<compile_context>
chip_gen: v7x
topology: tpu7x:2x2x1
jax: 0.10.0
libtpu: 0.0.40
codegen_flags: <defaults>
</compile_context>

<pallas_src>
import functools

import jax
import jax.numpy as jnp
from jax.experimental import pallas as pl
from jax.experimental.pallas import tpu as pltpu

LEAKY_SLOPE = 0.2
BN_EPS = 1e-5
MXU_DTYPE = jnp.bfloat16   # MXU-native on v5e/v6e/v7x; accumulation stays f32.

_VMEM = pl.BlockSpec(memory_space=pltpu.MemorySpace.VMEM)

CUBE_VERT = jnp.array(
    [[-1, -1, -1], [-1, -1, 1], [-1, 1, -1], [-1, 1, 1],
     [1, -1, -1], [1, -1, 1], [1, 1, -1], [1, 1, 1]], dtype=jnp.float32)

CUBE_FACE = jnp.array(
    [[0, 2, 3], [0, 3, 1], [0, 1, 2], [1, 3, 2],
     [4, 6, 7], [4, 7, 5], [4, 5, 6], [5, 7, 6],
     [0, 4, 5], [0, 5, 1], [0, 1, 4], [1, 5, 4],
     [2, 6, 7], [2, 7, 3], [2, 3, 6], [3, 7, 6],
     [0, 4, 6], [0, 6, 2], [0, 2, 4], [2, 6, 4],
     [1, 5, 7], [1, 7, 3], [1, 3, 5], [3, 7, 5]], dtype=jnp.float32)


def _leaky(x):
    return jnp.where(x >= 0, x, LEAKY_SLOPE * x)


def _mm(a, b):
    """Wide-contraction matmul on the MXU: bf16 operands, f32 accumulation."""
    return jnp.dot(a.astype(MXU_DTYPE), b.astype(MXU_DTYPE),
                   preferred_element_type=jnp.float32)


def _mm32(a, b):
    """Small / precision-sensitive matmul kept in f32."""
    return jnp.dot(a, b, preferred_element_type=jnp.float32)


# ----------------------------------------------------------------------------
# Kernel 1: kNN pairwise negative squared distance (single grid step, all B).
# ----------------------------------------------------------------------------
def _pdist_kernel(x_ref, out_ref):
    x = x_ref[...]                                                  # (B, N, C)
    sq = jnp.sum(x * x, axis=-1, keepdims=True)                     # (B, N, 1)
    inner = jnp.einsum("bnc,bmc->bnm", x, x,
                       preferred_element_type=jnp.float32)          # (B, N, N)
    # Column-broadcast of sq without a transpose: rank-1 batched outer product.
    ones_col = jnp.ones_like(sq)
    sq_j = jnp.einsum("bik,bjk->bij", ones_col, sq,
                      preferred_element_type=jnp.float32)           # (B, N, N)
    # pairwise[b, i, j] = -||x_i - x_j||^2   (matches -xx - inner - xx^T)
    out_ref[...] = 2.0 * inner - sq - sq_j


def pairwise_neg_sqdist(x_cl):
    B, N, _ = x_cl.shape
    return pl.pallas_call(
        _pdist_kernel,
        out_shape=jax.ShapeDtypeStruct((B, N, N), jnp.float32),
        in_specs=[_VMEM],
        out_specs=_VMEM,
    )(x_cl)


def knn(x_cl, k):
    dist = pairwise_neg_sqdist(x_cl)
    # TODO(synk): top-k neighbour selection stays in plain JAX (lax.top_k).
    _, idx = jax.lax.top_k(dist, k)
    return idx                                                      # (B, N, k)


def get_graph_feature_flat(x_cl, idx):
    # (B, N, C), (B, N, K) -> (B*N*K, 2C) rows = [neighbour - centre, centre],
    # pre-flattened in HBM so the EdgeConv kernels see a clean 2-D lane block.
    # TODO(synk): data-dependent neighbour gather stays in plain JAX.
    B, N, C = x_cl.shape
    K = idx.shape[-1]
    nbr = jax.vmap(lambda xb, ib: xb[ib])(x_cl, idx)                # (B, N, K, C)
    centre = jnp.broadcast_to(x_cl[:, :, None, :], nbr.shape)
    feat = jnp.concatenate([nbr - centre, centre], axis=-1)         # (B, N, K, 2C)
    return feat.reshape(B * N * K, 2 * C)


# ----------------------------------------------------------------------------
# Kernel 2: EdgeConv block 1 (two 1x1 convs w/ folded BN + LeakyReLU, max over K)
# ----------------------------------------------------------------------------
def _edge_block_kernel(feat_ref, w1_ref, b1_ref, w2_ref, b2_ref, out_ref,
                       *, rows_per_point):
    n_points, cout = out_ref.shape
    h = _leaky(_mm(feat_ref[...], w1_ref[...]) + b1_ref[...])
    h = _leaky(_mm(h, w2_ref[...]) + b2_ref[...])                   # (rows, cout)
    out_ref[...] = jnp.max(h.reshape(n_points, rows_per_point, cout), axis=1)


def edge_block(feat_flat, w1, b1, w2, b2, *, n_points, k):
    cout = w2.shape[1]
    kern = functools.partial(_edge_block_kernel, rows_per_point=k)
    return pl.pallas_call(
        kern,
        out_shape=jax.ShapeDtypeStruct((n_points, cout), jnp.float32),
        in_specs=[_VMEM] * 5,
        out_specs=_VMEM,
    )(feat_flat, w1, b1, w2, b2)


# ----------------------------------------------------------------------------
# Kernel 3: EdgeConv block 2 + concat + conv3 + global max + VAE head +
#           enc_cuboid_vec + conv_cuboid, fused in one call.
# ----------------------------------------------------------------------------
def _encode_kernel(feat2_ref, x1_ref, w2a_ref, b2a_ref, w2b_ref, b2b_ref,
                   w3_ref, b3_ref, wmu_ref, bmu_ref, wvar_ref, bvar_ref,
                   eps_ref, cvw_ref, wc1z_ref, wc1c_ref, wc2_ref,
                   xper_ref, xcub_ref, mu_ref, logvar_ref, z_ref,
                   *, B, N, K):
    # EdgeConv block 2 on pre-flattened graph features, then max over K.
    h = _leaky(_mm(feat2_ref[...], w2a_ref[...]) + b2a_ref[...])    # (B*N*K, 64)
    h = _leaky(_mm(h, w2b_ref[...]) + b2b_ref[...])
    x2 = jnp.max(h.reshape(B * N, K, h.shape[-1]), axis=1)          # (B*N, 64)

    # x_per = cat(x1, x2): one 128-lane-dense store.
    x_per = jnp.concatenate([x1_ref[...], x2], axis=-1)             # (B*N, 128)
    xper_ref[...] = x_per

    # conv3 (+ folded BN, LeakyReLU) then global max over points per batch.
    g = _leaky(_mm(x_per, w3_ref[...]) + b3_ref[...])               # (B*N, emb)
    xg = jnp.max(g.reshape(B, N, g.shape[-1]), axis=1)              # (B, emb)

    # VAE head: fc_mu / fc_var / reparameterize (eps supplied by caller).
    mu = _mm32(xg, wmu_ref[...]) + bmu_ref[...]
    lv = _mm32(xg, wvar_ref[...]) + bvar_ref[...]
    z = eps_ref[...] * jnp.exp(0.5 * lv) + mu
    mu_ref[...] = mu
    logvar_ref[...] = lv
    z_ref[...] = z

    # enc_cuboid_vec(eye(num_cuboid)) == LeakyReLU(W_enc^T)  (bias-free conv).
    cv = _leaky(cvw_ref[...])                                       # (nc, 64)
    nc = cv.shape[0]
    # conv_cuboid layer 1 split into z rows + cuboid-vec rows, so the
    # broadcast-concat (B*nc, zd+64) tensor is never materialized.
    hz = _mm32(z, wc1z_ref[...])                                    # (B, 256)
    hc = _mm(cv, wc1c_ref[...])                                     # (nc, 256)
    h1 = _leaky(hz[:, None, :] + hc[None, :, :])                    # (B, nc, 256)
    xc = _leaky(_mm(h1.reshape(B * nc, h1.shape[-1]), wc2_ref[...]))
    xcub_ref[...] = xc                                              # (B*nc, 128)


# ----------------------------------------------------------------------------
# Kernel 4: Para_pred heads + Attention_module + pc_assign_mean, fused.
# ----------------------------------------------------------------------------
def _decode_kernel(xper_ref, xcub_ref, pca_ref, wq_ref, wk_ref,
                   wsc_ref, bsc_ref, wrt_ref, brt_ref, wtr_ref, btr_ref,
                   we1_ref, be1_ref, we2_ref, be2_ref,
                   scale_ref, quat_ref, trans_ref, exist_ref,
                   assign_ref, pam_ref,
                   *, B, N, num_cuboid, attention_dim):
    xc = xcub_ref[...]                                              # (B*nc, 128)

    # ---- Para_pred heads (1x1 Conv1d == matmul over the channel/lane dim) ----
    scale_ref[...] = jax.nn.sigmoid(_mm(xc, wsc_ref[...]) + bsc_ref[...])
    q_raw = _mm(xc, wrt_ref[...]) + brt_ref[...]                    # (B*nc, 4)
    q_norm = jnp.sqrt(jnp.sum(q_raw * q_raw, axis=-1, keepdims=True))
    quat_ref[...] = q_raw / jnp.maximum(q_norm, 1e-12)              # F.normalize
    trans_ref[...] = jnp.tanh(_mm(xc, wtr_ref[...]) + btr_ref[...])
    he = _leaky(_mm(xc, we1_ref[...]) + be1_ref[...])               # (B*nc, 32)
    exist_ref[...] = _mm32(he, we2_ref[...]) + be2_ref[...]         # (B*nc, 1)

    # ---- Attention_module ----
    xp = xper_ref[...]                                              # (B*N, 128)
    q = _mm(xp, wq_ref[...]) * (1.0 / (attention_dim ** 0.5))       # (B*N, att)
    kk = _mm(xc, wk_ref[...])                                       # (B*nc, att)
    scores = jnp.einsum("bna,bca->bnc",
                        q.reshape(B, N, attention_dim),
                        kk.reshape(B, num_cuboid, attention_dim),
                        preferred_element_type=jnp.float32)         # (B, N, nc)
    m = jnp.max(scores, axis=-1, keepdims=True)
    e = jnp.exp(scores - m)
    assign = e / jnp.sum(e, axis=-1, keepdims=True)                 # softmax(nc)
    assign_ref[...] = assign

    # ---- pc_assign_mean = (assign^T @ [pc, 1]) with the "+1" denominator ----
    nd = jnp.einsum("bnc,bnj->bcj", assign, pca_ref[...],
                    preferred_element_type=jnp.float32)             # (B, nc, 4)
    pam_ref[...] = nd[:, :, 0:3] / (nd[:, :, 3:4] + 1.0)


# ----------------------------------------------------------------------------
# quat2mat + cuboid vertex assembly (tiny elementwise math, plain JAX/XLA).
# ----------------------------------------------------------------------------
def quat2mat(quat):
    # TODO(synk): quat2mat is not defined in the reference file; this is the
    # standard (w, x, y, z) unit-quaternion -> rotation-matrix conversion
    # (bias [1,0,0,0] -> identity rotation).
    w, x, y, z = quat[..., 0], quat[..., 1], quat[..., 2], quat[..., 3]
    rot = jnp.stack([
        1 - 2 * (y * y + z * z), 2 * (x * y - w * z), 2 * (x * z + w * y),
        2 * (x * y + w * z), 1 - 2 * (x * x + z * z), 2 * (y * z - w * x),
        2 * (x * z - w * y), 2 * (y * z + w * x), 1 - 2 * (x * x + y * y),
    ], axis=-1)
    return rot.reshape(quat.shape[:-1] + (3, 3))


# ----------------------------------------------------------------------------
# Parameters (deterministic synthetic init; BN scale folded into conv weights)
# ----------------------------------------------------------------------------
def init_params(key, emb_dims, z_dims, num_cuboid, attention_dim):
    ks = iter(jax.random.split(key, 64))

    def W(shape, scale=0.2):
        return (scale * jax.random.normal(next(ks), shape)).astype(jnp.float32)

    def bn_fold(w):
        # Eval-mode BatchNorm folded into the preceding (Cin, Cout) conv weight.
        c = w.shape[1]
        gamma = 1.0 + 0.1 * jax.random.normal(next(ks), (c,))
        beta = 0.1 * jax.random.normal(next(ks), (c,))
        mean = 0.1 * jax.random.normal(next(ks), (c,))
        var = jax.random.uniform(next(ks), (c,), minval=0.5, maxval=1.5)
        s = (gamma / jnp.sqrt(var + BN_EPS)).astype(jnp.float32)
        shift = (beta - mean * s).astype(jnp.float32)
        return (w * s[None, :]).astype(jnp.float32), shift[None, :]

    p = {}
    # Feature_extract (conv1/conv2/conv3 are bias-free, BN folded).
    p["w1a"], p["b1a"] = bn_fold(W((6, 64)))
    p["w1b"], p["b1b"] = bn_fold(W((64, 64)))
    p["w2a"], p["b2a"] = bn_fold(W((128, 64)))
    p["w2b"], p["b2b"] = bn_fold(W((64, 64)))
    p["w3"], p["b3"] = bn_fold(W((128, emb_dims)))
    p["wmu"], p["bmu"] = W((emb_dims, z_dims)), W((1, z_dims))
    p["wvar"], p["bvar"] = W((emb_dims, z_dims)), W((1, z_dims))
    # enc_cuboid_vec weight stored transposed (num_cuboid, 64): applied to the
    # identity cuboid_vector, the bias-free Conv1d reduces to the weight itself.
    p["wenc_t"] = W((num_cuboid, 64))
    # conv_cuboid layer 1 split into z rows / cuboid-vec rows; layer 2 intact.
    p["wc1_z"] = W((z_dims, 256))
    p["wc1_c"] = W((64, 256))
    p["wc2"] = W((256, 128))
    # Attention_module (bias-free 1x1 convs).
    p["wq"] = W((128, attention_dim))
    p["wk"] = W((128, attention_dim))
    # Para_pred heads (biases as in the reference init).
    p["w_scale"], p["b_scale"] = W((128, 3)), jnp.zeros((1, 3), jnp.float32)
    p["w_rot"], p["b_rot"] = W((128, 4)), jnp.array([[1.0, 0.0, 0.0, 0.0]],
                                                    jnp.float32)
    p["w_trans"], p["b_trans"] = W((128, 3)), jnp.zeros((1, 3), jnp.float32)
    p["w_ext1"], p["b_ext1"] = W((128, 32)), W((1, 32))
    p["w_ext2"], p["b_ext2"] = W((32, 1)), W((1, 1))
    return p


# ----------------------------------------------------------------------------
# Forward (mirrors Network_Whole.forward)
# ----------------------------------------------------------------------------
def network_whole_forward(pc, params, eps, *, k, low_dim_idx):
    B, N, _ = pc.shape
    z_dims = params["wmu"].shape[1]
    num_cuboid = params["wenc_t"].shape[0]
    attention_dim = params["wq"].shape[1]
    x_cl = pc.astype(jnp.float32)                                   # (B, N, 3)

    # ----------------------------- Feature_extract ---------------------------
    idx = knn(x_cl, k)                                              # (B, N, k)
    feat1 = get_graph_feature_flat(x_cl, idx)                       # (B*N*k, 6)
    x1_flat = edge_block(feat1, params["w1a"], params["b1a"],
                         params["w1b"], params["b1b"],
                         n_points=B * N, k=k)                       # (B*N, 64)
    x1 = x1_flat.reshape(B, N, 64)

    idx2 = idx if low_dim_idx == 1 else knn(x1, k)
    feat2 = get_graph_feature_flat(x1, idx2)                        # (B*N*k, 128)

    enc = functools.partial(_encode_kernel, B=B, N=N, K=k)
    x_per_flat, x_cuboid_flat, mu, log_var, z = pl.pallas_call(
        enc,
        out_shape=(
            jax.ShapeDtypeStruct((B * N, 128), jnp.float32),
            jax.ShapeDtypeStruct((B * num_cuboid, 128), jnp.float32),
            jax.ShapeDtypeStruct((B, z_dims), jnp.float32),
            jax.ShapeDtypeStruct((B, z_dims), jnp.float32),
            jax.ShapeDtypeStruct((B, z_dims), jnp.float32),
        ),
        in_specs=[_VMEM] * 17,
        out_specs=(_VMEM,) * 5,
    )(feat2, x1_flat, params["w2a"], params["b2a"], params["w2b"],
      params["b2b"], params["w3"], params["b3"], params["wmu"], params["bmu"],
      params["wvar"], params["bvar"], eps, params["wenc_t"], params["wc1_z"],
      params["wc1_c"], params["wc2"])

    # ----------------------- Para_pred + Attention_module --------------------
    pc_aug = jnp.concatenate([x_cl, jnp.ones((B, N, 1), jnp.float32)], axis=-1)
    dec = functools.partial(_decode_kernel, B=B, N=N, num_cuboid=num_cuboid,
                            attention_dim=attention_dim)
    (scale_f, quat_f, trans_f, exist_f, assign_matrix,
     pc_assign_mean) = pl.pallas_call(
        dec,
        out_shape=(
            jax.ShapeDtypeStruct((B * num_cuboid, 3), jnp.float32),
            jax.ShapeDtypeStruct((B * num_cuboid, 4), jnp.float32),
            jax.ShapeDtypeStruct((B * num_cuboid, 3), jnp.float32),
            jax.ShapeDtypeStruct((B * num_cuboid, 1), jnp.float32),
            jax.ShapeDtypeStruct((B, N, num_cuboid), jnp.float32),
            jax.ShapeDtypeStruct((B, num_cuboid, 3), jnp.float32),
        ),
        in_specs=[_VMEM] * 15,
        out_specs=(_VMEM,) * 6,
    )(x_per_flat, x_cuboid_flat, pc_aug, params["wq"], params["wk"],
      params["w_scale"], params["b_scale"], params["w_rot"], params["b_rot"],
      params["w_trans"], params["b_trans"], params["w_ext1"], params["b_ext1"],
      params["w_ext2"], params["b_ext2"])

    scale = scale_f.reshape(B, num_cuboid, 3)
    quat = quat_f.reshape(B, num_cuboid, 4)
    trans = trans_f.reshape(B, num_cuboid, 3)
    exist = exist_f.reshape(B, num_cuboid, 1)

    # Cuboid vertex assembly: tiny (...,3,3)/(...,8,3) elementwise math, left
    # to plain JAX/XLA (no lane-friendly Pallas layout).
    rotate = quat2mat(quat)                                         # (B, nc, 3, 3)
    verts_scaled = CUBE_VERT[None, None] * scale[:, :, None, :]     # (B, nc, 8, 3)
    verts_rot = jnp.einsum("bcij,bcvj->bcvi", rotate, verts_scaled)
    verts_forward = verts_rot + pc_assign_mean[:, :, None, :]
    verts_predict = (verts_forward - pc_assign_mean[:, :, None, :]
                     + trans[:, :, None, :])

    x_cuboid = jnp.transpose(
        x_cuboid_flat.reshape(B, num_cuboid, 128), (0, 2, 1))       # (B, 128, nc)

    return {
        "scale": scale, "rotate": rotate, "trans": trans,
        "pc_assign_mean": pc_assign_mean, "assign_matrix": assign_matrix,
        "verts_forward": verts_forward, "verts_predict": verts_predict,
        "cube_face": CUBE_FACE, "x_cuboid": x_cuboid, "exist": exist,
        "z": z[..., None], "mu": mu, "log_var": log_var,
    }


if __name__ == "__main__":
    B, N, K = 2, 32, 8
    emb_dims, z_dims, num_cuboid, attention_dim, low_dim_idx = 64, 16, 8, 32, 1

    key = jax.random.PRNGKey(0)
    kp, kx, ke = jax.random.split(key, 3)
    params = init_params(kp, emb_dims, z_dims, num_cuboid, attention_dim)
    pc = jax.random.normal(kx, (B, N, 3), dtype=jnp.float32)
    # TODO(synk): reparameterize's randn_like noise is drawn outside the kernel.
    eps = jax.random.normal(ke, (B, z_dims), dtype=jnp.float32)

    fwd = jax.jit(functools.partial(network_whole_forward, k=K,
                                    low_dim_idx=low_dim_idx))
    out = jax.block_until_ready(fwd(pc, params, eps))

    assert out["scale"].shape == (B, num_cuboid, 3)
    assert out["rotate"].shape == (B, num_cuboid, 3, 3)
    assert out["trans"].shape == (B, num_cuboid, 3)
    assert out["exist"].shape == (B, num_cuboid, 1)
    assert out["assign_matrix"].shape == (B, N, num_cuboid)
    assert out["pc_assign_mean"].shape == (B, num_cuboid, 3)
    assert out["verts_forward"].shape == (B, num_cuboid, 8, 3)
    assert out["verts_predict"].shape == (B, num_cuboid, 8, 3)
    assert out["x_cuboid"].shape == (B, 128, num_cuboid)
    assert out["z"].shape == (B, z_dims, 1)
    assert out["mu"].shape == (B, z_dims) and out["log_var"].shape == (B, z_dims)
    assert out["cube_face"].shape == (24, 3)
    assert all(bool(jnp.all(jnp.isfinite(v)))
               for v in jax.tree_util.tree_leaves(out))
    assert bool(jnp.allclose(out["assign_matrix"].sum(-1), 1.0, atol=1e-3))
    print("KERNEL_OK")
</pallas_src>

<mosaic_0001>
module attributes {stable_mosaic.version = 11 : i64} {
  func.func @_pdist_kernel(%arg0: memref<2x32x3xf32, #tpu.memory_space<vmem>>, %arg1: memref<2x32x32xf32, #tpu.memory_space<vmem>>) attributes {dimension_semantics = [], scalar_prefetch = 0 : i64, scratch_operands = 0 : i64, tpu.core_type = #tpu.core_type<tc>} {
    %c0 = arith.constant 0 : index
    %c0_0 = arith.constant 0 : index
    %c0_1 = arith.constant 0 : index
    %0 = vector.load %arg0[%c0, %c0_0, %c0_1] : memref<2x32x3xf32, #tpu.memory_space<vmem>>, vector<2x32x3xf32>
    %1 = arith.mulf %0, %0 : vector<2x32x3xf32>
    %cst = arith.constant dense<0.000000e+00> : vector<2x32xf32>
    %2 = vector.multi_reduction <add>, %1, %cst [2] : vector<2x32x3xf32> to vector<2x32xf32>
    %3 = vector.shape_cast %2 : vector<2x32xf32> to vector<2x32x1xf32>
    "tpu.trace_start"() <{level = 10 : i32, message = "bnc,bmc->bnm"}> : () -> ()
    %cst_2 = arith.constant dense<0.000000e+00> : vector<2x32x32xf32>
    %4 = tpu.matmul %0, %0, %cst_2 {dimension_numbers = #tpu.dot_dimension_numbers<[2], [2], [1], [1], [0, 0, 0, 1, 1, 1], [0], [0]>} : vector<2x32x3xf32>, vector<2x32x3xf32>, vector<2x32x32xf32> -> vector<2x32x32xf32>
    %cst_3 = arith.constant 1.000000e+00 : f32
    "tpu.trace_stop"() : () -> ()
    %5 = vector.broadcast %cst_3 : f32 to vector<2x32x1xf32>
    "tpu.trace_start"() <{level = 10 : i32, message = "bik,bjk->bij"}> : () -> ()
    %cst_4 = arith.constant dense<0.000000e+00> : vector<2x32x32xf32>
    %6 = tpu.matmul %5, %3, %cst_4 {dimension_numbers = #tpu.dot_dimension_numbers<[2], [2], [1], [1], [0, 0, 0, 1, 1, 1], [0], [0]>} : vector<2x32x1xf32>, vector<2x32x1xf32>, vector<2x32x32xf32> -> vector<2x32x32xf32>
    "tpu.trace_stop"() : () -> ()
    %cst_5 = arith.constant 2.000000e+00 : f32
    %7 = vector.broadcast %cst_5 : f32 to vector<2x32x32xf32>
    %8 = arith.mulf %7, %4 : vector<2x32x32xf32>
    %9 = vector.broadcast %3 : vector<2x32x1xf32> to vector<2x32x32xf32>
    %10 = arith.subf %8, %9 : vector<2x32x32xf32>
    %11 = arith.subf %10, %6 : vector<2x32x32xf32>
    %c0_6 = arith.constant 0 : index
    %c0_7 = arith.constant 0 : index
    %c0_8 = arith.constant 0 : index
    %12 = vector.load %arg1[%c0_6, %c0_7, %c0_8] : memref<2x32x32xf32, #tpu.memory_space<vmem>>, vector<2x32x32xf32>
    tpu.vector_store %arg1[%c0_6, %c0_7, %c0_8], %11 {strides = array<i32>} : memref<2x32x32xf32, #tpu.memory_space<vmem>>, vector<2x32x32xf32>,
    return
  }
}

module attributes {stable_mosaic.version = 11 : i64} {
  func.func @_edge_block_kernel(%arg0: memref<512x6xf32, #tpu.memory_space<vmem>>, %arg1: memref<6x64xf32, #tpu.memory_space<vmem>>, %arg2: memref<1x64xf32, #tpu.memory_space<vmem>>, %arg3: memref<64x64xf32, #tpu.memory_space<vmem>>, %arg4: memref<1x64xf32, #tpu.memory_space<vmem>>, %arg5: memref<64x64xf32, #tpu.memory_space<vmem>>) attributes {dimension_semantics = [], scalar_prefetch = 0 : i64, scratch_operands = 0 : i64, tpu.core_type = #tpu.core_type<tc>} {
    %c0 = arith.constant 0 : index
    %c0_0 = arith.constant 0 : index
    %0 = vector.load %arg0[%c0, %c0_0] : memref<512x6xf32, #tpu.memory_space<vmem>>, vector<512x6xf32>
    %c0_1 = arith.constant 0 : index
    %c0_2 = arith.constant 0 : index
    %1 = vector.load %arg1[%c0_1, %c0_2] : memref<6x64xf32, #tpu.memory_space<vmem>>, vector<6x64xf32>
    %2 = arith.truncf %0 : vector<512x6xf32> to vector<512x6xbf16>
    %3 = arith.truncf %1 : vector<6x64xf32> to vector<6x64xbf16>
    %cst = arith.constant dense<0.000000e+00> : vector<512x64xf32>
    %4 = tpu.matmul %2, %3, %cst {dimension_numbers = #tpu.dot_dimension_numbers<[1], [0], [0], [1], [0, 0, 1, 1], [], []>} : vector<512x6xbf16>, vector<6x64xbf16>, vector<512x64xf32> -> vector<512x64xf32>
    %c0_3 = arith.constant 0 : index
    %c0_4 = arith.constant 0 : index
    %5 = vector.load %arg2[%c0_3, %c0_4] : memref<1x64xf32, #tpu.memory_space<vmem>>, vector<1x64xf32>
    %6 = vector.broadcast %5 : vector<1x64xf32> to vector<512x64xf32>
    %7 = arith.addf %4, %6 : vector<512x64xf32>
    %cst_5 = arith.constant 0.000000e+00 : f32
    %8 = vector.broadcast %cst_5 : f32 to vector<512x64xf32>
    %9 = arith.cmpf oge, %7, %8 : vector<512x64xf32>
    %cst_6 = arith.constant 2.000000e-01 : f32
    %10 = vector.broadcast %cst_6 : f32 to vector<512x64xf32>
    %11 = arith.mulf %10, %7 : vector<512x64xf32>
    %12 = arith.select %9, %7, %11 : vector<512x64xi1>, vector<512x64xf32>
    %c0_7 = arith.constant 0 : index
    %c0_8 = arith.constant 0 : index
    %13 = vector.load %arg3[%c0_7, %c0_8] : memref<64x64xf32, #tpu.memory_space<vmem>>, vector<64x64xf32>
    %14 = arith.truncf %12 : vector<512x64xf32> to vector<512x64xbf16>
    %15 = arith.truncf %13 : vector<64x64xf32> to vector<64x64xbf16>
    %cst_9 = arith.constant dense<0.000000e+00> : vector<512x64xf32>
    %16 = tpu.matmul %14, %15, %cst_9 {dimension_numbers = #tpu.dot_dimension_numbers<[1], [0], [0], [1], [0, 0, 1, 1], [], []>} : vector<512x64xbf16>, vector<64x64xbf16>, vector<512x64xf32> -> vector<512x64xf32>
    %c0_10 = arith.constant 0 : index
    %c0_11 = arith.constant 0 : index
    %17 = vector.load %arg4[%c0_10, %c0_11] : memref<1x64xf32, #tpu.memory_space<vmem>>, vector<1x64xf32>
    %18 = vector.broadcast %17 : vector<1x64xf32> to vector<512x64xf32>
    %19 = arith.addf %16, %18 : vector<512x64xf32>
    %cst_12 = arith.constant 0.000000e+00 : f32
    %20 = vector.broadcast %cst_12 : f32 to vector<512x64xf32>
    %21 = arith.cmpf oge, %19, %20 : vector<512x64xf32>
    %cst_13 = arith.constant 2.000000e-01 : f32
    %22 = vector.broadcast %cst_13 : f32 to vector<512x64xf32>
    %23 = arith.mulf %22, %19 : vector<512x64xf32>
    %24 = arith.select %21, %19, %23 : vector<512x64xi1>, vector<512x64xf32>
    %25 = vector.shape_cast %24 : vector<512x64xf32> to vector<64x8x64xf32>
    %cst_14 = arith.constant dense<0xFF800000> : vector<64x64xf32>
    %26 = vector.multi_reduction <maximumf>, %25, %cst_14 [1] : vector<64x8x64xf32> to vector<64x64xf32>
    %c0_15 = arith.constant 0 : index
    %c0_16 = arith.constant 0 : index
    %27 = vector.load %arg5[%c0_15, %c0_16] : memref<64x64xf32, #tpu.memory_space<vmem>>, vector<64x64xf32>
    tpu.vector_store %arg5[%c0_15, %c0_16], %26 {strides = array<i32>} : memref<64x64xf32, #tpu.memory_space<vmem>>, vector<64x64xf32>,
    return
  }
}

module attributes {stable_mosaic.version = 11 : i64} {
  func.func @_encode_kernel(%arg0: memref<512x128xf32, #tpu.memory_space<vmem>>, %arg1: memref<64x64xf32, #tpu.memory_space<vmem>>, %arg2: memref<128x64xf32, #tpu.memory_space<vmem>>, %arg3: memref<1x64xf32, #tpu.memory_space<vmem>>, %arg4: memref<64x64xf32, #tpu.memory_space<vmem>>, %arg5: memref<1x64xf32, #tpu.memory_space<vmem>>, %arg6: memref<128x64xf32, #tpu.memory_space<vmem>>, %arg7: memref<1x64xf32, #tpu.memory_space<vmem>>, %arg8: memref<64x16xf32, #tpu.memory_space<vmem>>, %arg9: memref<1x16xf32, #tpu.memory_space<vmem>>, %arg10: memref<64x16xf32, #tpu.memory_space<vmem>>, %arg11: memref<1x16xf32, #tpu.memory_space<vmem>>, %arg12: memref<2x16xf32, #tpu.memory_space<vmem>>, %arg13: memref<8x64xf32, #tpu.memory_space<vmem>>, %arg14: memref<16x256xf32, #tpu.memory_space<vmem>>, %arg15: memref<64x256xf32, #tpu.memory_space<vmem>>, %arg16: memref<256x128xf32, #tpu.memory_space<vmem>>, %arg17: memref<64x128xf32, #tpu.memory_space<vmem>>, %arg18: memref<16x128xf32, #tpu.memory_space<vmem>>, %arg19: memref<2x16xf32, #tpu.memory_space<vmem>>, %arg20: memref<2x16xf32, #tpu.memory_space<vmem>>, %arg21: memref<2x16xf32, #tpu.memory_space<vmem>>) attributes {dimension_semantics = [], scalar_prefetch = 0 : i64, scratch_operands = 0 : i64, tpu.core_type = #tpu.core_type<tc>} {
    %c0 = arith.constant 0 : index
    %c0_0 = arith.constant 0 : index
    %0 = vector.load %arg0[%c0, %c0_0] : memref<512x128xf32, #tpu.memory_space<vmem>>, vector<512x128xf32>
    %c0_1 = arith.constant 0 : index
    %c0_2 = arith.constant 0 : index
    %1 = vector.load %arg2[%c0_1, %c0_2] : memref<128x64xf32, #tpu.memory_space<vmem>>, vector<128x64xf32>
    %2 = arith.truncf %0 : vector<512x128xf32> to vector<512x128xbf16>
    %3 = arith.truncf %1 : vector<128x64xf32> to vector<128x64xbf16>
    %cst = arith.constant dense<0.000000e+00> : vector<512x64xf32>
    %4 = tpu.matmul %2, %3, %cst {dimension_numbers = #tpu.dot_dimension_numbers<[1], [0], [0], [1], [0, 0, 1, 1], [], []>} : vector<512x128xbf16>, vector<128x64xbf16>, vector<512x64xf32> -> vector<512x64xf32>
    %c0_3 = arith.constant 0 : index
    %c0_4 = arith.constant 0 : index
    %5 = vector.load %arg3[%c0_3, %c0_4] : memref<1x64xf32, #tpu.memory_space<vmem>>, vector<1x64xf32>
    %6 = vector.broadcast %5 : vector<1x64xf32> to vector<512x64xf32>
    %7 = arith.addf %4, %6 : vector<512x64xf32>
    %cst_5 = arith.constant 0.000000e+00 : f32
    %8 = vector.broadcast %cst_5 : f32 to vector<512x64xf32>
    %9 = arith.cmpf oge, %7, %8 : vector<512x64xf32>
    %cst_6 = arith.constant 2.000000e-01 : f32
    %10 = vector.broadcast %cst_6 : f32 to vector<512x64xf32>
    %11 = arith.mulf %10, %7 : vector<512x64xf32>
    %12 = arith.select %9, %7, %11 : vector<512x64xi1>, vector<512x64xf32>
    %c0_7 = arith.constant 0 : index
    %c0_8 = arith.constant 0 : index
    %13 = vector.load %arg4[%c0_7, %c0_8] : memref<64x64xf32, #tpu.memory_space<vmem>>, vector<64x64xf32>
    %14 = arith.truncf %12 : vector<512x64xf32> to vector<512x64xbf16>
    %15 = arith.truncf %13 : vector<64x64xf32> to vector<64x64xbf16>
    %cst_9 = arith.constant dense<0.000000e+00> : vector<512x64xf32>
    %16 = tpu.matmul %14, %15, %cst_9 {dimension_numbers = #tpu.dot_dimension_numbers<[1], [0], [0], [1], [0, 0, 1, 1], [], []>} : vector<512x64xbf16>, vector<64x64xbf16>, vector<512x64xf32> -> vector<512x64xf32>
    %c0_10 = arith.constant 0 : index
    %c0_11 = arith.constant 0 : index
    %17 = vector.load %arg5[%c0_10, %c0_11] : memref<1x64xf32, #tpu.memory_space<vmem>>, vector<1x64xf32>
    %18 = vector.broadcast %17 : vector<1x64xf32> to vector<512x64xf32>
    %19 = arith.addf %16, %18 : vector<512x64xf32>
    %cst_12 = arith.constant 0.000000e+00 : f32
    %20 = vector.broadcast %cst_12 : f32 to vector<512x64xf32>
    %21 = arith.cmpf oge, %19, %20 : vector<512x64xf32>
    %cst_13 = arith.constant 2.000000e-01 : f32
    %22 = vector.broadcast %cst_13 : f32 to vector<512x64xf32>
    %23 = arith.mulf %22, %19 : vector<512x64xf32>
    %24 = arith.select %21, %19, %23 : vector<512x64xi1>, vector<512x64xf32>
    %25 = vector.shape_cast %24 : vector<512x64xf32> to vector<64x8x64xf32>
    %cst_14 = arith.constant dense<0xFF800000> : vector<64x64xf32>
    %26 = vector.multi_reduction <maximumf>, %25, %cst_14 [1] : vector<64x8x64xf32> to vector<64x64xf32>
    %c0_15 = arith.constant 0 : index
    %c0_16 = arith.constant 0 : index
    %27 = vector.load %arg1[%c0_15, %c0_16] : memref<64x64xf32, #tpu.memory_space<vmem>>, vector<64x64xf32>
    %28 = tpu.concatenate %27, %26 in 1 : vector<64x64xf32>, vector<64x64xf32> -> vector<64x128xf32>
    %c0_17 = arith.constant 0 : index
    %c0_18 = arith.constant 0 : index
    %29 = vector.load %arg17[%c0_17, %c0_18] : memref<64x128xf32, #tpu.memory_space<vmem>>, vector<64x128xf32>
    tpu.vector_store %arg17[%c0_17, %c0_18], %28 {strides = array<i32>} : memref<64x128xf32, #tpu.memory_space<vmem>>, vector<64x128xf32>,
    %c0_19 = arith.constant 0 : index
    %c0_20 = arith.constant 0 : index
    %30 = vector.load %arg6[%c0_19, %c0_20] : memref<128x64xf32, #tpu.memory_space<vmem>>, vector<128x64xf32>
    %31 = arith.truncf %28 : vector<64x128xf32> to vector<64x128xbf16>
    %32 = arith.truncf %30 : vector<128x64xf32> to vector<128x64xbf16>
    %cst_21 = arith.constant dense<0.000000e+00> : vector<64x64xf32>
    %33 = tpu.matmul %31, %32, %cst_21 {dimension_numbers = #tpu.dot_dimension_numbers<[1], [0], [0], [1], [0, 0, 1, 1], [], []>} : vector<64x128xbf16>, vector<128x64xbf16>, vector<64x64xf32> -> vector<64x64xf32>
    %c0_22 = arith.constant 0 : index
    %c0_23 = arith.constant 0 : index
    %34 = vector.load %arg7[%c0_22, %c0_23] : memref<1x64xf32, #tpu.memory_space<vmem>>, vector<1x64xf32>
    %35 = vector.broadcast %34 : vector<1x64xf32> to vector<64x64xf32>
    %36 = arith.addf %33, %35 : vector<64x64xf32>
    %cst_24 = arith.constant 0.000000e+00 : f32
    %37 = vector.broadcast %cst_24 : f32 to vector<64x64xf32>
    %38 = arith.cmpf oge, %36, %37 : vector<64x64xf32>
    %cst_25 = arith.constant 2.000000e-01 : f32
    %39 = vector.broadcast %cst_25 : f32 to vector<64x64xf32>
    %40 = arith.mulf %39, %36 : vector<64x64xf32>
    %41 = arith.select %38, %36, %40 : vector<64x64xi1>, vector<64x64xf32>
    %42 = vector.shape_cast %41 : vector<64x64xf32> to vector<2x32x64xf32>
    %cst_26 = arith.constant dense<0xFF800000> : vector<2x64xf32>
    %43 = vector.multi_reduction <maximumf>, %42, %cst_26 [1] : vector<2x32x64xf32> to vector<2x64xf32>
    %c0_27 = arith.constant 0 : index
    %c0_28 = arith.constant 0 : index
    %44 = vector.load %arg8[%c0_27, %c0_28] : memref<64x16xf32, #tpu.memory_space<vmem>>, vector<64x16xf32>
    %cst_29 = arith.constant dense<0.000000e+00> : vector<2x16xf32>
    %45 = tpu.matmul %43, %44, %cst_29 {dimension_numbers = #tpu.dot_dimension_numbers<[1], [0], [0], [1], [0, 0, 1, 1], [], []>} : vector<2x64xf32>, vector<64x16xf32>, vector<2x16xf32> -> vector<2x16xf32>
    %c0_30 = arith.constant 0 : index
    %c0_31 = arith.constant 0 : index
    %46 = vector.load %arg9[%c0_30, %c0_31] : memref<1x16xf32, #tpu.memory_space<vmem>>, vector<1x16xf32>
    %47 = vector.broadcast %46 : vector<1x16xf32> to vector<2x16xf32>
    %48 = arith.addf %45, %47 : vector<2x16xf32>
    %c0_32 = arith.constant 0 : index
    %c0_33 = arith.constant 0 : index
    %49 = vector.load %arg10[%c0_32, %c0_33] : memref<64x16xf32, #tpu.memory_space<vmem>>, vector<64x16xf32>
    %cst_34 = arith.constant dense<0.000000e+00> : vector<2x16xf32>
    %50 = tpu.matmul %43, %49, %cst_34 {dimension_numbers = #tpu.dot_dimension_numbers<[1], [0], [0], [1], [0, 0, 1, 1], [], []>} : vector<2x64xf32>, vector<64x16xf32>, vector<2x16xf32> -> vector<2x16xf32>
    %c0_35 = arith.constant 0 : index
    %c0_36 = arith.constant 0 : index
    %51 = vector.load %arg11[%c0_35, %c0_36] : memref<1x16xf32, #tpu.memory_space<vmem>>, vector<1x16xf32>
    %52 = vector.broadcast %51 : vector<1x16xf32> to vector<2x16xf32>
    %53 = arith.addf %50, %52 : vector<2x16xf32>
    %c0_37 = arith.constant 0 : index
    %c0_38 = arith.constant 0 : index
    %54 = vector.load %arg12[%c0_37, %c0_38] : memref<2x16xf32, #tpu.memory_space<vmem>>, vector<2x16xf32>
    %cst_39 = arith.constant 5.000000e-01 : f32
    %55 = vector.broadcast %cst_39 : f32 to vector<2x16xf32>
    %56 = arith.mulf %55, %53 : vector<2x16xf32>
    %57 = math.exp %56 : vector<2x16xf32>
    %58 = arith.mulf %54, %57 : vector<2x16xf32>
    %59 = arith.addf %58, %48 : vector<2x16xf32>
    %c0_40 = arith.constant 0 : index
    %c0_41 = arith.constant 0 : index
    %60 = vector.load %arg19[%c0_40, %c0_41] : memref<2x16xf32, #tpu.memory_space<vmem>>, vector<2x16xf32>
    tpu.vector_store %arg19[%c0_40, %c0_41], %48 {strides = array<i32>} : memref<2x16xf32, #tpu.memory_space<vmem>>, vector<2x16xf32>,
    %c0_42 = arith.constant 0 : index
    %c0_43 = arith.constant 0 : index
    %61 = vector.load %arg20[%c0_42, %c0_43] : memref<2x16xf32, #tpu.memory_space<vmem>>, vector<2x16xf32>
    tpu.vector_store %arg20[%c0_42, %c0_43], %53 {strides = array<i32>} : memref<2x16xf32, #tpu.memory_space<vmem>>, vector<2x16xf32>,
    %c0_44 = arith.constant 0 : index
    %c0_45 = arith.constant 0 : index
    %62 = vector.load %arg21[%c0_44, %c0_45] : memref<2x16xf32, #tpu.memory_space<vmem>>, vector<2x16xf32>
    tpu.vector_store %arg21[%c0_44, %c0_45], %59 {strides = array<i32>} : memref<2x16xf32, #tpu.memory_space<vmem>>, vector<2x16xf32>,
    %c0_46 = arith.constant 0 : index
    %c0_47 = arith.constant 0 : index
    %63 = vector.load %arg13[%c0_46, %c0_47] : memref<8x64xf32, #tpu.memory_space<vmem>>, vector<8x64xf32>
    %cst_48 = arith.constant 0.000000e+00 : f32
    %64 = vector.broadcast %cst_48 : f32 to vector<8x64xf32>
    %65 = arith.cmpf oge, %63, %64 : vector<8x64xf32>
    %cst_49 = arith.constant 2.000000e-01 : f32
    %66 = vector.broadcast %cst_49 : f32 to vector<8x64xf32>
    %67 = arith.mulf %66, %63 : vector<8x64xf32>
    %68 = arith.select %65, %63, %67 : vector<8x64xi1>, vector<8x64xf32>
    %c0_50 = arith.constant 0 : index
    %c0_51 = arith.constant 0 : index
    %69 = vector.load %arg14[%c0_50, %c0_51] : memref<16x256xf32, #tpu.memory_space<vmem>>, vector<16x256xf32>
    %cst_52 = arith.constant dense<0.000000e+00> : vector<2x256xf32>
    %70 = tpu.matmul %59, %69, %cst_52 {dimension_numbers = #tpu.dot_dimension_numbers<[1], [0], [0], [1], [0, 0, 1, 1], [], []>} : vector<2x16xf32>, vector<16x256xf32>, vector<2x256xf32> -> vector<2x256xf32>
    %c0_53 = arith.constant 0 : index
    %c0_54 = arith.constant 0 : index
    %71 = vector.load %arg15[%c0_53, %c0_54] : memref<64x256xf32, #tpu.memory_space<vmem>>, vector<64x256xf32>
    %72 = arith.truncf %68 : vector<8x64xf32> to vector<8x64xbf16>
    %73 = arith.truncf %71 : vector<64x256xf32> to vector<64x256xbf16>
    %cst_55 = arith.constant dense<0.000000e+00> : vector<8x256xf32>
    %74 = tpu.matmul %72, %73, %cst_55 {dimension_numbers = #tpu.dot_dimension_numbers<[1], [0], [0], [1], [0, 0, 1, 1], [], []>} : vector<8x64xbf16>, vector<64x256xbf16>, vector<8x256xf32> -> vector<8x256xf32>
    %75 = vector.shape_cast %70 : vector<2x256xf32> to vector<2x1x256xf32>
    %76 = vector.shape_cast %74 : vector<8x256xf32> to vector<1x8x256xf32>
    %77 = vector.broadcast %75 : vector<2x1x256xf32> to vector<2x8x256xf32>
    %78 = vector.broadcast %76 : vector<1x8x256xf32> to vector<2x8x256xf32>
    %79 = arith.addf %77, %78 : vector<2x8x256xf32>
    %cst_56 = arith.constant 0.000000e+00 : f32
    %80 = vector.broadcast %cst_56 : f32 to vector<2x8x256xf32>
    %81 = arith.cmpf oge, %79, %80 : vector<2x8x256xf32>
    %cst_57 = arith.constant 2.000000e-01 : f32
    %82 = vector.broadcast %cst_57 : f32 to vector<2x8x256xf32>
    %83 = arith.mulf %82, %79 : vector<2x8x256xf32>
    %84 = arith.select %81, %79, %83 : vector<2x8x256xi1>, vector<2x8x256xf32>
    %85 = vector.shape_cast %84 : vector<2x8x256xf32> to vector<16x256xf32>
    %c0_58 = arith.constant 0 : index
    %c0_59 = arith.constant 0 : index
    %86 = vector.load %arg16[%c0_58, %c0_59] : memref<256x128xf32, #tpu.memory_space<vmem>>, vector<256x128xf32>
    %87 = arith.truncf %85 : vector<16x256xf32> to vector<16x256xbf16>
    %88 = arith.truncf %86 : vector<256x128xf32> to vector<256x128xbf16>
    %cst_60 = arith.constant dense<0.000000e+00> : vector<16x128xf32>
    %89 = tpu.matmul %87, %88, %cst_60 {dimension_numbers = #tpu.dot_dimension_numbers<[1], [0], [0], [1], [0, 0, 1, 1], [], []>} : vector<16x256xbf16>, vector<256x128xbf16>, vector<16x128xf32> -> vector<16x128xf32>
    %cst_61 = arith.constant 0.000000e+00 : f32
    %90 = vector.broadcast %cst_61 : f32 to vector<16x128xf32>
    %91 = arith.cmpf oge, %89, %90 : vector<16x128xf32>
    %cst_62 = arith.constant 2.000000e-01 : f32
    %92 = vector.broadcast %cst_62 : f32 to vector<16x128xf32>
    %93 = arith.mulf %92, %89 : vector<16x128xf32>
    %94 = arith.select %91, %89, %93 : vector<16x128xi1>, vector<16x128xf32>
    %c0_63 = arith.constant 0 : index
    %c0_64 = arith.constant 0 : index
    %95 = vector.load %arg18[%c0_63, %c0_64] : memref<16x128xf32, #tpu.memory_space<vmem>>, vector<16x128xf32>
    tpu.vector_store %arg18[%c0_63, %c0_64], %94 {strides = array<i32>} : memref<16x128xf32, #tpu.memory_space<vmem>>, vector<16x128xf32>,
    return
  }
}

module attributes {stable_mosaic.version = 11 : i64} {
  func.func @_decode_kernel(%arg0: memref<64x128xf32, #tpu.memory_space<vmem>>, %arg1: memref<16x128xf32, #tpu.memory_space<vmem>>, %arg2: memref<2x32x4xf32, #tpu.memory_space<vmem>>, %arg3: memref<128x32xf32, #tpu.memory_space<vmem>>, %arg4: memref<128x32xf32, #tpu.memory_space<vmem>>, %arg5: memref<128x3xf32, #tpu.memory_space<vmem>>, %arg6: memref<1x3xf32, #tpu.memory_space<vmem>>, %arg7: memref<128x4xf32, #tpu.memory_space<vmem>>, %arg8: memref<1x4xf32, #tpu.memory_space<vmem>>, %arg9: memref<128x3xf32, #tpu.memory_space<vmem>>, %arg10: memref<1x3xf32, #tpu.memory_space<vmem>>, %arg11: memref<128x32xf32, #tpu.memory_space<vmem>>, %arg12: memref<1x32xf32, #tpu.memory_space<vmem>>, %arg13: memref<32x1xf32, #tpu.memory_space<vmem>>, %arg14: memref<1x1xf32, #tpu.memory_space<vmem>>, %arg15: memref<16x3xf32, #tpu.memory_space<vmem>>, %arg16: memref<16x4xf32, #tpu.memory_space<vmem>>, %arg17: memref<16x3xf32, #tpu.memory_space<vmem>>, %arg18: memref<16x1xf32, #tpu.memory_space<vmem>>, %arg19: memref<2x32x8xf32, #tpu.memory_space<vmem>>, %arg20: memref<2x8x3xf32, #tpu.memory_space<vmem>>) attributes {dimension_semantics = [], scalar_prefetch = 0 : i64, scratch_operands = 0 : i64, tpu.core_type = #tpu.core_type<tc>} {
    %c0 = arith.constant 0 : index
    %c0_0 = arith.constant 0 : index
    %0 = vector.load %arg1[%c0, %c0_0] : memref<16x128xf32, #tpu.memory_space<vmem>>, vector<16x128xf32>
    %c0_1 = arith.constant 0 : index
    %c0_2 = arith.constant 0 : index
    %1 = vector.load %arg5[%c0_1, %c0_2] : memref<128x3xf32, #tpu.memory_space<vmem>>, vector<128x3xf32>
    %2 = arith.truncf %0 : vector<16x128xf32> to vector<16x128xbf16>
    %3 = arith.truncf %1 : vector<128x3xf32> to vector<128x3xbf16>
    %cst = arith.constant dense<0.000000e+00> : vector<16x3xf32>
    %4 = tpu.matmul %2, %3, %cst {dimension_numbers = #tpu.dot_dimension_numbers<[1], [0], [0], [1], [0, 0, 1, 1], [], []>} : vector<16x128xbf16>, vector<128x3xbf16>, vector<16x3xf32> -> vector<16x3xf32>
    %c0_3 = arith.constant 0 : index
    %c0_4 = arith.constant 0 : index
    %5 = vector.load %arg6[%c0_3, %c0_4] : memref<1x3xf32, #tpu.memory_space<vmem>>, vector<1x3xf32>
    %6 = vector.broadcast %5 : vector<1x3xf32> to vector<16x3xf32>
    %7 = arith.addf %4, %6 : vector<16x3xf32>
    %8 = arith.negf %7 : vector<16x3xf32>
    %9 = math.exp %8 : vector<16x3xf32>
    %cst_5 = arith.constant 1.000000e+00 : f32
    %10 = vector.broadcast %cst_5 : f32 to vector<16x3xf32>
    %11 = arith.addf %10, %9 : vector<16x3xf32>
    %12 = arith.divf %10, %11 : vector<16x3xf32>
    %c0_6 = arith.constant 0 : index
    %c0_7 = arith.constant 0 : index
    %13 = vector.load %arg15[%c0_6, %c0_7] : memref<16x3xf32, #tpu.memory_space<vmem>>, vector<16x3xf32>
    tpu.vector_store %arg15[%c0_6, %c0_7], %12 {strides = array<i32>} : memref<16x3xf32, #tpu.memory_space<vmem>>, vector<16x3xf32>,
    %c0_8 = arith.constant 0 : index
    %c0_9 = arith.constant 0 : index
    %14 = vector.load %arg7[%c0_8, %c0_9] : memref<128x4xf32, #tpu.memory_space<vmem>>, vector<128x4xf32>
    %15 = arith.truncf %0 : vector<16x128xf32> to vector<16x128xbf16>
    %16 = arith.truncf %14 : vector<128x4xf32> to vector<128x4xbf16>
    %cst_10 = arith.constant dense<0.000000e+00> : vector<16x4xf32>
    %17 = tpu.matmul %15, %16, %cst_10 {dimension_numbers = #tpu.dot_dimension_numbers<[1], [0], [0], [1], [0, 0, 1, 1], [], []>} : vector<16x128xbf16>, vector<128x4xbf16>, vector<16x4xf32> -> vector<16x4xf32>
    %c0_11 = arith.constant 0 : index
    %c0_12 = arith.constant 0 : index
    %18 = vector.load %arg8[%c0_11, %c0_12] : memref<1x4xf32, #tpu.memory_space<vmem>>, vector<1x4xf32>
    %19 = vector.broadcast %18 : vector<1x4xf32> to vector<16x4xf32>
    %20 = arith.addf %17, %19 : vector<16x4xf32>
    %21 = arith.mulf %20, %20 : vector<16x4xf32>
    %cst_13 = arith.constant dense<0.000000e+00> : vector<16xf32>
    %22 = vector.multi_reduction <add>, %21, %cst_13 [1] : vector<16x4xf32> to vector<16xf32>
    %23 = vector.shape_cast %22 : vector<16xf32> to vector<16x1xf32>
    %24 = math.sqrt %23 : vector<16x1xf32>
    %cst_14 = arith.constant 9.99999996E-13 : f32
    %25 = vector.broadcast %cst_14 : f32 to vector<16x1xf32>
    %26 = arith.maximumf %24, %25 : vector<16x1xf32>
    %27 = vector.broadcast %26 : vector<16x1xf32> to vector<16x4xf32>
    %28 = arith.divf %20, %27 : vector<16x4xf32>
    %c0_15 = arith.constant 0 : index
    %c0_16 = arith.constant 0 : index
    %29 = vector.load %arg16[%c0_15, %c0_16] : memref<16x4xf32, #tpu.memory_space<vmem>>, vector<16x4xf32>
    tpu.vector_store %arg16[%c0_15, %c0_16], %28 {strides = array<i32>} : memref<16x4xf32, #tpu.memory_space<vmem>>, vector<16x4xf32>,
    %c0_17 = arith.constant 0 : index
    %c0_18 = arith.constant 0 : index
    %30 = vector.load %arg9[%c0_17, %c0_18] : memref<128x3xf32, #tpu.memory_space<vmem>>, vector<128x3xf32>
    %31 = arith.truncf %0 : vector<16x128xf32> to vector<16x128xbf16>
    %32 = arith.truncf %30 : vector<128x3xf32> to vector<128x3xbf16>
    %cst_19 = arith.constant dense<0.000000e+00> : vector<16x3xf32>
    %33 = tpu.matmul %31, %32, %cst_19 {dimension_numbers = #tpu.dot_dimension_numbers<[1], [0], [0], [1], [0, 0, 1, 1], [], []>} : vector<16x128xbf16>, vector<128x3xbf16>, vector<16x3xf32> -> vector<16x3xf32>
    %c0_20 = arith.constant 0 : index
    %c0_21 = arith.constant 0 : index
    %34 = vector.load %arg10[%c0_20, %c0_21] : memref<1x3xf32, #tpu.memory_space<vmem>>, vector<1x3xf32>
    %35 = vector.broadcast %34 : vector<1x3xf32> to vector<16x3xf32>
    %36 = arith.addf %33, %35 : vector<16x3xf32>
    %37 = math.tanh %36 : vector<16x3xf32>
    %c0_22 = arith.constant 0 : index
    %c0_23 = arith.constant 0 : index
    %38 = vector.load %arg17[%c0_22, %c0_23] : memref<16x3xf32, #tpu.memory_space<vmem>>, vector<16x3xf32>
    tpu.vector_store %arg17[%c0_22, %c0_23], %37 {strides = array<i32>} : memref<16x3xf32, #tpu.memory_space<vmem>>, vector<16x3xf32>,
    %c0_24 = arith.constant 0 : index
    %c0_25 = arith.constant 0 : index
    %39 = vector.load %arg11[%c0_24, %c0_25] : memref<128x32xf32, #tpu.memory_space<vmem>>, vector<128x32xf32>
    %40 = arith.truncf %0 : vector<16x128xf32> to vector<16x128xbf16>
    %41 = arith.truncf %39 : vector<128x32xf32> to vector<128x32xbf16>
    %cst_26 = arith.constant dense<0.000000e+00> : vector<16x32xf32>
    %42 = tpu.matmul %40, %41, %cst_26 {dimension_numbers = #tpu.dot_dimension_numbers<[1], [0], [0], [1], [0, 0, 1, 1], [], []>} : vector<16x128xbf16>, vector<128x32xbf16>, vector<16x32xf32> -> vector<16x32xf32>
    %c0_27 = arith.constant 0 : index
    %c0_28 = arith.constant 0 : index
    %43 = vector.load %arg12[%c0_27, %c0_28] : memref<1x32xf32, #tpu.memory_space<vmem>>, vector<1x32xf32>
    %44 = vector.broadcast %43 : vector<1x32xf32> to vector<16x32xf32>
    %45 = arith.addf %42, %44 : vector<16x32xf32>
    %cst_29 = arith.constant 0.000000e+00 : f32
    %46 = vector.broadcast %cst_29 : f32 to vector<16x32xf32>
    %47 = arith.cmpf oge, %45, %46 : vector<16x32xf32>
    %cst_30 = arith.constant 2.000000e-01 : f32
    %48 = vector.broadcast %cst_30 : f32 to vector<16x32xf32>
    %49 = arith.mulf %48, %45 : vector<16x32xf32>
    %50 = arith.select %47, %45, %49 : vector<16x32xi1>, vector<16x32xf32>
    %c0_31 = arith.constant 0 : index
    %c0_32 = arith.constant 0 : index
    %51 = vector.load %arg13[%c0_31, %c0_32] : memref<32x1xf32, #tpu.memory_space<vmem>>, vector<32x1xf32>
    %cst_33 = arith.constant dense<0.000000e+00> : vector<16x1xf32>
    %52 = tpu.matmul %50, %51, %cst_33 {dimension_numbers = #tpu.dot_dimension_numbers<[1], [0], [0], [1], [0, 0, 1, 1], [], []>} : vector<16x32xf32>, vector<32x1xf32>, vector<16x1xf32> -> vector<16x1xf32>
    %c0_34 = arith.constant 0 : index
    %c0_35 = arith.constant 0 : index
    %53 = vector.load %arg14[%c0_34, %c0_35] : memref<1x1xf32, #tpu.memory_space<vmem>>, vector<1x1xf32>
    %54 = vector.broadcast %53 : vector<1x1xf32> to vector<16x1xf32>
    %55 = arith.addf %52, %54 : vector<16x1xf32>
    %c0_36 = arith.constant 0 : index
    %c0_37 = arith.constant 0 : index
    %56 = vector.load %arg18[%c0_36, %c0_37] : memref<16x1xf32, #tpu.memory_space<vmem>>, vector<16x1xf32>
    tpu.vector_store %arg18[%c0_36, %c0_37], %55 {strides = array<i32>} : memref<16x1xf32, #tpu.memory_space<vmem>>, vector<16x1xf32>,
    %c0_38 = arith.constant 0 : index
    %c0_39 = arith.constant 0 : index
    %57 = vector.load %arg0[%c0_38, %c0_39] : memref<64x128xf32, #tpu.memory_space<vmem>>, vector<64x128xf32>
    %c0_40 = arith.constant 0 : index
    %c0_41 = arith.constant 0 : index
    %58 = vector.load %arg3[%c0_40, %c0_41] : memref<128x32xf32, #tpu.memory_space<vmem>>, vector<128x32xf32>
    %59 = arith.truncf %57 : vector<64x128xf32> to vector<64x128xbf16>
    %60 = arith.truncf %58 : vector<128x32xf32> to vector<128x32xbf16>
    %cst_42 = arith.constant dense<0.000000e+00> : vector<64x32xf32>
    %61 = tpu.matmul %59, %60, %cst_42 {dimension_numbers = #tpu.dot_dimension_numbers<[1], [0], [0], [1], [0, 0, 1, 1], [], []>} : vector<64x128xbf16>, vector<128x32xbf16>, vector<64x32xf32> -> vector<64x32xf32>
    %cst_43 = arith.constant 0.176776692 : f32
    %62 = vector.broadcast %cst_43 : f32 to vector<64x32xf32>
    %63 = arith.mulf %61, %62 : vector<64x32xf32>
    %c0_44 = arith.constant 0 : index
    %c0_45 = arith.constant 0 : index
    %64 = vector.load %arg4[%c0_44, %c0_45] : memref<128x32xf32, #tpu.memory_space<vmem>>, vector<128x32xf32>
    %65 = arith.truncf %0 : vector<16x128xf32> to vector<16x128xbf16>
    %66 = arith.truncf %64 : vector<128x32xf32> to vector<128x32xbf16>
    %cst_46 = arith.constant dense<0.000000e+00> : vector<16x32xf32>
    %67 = tpu.matmul %65, %66, %cst_46 {dimension_numbers = #tpu.dot_dimension_numbers<[1], [0], [0], [1], [0, 0, 1, 1], [], []>} : vector<16x128xbf16>, vector<128x32xbf16>, vector<16x32xf32> -> vector<16x32xf32>
    %68 = vector.shape_cast %63 : vector<64x32xf32> to vector<2x32x32xf32>
    %69 = vector.shape_cast %67 : vector<16x32xf32> to vector<2x8x32xf32>
    "tpu.trace_start"() <{level = 10 : i32, message = "bna,bca->bnc"}> : () -> ()
    %cst_47 = arith.constant dense<0.000000e+00> : vector<2x32x8xf32>
    %70 = tpu.matmul %68, %69, %cst_47 {dimension_numbers = #tpu.dot_dimension_numbers<[2], [2], [1], [1], [0, 0, 0, 1, 1, 1], [0], [0]>} : vector<2x32x32xf32>, vector<2x8x32xf32>, vector<2x32x8xf32> -> vector<2x32x8xf32>
    "tpu.trace_stop"() : () -> ()
    %cst_48 = arith.constant dense<0xFF800000> : vector<2x32xf32>
    %71 = vector.multi_reduction <maximumf>, %70, %cst_48 [2] : vector<2x32x8xf32> to vector<2x32xf32>
    %72 = vector.shape_cast %71 : vector<2x32xf32> to vector<2x32x1xf32>
    %73 = vector.broadcast %72 : vector<2x32x1xf32> to vector<2x32x8xf32>
    %74 = arith.subf %70, %73 : vector<2x32x8xf32>
    %75 = math.exp %74 : vector<2x32x8xf32>
    %cst_49 = arith.constant dense<0.000000e+00> : vector<2x32xf32>
    %76 = vector.multi_reduction <add>, %75, %cst_49 [2] : vector<2x32x8xf32> to vector<2x32xf32>
    %77 = vector.shape_cast %76 : vector<2x32xf32> to vector<2x32x1xf32>
    %78 = vector.broadcast %77 : vector<2x32x1xf32> to vector<2x32x8xf32>
    %79 = arith.divf %75, %78 : vector<2x32x8xf32>
    %c0_50 = arith.constant 0 : index
    %c0_51 = arith.constant 0 : index
    %c0_52 = arith.constant 0 : index
    %80 = vector.load %arg19[%c0_50, %c0_51, %c0_52] : memref<2x32x8xf32, #tpu.memory_space<vmem>>, vector<2x32x8xf32>
    tpu.vector_store %arg19[%c0_50, %c0_51, %c0_52], %79 {strides = array<i32>} : memref<2x32x8xf32, #tpu.memory_space<vmem>>, vector<2x32x8xf32>,
    %c0_53 = arith.constant 0 : index
    %c0_54 = arith.constant 0 : index
    %c0_55 = arith.constant 0 : index
    %81 = vector.load %arg2[%c0_53, %c0_54, %c0_55] : memref<2x32x4xf32, #tpu.memory_space<vmem>>, vector<2x32x4xf32>
    "tpu.trace_start"() <{level = 10 : i32, message = "bnc,bnj->bcj"}> : () -> ()
    %cst_56 = arith.constant dense<0.000000e+00> : vector<2x8x4xf32>
    %82 = tpu.matmul %79, %81, %cst_56 {dimension_numbers = #tpu.dot_dimension_numbers<[1], [1], [2], [2], [0, 0, 0, 2, 1, 2], [0], [0]>} : vector<2x32x8xf32>, vector<2x32x4xf32>, vector<2x8x4xf32> -> vector<2x8x4xf32>
    "tpu.trace_stop"() : () -> ()
    %83 = vector.extract_strided_slice %82 {offsets = [0, 0, 0], sizes = [2, 8, 3], strides = [1, 1, 1]} : vector<2x8x4xf32> to vector<2x8x3xf32>
    %84 = vector.extract_strided_slice %82 {offsets = [0, 0, 3], sizes = [2, 8, 1], strides = [1, 1, 1]} : vector<2x8x4xf32> to vector<2x8x1xf32>
    %cst_57 = arith.constant 1.000000e+00 : f32
    %85 = vector.broadcast %cst_57 : f32 to vector<2x8x1xf32>
    %86 = arith.addf %84, %85 : vector<2x8x1xf32>
    %87 = vector.broadcast %86 : vector<2x8x1xf32> to vector<2x8x3xf32>
    %88 = arith.divf %83, %87 : vector<2x8x3xf32>
    %c0_58 = arith.constant 0 : index
    %c0_59 = arith.constant 0 : index
    %c0_60 = arith.constant 0 : index
    %89 = vector.load %arg20[%c0_58, %c0_59, %c0_60] : memref<2x8x3xf32, #tpu.memory_space<vmem>>, vector<2x8x3xf32>
    tpu.vector_store %arg20[%c0_58, %c0_59, %c0_60], %88 {strides = array<i32>} : memref<2x8x3xf32, #tpu.memory_space<vmem>>, vector<2x8x3xf32>,
    return
  }
}

</mosaic_0001>

<bundles_post_ra>
// kernel: sub.0
= control target key start
LH: loop header
LB: loop body
LE: loop exit
PB: predicated region body
PF: predicated region fallthrough
CT: control target
= control target key end

     0   :  { %s1420_s0 = inlined_call_operand.vmem [shape: f32[512,3], index: 0, kind: input, shape index: {}]   ;;  %s1421_s1 = inlined_call_operand.vmem [shape: f32[512,3], index: 1, kind: input, shape index: {}]   ;;  %s1422_s2 = inlined_call_operand.vmem [shape: f32[512,3], index: 2, kind: output, shape index: {}]  }
   0x1   :  { %v3_v0 = vld [vmem:[%s1420_s0] sm:$0xff]  ;;  %v640_v2 = vld [vmem:[%s1420_s0 + $0x8] sm:$0xff]  ;;  %v643_v5 = vld [vmem:[%s1420_s0 + $0x10] sm:$0xff] }
   0x2   :  { %v4_v1 = vld [vmem:[%s1421_s1] sm:$0xff]  ;;  %v641_v4 = vld [vmem:[%s1421_s1 + $0x8] sm:$0xff]  ;;  %v644_v6 = vld [vmem:[%s1421_s1 + $0x10] sm:$0xff] }
   0x3   :  { %v7_v3 = vsub.f32 %v3_v0, %v4_v1  ;;  %v16_v7 = vsub.f32 %v640_v2, %v641_v4  ;;  %v26_v8 = vsub.f32 %v643_v5, %v644_v6  ;;  %v646_v9 = vld [vmem:[%s1420_s0 + $0x18] sm:$0xff]  ;;  %v649_v11 = vld [vmem:[%s1420_s0 + $0x20] sm:$0xff]  ;;  %v652_v14 = vld [vmem:[%s1420_s0 + $0x28] sm:$0xff] }
   0x4   :  { %v647_v10 = vld [vmem:[%s1421_s1 + $0x18] sm:$0xff]  ;;  %v650_v13 = vld [vmem:[%s1421_s1 + $0x20] sm:$0xff]  ;;  %v653_v15 = vld [vmem:[%s1421_s1 + $0x28] sm:$0xff] }
   0x5   :  { %9 = vst [vmem:[%s1422_s2] sm:$0xff] %v7_v3  ;;  %v36_v12 = vsub.f32 %v646_v9, %v647_v10  ;;  %642 = vst [vmem:[%s1422_s2 + $0x8] sm:$0xff] %v16_v7  ;;  %v46_v16 = vsub.f32 %v649_v11, %v650_v13  ;;  %v56_v17 = vsub.f32 %v652_v14, %v653_v15  ;;  %v655_v18 = vld [vmem:[%s1420_s0 + $0x30] sm:$0xff]  ;;  %v658_v20 = vld [vmem:[%s1420_s0 + $0x38] sm:$0xff] }
   0x6   :  { %645 = vst [vmem:[%s1422_s2 + $0x10] sm:$0xff] %v26_v8  ;;  %v656_v19 = vld [vmem:[%s1421_s1 + $0x30] sm:$0xff]  ;;  %v659_v22 = vld [vmem:[%s1421_s1 + $0x38] sm:$0xff]  ;;  %v661_v23 = vld [vmem:[%s1420_s0 + $0x40] sm:$0xff] }
   0x7   :  { %648 = vst [vmem:[%s1422_s2 + $0x18] sm:$0xff] %v36_v12  ;;  %v66_v21 = vsub.f32 %v655_v18, %v656_v19  ;;  %v662_v24 = vld [vmem:[%s1421_s1 + $0x40] sm:$0xff]  ;;  %651 = vst [vmem:[%s1422_s2 + $0x20] sm:$0xff] %v46_v16  ;;  %v76_v25 = vsub.f32 %v658_v20, %v659_v22  ;;  %v664_v27 = vld [vmem:[%s1420_s0 + $0x48] sm:$0xff] }
   0x8   :  { %654 = vst [vmem:[%s1422_s2 + $0x28] sm:$0xff] %v56_v17  ;;  %v86_v26 = vsub.f32 %v661_v23, %v662_v24  ;;  %v665_v28 = vld [vmem:[%s1421_s1 + $0x48] sm:$0xff]  ;;  %v667_v29 = vld [vmem:[%s1420_s0 + $0x50] sm:$0xff]  ;;  %v670_v32 = vld [vmem:[%s1420_s0 + $0x58] sm:$0xff] }
   0x9   :  { %657 = vst [vmem:[%s1422_s2 + $0x30] sm:$0xff] %v66_v21  ;;  %v96_v30 = vsub.f32 %v664_v27, %v665_v28  ;;  %v668_v31 = vld [vmem:[%s1421_s1 + $0x50] sm:$0xff]  ;;  %v671_v33 = vld [vmem:[%s1421_s1 + $0x58] sm:$0xff]  ;;  %660 = vst [vmem:[%s1422_s2 + $0x38] sm:$0xff] %v76_v25 }
   0xa   :  { %663 = vst [vmem:[%s1422_s2 + $0x40] sm:$0xff] %v86_v26  ;;  %v106_v34 = vsub.f32 %v667_v29, %v668_v31  ;;  %v116_v35 = vsub.f32 %v670_v32, %v671_v33  ;;  %v673_v36 = vld [vmem:[%s1420_s0 + $0x60] sm:$0xff]  ;;  %v676_v38 = vld [vmem:[%s1420_s0 + $0x68] sm:$0xff]  ;;  %v679_v41 = vld [vmem:[%s1420_s0 + $0x70] sm:$0xff] }
   0xb   :  { %v674_v37 = vld [vmem:[%s1421_s1 + $0x60] sm:$0xff]  ;;  %666 = vst [vmem:[%s1422_s2 + $0x48] sm:$0xff] %v96_v30  ;;  %v677_v40 = vld [vmem:[%s1421_s1 + $0x68] sm:$0xff]  ;;  %v680_v42 = vld [vmem:[%s1421_s1 + $0x70] sm:$0xff] }
   0xc   :  { %v126_v39 = vsub.f32 %v673_v36, %v674_v37  ;;  %669 = vst [vmem:[%s1422_s2 + $0x50] sm:$0xff] %v106_v34  ;;  %672 = vst [vmem:[%s1422_s2 + $0x58] sm:$0xff] %v116_v35  ;;  %v136_v43 = vsub.f32 %v676_v38, %v677_v40  ;;  %v146_v44 = vsub.f32 %v679_v41, %v680_v42  ;;  %v682_v45 = vld [vmem:[%s1420_s0 + $0x78] sm:$0xff]  ;;  %v685_v47 = vld [vmem:[%s1420_s0 + $0x80] sm:$0xff] }
   0xd   :  { %v683_v46 = vld [vmem:[%s1421_s1 + $0x78] sm:$0xff]  ;;  %v686_v49 = vld [vmem:[%s1421_s1 + $0x80] sm:$0xff]  ;;  %v688_v50 = vld [vmem:[%s1420_s0 + $0x88] sm:$0xff] }
   0xe   :  { %675 = vst [vmem:[%s1422_s2 + $0x60] sm:$0xff] %v126_v39  ;;  %v156_v48 = vsub.f32 %v682_v45, %v683_v46  ;;  %v689_v51 = vld [vmem:[%s1421_s1 + $0x88] sm:$0xff]  ;;  %678 = vst [vmem:[%s1422_s2 + $0x68] sm:$0xff] %v136_v43  ;;  %v166_v52 = vsub.f32 %v685_v47, %v686_v49  ;;  %v691_v54 = vld [vmem:[%s1420_s0 + $0x90] sm:$0xff] }
   0xf   :  { %681 = vst [vmem:[%s1422_s2 + $0x70] sm:$0xff] %v146_v44  ;;  %v176_v53 = vsub.f32 %v688_v50, %v689_v51  ;;  %v692_v55 = vld [vmem:[%s1421_s1 + $0x90] sm:$0xff]  ;;  %v694_v56 = vld [vmem:[%s1420_s0 + $0x98] sm:$0xff]  ;;  %v697_v59 = vld [vmem:[%s1420_s0 + $0xa0] sm:$0xff] }
  0x10   :  { %684 = vst [vmem:[%s1422_s2 + $0x78] sm:$0xff] %v156_v48  ;;  %v186_v57 = vsub.f32 %v691_v54, %v692_v55  ;;  %v695_v58 = vld [vmem:[%s1421_s1 + $0x98] sm:$0xff]  ;;  %v698_v60 = vld [vmem:[%s1421_s1 + $0xa0] sm:$0xff]  ;;  %687 = vst [vmem:[%s1422_s2 + $0x80] sm:$0xff] %v166_v52 }
  0x11   :  { %690 = vst [vmem:[%s1422_s2 + $0x88] sm:$0xff] %v176_v53  ;;  %v196_v61 = vsub.f32 %v694_v56, %v695_v58  ;;  %v206_v62 = vsub.f32 %v697_v59, %v698_v60  ;;  %v700_v63 = vld [vmem:[%s1420_s0 + $0xa8] sm:$0xff]  ;;  %v703_v1 = vld [vmem:[%s1420_s0 + $0xb0] sm:$0xff]  ;;  %v706_v4 = vld [vmem:[%s1420_s0 + $0xb8] sm:$0xff] }
  0x12   :  { %v701_v0 = vld [vmem:[%s1421_s1 + $0xa8] sm:$0xff]  ;;  %693 = vst [vmem:[%s1422_s2 + $0x90] sm:$0xff] %v186_v57  ;;  %v704_v3 = vld [vmem:[%s1421_s1 + $0xb0] sm:$0xff]  ;;  %v707_v5 = vld [vmem:[%s1421_s1 + $0xb8] sm:$0xff] }
  0x13   :  { %v216_v2 = vsub.f32 %v700_v63, %v701_v0  ;;  %696 = vst [vmem:[%s1422_s2 + $0x98] sm:$0xff] %v196_v61  ;;  %699 = vst [vmem:[%s1422_s2 + $0xa0] sm:$0xff] %v206_v62  ;;  %v226_v6 = vsub.f32 %v703_v1, %v704_v3  ;;  %v236_v7 = vsub.f32 %v706_v4, %v707_v5  ;;  %v709_v8 = vld [vmem:[%s1420_s0 + $0xc0] sm:$0xff]  ;;  %v712_v10 = vld [vmem:[%s1420_s0 + $0xc8] sm:$0xff] }
  0x14   :  { %v710_v9 = vld [vmem:[%s1421_s1 + $0xc0] sm:$0xff]  ;;  %v713_v12 = vld [vmem:[%s1421_s1 + $0xc8] sm:$0xff]  ;;  %v715_v13 = vld [vmem:[%s1420_s0 + $0xd0] sm:$0xff] }
  0x15   :  { %702 = vst [vmem:[%s1422_s2 + $0xa8] sm:$0xff] %v216_v2  ;;  %v246_v11 = vsub.f32 %v709_v8, %v710_v9  ;;  %v716_v14 = vld [vmem:[%s1421_s1 + $0xd0] sm:$0xff]  ;;  %705 = vst [vmem:[%s1422_s2 + $0xb0] sm:$0xff] %v226_v6  ;;  %v256_v15 = vsub.f32 %v712_v10, %v713_v12  ;;  %v718_v17 = vld [vmem:[%s1420_s0 + $0xd8] sm:$0xff] }
  0x16   :  { %708 = vst [vmem:[%s1422_s2 + $0xb8] sm:$0xff] %v236_v7  ;;  %v266_v16 = vsub.f32 %v715_v13, %v716_v14  ;;  %v719_v18 = vld [vmem:[%s1421_s1 + $0xd8] sm:$0xff]  ;;  %v721_v19 = vld [vmem:[%s1420_s0 + $0xe0] sm:$0xff]  ;;  %v724_v22 = vld [vmem:[%s1420_s0 + $0xe8] sm:$0xff] }
  0x17   :  { %711 = vst [vmem:[%s1422_s2 + $0xc0] sm:$0xff] %v246_v11  ;;  %v276_v20 = vsub.f32 %v718_v17, %v719_v18  ;;  %v722_v21 = vld [vmem:[%s1421_s1 + $0xe0] sm:$0xff]  ;;  %v725_v23 = vld [vmem:[%s1421_s1 + $0xe8] sm:$0xff]  ;;  %714 = vst [vmem:[%s1422_s2 + $0xc8] sm:$0xff] %v256_v15 }
  0x18   :  { %717 = vst [vmem:[%s1422_s2 + $0xd0] sm:$0xff] %v266_v16  ;;  %v286_v24 = vsub.f32 %v721_v19, %v722_v21  ;;  %v296_v25 = vsub.f32 %v724_v22, %v725_v23  ;;  %v727_v26 = vld [vmem:[%s1420_s0 + $0xf0] sm:$0xff]  ;;  %v730_v28 = vld [vmem:[%s1420_s0 + $0xf8] sm:$0xff]  ;;  %v733_v31 = vld [vmem:[%s1420_s0 + $0x100] sm:$0xff] }
  0x19   :  { %v728_v27 = vld [vmem:[%s1421_s1 + $0xf0] sm:$0xff]  ;;  %720 = vst [vmem:[%s1422_s2 + $0xd8] sm:$0xff] %v276_v20  ;;  %v731_v30 = vld [vmem:[%s1421_s1 + $0xf8] sm:$0xff]  ;;  %v734_v32 = vld [vmem:[%s1421_s1 + $0x100] sm:$0xff] }
  0x1a   :  { %v306_v29 = vsub.f32 %v727_v26, %v728_v27  ;;  %723 = vst [vmem:[%s1422_s2 + $0xe0] sm:$0xff] %v286_v24  ;;  %726 = vst [vmem:[%s1422_s2 + $0xe8] sm:$0xff] %v296_v25  ;;  %v316_v33 = vsub.f32 %v730_v28, %v731_v30  ;;  %v326_v34 = vsub.f32 %v733_v31, %v734_v32  ;;  %v736_v35 = vld [vmem:[%s1420_s0 + $0x108] sm:$0xff]  ;;  %v739_v37 = vld [vmem:[%s1420_s0 + $0x110] sm:$0xff] }
  0x1b   :  { %v737_v36 = vld [vmem:[%s1421_s1 + $0x108] sm:$0xff]  ;;  %v740_v39 = vld [vmem:[%s1421_s1 + $0x110] sm:$0xff]  ;;  %v742_v40 = vld [vmem:[%s1420_s0 + $0x118] sm:$0xff] }
  0x1c   :  { %729 = vst [vmem:[%s1422_s2 + $0xf0] sm:$0xff] %v306_v29  ;;  %v336_v38 = vsub.f32 %v736_v35, %v737_v36  ;;  %v743_v41 = vld [vmem:[%s1421_s1 + $0x118] sm:$0xff]  ;;  %732 = vst [vmem:[%s1422_s2 + $0xf8] sm:$0xff] %v316_v33  ;;  %v346_v42 = vsub.f32 %v739_v37, %v740_v39  ;;  %v745_v44 = vld [vmem:[%s1420_s0 + $0x120] sm:$0xff] }
  0x1d   :  { %735 = vst [vmem:[%s1422_s2 + $0x100] sm:$0xff] %v326_v34  ;;  %v356_v43 = vsub.f32 %v742_v40, %v743_v41  ;;  %v746_v45 = vld [vmem:[%s1421_s1 + $0x120] sm:$0xff]  ;;  %v748_v46 = vld [vmem:[%s1420_s0 + $0x128] sm:$0xff]  ;;  %v751_v49 = vld [vmem:[%s1420_s0 + $0x130] sm:$0xff] }
  0x1e   :  { %738 = vst [vmem:[%s1422_s2 + $0x108] sm:$0xff] %v336_v38  ;;  %v366_v47 = vsub.f32 %v745_v44, %v746_v45  ;;  %v749_v48 = vld [vmem:[%s1421_s1 + $0x128] sm:$0xff]  ;;  %v752_v50 = vld [vmem:[%s1421_s1 + $0x130] sm:$0xff]  ;;  %741 = vst [vmem:[%s1422_s2 + $0x110] sm:$0xff] %v346_v42 }
  0x1f   :  { %744 = vst [vmem:[%s1422_s2 + $0x118] sm:$0xff] %v356_v43  ;;  %v376_v51 = vsub.f32 %v748_v46, %v749_v48  ;;  %v386_v52 = vsub.f32 %v751_v49, %v752_v50  ;;  %v754_v53 = vld [vmem:[%s1420_s0 + $0x138] sm:$0xff]  ;;  %v757_v55 = vld [vmem:[%s1420_s0 + $0x140] sm:$0xff]  ;;  %v760_v58 = vld [vmem:[%s1420_s0 + $0x148] sm:$0xff] }
  0x20   :  { %v755_v54 = vld [vmem:[%s1421_s1 + $0x138] sm:$0xff]  ;;  %747 = vst [vmem:[%s1422_s2 + $0x120] sm:$0xff] %v366_v47  ;;  %v758_v57 = vld [vmem:[%s1421_s1 + $0x140] sm:$0xff]  ;;  %v761_v59 = vld [vmem:[%s1421_s1 + $0x148] sm:$0xff] }
  0x21   :  { %v396_v56 = vsub.f32 %v754_v53, %v755_v54  ;;  %750 = vst [vmem:[%s1422_s2 + $0x128] sm:$0xff] %v376_v51  ;;  %753 = vst [vmem:[%s1422_s2 + $0x130] sm:$0xff] %v386_v52  ;;  %v406_v60 = vsub.f32 %v757_v55, %v758_v57  ;;  %v416_v61 = vsub.f32 %v760_v58, %v761_v59  ;;  %v763_v62 = vld [vmem:[%s1420_s0 + $0x150] sm:$0xff]  ;;  %v766_v0 = vld [vmem:[%s1420_s0 + $0x158] sm:$0xff] }
  0x22   :  { %v764_v63 = vld [vmem:[%s1421_s1 + $0x150] sm:$0xff]  ;;  %v767_v2 = vld [vmem:[%s1421_s1 + $0x158] sm:$0xff]  ;;  %v769_v3 = vld [vmem:[%s1420_s0 + $0x160] sm:$0xff] }
  0x23   :  { %756 = vst [vmem:[%s1422_s2 + $0x138] sm:$0xff] %v396_v56  ;;  %v426_v1 = vsub.f32 %v763_v62, %v764_v63  ;;  %v770_v4 = vld [vmem:[%s1421_s1 + $0x160] sm:$0xff]  ;;  %759 = vst [vmem:[%s1422_s2 + $0x140] sm:$0xff] %v406_v60  ;;  %v436_v5 = vsub.f32 %v766_v0, %v767_v2  ;;  %v772_v7 = vld [vmem:[%s1420_s0 + $0x168] sm:$0xff] }
  0x24   :  { %762 = vst [vmem:[%s1422_s2 + $0x148] sm:$0xff] %v416_v61  ;;  %v446_v6 = vsub.f32 %v769_v3, %v770_v4  ;;  %v773_v8 = vld [vmem:[%s1421_s1 + $0x168] sm:$0xff]  ;;  %v775_v9 = vld [vmem:[%s1420_s0 + $0x170] sm:$0xff]  ;;  %v778_v12 = vld [vmem:[%s1420_s0 + $0x178] sm:$0xff] }
  0x25   :  { %765 = vst [vmem:[%s1422_s2 + $0x150] sm:$0xff] %v426_v1  ;;  %v456_v10 = vsub.f32 %v772_v7, %v773_v8  ;;  %v776_v11 = vld [vmem:[%s1421_s1 + $0x170] sm:$0xff]  ;;  %v779_v13 = vld [vmem:[%s1421_s1 + $0x178] sm:$0xff]  ;;  %768 = vst [vmem:[%s1422_s2 + $0x158] sm:$0xff] %v436_v5 }
  0x26   :  { %771 = vst [vmem:[%s1422_s2 + $0x160] sm:$0xff] %v446_v6  ;;  %v466_v14 = vsub.f32 %v775_v9, %v776_v11  ;;  %v476_v15 = vsub.f32 %v778_v12, %v779_v13  ;;  %v781_v16 = vld [vmem:[%s1420_s0 + $0x180] sm:$0xff]  ;;  %v784_v18 = vld [vmem:[%s1420_s0 + $0x188] sm:$0xff]  ;;  %v787_v21 = vld [vmem:[%s1420_s0 + $0x190] sm:$0xff] }
  0x27   :  { %v782_v17 = vld [vmem:[%s1421_s1 + $0x180] sm:$0xff]  ;;  %774 = vst [vmem:[%s1422_s2 + $0x168] sm:$0xff] %v456_v10  ;;  %v785_v20 = vld [vmem:[%s1421_s1 + $0x188] sm:$0xff]  ;;  %v788_v22 = vld [vmem:[%s1421_s1 + $0x190] sm:$0xff] }
  0x28   :  { %v486_v19 = vsub.f32 %v781_v16, %v782_v17  ;;  %777 = vst [vmem:[%s1422_s2 + $0x170] sm:$0xff] %v466_v14  ;;  %780 = vst [vmem:[%s1422_s2 + $0x178] sm:$0xff] %v476_v15  ;;  %v496_v23 = vsub.f32 %v784_v18, %v785_v20  ;;  %v506_v24 = vsub.f32 %v787_v21, %v788_v22  ;;  %v790_v25 = vld [vmem:[%s1420_s0 + $0x198] sm:$0xff]  ;;  %v793_v27 = vld [vmem:[%s1420_s0 + $0x1a0] sm:$0xff] }
  0x29   :  { %v791_v26 = vld [vmem:[%s1421_s1 + $0x198] sm:$0xff]  ;;  %v794_v29 = vld [vmem:[%s1421_s1 + $0x1a0] sm:$0xff]  ;;  %v796_v30 = vld [vmem:[%s1420_s0 + $0x1a8] sm:$0xff] }
  0x2a   :  { %783 = vst [vmem:[%s1422_s2 + $0x180] sm:$0xff] %v486_v19  ;;  %v516_v28 = vsub.f32 %v790_v25, %v791_v26  ;;  %v797_v31 = vld [vmem:[%s1421_s1 + $0x1a8] sm:$0xff]  ;;  %786 = vst [vmem:[%s1422_s2 + $0x188] sm:$0xff] %v496_v23  ;;  %v526_v32 = vsub.f32 %v793_v27, %v794_v29  ;;  %v799_v34 = vld [vmem:[%s1420_s0 + $0x1b0] sm:$0xff] }
  0x2b   :  { %789 = vst [vmem:[%s1422_s2 + $0x190] sm:$0xff] %v506_v24  ;;  %v536_v33 = vsub.f32 %v796_v30, %v797_v31  ;;  %v800_v35 = vld [vmem:[%s1421_s1 + $0x1b0] sm:$0xff]  ;;  %v802_v36 = vld [vmem:[%s1420_s0 + $0x1b8] sm:$0xff]  ;;  %v805_v39 = vld [vmem:[%s1420_s0 + $0x1c0] sm:$0xff] }
  0x2c   :  { %792 = vst [vmem:[%s1422_s2 + $0x198] sm:$0xff] %v516_v28  ;;  %v546_v37 = vsub.f32 %v799_v34, %v800_v35  ;;  %v803_v38 = vld [vmem:[%s1421_s1 + $0x1b8] sm:$0xff]  ;;  %v806_v40 = vld [vmem:[%s1421_s1 + $0x1c0] sm:$0xff]  ;;  %795 = vst [vmem:[%s1422_s2 + $0x1a0] sm:$0xff] %v526_v32 }
  0x2d   :  { %798 = vst [vmem:[%s1422_s2 + $0x1a8] sm:$0xff] %v536_v33  ;;  %v556_v41 = vsub.f32 %v802_v36, %v803_v38  ;;  %v566_v42 = vsub.f32 %v805_v39, %v806_v40  ;;  %v808_v43 = vld [vmem:[%s1420_s0 + $0x1c8] sm:$0xff]  ;;  %v811_v45 = vld [vmem:[%s1420_s0 + $0x1d0] sm:$0xff]  ;;  %v814_v48 = vld [vmem:[%s1420_s0 + $0x1d8] sm:$0xff] }
  0x2e   :  { %v809_v44 = vld [vmem:[%s1421_s1 + $0x1c8] sm:$0xff]  ;;  %801 = vst [vmem:[%s1422_s2 + $0x1b0] sm:$0xff] %v546_v37  ;;  %v812_v47 = vld [vmem:[%s1421_s1 + $0x1d0] sm:$0xff]  ;;  %v815_v49 = vld [vmem:[%s1421_s1 + $0x1d8] sm:$0xff] }
  0x2f   :  { %v576_v46 = vsub.f32 %v808_v43, %v809_v44  ;;  %804 = vst [vmem:[%s1422_s2 + $0x1b8] sm:$0xff] %v556_v41  ;;  %807 = vst [vmem:[%s1422_s2 + $0x1c0] sm:$0xff] %v566_v42  ;;  %v586_v50 = vsub.f32 %v811_v45, %v812_v47  ;;  %v596_v51 = vsub.f32 %v814_v48, %v815_v49  ;;  %v817_v52 = vld [vmem:[%s1420_s0 + $0x1e0] sm:$0xff]  ;;  %v820_v54 = vld [vmem:[%s1420_s0 + $0x1e8] sm:$0xff] }
  0x30   :  { %v818_v53 = vld [vmem:[%s1421_s1 + $0x1e0] sm:$0xff]  ;;  %v821_v56 = vld [vmem:[%s1421_s1 + $0x1e8] sm:$0xff]  ;;  %v823_v57 = vld [vmem:[%s1420_s0 + $0x1f0] sm:$0xff] }
  0x31   :  { %810 = vst [vmem:[%s1422_s2 + $0x1c8] sm:$0xff] %v576_v46  ;;  %v606_v55 = vsub.f32 %v817_v52, %v818_v53  ;;  %v824_v58 = vld [vmem:[%s1421_s1 + $0x1f0] sm:$0xff]  ;;  %813 = vst [vmem:[%s1422_s2 + $0x1d0] sm:$0xff] %v586_v50  ;;  %v616_v59 = vsub.f32 %v820_v54, %v821_v56  ;;  %v826_v61 = vld [vmem:[%s1420_s0 + $0x1f8] sm:$0xff] }
  0x32   :  { %816 = vst [vmem:[%s1422_s2 + $0x1d8] sm:$0xff] %v596_v51  ;;  %v626_v60 = vsub.f32 %v823_v57, %v824_v58  ;;  %v827_v62 = vld [vmem:[%s1421_s1 + $0x1f8] sm:$0xff] }
  0x33   :  { %819 = vst [vmem:[%s1422_s2 + $0x1e0] sm:$0xff] %v606_v55  ;;  %v636_v63 = vsub.f32 %v826_v61, %v827_v62  ;;  %822 = vst [vmem:[%s1422_s2 + $0x1e8] sm:$0xff] %v616_v59 }
  0x34   :  { %825 = vst [vmem:[%s1422_s2 + $0x1f0] sm:$0xff] %v626_v60 }
  0x35   :  { %828 = vst [vmem:[%s1422_s2 + $0x1f8] sm:$0xff] %v636_v63 }

// kernel: network_whole_forward.4
= control target key start
LH: loop header
LB: loop body
LE: loop exit
PB: predicated region body
PF: predicated region fallthrough
CT: control target
= control target key end

     0   :  { %vm24_vm0 = vcmask 23552   ;;  %vm243_vm2 = vcmask 7168   ;;  %v647_v29 = vmov 1.0   ;;  %vm465_vm4 = vcmask 261120   ;;  %s782_s0 = inlined_call_operand.vmem [shape: f32[2,32,3], index: 0, kind: input, shape index: {}]   ;;  %s783_s1 = inlined_call_operand.vmem [shape: f32[2,32,32], index: 1, kind: output, shape index: {}]  }
   0x1   :  { %v8_v0 = vld [vmem:[%s782_s0] sm:$0xff]  ;;  %v9_v1 = vld [vmem:[%s782_s0 + $0x8] sm:$0xff]  ;;  %vm666_vm1 = vmpackc.low %vm24_vm0, %vm24_vm0 }
   0x2   :  { %v598_v3 = vpack.c.bf16 %v9_v1, %v8_v0  ;;  %v12_v4 = vld [vmem:[%s782_s0 + $0x20] sm:$0xff]  ;;  %v13_v5 = vld [vmem:[%s782_s0 + $0x28] sm:$0xff]  ;;  %v16_v6 = vmul.f32 %v8_v0, %v8_v0  ;;  %v10_v7 = vld [vmem:[%s782_s0 + $0x10] sm:$0xff]  ;;  %550 = vmatprep.mubr.msk.f32.mxu0 %vm24_vm0, %v8_v0  ;;  %v17_v15 = vmul.f32 %v9_v1, %v9_v1 }
   0x3   :  { %v610_v8 = vpack.c.bf16 %v13_v5, %v12_v4  ;;  %v20_v9 = vmul.f32 %v12_v4, %v12_v4  ;;  %v21_v10 = vmul.f32 %v13_v5, %v13_v5  ;;  %v11_v11 = vld [vmem:[%s782_s0 + $0x18] sm:$0xff]  ;;  %v14_v12 = vld [vmem:[%s782_s0 + $0x30] sm:$0xff]  ;;  %564 = vmatprep.mubr.msk.f32.mxu1 %vm24_vm0, %v12_v4  ;;  %v18_v22 = vmul.f32 %v10_v7, %v10_v7  ;;  %vm724_vm3 = vmpackc.low %vm243_vm2, %vm243_vm2 }
   0x4   :  { %v15_v13 = vld [vmem:[%s782_s0 + $0x38] sm:$0xff]  ;;  %600 = vmatprep.subr.msk.bf16.mxu0 %vm666_vm1, %v598_v3  ;;  %v25_v14 = vsel %vm24_vm0, %v16_v6, 0.0  ;;  %v604_v16 = vpack.c.bf16 %v11_v11, %v10_v7  ;;  %v19_v20 = vmul.f32 %v11_v11, %v11_v11  ;;  %v28_v21 = vsel %vm24_vm0, %v17_v15, 0.0 }
   0x5   :  { %v616_v17 = vpack.c.bf16 %v15_v13, %v14_v12  ;;  %612 = vmatprep.subr.msk.bf16.mxu1 %vm666_vm1, %v610_v8  ;;  %v37_v18 = vsel %vm24_vm0, %v20_v9, 0.0  ;;  %603 = vmatpush3.bf16.xpose.msk.msra.mxu0 %vm666_vm1, %v598_v3  ;;  %v40_v19 = vsel %vm24_vm0, %v21_v10, 0.0  ;;  %v23_v24 = vmul.f32 %v15_v13, %v15_v13 }
   0x6   :  { %615 = vmatpush3.bf16.xpose.msk.msra.mxu1 %vm666_vm1, %v610_v8  ;;  %38 = vadd.xlane.f32.xlu1 %v37_v18  ;;  %v34_v23 = vsel %vm24_vm0, %v19_v20, 0.0  ;;  %v31_v25 = vsel %vm24_vm0, %v18_v22, 0.0  ;;  %v22_v26 = vmul.f32 %v14_v12, %v14_v12 }
   0x7   :  { %26 = vadd.xlane.f32.xlu0 %v25_v14  ;;  %606 = vmatprep.subr.msk.bf16.mxu0 %vm666_vm1, %v604_v16  ;;  %v46_v27 = vsel %vm24_vm0, %v23_v24, 0.0 }
   0x8   :  { %618 = vmatprep.subr.msk.bf16.mxu1 %vm666_vm1, %v616_v17  ;;  %v43_v28 = vsel %vm24_vm0, %v22_v26, 0.0 }
   0xa   :  { %41 = vadd.xlane.f32.xlu1 %v40_v19 }
   0xb   :  { %29 = vadd.xlane.f32.xlu0 %v28_v21 }
   0xd   :  { %609 = vmatpush3.bf16.xpose.msk.msra.mxu0 %vm666_vm1, %v604_v16 }
   0xe   :  { %621 = vmatpush3.bf16.xpose.msk.msra.mxu1 %vm666_vm1, %v616_v17  ;;  %35 = vadd.xlane.f32.xlu1 %v34_v23 }
   0xf   :  { %32 = vadd.xlane.f32.xlu0 %v31_v25 }
  0x12   :  { %47 = vadd.xlane.f32.xlu1 %v46_v27 }
  0x13   :  { %44 = vadd.xlane.f32.xlu0 %v43_v28 }
  0x14   :  { %551 = vmatmul.mubr.msk.f32.vlgmr.msra.gmra.mrb[0].mxu0 %vm24_vm0, %v9_v1 }
  0x15   :  { %565 = vmatmul.mubr.msk.f32.vlgmr.msra.gmra.mrb[0].mxu1 %vm24_vm0, %v13_v5  ;;  %553 = vmatprep.mubr.msk.f32.mxu0 %vm24_vm0, %v10_v7 }
  0x16   :  { %567 = vmatprep.mubr.msk.f32.mxu1 %vm24_vm0, %v14_v12 }
  0x18   :  { %554 = vmatmul.mubr.msk.f32.gmra.mrb[2].mxu0 %vm24_vm0, %v11_v11 }
  0x19   :  { %568 = vmatmul.mubr.msk.f32.gmra.mrb[2].mxu1 %vm24_vm0, %v15_v13  ;;  %578 = vmatprep.mubr.msk.f32.mxu0 %vm243_vm2, %v647_v29 }
  0x1a   :  { %592 = vmatprep.mubr.msk.f32.mxu1 %vm243_vm2, %v647_v29 }
  0x93   :  { %v39_v30 = vpop.xlane.xlu1 %38 }
  0x94   :  { %v27_v31 = vpop.xlane.xlu0 %26 }
  0x97   :  { %v42_v32 = vpop.xlane.xlu1 %41 }
  0x98   :  { %v634_v34 = vpack.c.bf16 %v42_v32, %v39_v30  ;;  %v30_v35 = vpop.xlane.xlu0 %29 }
  0x99   :  { %v622_v36 = vpack.c.bf16 %v30_v35, %v27_v31 }
  0x9a   :  { %636 = vmatprep.subr.msk.bf16.mxu1 %vm724_vm3, %v634_v34 }
  0x9b   :  { %624 = vmatprep.subr.msk.bf16.mxu0 %vm724_vm3, %v622_v36  ;;  %639 = vmatpush3.bf16.xpose.msk.msra.mxu1 %vm724_vm3, %v634_v34  ;;  %v36_v37 = vpop.xlane.xlu1 %35 }
  0x9c   :  { %627 = vmatpush3.bf16.xpose.msk.msra.mxu0 %vm724_vm3, %v622_v36  ;;  %v33_v38 = vpop.xlane.xlu0 %32 }
  0x9d   :  { %v628_v39 = vpack.c.bf16 %v36_v37, %v33_v38 }
  0x9f   :  { %630 = vmatprep.subr.msk.bf16.mxu0 %vm724_vm3, %v628_v39  ;;  %v48_v40 = vpop.xlane.xlu1 %47 }
  0xa0   :  { %v45_v41 = vpop.xlane.xlu0 %44 }
  0xa1   :  { %v640_v42 = vpack.c.bf16 %v48_v40, %v45_v41 }
  0xa3   :  { %642 = vmatprep.subr.msk.bf16.mxu1 %vm724_vm3, %v640_v42 }
  0xa4   :  { %633 = vmatpush3.bf16.xpose.msk.msra.mxu0 %vm724_vm3, %v628_v39  ;;  %645 = vmatpush3.bf16.xpose.msk.msra.mxu1 %vm724_vm3, %v640_v42 }
  0xab   :  { %579 = vmatmul.mubr.msk.f32.vlgmr.msra.gmra.mrb[4].mxu0 %vm243_vm2, %v647_v29  ;;  %593 = vmatmul.mubr.msk.f32.vlgmr.msra.gmra.mrb[4].mxu1 %vm243_vm2, %v647_v29 }
  0xac   :  { %581 = vmatprep.mubr.msk.f32.mxu0 %vm243_vm2, %v647_v29  ;;  %595 = vmatprep.mubr.msk.f32.mxu1 %vm243_vm2, %v647_v29 }
  0xaf   :  { %582 = vmatmul.mubr.msk.f32.gmra.mrb[6].mxu0 %vm243_vm2, %v647_v29  ;;  %596 = vmatmul.mubr.msk.f32.gmra.mrb[6].mxu1 %vm243_vm2, %v647_v29 }
  0xe7   :  { %v552_v43 = vpop.f32.mrb[0].mxu0 }
  0xe8   :  { %v566_v44 = vpop.f32.mrb[0].mxu1  ;;  %v127_v45 = vpop.f32.mrb[1].mxu0  ;;  %v442_v51 = vmul.f32 2.0, %v552_v43 }
  0xe9   :  { %v224_v46 = vpop.f32.mrb[1].mxu1  ;;  %v446_v52 = vmul.f32 2.0, %v566_v44  ;;  %v441_v53 = vmul.f32 2.0, %v127_v45 }
  0xea   :  { %v445_v54 = vmul.f32 2.0, %v224_v46  ;;  %v450_v55 = vsub.f32 %v442_v51, %v30_v35 }
  0xeb   :  { %v555_v47 = vpop.f32.mrb[2].mxu0  ;;  %v454_v58 = vsub.f32 %v446_v52, %v42_v32  ;;  %v449_v59 = vsub.f32 %v441_v53, %v27_v31 }
  0xec   :  { %v569_v48 = vpop.f32.mrb[2].mxu1  ;;  %v137_v49 = vpop.f32.mrb[3].mxu0  ;;  %v444_v56 = vmul.f32 2.0, %v555_v47  ;;  %v453_v0 = vsub.f32 %v445_v54, %v39_v30 }
  0xed   :  { %v234_v50 = vpop.f32.mrb[3].mxu1  ;;  %v448_v57 = vmul.f32 2.0, %v569_v48  ;;  %v443_v60 = vmul.f32 2.0, %v137_v49 }
  0xee   :  { %v447_v61 = vmul.f32 2.0, %v234_v50  ;;  %v452_v7 = vsub.f32 %v444_v56, %v36_v37 }
  0xef   :  { %v456_v8 = vsub.f32 %v448_v57, %v48_v40  ;;  %v451_v11 = vsub.f32 %v443_v60, %v33_v38 }
  0xf0   :  { %v455_v12 = vsub.f32 %v447_v61, %v45_v41 }
 0x17e   :  { %v580_v62 = vpop.f32.mrb[4].mxu0  ;;  %v594_v63 = vpop.f32.mrb[4].mxu1 }
 0x17f   :  { %v458_v1 = vsub.f32 %v450_v55, %v580_v62  ;;  %v462_v2 = vsub.f32 %v454_v58, %v594_v63  ;;  %v325_v3 = vpop.f32.mrb[5].mxu0  ;;  %v422_v4 = vpop.f32.mrb[5].mxu1 }
 0x180   :  { %v457_v5 = vsub.f32 %v449_v59, %v325_v3  ;;  %v461_v6 = vsub.f32 %v453_v0, %v422_v4 }
 0x181   :  { %467 = vst.msk [vmem:[%s783_s1 + $0x8] sm:$0xff] %vm465_vm4, %v458_v1  ;;  %471 = vst.msk [vmem:[%s783_s1 + $0x28] sm:$0xff] %vm465_vm4, %v462_v2 }
 0x182   :  { %466 = vst.msk [vmem:[%s783_s1] sm:$0xff] %vm465_vm4, %v457_v5  ;;  %470 = vst.msk [vmem:[%s783_s1 + $0x20] sm:$0xff] %vm465_vm4, %v461_v6  ;;  %v583_v9 = vpop.f32.mrb[6].mxu0  ;;  %v597_v10 = vpop.f32.mrb[6].mxu1 }
 0x183   :  { %v460_v13 = vsub.f32 %v452_v7, %v583_v9  ;;  %v464_v14 = vsub.f32 %v456_v8, %v597_v10  ;;  %v335_v15 = vpop.f32.mrb[7].mxu0  ;;  %v432_v16 = vpop.f32.mrb[7].mxu1 }
 0x184   :  { %v459_v17 = vsub.f32 %v451_v11, %v335_v15  ;;  %v463_v18 = vsub.f32 %v455_v12, %v432_v16 }
 0x185   :  { %469 = vst.msk [vmem:[%s783_s1 + $0x18] sm:$0xff] %vm465_vm4, %v460_v13  ;;  %473 = vst.msk [vmem:[%s783_s1 + $0x38] sm:$0xff] %vm465_vm4, %v464_v14 }
 0x186   :  { %468 = vst.msk [vmem:[%s783_s1 + $0x10] sm:$0xff] %vm465_vm4, %v459_v17  ;;  %472 = vst.msk [vmem:[%s783_s1 + $0x30] sm:$0xff] %vm465_vm4, %v463_v18 }

// kernel: sub.1
= control target key start
LH: loop header
LB: loop body
LE: loop exit
PB: predicated region body
PF: predicated region fallthrough
CT: control target
= control target key end

     0   :  { %s1420_s0 = inlined_call_operand.vmem [shape: f32[512,64], index: 0, kind: input, shape index: {}]   ;;  %s1421_s1 = inlined_call_operand.vmem [shape: f32[512,64], index: 1, kind: input, shape index: {}]   ;;  %s1422_s2 = inlined_call_operand.vmem [shape: f32[512,64], index: 2, kind: output, shape index: {}]  }
   0x1   :  { %v3_v0 = vld [vmem:[%s1420_s0] sm:$0xff]  ;;  %v640_v2 = vld [vmem:[%s1420_s0 + $0x8] sm:$0xff]  ;;  %v643_v5 = vld [vmem:[%s1420_s0 + $0x10] sm:$0xff] }
   0x2   :  { %v4_v1 = vld [vmem:[%s1421_s1] sm:$0xff]  ;;  %v641_v4 = vld [vmem:[%s1421_s1 + $0x8] sm:$0xff]  ;;  %v644_v6 = vld [vmem:[%s1421_s1 + $0x10] sm:$0xff] }
   0x3   :  { %v7_v3 = vsub.f32 %v3_v0, %v4_v1  ;;  %v16_v7 = vsub.f32 %v640_v2, %v641_v4  ;;  %v26_v8 = vsub.f32 %v643_v5, %v644_v6  ;;  %v646_v9 = vld [vmem:[%s1420_s0 + $0x18] sm:$0xff]  ;;  %v649_v11 = vld [vmem:[%s1420_s0 + $0x20] sm:$0xff]  ;;  %v652_v14 = vld [vmem:[%s1420_s0 + $0x28] sm:$0xff] }
   0x4   :  { %v647_v10 = vld [vmem:[%s1421_s1 + $0x18] sm:$0xff]  ;;  %v650_v13 = vld [vmem:[%s1421_s1 + $0x20] sm:$0xff]  ;;  %v653_v15 = vld [vmem:[%s1421_s1 + $0x28] sm:$0xff] }
   0x5   :  { %9 = vst [vmem:[%s1422_s2] sm:$0xff] %v7_v3  ;;  %v36_v12 = vsub.f32 %v646_v9, %v647_v10  ;;  %642 = vst [vmem:[%s1422_s2 + $0x8] sm:$0xff] %v16_v7  ;;  %v46_v16 = vsub.f32 %v649_v11, %v650_v13  ;;  %v56_v17 = vsub.f32 %v652_v14, %v653_v15  ;;  %v655_v18 = vld [vmem:[%s1420_s0 + $0x30] sm:$0xff]  ;;  %v658_v20 = vld [vmem:[%s1420_s0 + $0x38] sm:$0xff] }
   0x6   :  { %645 = vst [vmem:[%s1422_s2 + $0x10] sm:$0xff] %v26_v8  ;;  %v656_v19 = vld [vmem:[%s1421_s1 + $0x30] sm:$0xff]  ;;  %v659_v22 = vld [vmem:[%s1421_s1 + $0x38] sm:$0xff]  ;;  %v661_v23 = vld [vmem:[%s1420_s0 + $0x40] sm:$0xff] }
   0x7   :  { %648 = vst [vmem:[%s1422_s2 + $0x18] sm:$0xff] %v36_v12  ;;  %v66_v21 = vsub.f32 %v655_v18, %v656_v19  ;;  %v662_v24 = vld [vmem:[%s1421_s1 + $0x40] sm:$0xff]  ;;  %651 = vst [vmem:[%s1422_s2 + $0x20] sm:$0xff] %v46_v16  ;;  %v76_v25 = vsub.f32 %v658_v20, %v659_v22  ;;  %v664_v27 = vld [vmem:[%s1420_s0 + $0x48] sm:$0xff] }
   0x8   :  { %654 = vst [vmem:[%s1422_s2 + $0x28] sm:$0xff] %v56_v17  ;;  %v86_v26 = vsub.f32 %v661_v23, %v662_v24  ;;  %v665_v28 = vld [vmem:[%s1421_s1 + $0x48] sm:$0xff]  ;;  %v667_v29 = vld [vmem:[%s1420_s0 + $0x50] sm:$0xff]  ;;  %v670_v32 = vld [vmem:[%s1420_s0 + $0x58] sm:$0xff] }
   0x9   :  { %657 = vst [vmem:[%s1422_s2 + $0x30] sm:$0xff] %v66_v21  ;;  %v96_v30 = vsub.f32 %v664_v27, %v665_v28  ;;  %v668_v31 = vld [vmem:[%s1421_s1 + $0x50] sm:$0xff]  ;;  %v671_v33 = vld [vmem:[%s1421_s1 + $0x58] sm:$0xff]  ;;  %660 = vst [vmem:[%s1422_s2 + $0x38] sm:$0xff] %v76_v25 }
   0xa   :  { %663 = vst [vmem:[%s1422_s2 + $0x40] sm:$0xff] %v86_v26  ;;  %v106_v34 = vsub.f32 %v667_v29, %v668_v31  ;;  %v116_v35 = vsub.f32 %v670_v32, %v671_v33  ;;  %v673_v36 = vld [vmem:[%s1420_s0 + $0x60] sm:$0xff]  ;;  %v676_v38 = vld [vmem:[%s1420_s0 + $0x68] sm:$0xff]  ;;  %v679_v41 = vld [vmem:[%s1420_s0 + $0x70] sm:$0xff] }
   0xb   :  { %v674_v37 = vld [vmem:[%s1421_s1 + $0x60] sm:$0xff]  ;;  %666 = vst [vmem:[%s1422_s2 + $0x48] sm:$0xff] %v96_v30  ;;  %v677_v40 = vld [vmem:[%s1421_s1 + $0x68] sm:$0xff]  ;;  %v680_v42 = vld [vmem:[%s1421_s1 + $0x70] sm:$0xff] }
   0xc   :  { %v126_v39 = vsub.f32 %v673_v36, %v674_v37  ;;  %669 = vst [vmem:[%s1422_s2 + $0x50] sm:$0xff] %v106_v34  ;;  %672 = vst [vmem:[%s1422_s2 + $0x58] sm:$0xff] %v116_v35  ;;  %v136_v43 = vsub.f32 %v676_v38, %v677_v40  ;;  %v146_v44 = vsub.f32 %v679_v41, %v680_v42  ;;  %v682_v45 = vld [vmem:[%s1420_s0 + $0x78] sm:$0xff]  ;;  %v685_v47 = vld [vmem:[%s1420_s0 + $0x80] sm:$0xff] }
   0xd   :  { %v683_v46 = vld [vmem:[%s1421_s1 + $0x78] sm:$0xff]  ;;  %v686_v49 = vld [vmem:[%s1421_s1 + $0x80] sm:$0xff]  ;;  %v688_v50 = vld [vmem:[%s1420_s0 + $0x88] sm:$0xff] }
   0xe   :  { %675 = vst [vmem:[%s1422_s2 + $0x60] sm:$0xff] %v126_v39  ;;  %v156_v48 = vsub.f32 %v682_v45, %v683_v46  ;;  %v689_v51 = vld [vmem:[%s1421_s1 + $0x88] sm:$0xff]  ;;  %678 = vst [vmem:[%s1422_s2 + $0x68] sm:$0xff] %v136_v43  ;;  %v166_v52 = vsub.f32 %v685_v47, %v686_v49  ;;  %v691_v54 = vld [vmem:[%s1420_s0 + $0x90] sm:$0xff] }
   0xf   :  { %681 = vst [vmem:[%s1422_s2 + $0x70] sm:$0xff] %v146_v44  ;;  %v176_v53 = vsub.f32 %v688_v50, %v689_v51  ;;  %v692_v55 = vld [vmem:[%s1421_s1 + $0x90] sm:$0xff]  ;;  %v694_v56 = vld [vmem:[%s1420_s0 + $0x98] sm:$0xff]  ;;  %v697_v59 = vld [vmem:[%s1420_s0 + $0xa0] sm:$0xff] }
  0x10   :  { %684 = vst [vmem:[%s1422_s2 + $0x78] sm:$0xff] %v156_v48  ;;  %v186_v57 = vsub.f32 %v691_v54, %v692_v55  ;;  %v695_v58 = vld [vmem:[%s1421_s1 + $0x98] sm:$0xff]  ;;  %v698_v60 = vld [vmem:[%s1421_s1 + $0xa0] sm:$0xff]  ;;  %687 = vst [vmem:[%s1422_s2 + $0x80] sm:$0xff] %v166_v52 }
  0x11   :  { %690 = vst [vmem:[%s1422_s2 + $0x88] sm:$0xff] %v176_v53  ;;  %v196_v61 = vsub.f32 %v694_v56, %v695_v58  ;;  %v206_v62 = vsub.f32 %v697_v59, %v698_v60  ;;  %v700_v63 = vld [vmem:[%s1420_s0 + $0xa8] sm:$0xff]  ;;  %v703_v1 = vld [vmem:[%s1420_s0 + $0xb0] sm:$0xff]  ;;  %v706_v4 = vld [vmem:[%s1420_s0 + $0xb8] sm:$0xff] }
  0x12   :  { %v701_v0 = vld [vmem:[%s1421_s1 + $0xa8] sm:$0xff]  ;;  %693 = vst [vmem:[%s1422_s2 + $0x90] sm:$0xff] %v186_v57  ;;  %v704_v3 = vld [vmem:[%s1421_s1 + $0xb0] sm:$0xff]  ;;  %v707_v5 = vld [vmem:[%s1421_s1 + $0xb8] sm:$0xff] }
  0x13   :  { %v216_v2 = vsub.f32 %v700_v63, %v701_v0  ;;  %696 = vst [vmem:[%s1422_s2 + $0x98] sm:$0xff] %v196_v61  ;;  %699 = vst [vmem:[%s1422_s2 + $0xa0] sm:$0xff] %v206_v62  ;;  %v226_v6 = vsub.f32 %v703_v1, %v704_v3  ;;  %v236_v7 = vsub.f32 %v706_v4, %v707_v5  ;;  %v709_v8 = vld [vmem:[%s1420_s0 + $0xc0] sm:$0xff]  ;;  %v712_v10 = vld [vmem:[%s1420_s0 + $0xc8] sm:$0xff] }
  0x14   :  { %v710_v9 = vld [vmem:[%s1421_s1 + $0xc0] sm:$0xff]  ;;  %v713_v12 = vld [vmem:[%s1421_s1 + $0xc8] sm:$0xff]  ;;  %v715_v13 = vld [vmem:[%s1420_s0 + $0xd0] sm:$0xff] }
  0x15   :  { %702 = vst [vmem:[%s1422_s2 + $0xa8] sm:$0xff] %v216_v2  ;;  %v246_v11 = vsub.f32 %v709_v8, %v710_v9  ;;  %v716_v14 = vld [vmem:[%s1421_s1 + $0xd0] sm:$0xff]  ;;  %705 = vst [vmem:[%s1422_s2 + $0xb0] sm:$0xff] %v226_v6  ;;  %v256_v15 = vsub.f32 %v712_v10, %v713_v12  ;;  %v718_v17 = vld [vmem:[%s1420_s0 + $0xd8] sm:$0xff] }
  0x16   :  { %708 = vst [vmem:[%s1422_s2 + $0xb8] sm:$0xff] %v236_v7  ;;  %v266_v16 = vsub.f32 %v715_v13, %v716_v14  ;;  %v719_v18 = vld [vmem:[%s1421_s1 + $0xd8] sm:$0xff]  ;;  %v721_v19 = vld [vmem:[%s1420_s0 + $0xe0] sm:$0xff]  ;;  %v724_v22 = vld [vmem:[%s1420_s0 + $0xe8] sm:$0xff] }
  0x17   :  { %711 = vst [vmem:[%s1422_s2 + $0xc0] sm:$0xff] %v246_v11  ;;  %v276_v20 = vsub.f32 %v718_v17, %v719_v18  ;;  %v722_v21 = vld [vmem:[%s1421_s1 + $0xe0] sm:$0xff]  ;;  %v725_v23 = vld [vmem:[%s1421_s1 + $0xe8] sm:$0xff]  ;;  %714 = vst [vmem:[%s1422_s2 + $0xc8] sm:$0xff] %v256_v15 }
  0x18   :  { %717 = vst [vmem:[%s1422_s2 + $0xd0] sm:$0xff] %v266_v16  ;;  %v286_v24 = vsub.f32 %v721_v19, %v722_v21  ;;  %v296_v25 = vsub.f32 %v724_v22, %v725_v23  ;;  %v727_v26 = vld [vmem:[%s1420_s0 + $0xf0] sm:$0xff]  ;;  %v730_v28 = vld [vmem:[%s1420_s0 + $0xf8] sm:$0xff]  ;;  %v733_v31 = vld [vmem:[%s1420_s0 + $0x100] sm:$0xff] }
  0x19   :  { %v728_v27 = vld [vmem:[%s1421_s1 + $0xf0] sm:$0xff]  ;;  %720 = vst [vmem:[%s1422_s2 + $0xd8] sm:$0xff] %v276_v20  ;;  %v731_v30 = vld [vmem:[%s1421_s1 + $0xf8] sm:$0xff]  ;;  %v734_v32 = vld [vmem:[%s1421_s1 + $0x100] sm:$0xff] }
  0x1a   :  { %v306_v29 = vsub.f32 %v727_v26, %v728_v27  ;;  %723 = vst [vmem:[%s1422_s2 + $0xe0] sm:$0xff] %v286_v24  ;;  %726 = vst [vmem:[%s1422_s2 + $0xe8] sm:$0xff] %v296_v25  ;;  %v316_v33 = vsub.f32 %v730_v28, %v731_v30  ;;  %v326_v34 = vsub.f32 %v733_v31, %v734_v32  ;;  %v736_v35 = vld [vmem:[%s1420_s0 + $0x108] sm:$0xff]  ;;  %v739_v37 = vld [vmem:[%s1420_s0 + $0x110] sm:$0xff] }
  0x1b   :  { %v737_v36 = vld [vmem:[%s1421_s1 + $0x108] sm:$0xff]  ;;  %v740_v39 = vld [vmem:[%s1421_s1 + $0x110] sm:$0xff]  ;;  %v742_v40 = vld [vmem:[%s1420_s0 + $0x118] sm:$0xff] }
  0x1c   :  { %729 = vst [vmem:[%s1422_s2 + $0xf0] sm:$0xff] %v306_v29  ;;  %v336_v38 = vsub.f32 %v736_v35, %v737_v36  ;;  %v743_v41 = vld [vmem:[%s1421_s1 + $0x118] sm:$0xff]  ;;  %732 = vst [vmem:[%s1422_s2 + $0xf8] sm:$0xff] %v316_v33  ;;  %v346_v42 = vsub.f32 %v739_v37, %v740_v39  ;;  %v745_v44 = vld [vmem:[%s1420_s0 + $0x120] sm:$0xff] }
  0x1d   :  { %735 = vst [vmem:[%s1422_s2 + $0x100] sm:$0xff] %v326_v34  ;;  %v356_v43 = vsub.f32 %v742_v40, %v743_v41  ;;  %v746_v45 = vld [vmem:[%s1421_s1 + $0x120] sm:$0xff]  ;;  %v748_v46 = vld [vmem:[%s1420_s0 + $0x128] sm:$0xff]  ;;  %v751_v49 = vld [vmem:[%s1420_s0 + $0x130] sm:$0xff] }
  0x1e   :  { %738 = vst [vmem:[%s1422_s2 + $0x108] sm:$0xff] %v336_v38  ;;  %v366_v47 = vsub.f32 %v745_v44, %v746_v45  ;;  %v749_v48 = vld [vmem:[%s1421_s1 + $0x128] sm:$0xff]  ;;  %v752_v50 = vld [vmem:[%s1421_s1 + $0x130] sm:$0xff]  ;;  %741 = vst [vmem:[%s1422_s2 + $0x110] sm:$0xff] %v346_v42 }
  0x1f   :  { %744 = vst [vmem:[%s1422_s2 + $0x118] sm:$0xff] %v356_v43  ;;  %v376_v51 = vsub.f32 %v748_v46, %v749_v48  ;;  %v386_v52 = vsub.f32 %v751_v49, %v752_v50  ;;  %v754_v53 = vld [vmem:[%s1420_s0 + $0x138] sm:$0xff]  ;;  %v757_v55 = vld [vmem:[%s1420_s0 + $0x140] sm:$0xff]  ;;  %v760_v58 = vld [vmem:[%s1420_s0 + $0x148] sm:$0xff] }
  0x20   :  { %v755_v54 = vld [vmem:[%s1421_s1 + $0x138] sm:$0xff]  ;;  %747 = vst [vmem:[%s1422_s2 + $0x120] sm:$0xff] %v366_v47  ;;  %v758_v57 = vld [vmem:[%s1421_s1 + $0x140] sm:$0xff]  ;;  %v761_v59 = vld [vmem:[%s1421_s1 + $0x148] sm:$0xff] }
  0x21   :  { %v396_v56 = vsub.f32 %v754_v53, %v755_v54  ;;  %750 = vst [vmem:[%s1422_s2 + $0x128] sm:$0xff] %v376_v51  ;;  %753 = vst [vmem:[%s1422_s2 + $0x130] sm:$0xff] %v386_v52  ;;  %v406_v60 = vsub.f32 %v757_v55, %v758_v57  ;;  %v416_v61 = vsub.f32 %v760_v58, %v761_v59  ;;  %v763_v62 = vld [vmem:[%s1420_s0 + $0x150] sm:$0xff]  ;;  %v766_v0 = vld [vmem:[%s1420_s0 + $0x158] sm:$0xff] }
  0x22   :  { %v764_v63 = vld [vmem:[%s1421_s1 + $0x150] sm:$0xff]  ;;  %v767_v2 = vld [vmem:[%s1421_s1 + $0x158] sm:$0xff]  ;;  %v769_v3 = vld [vmem:[%s1420_s0 + $0x160] sm:$0xff] }
  0x23   :  { %756 = vst [vmem:[%s1422_s2 + $0x138] sm:$0xff] %v396_v56  ;;  %v426_v1 = vsub.f32 %v763_v62, %v764_v63  ;;  %v770_v4 = vld [vmem:[%s1421_s1 + $0x160] sm:$0xff]  ;;  %759 = vst [vmem:[%s1422_s2 + $0x140] sm:$0xff] %v406_v60  ;;  %v436_v5 = vsub.f32 %v766_v0, %v767_v2  ;;  %v772_v7 = vld [vmem:[%s1420_s0 + $0x168] sm:$0xff] }
  0x24   :  { %762 = vst [vmem:[%s1422_s2 + $0x148] sm:$0xff] %v416_v61  ;;  %v446_v6 = vsub.f32 %v769_v3, %v770_v4  ;;  %v773_v8 = vld [vmem:[%s1421_s1 + $0x168] sm:$0xff]  ;;  %v775_v9 = vld [vmem:[%s1420_s0 + $0x170] sm:$0xff]  ;;  %v778_v12 = vld [vmem:[%s1420_s0 + $0x178] sm:$0xff] }
  0x25   :  { %765 = vst [vmem:[%s1422_s2 + $0x150] sm:$0xff] %v426_v1  ;;  %v456_v10 = vsub.f32 %v772_v7, %v773_v8  ;;  %v776_v11 = vld [vmem:[%s1421_s1 + $0x170] sm:$0xff]  ;;  %v779_v13 = vld [vmem:[%s1421_s1 + $0x178] sm:$0xff]  ;;  %768 = vst [vmem:[%s1422_s2 + $0x158] sm:$0xff] %v436_v5 }
  0x26   :  { %771 = vst [vmem:[%s1422_s2 + $0x160] sm:$0xff] %v446_v6  ;;  %v466_v14 = vsub.f32 %v775_v9, %v776_v11  ;;  %v476_v15 = vsub.f32 %v778_v12, %v779_v13  ;;  %v781_v16 = vld [vmem:[%s1420_s0 + $0x180] sm:$0xff]  ;;  %v784_v18 = vld [vmem:[%s1420_s0 + $0x188] sm:$0xff]  ;;  %v787_v21 = vld [vmem:[%s1420_s0 + $0x190] sm:$0xff] }
  0x27   :  { %v782_v17 = vld [vmem:[%s1421_s1 + $0x180] sm:$0xff]  ;;  %774 = vst [vmem:[%s1422_s2 + $0x168] sm:$0xff] %v456_v10  ;;  %v785_v20 = vld [vmem:[%s1421_s1 + $0x188] sm:$0xff]  ;;  %v788_v22 = vld [vmem:[%s1421_s1 + $0x190] sm:$0xff] }
  0x28   :  { %v486_v19 = vsub.f32 %v781_v16, %v782_v17  ;;  %777 = vst [vmem:[%s1422_s2 + $0x170] sm:$0xff] %v466_v14  ;;  %780 = vst [vmem:[%s1422_s2 + $0x178] sm:$0xff] %v476_v15  ;;  %v496_v23 = vsub.f32 %v784_v18, %v785_v20  ;;  %v506_v24 = vsub.f32 %v787_v21, %v788_v22  ;;  %v790_v25 = vld [vmem:[%s1420_s0 + $0x198] sm:$0xff]  ;;  %v793_v27 = vld [vmem:[%s1420_s0 + $0x1a0] sm:$0xff] }
  0x29   :  { %v791_v26 = vld [vmem:[%s1421_s1 + $0x198] sm:$0xff]  ;;  %v794_v29 = vld [vmem:[%s1421_s1 + $0x1a0] sm:$0xff]  ;;  %v796_v30 = vld [vmem:[%s1420_s0 + $0x1a8] sm:$0xff] }
  0x2a   :  { %783 = vst [vmem:[%s1422_s2 + $0x180] sm:$0xff] %v486_v19  ;;  %v516_v28 = vsub.f32 %v790_v25, %v791_v26  ;;  %v797_v31 = vld [vmem:[%s1421_s1 + $0x1a8] sm:$0xff]  ;;  %786 = vst [vmem:[%s1422_s2 + $0x188] sm:$0xff] %v496_v23  ;;  %v526_v32 = vsub.f32 %v793_v27, %v794_v29  ;;  %v799_v34 = vld [vmem:[%s1420_s0 + $0x1b0] sm:$0xff] }
  0x2b   :  { %789 = vst [vmem:[%s1422_s2 + $0x190] sm:$0xff] %v506_v24  ;;  %v536_v33 = vsub.f32 %v796_v30, %v797_v31  ;;  %v800_v35 = vld [vmem:[%s1421_s1 + $0x1b0] sm:$0xff]  ;;  %v802_v36 = vld [vmem:[%s1420_s0 + $0x1b8] sm:$0xff]  ;;  %v805_v39 = vld [vmem:[%s1420_s0 + $0x1c0] sm:$0xff] }
  0x2c   :  { %792 = vst [vmem:[%s1422_s2 + $0x198] sm:$0xff] %v516_v28  ;;  %v546_v37 = vsub.f32 %v799_v34, %v800_v35  ;;  %v803_v38 = vld [vmem:[%s1421_s1 + $0x1b8] sm:$0xff]  ;;  %v806_v40 = vld [vmem:[%s1421_s1 + $0x1c0] sm:$0xff]  ;;  %795 = vst [vmem:[%s1422_s2 + $0x1a0] sm:$0xff] %v526_v32 }
  0x2d   :  { %798 = vst [vmem:[%s1422_s2 + $0x1a8] sm:$0xff] %v536_v33  ;;  %v556_v41 = vsub.f32 %v802_v36, %v803_v38  ;;  %v566_v42 = vsub.f32 %v805_v39, %v806_v40  ;;  %v808_v43 = vld [vmem:[%s1420_s0 + $0x1c8] sm:$0xff]  ;;  %v811_v45 = vld [vmem:[%s1420_s0 + $0x1d0] sm:$0xff]  ;;  %v814_v48 = vld [vmem:[%s1420_s0 + $0x1d8] sm:$0xff] }
  0x2e   :  { %v809_v44 = vld [vmem:[%s1421_s1 + $0x1c8] sm:$0xff]  ;;  %801 = vst [vmem:[%s1422_s2 + $0x1b0] sm:$0xff] %v546_v37  ;;  %v812_v47 = vld [vmem:[%s1421_s1 + $0x1d0] sm:$0xff]  ;;  %v815_v49 = vld [vmem:[%s1421_s1 + $0x1d8] sm:$0xff] }
  0x2f   :  { %v576_v46 = vsub.f32 %v808_v43, %v809_v44  ;;  %804 = vst [vmem:[%s1422_s2 + $0x1b8] sm:$0xff] %v556_v41  ;;  %807 = vst [vmem:[%s1422_s2 + $0x1c0] sm:$0xff] %v566_v42  ;;  %v586_v50 = vsub.f32 %v811_v45, %v812_v47  ;;  %v596_v51 = vsub.f32 %v814_v48, %v815_v49  ;;  %v817_v52 = vld [vmem:[%s1420_s0 + $0x1e0] sm:$0xff]  ;;  %v820_v54 = vld [vmem:[%s1420_s0 + $0x1e8] sm:$0xff] }
  0x30   :  { %v818_v53 = vld [vmem:[%s1421_s1 + $0x1e0] sm:$0xff]  ;;  %v821_v56 = vld [vmem:[%s1421_s1 + $0x1e8] sm:$0xff]  ;;  %v823_v57 = vld [vmem:[%s1420_s0 + $0x1f0] sm:$0xff] }
  0x31   :  { %810 = vst [vmem:[%s1422_s2 + $0x1c8] sm:$0xff] %v576_v46  ;;  %v606_v55 = vsub.f32 %v817_v52, %v818_v53  ;;  %v824_v58 = vld [vmem:[%s1421_s1 + $0x1f0] sm:$0xff]  ;;  %813 = vst [vmem:[%s1422_s2 + $0x1d0] sm:$0xff] %v586_v50  ;;  %v616_v59 = vsub.f32 %v820_v54, %v821_v56  ;;  %v826_v61 = vld [vmem:[%s1420_s0 + $0x1f8] sm:$0xff] }
  0x32   :  { %816 = vst [vmem:[%s1422_s2 + $0x1d8] sm:$0xff] %v596_v51  ;;  %v626_v60 = vsub.f32 %v823_v57, %v824_v58  ;;  %v827_v62 = vld [vmem:[%s1421_s1 + $0x1f8] sm:$0xff] }
  0x33   :  { %819 = vst [vmem:[%s1422_s2 + $0x1e0] sm:$0xff] %v606_v55  ;;  %v636_v63 = vsub.f32 %v826_v61, %v827_v62  ;;  %822 = vst [vmem:[%s1422_s2 + $0x1e8] sm:$0xff] %v616_v59 }
  0x34   :  { %825 = vst [vmem:[%s1422_s2 + $0x1f0] sm:$0xff] %v626_v60 }
  0x35   :  { %828 = vst [vmem:[%s1422_s2 + $0x1f8] sm:$0xff] %v636_v63 }

// kernel: network_whole_forward.5
= control target key start
LH: loop header
LB: loop body
LE: loop exit
PB: predicated region body
PF: predicated region fallthrough
CT: control target
= control target key end

     0   :  { %vm223_vm0 = vcmask 1042432   ;;  %vm126_vm1 = vcmask 48128   ;;  %vm759_vm6 = vcmask 523264   ;;  %s2975_s1 = inlined_call_operand.vmem [shape: f32[6,64], index: 1, kind: input, shape index: {}]   ;;  %s2976_s0 = inlined_call_operand.vmem [shape: f32[512,6], index: 0, kind: input, shape index: {}]   ;;  %s2977_s3 = inlined_call_operand.vmem [shape: f32[64,64], index: 3, kind: input, shape index: {}]   ;;  %s2978_s2 = inlined_call_operand.vmem [shape: f32[1,64], index: 2, kind: input, shape index: {}]   ;;  %s2979_s4 = inlined_call_operand.vmem [shape: f32[1,64], index: 4, kind: input, shape index: {}]   ;;  %s2980_s5 = inlined_call_operand.vmem [shape: f32[64,64], index: 5, kind: output, shape index: {}]  }
   0x1   :  { %v85_v0 = vld [vmem:[%s2975_s1] sm:$0x3f]  ;;  %v22_v2 = vld [vmem:[%s2976_s0 + $0x8] sm:$0xff]  ;;  %v23_v5 = vld [vmem:[%s2976_s0 + $0x10] sm:$0xff] }
   0x2   :  { %v21_v1 = vld [vmem:[%s2976_s0] sm:$0xff]  ;;  %v118_v3 = vpack.c.bf16 %v85_v0, %v85_v0  ;;  %v24_v6 = vld [vmem:[%s2976_s0 + $0x18] sm:$0xff]  ;;  %v26_v8 = vld [vmem:[%s2976_s0 + $0x28] sm:$0xff] }
   0x3   :  { %v86_v4 = vpack.c.bf16 %v22_v2, %v21_v1  ;;  %v25_v7 = vld [vmem:[%s2976_s0 + $0x20] sm:$0xff]  ;;  %v87_v10 = vpack.c.bf16 %v24_v6, %v23_v5  ;;  %v27_v12 = vld [vmem:[%s2976_s0 + $0x30] sm:$0xff]  ;;  %v28_v13 = vld [vmem:[%s2976_s0 + $0x38] sm:$0xff] }
   0x4   :  { %2205 = vmatprep.subr.msk.bf16.mxu0 %vm223_vm0, %v118_v3  ;;  %v225_v9 = vsel %vm223_vm0, %v118_v3, 0  ;;  %v88_v11 = vpack.c.bf16 %v26_v8, %v25_v7  ;;  %v29_v14 = vld [vmem:[%s2976_s0 + $0x40] sm:$0xff]  ;;  %v30_v15 = vld [vmem:[%s2976_s0 + $0x48] sm:$0xff]  ;;  %v89_v16 = vpack.c.bf16 %v28_v13, %v27_v12  ;;  %v31_v18 = vld [vmem:[%s2976_s0 + $0x50] sm:$0xff] }
   0x5   :  { %2069 = vmatprep.mubr.msk.bf16.mxu0 %vm126_vm1, %v86_v4  ;;  %2068 = vmatpush3.bf16.msra.mxu0 %v225_v9  ;;  %v90_v17 = vpack.c.bf16 %v30_v15, %v29_v14  ;;  %v32_v19 = vld [vmem:[%s2976_s0 + $0x58] sm:$0xff]  ;;  %v33_v20 = vld [vmem:[%s2976_s0 + $0x60] sm:$0xff]  ;;  %v34_v21 = vld [vmem:[%s2976_s0 + $0x68] sm:$0xff] }
   0x6   :  { %v91_v22 = vpack.c.bf16 %v32_v19, %v31_v18  ;;  %v92_v23 = vpack.c.bf16 %v34_v21, %v33_v20  ;;  %v708_v24 = vld [vmem:[%s2977_s3] sm:$0xff]  ;;  %v709_v25 = vld [vmem:[%s2977_s3 + $0x8] sm:$0xff]  ;;  %v35_v27 = vld [vmem:[%s2976_s0 + $0x70] sm:$0xff] }
   0x7   :  { %v748_v26 = vpack.c.bf16 %v709_v25, %v708_v24  ;;  %v36_v28 = vld [vmem:[%s2976_s0 + $0x78] sm:$0xff]  ;;  %v37_v29 = vld [vmem:[%s2976_s0 + $0x80] sm:$0xff]  ;;  %v38_v30 = vld [vmem:[%s2976_s0 + $0x88] sm:$0xff] }
   0x8   :  { %2070 = vmatmul.mubr.msk.bf16.vlgmr.msra.gmra.mrb[0].mxu0 %vm126_vm1, %v87_v10  ;;  %v93_v31 = vpack.c.bf16 %v36_v28, %v35_v27  ;;  %v94_v32 = vpack.c.bf16 %v38_v30, %v37_v29  ;;  %v39_v33 = vld [vmem:[%s2976_s0 + $0x90] sm:$0xff]  ;;  %v40_v34 = vld [vmem:[%s2976_s0 + $0x98] sm:$0xff]  ;;  %v41_v35 = vld [vmem:[%s2976_s0 + $0xa0] sm:$0xff] }
   0x9   :  { %2073 = vmatprep.mubr.msk.bf16.mxu0 %vm126_vm1, %v88_v11  ;;  %2133 = vmatprep.subr.bf16.mxu1 %v748_v26  ;;  %v42_v36 = vld [vmem:[%s2976_s0 + $0xa8] sm:$0xff]  ;;  %v95_v37 = vpack.c.bf16 %v40_v34, %v39_v33  ;;  %v43_v39 = vld [vmem:[%s2976_s0 + $0xb0] sm:$0xff]  ;;  %v44_v40 = vld [vmem:[%s2976_s0 + $0xb8] sm:$0xff] }
   0xa   :  { %2134 = vmatpush3.bf16.msra.mxu1 %v748_v26  ;;  %v96_v38 = vpack.c.bf16 %v42_v36, %v41_v35  ;;  %v45_v41 = vld [vmem:[%s2976_s0 + $0xc0] sm:$0xff]  ;;  %v46_v42 = vld [vmem:[%s2976_s0 + $0xc8] sm:$0xff]  ;;  %v97_v43 = vpack.c.bf16 %v44_v40, %v43_v39  ;;  %v47_v45 = vld [vmem:[%s2976_s0 + $0xd0] sm:$0xff] }
   0xb   :  { %v98_v44 = vpack.c.bf16 %v46_v42, %v45_v41  ;;  %v48_v46 = vld [vmem:[%s2976_s0 + $0xd8] sm:$0xff]  ;;  %v49_v47 = vld [vmem:[%s2976_s0 + $0xe0] sm:$0xff]  ;;  %v50_v48 = vld [vmem:[%s2976_s0 + $0xe8] sm:$0xff] }
   0xc   :  { %v99_v49 = vpack.c.bf16 %v48_v46, %v47_v45  ;;  %v100_v50 = vpack.c.bf16 %v50_v48, %v49_v47  ;;  %v51_v51 = vld [vmem:[%s2976_s0 + $0xf0] sm:$0xff]  ;;  %v52_v52 = vld [vmem:[%s2976_s0 + $0xf8] sm:$0xff]  ;;  %v53_v53 = vld [vmem:[%s2976_s0 + $0x100] sm:$0xff] }
   0xd   :  { %v54_v54 = vld [vmem:[%s2976_s0 + $0x108] sm:$0xff]  ;;  %v101_v55 = vpack.c.bf16 %v52_v52, %v51_v51  ;;  %v55_v57 = vld [vmem:[%s2976_s0 + $0x110] sm:$0xff]  ;;  %v56_v58 = vld [vmem:[%s2976_s0 + $0x118] sm:$0xff] }
   0xe   :  { %v102_v56 = vpack.c.bf16 %v54_v54, %v53_v53  ;;  %v57_v59 = vld [vmem:[%s2976_s0 + $0x120] sm:$0xff]  ;;  %v58_v60 = vld [vmem:[%s2976_s0 + $0x128] sm:$0xff]  ;;  %v103_v61 = vpack.c.bf16 %v56_v58, %v55_v57  ;;  %v59_v63 = vld [vmem:[%s2976_s0 + $0x130] sm:$0xff] }
   0xf   :  { %v104_v62 = vpack.c.bf16 %v58_v60, %v57_v59  ;;  %v60_v0 = vld [vmem:[%s2976_s0 + $0x138] sm:$0xff]  ;;  %v61_v1 = vld [vmem:[%s2976_s0 + $0x140] sm:$0xff]  ;;  %v62_v2 = vld [vmem:[%s2976_s0 + $0x148] sm:$0xff] }
  0x10   :  { %2074 = vmatmul.mubr.msk.bf16.gmra.mrb[4].mxu0 %vm126_vm1, %v89_v16  ;;  %v105_v3 = vpack.c.bf16 %v60_v0, %v59_v63  ;;  %v106_v4 = vpack.c.bf16 %v62_v2, %v61_v1  ;;  %v63_v5 = vld [vmem:[%s2976_s0 + $0x150] sm:$0xff]  ;;  %v64_v6 = vld [vmem:[%s2976_s0 + $0x158] sm:$0xff]  ;;  %v65_v7 = vld [vmem:[%s2976_s0 + $0x160] sm:$0xff] }
  0x11   :  { %2077 = vmatprep.mubr.msk.bf16.mxu0 %vm126_vm1, %v90_v17  ;;  %v66_v8 = vld [vmem:[%s2976_s0 + $0x168] sm:$0xff]  ;;  %v107_v9 = vpack.c.bf16 %v64_v6, %v63_v5  ;;  %v710_v11 = vld [vmem:[%s2977_s3 + $0x10] sm:$0xff]  ;;  %v711_v12 = vld [vmem:[%s2977_s3 + $0x18] sm:$0xff] }
  0x12   :  { %v108_v10 = vpack.c.bf16 %v66_v8, %v65_v7  ;;  %v67_v13 = vld [vmem:[%s2976_s0 + $0x170] sm:$0xff]  ;;  %v68_v14 = vld [vmem:[%s2976_s0 + $0x178] sm:$0xff]  ;;  %v749_v15 = vpack.c.bf16 %v711_v12, %v710_v11  ;;  %v69_v16 = vld [vmem:[%s2976_s0 + $0x180] sm:$0xff] }
  0x13   :  { %v70_v17 = vld [vmem:[%s2976_s0 + $0x188] sm:$0xff]  ;;  %v109_v18 = vpack.c.bf16 %v68_v14, %v67_v13  ;;  %v712_v19 = vld [vmem:[%s2977_s3 + $0x20] sm:$0xff]  ;;  %v715_v24 = vld [vmem:[%s2977_s3 + $0x38] sm:$0xff] }
  0x14   :  { %2135 = vmatprep.subr.bf16.mxu1 %v749_v15  ;;  %v713_v20 = vld [vmem:[%s2977_s3 + $0x28] sm:$0xff]  ;;  %v110_v21 = vpack.c.bf16 %v70_v17, %v69_v16  ;;  %v71_v25 = vld [vmem:[%s2976_s0 + $0x190] sm:$0xff]  ;;  %v72_v26 = vld [vmem:[%s2976_s0 + $0x198] sm:$0xff] }
  0x15   :  { %2136 = vmatpush3.bf16.msra.mxu1 %v749_v15  ;;  %v73_v28 = vld [vmem:[%s2976_s0 + $0x1a0] sm:$0xff]  ;;  %v74_v29 = vld [vmem:[%s2976_s0 + $0x1a8] sm:$0xff]  ;;  %v111_v30 = vpack.c.bf16 %v72_v26, %v71_v25  ;;  %v76_v33 = vld [vmem:[%s2976_s0 + $0x1b8] sm:$0xff] }
  0x16   :  { %v77_v34 = vld [vmem:[%s2976_s0 + $0x1c0] sm:$0xff]  ;;  %v78_v35 = vld [vmem:[%s2976_s0 + $0x1c8] sm:$0xff]  ;;  %v80_v39 = vld [vmem:[%s2976_s0 + $0x1d8] sm:$0xff] }
  0x17   :  { %v81_v40 = vld [vmem:[%s2976_s0 + $0x1e0] sm:$0xff]  ;;  %v82_v41 = vld [vmem:[%s2976_s0 + $0x1e8] sm:$0xff]  ;;  %v84_v45 = vld [vmem:[%s2976_s0 + $0x1f8] sm:$0xff] }
  0x18   :  { %2078 = vmatmul.mubr.msk.bf16.gmra.mrb[8].mxu0 %vm126_vm1, %v91_v22  ;;  %v750_v22 = vpack.c.bf16 %v713_v20, %v712_v19  ;;  %v2491_v47 = vld [vmem:[%s2978_s2] ss:$0 sm:$0xff] }
  0x19   :  { %2081 = vmatprep.mubr.msk.bf16.mxu0 %vm126_vm1, %v92_v23  ;;  %v714_v23 = vld [vmem:[%s2977_s3 + $0x30] sm:$0xff] }
  0x1a   :  { %2137 = vmatprep.subr.bf16.mxu1 %v750_v22  ;;  %v751_v27 = vpack.c.bf16 %v715_v24, %v714_v23 }
  0x1b   :  { %2138 = vmatpush3.bf16.msra.mxu1 %v750_v22 }
  0x1c   :  { %2139 = vmatprep.subr.bf16.mxu1 %v751_v27 }
  0x1f   :  { %2140 = vmatpush3.bf16.msra.mxu1 %v751_v27 }
  0x20   :  { %2082 = vmatmul.mubr.msk.bf16.gmra.mrb[12].mxu0 %vm126_vm1, %v93_v31  ;;  %v112_v31 = vpack.c.bf16 %v74_v29, %v73_v28 }
  0x21   :  { %2085 = vmatprep.mubr.msk.bf16.mxu0 %vm126_vm1, %v94_v32  ;;  %v75_v32 = vld [vmem:[%s2976_s0 + $0x1b0] sm:$0xff] }
  0x22   :  { %v113_v36 = vpack.c.bf16 %v76_v33, %v75_v32 }
  0x28   :  { %2086 = vmatmul.mubr.msk.bf16.gmra.mrb[16].mxu0 %vm126_vm1, %v95_v37  ;;  %v114_v37 = vpack.c.bf16 %v78_v35, %v77_v34 }
  0x29   :  { %2089 = vmatprep.mubr.msk.bf16.mxu0 %vm126_vm1, %v96_v38  ;;  %v79_v38 = vld [vmem:[%s2976_s0 + $0x1d0] sm:$0xff] }
  0x2a   :  { %v115_v42 = vpack.c.bf16 %v80_v39, %v79_v38 }
  0x30   :  { %2090 = vmatmul.mubr.msk.bf16.gmra.mrb[20].mxu0 %vm126_vm1, %v97_v43  ;;  %v116_v43 = vpack.c.bf16 %v82_v41, %v81_v40 }
  0x31   :  { %2093 = vmatprep.mubr.msk.bf16.mxu0 %vm126_vm1, %v98_v44  ;;  %v83_v44 = vld [vmem:[%s2976_s0 + $0x1f0] sm:$0xff] }
  0x32   :  { %v117_v46 = vpack.c.bf16 %v84_v45, %v83_v44 }
  0x38   :  { %2094 = vmatmul.mubr.msk.bf16.gmra.mrb[24].mxu0 %vm126_vm1, %v99_v49 }
  0x39   :  { %2097 = vmatprep.mubr.msk.bf16.mxu0 %vm126_vm1, %v100_v50 }
  0x40   :  { %2098 = vmatmul.mubr.msk.bf16.gmra.mrb[28].mxu0 %vm126_vm1, %v101_v55 }
  0x41   :  { %2101 = vmatprep.mubr.msk.bf16.mxu0 %vm126_vm1, %v102_v56 }
  0x48   :  { %2102 = vmatmul.mubr.msk.bf16.gmra.mrb[32].mxu0 %vm126_vm1, %v103_v61 }
  0x49   :  { %2105 = vmatprep.mubr.msk.bf16.mxu0 %vm126_vm1, %v104_v62 }
  0x50   :  { %2106 = vmatmul.mubr.msk.bf16.gmra.mrb[36].mxu0 %vm126_vm1, %v105_v3 }
  0x51   :  { %2109 = vmatprep.mubr.msk.bf16.mxu0 %vm126_vm1, %v106_v4 }
  0x58   :  { %2110 = vmatmul.mubr.msk.bf16.gmra.mrb[40].mxu0 %vm126_vm1, %v107_v9 }
  0x59   :  { %2113 = vmatprep.mubr.msk.bf16.mxu0 %vm126_vm1, %v108_v10 }
  0x60   :  { %2114 = vmatmul.mubr.msk.bf16.gmra.mrb[44].mxu0 %vm126_vm1, %v109_v18 }
  0x61   :  { %2117 = vmatprep.mubr.msk.bf16.mxu0 %vm126_vm1, %v110_v21 }
  0x68   :  { %2118 = vmatmul.mubr.msk.bf16.gmra.mrb[48].mxu0 %vm126_vm1, %v111_v30 }
  0x69   :  { %2121 = vmatprep.mubr.msk.bf16.mxu0 %vm126_vm1, %v112_v31 }
  0x70   :  { %2122 = vmatmul.mubr.msk.bf16.gmra.mrb[52].mxu0 %vm126_vm1, %v113_v36 }
  0x71   :  { %2125 = vmatprep.mubr.msk.bf16.mxu0 %vm126_vm1, %v114_v37 }
  0x78   :  { %2126 = vmatmul.mubr.msk.bf16.gmra.mrb[56].mxu0 %vm126_vm1, %v115_v42 }
  0x79   :  { %2129 = vmatprep.mubr.msk.bf16.mxu0 %vm126_vm1, %v116_v43 }
  0x80   :  { %2130 = vmatmul.mubr.msk.bf16.gmra.mrb[60].mxu0 %vm126_vm1, %v117_v46 }
  0xdb   :  { %v2071_v48 = vpop.f32.mrb[0].mxu0 }
  0xdc   :  { %v270_v49 = vadd.f32 %v2071_v48, %v2491_v47  ;;  %v261_v50 = vpop.f32.mrb[1].mxu0 }
  0xdd   :  { %v262_v51 = vadd.f32 %v2491_v47, %v261_v50  ;;  %v2072_v52 = vpop.f32.mrb[2].mxu0 }
  0xde   :  { %v582_v53 = vmul.f32 0.2, %v270_v49  ;;  %v273_v54 = vadd.f32 %v2072_v52, %v2491_v47  ;;  %v264_v55 = vpop.f32.mrb[3].mxu0  ;;  %vm518_vm2 = vcmp.ge.f32.partialorder %v270_v49, 0.0 }
  0xdf   :  { %v580_v56 = vmul.f32 0.2, %v262_v51  ;;  %v265_v57 = vadd.f32 %v2491_v47, %v264_v55  ;;  %vm516_vm4 = vcmp.ge.f32.partialorder %v262_v51, 0.0 }
  0xe0   :  { %vm519_vm3 = vcmp.ge.f32.partialorder %v273_v54, 0.0  ;;  %v583_v58 = vmul.f32 0.2, %v273_v54  ;;  %v646_v60 = vsel %vm518_vm2, %v270_v49, %v582_v53 }
  0xe1   :  { %v581_v59 = vmul.f32 0.2, %v265_v57  ;;  %vm517_vm5 = vcmp.ge.f32.partialorder %v265_v57, 0.0  ;;  %v644_v0 = vsel %vm516_vm4, %v262_v51, %v580_v56 }
  0xe2   :  { %v647_v61 = vsel %vm519_vm3, %v273_v54, %v583_v58 }
  0xe3   :  { %v717_v62 = vpack.c.bf16 %v647_v61, %v646_v60  ;;  %v2075_v63 = vpop.f32.mrb[4].mxu0  ;;  %v645_v1 = vsel %vm517_vm5, %v265_v57, %v581_v59 }
  0xe4   :  { %v286_v2 = vadd.f32 %v2075_v63, %v2491_v47  ;;  %v277_v3 = vpop.f32.mrb[5].mxu0  ;;  %v716_v4 = vpack.c.bf16 %v645_v1, %v644_v0 }
  0xe5   :  { %v278_v5 = vadd.f32 %v2491_v47, %v277_v3  ;;  %v2076_v6 = vpop.f32.mrb[6].mxu0 }
  0xe6   :  { %v586_v7 = vmul.f32 0.2, %v286_v2  ;;  %v289_v8 = vadd.f32 %v2076_v6, %v2491_v47  ;;  %v280_v9 = vpop.f32.mrb[7].mxu0  ;;  %2141 = vmatprep.mubr.msk.bf16.mxu1 %vm759_vm6, %v716_v4  ;;  %vm522_vm7 = vcmp.ge.f32.partialorder %v286_v2, 0.0 }
  0xe7   :  { %v584_v10 = vmul.f32 0.2, %v278_v5  ;;  %v281_v11 = vadd.f32 %v2491_v47, %v280_v9  ;;  %2142 = vmatmul.mubr.msk.bf16.vlgmr.msra.gmra.mrb[0].mxu1 %vm759_vm6, %v717_v62  ;;  %vm520_vm8 = vcmp.ge.f32.partialorder %v278_v5, 0.0 }
  0xe8   :  { %vm523_vm9 = vcmp.ge.f32.partialorder %v289_v8, 0.0  ;;  %v587_v12 = vmul.f32 0.2, %v289_v8  ;;  %v650_v14 = vsel %vm522_vm7, %v286_v2, %v586_v7 }
  0xe9   :  { %vm521_vm10 = vcmp.ge.f32.partialorder %v281_v11, 0.0  ;;  %v585_v13 = vmul.f32 0.2, %v281_v11  ;;  %v648_v16 = vsel %vm520_vm8, %v278_v5, %v584_v10 }
  0xea   :  { %v651_v15 = vsel %vm523_vm9, %v289_v8, %v587_v12 }
  0xeb   :  { %v719_v17 = vpack.c.bf16 %v651_v15, %v650_v14  ;;  %v649_v18 = vsel %vm521_vm10, %v281_v11, %v585_v13  ;;  %v2079_v19 = vpop.f32.mrb[8].mxu0 }
  0xec   :  { %v718_v20 = vpack.c.bf16 %v649_v18, %v648_v16  ;;  %v302_v21 = vadd.f32 %v2079_v19, %v2491_v47  ;;  %v293_v22 = vpop.f32.mrb[9].mxu0 }
  0xed   :  { %v294_v23 = vadd.f32 %v2491_v47, %v293_v22  ;;  %v2080_v24 = vpop.f32.mrb[10].mxu0 }
  0xee   :  { %v590_v25 = vmul.f32 0.2, %v302_v21  ;;  %v305_v26 = vadd.f32 %v2080_v24, %v2491_v47  ;;  %v296_v27 = vpop.f32.mrb[11].mxu0  ;;  %2145 = vmatprep.mubr.msk.bf16.mxu1 %vm759_vm6, %v718_v20  ;;  %vm526_vm11 = vcmp.ge.f32.partialorder %v302_v21, 0.0 }
  0xef   :  { %v588_v28 = vmul.f32 0.2, %v294_v23  ;;  %v297_v29 = vadd.f32 %v2491_v47, %v296_v27  ;;  %2146 = vmatmul.mubr.msk.bf16.gmra.mrb[4].mxu1 %vm759_vm6, %v719_v17  ;;  %vm524_vm12 = vcmp.ge.f32.partialorder %v294_v23, 0.0 }
  0xf0   :  { %vm527_vm13 = vcmp.ge.f32.partialorder %v305_v26, 0.0  ;;  %v591_v30 = vmul.f32 0.2, %v305_v26  ;;  %v654_v32 = vsel %vm526_vm11, %v302_v21, %v590_v25 }
  0xf1   :  { %vm525_vm14 = vcmp.ge.f32.partialorder %v297_v29, 0.0  ;;  %v589_v31 = vmul.f32 0.2, %v297_v29  ;;  %v652_v34 = vsel %vm524_vm12, %v294_v23, %v588_v28 }
  0xf2   :  { %v655_v33 = vsel %vm527_vm13, %v305_v26, %v591_v30 }
  0xf3   :  { %v721_v35 = vpack.c.bf16 %v655_v33, %v654_v32  ;;  %v653_v36 = vsel %vm525_vm14, %v297_v29, %v589_v31  ;;  %v2083_v37 = vpop.f32.mrb[12].mxu0 }
  0xf4   :  { %v720_v38 = vpack.c.bf16 %v653_v36, %v652_v34  ;;  %v318_v39 = vadd.f32 %v2083_v37, %v2491_v47  ;;  %v309_v40 = vpop.f32.mrb[13].mxu0 }
  0xf5   :  { %v310_v41 = vadd.f32 %v2491_v47, %v309_v40  ;;  %v2084_v42 = vpop.f32.mrb[14].mxu0 }
  0xf6   :  { %v594_v43 = vmul.f32 0.2, %v318_v39  ;;  %v321_v44 = vadd.f32 %v2084_v42, %v2491_v47  ;;  %v312_v45 = vpop.f32.mrb[15].mxu0  ;;  %2149 = vmatprep.mubr.msk.bf16.mxu1 %vm759_vm6, %v720_v38  ;;  %vm530_vm15 = vcmp.ge.f32.partialorder %v318_v39, 0.0 }
  0xf7   :  { %v592_v46 = vmul.f32 0.2, %v310_v41  ;;  %v313_v48 = vadd.f32 %v2491_v47, %v312_v45  ;;  %2150 = vmatmul.mubr.msk.bf16.gmra.mrb[8].mxu1 %vm759_vm6, %v721_v35  ;;  %vm528_vm0 = vcmp.ge.f32.partialorder %v310_v41, 0.0 }
  0xf8   :  { %vm531_vm1 = vcmp.ge.f32.partialorder %v321_v44, 0.0  ;;  %v595_v49 = vmul.f32 0.2, %v321_v44  ;;  %v658_v51 = vsel %vm530_vm15, %v318_v39, %v594_v43 }
  0xf9   :  { %vm529_vm2 = vcmp.ge.f32.partialorder %v313_v48, 0.0  ;;  %v593_v50 = vmul.f32 0.2, %v313_v48  ;;  %v656_v53 = vsel %vm528_vm0, %v310_v41, %v592_v46 }
  0xfa   :  { %v659_v52 = vsel %vm531_vm1, %v321_v44, %v595_v49 }
  0xfb   :  { %v723_v54 = vpack.c.bf16 %v659_v52, %v658_v51  ;;  %v657_v55 = vsel %vm529_vm2, %v313_v48, %v593_v50  ;;  %v2087_v56 = vpop.f32.mrb[16].mxu0 }
  0xfc   :  { %v722_v57 = vpack.c.bf16 %v657_v55, %v656_v53  ;;  %v334_v58 = vadd.f32 %v2087_v56, %v2491_v47  ;;  %v325_v59 = vpop.f32.mrb[17].mxu0 }
  0xfd   :  { %v326_v60 = vadd.f32 %v2491_v47, %v325_v59  ;;  %v2088_v61 = vpop.f32.mrb[18].mxu0 }
  0xfe   :  { %v598_v62 = vmul.f32 0.2, %v334_v58  ;;  %v337_v63 = vadd.f32 %v2088_v61, %v2491_v47  ;;  %v328_v0 = vpop.f32.mrb[19].mxu0  ;;  %2153 = vmatprep.mubr.msk.bf16.mxu1 %vm759_vm6, %v722_v57  ;;  %vm534_vm3 = vcmp.ge.f32.partialorder %v334_v58, 0.0 }
  0xff   :  { %v596_v1 = vmul.f32 0.2, %v326_v60  ;;  %v329_v2 = vadd.f32 %v2491_v47, %v328_v0  ;;  %2154 = vmatmul.mubr.msk.bf16.gmra.mrb[12].mxu1 %vm759_vm6, %v723_v54  ;;  %vm532_vm4 = vcmp.ge.f32.partialorder %v326_v60, 0.0 }
 0x100   :  { %vm535_vm5 = vcmp.ge.f32.partialorder %v337_v63, 0.0  ;;  %v599_v3 = vmul.f32 0.2, %v337_v63  ;;  %v662_v5 = vsel %vm534_vm3, %v334_v58, %v598_v62 }
 0x101   :  { %vm533_vm7 = vcmp.ge.f32.partialorder %v329_v2, 0.0  ;;  %v597_v4 = vmul.f32 0.2, %v329_v2  ;;  %v660_v7 = vsel %vm532_vm4, %v326_v60, %v596_v1 }
 0x102   :  { %v663_v6 = vsel %vm535_vm5, %v337_v63, %v599_v3 }
 0x103   :  { %v725_v8 = vpack.c.bf16 %v663_v6, %v662_v5  ;;  %v661_v9 = vsel %vm533_vm7, %v329_v2, %v597_v4  ;;  %v2091_v10 = vpop.f32.mrb[20].mxu0 }
 0x104   :  { %v724_v11 = vpack.c.bf16 %v661_v9, %v660_v7  ;;  %v350_v12 = vadd.f32 %v2091_v10, %v2491_v47  ;;  %v341_v13 = vpop.f32.mrb[21].mxu0 }
 0x105   :  { %v342_v14 = vadd.f32 %v2491_v47, %v341_v13  ;;  %v2092_v15 = vpop.f32.mrb[22].mxu0 }
 0x106   :  { %v602_v16 = vmul.f32 0.2, %v350_v12  ;;  %v353_v17 = vadd.f32 %v2092_v15, %v2491_v47  ;;  %v344_v18 = vpop.f32.mrb[23].mxu0  ;;  %2157 = vmatprep.mubr.msk.bf16.mxu1 %vm759_vm6, %v724_v11  ;;  %vm538_vm8 = vcmp.ge.f32.partialorder %v350_v12, 0.0 }
 0x107   :  { %v600_v19 = vmul.f32 0.2, %v342_v14  ;;  %v345_v20 = vadd.f32 %v2491_v47, %v344_v18  ;;  %2158 = vmatmul.mubr.msk.bf16.gmra.mrb[16].mxu1 %vm759_vm6, %v725_v8  ;;  %vm536_vm9 = vcmp.ge.f32.partialorder %v342_v14, 0.0 }
 0x108   :  { %vm539_vm10 = vcmp.ge.f32.partialorder %v353_v17, 0.0  ;;  %v603_v21 = vmul.f32 0.2, %v353_v17  ;;  %v666_v23 = vsel %vm538_vm8, %v350_v12, %v602_v16 }
 0x109   :  { %vm537_vm11 = vcmp.ge.f32.partialorder %v345_v20, 0.0  ;;  %v601_v22 = vmul.f32 0.2, %v345_v20  ;;  %v664_v25 = vsel %vm536_vm9, %v342_v14, %v600_v19 }
 0x10a   :  { %v667_v24 = vsel %vm539_vm10, %v353_v17, %v603_v21 }
 0x10b   :  { %v727_v26 = vpack.c.bf16 %v667_v24, %v666_v23  ;;  %v665_v27 = vsel %vm537_vm11, %v345_v20, %v601_v22  ;;  %v2095_v28 = vpop.f32.mrb[24].mxu0 }
 0x10c   :  { %v726_v29 = vpack.c.bf16 %v665_v27, %v664_v25  ;;  %v366_v30 = vadd.f32 %v2095_v28, %v2491_v47  ;;  %v357_v31 = vpop.f32.mrb[25].mxu0 }
 0x10d   :  { %v358_v32 = vadd.f32 %v2491_v47, %v357_v31  ;;  %v2096_v33 = vpop.f32.mrb[26].mxu0 }
 0x10e   :  { %v606_v34 = vmul.f32 0.2, %v366_v30  ;;  %v369_v35 = vadd.f32 %v2096_v33, %v2491_v47  ;;  %v360_v36 = vpop.f32.mrb[27].mxu0  ;;  %2161 = vmatprep.mubr.msk.bf16.mxu1 %vm759_vm6, %v726_v29  ;;  %vm542_vm12 = vcmp.ge.f32.partialorder %v366_v30, 0.0 }
 0x10f   :  { %v604_v37 = vmul.f32 0.2, %v358_v32  ;;  %v361_v38 = vadd.f32 %v2491_v47, %v360_v36  ;;  %2162 = vmatmul.mubr.msk.bf16.gmra.mrb[20].mxu1 %vm759_vm6, %v727_v26  ;;  %vm540_vm13 = vcmp.ge.f32.partialorder %v358_v32, 0.0 }
 0x110   :  { %vm543_vm14 = vcmp.ge.f32.partialorder %v369_v35, 0.0  ;;  %v607_v39 = vmul.f32 0.2, %v369_v35  ;;  %v670_v41 = vsel %vm542_vm12, %v366_v30, %v606_v34 }
 0x111   :  { %vm541_vm15 = vcmp.ge.f32.partialorder %v361_v38, 0.0  ;;  %v605_v40 = vmul.f32 0.2, %v361_v38  ;;  %v668_v43 = vsel %vm540_vm13, %v358_v32, %v604_v37 }
 0x112   :  { %v671_v42 = vsel %vm543_vm14, %v369_v35, %v607_v39 }
 0x113   :  { %v729_v44 = vpack.c.bf16 %v671_v42, %v670_v41  ;;  %v669_v45 = vsel %vm541_vm15, %v361_v38, %v605_v40  ;;  %v2099_v46 = vpop.f32.mrb[28].mxu0 }
 0x114   :  { %v728_v48 = vpack.c.bf16 %v669_v45, %v668_v43  ;;  %v382_v49 = vadd.f32 %v2099_v46, %v2491_v47  ;;  %v373_v50 = vpop.f32.mrb[29].mxu0 }
 0x115   :  { %v374_v51 = vadd.f32 %v2491_v47, %v373_v50  ;;  %v2100_v52 = vpop.f32.mrb[30].mxu0 }
 0x116   :  { %v610_v53 = vmul.f32 0.2, %v382_v49  ;;  %v385_v54 = vadd.f32 %v2100_v52, %v2491_v47  ;;  %v376_v55 = vpop.f32.mrb[31].mxu0  ;;  %2165 = vmatprep.mubr.msk.bf16.mxu1 %vm759_vm6, %v728_v48  ;;  %vm546_vm0 = vcmp.ge.f32.partialorder %v382_v49, 0.0 }
 0x117   :  { %v608_v56 = vmul.f32 0.2, %v374_v51  ;;  %v377_v57 = vadd.f32 %v2491_v47, %v376_v55  ;;  %2166 = vmatmul.mubr.msk.bf16.gmra.mrb[24].mxu1 %vm759_vm6, %v729_v44  ;;  %vm544_vm1 = vcmp.ge.f32.partialorder %v374_v51, 0.0 }
 0x118   :  { %vm547_vm2 = vcmp.ge.f32.partialorder %v385_v54, 0.0  ;;  %v611_v58 = vmul.f32 0.2, %v385_v54  ;;  %v674_v60 = vsel %vm546_vm0, %v382_v49, %v610_v53 }
 0x119   :  { %vm545_vm3 = vcmp.ge.f32.partialorder %v377_v57, 0.0  ;;  %v609_v59 = vmul.f32 0.2, %v377_v57  ;;  %v672_v62 = vsel %vm544_vm1, %v374_v51, %v608_v56 }
 0x11a   :  { %v675_v61 = vsel %vm547_vm2, %v385_v54, %v611_v58 }
 0x11b   :  { %v731_v63 = vpack.c.bf16 %v675_v61, %v674_v60  ;;  %v673_v0 = vsel %vm545_vm3, %v377_v57, %v609_v59  ;;  %v2103_v1 = vpop.f32.mrb[32].mxu0 }
 0x11c   :  { %v730_v2 = vpack.c.bf16 %v673_v0, %v672_v62  ;;  %v398_v3 = vadd.f32 %v2103_v1, %v2491_v47  ;;  %v389_v4 = vpop.f32.mrb[33].mxu0 }
 0x11d   :  { %v390_v5 = vadd.f32 %v2491_v47, %v389_v4  ;;  %v2104_v6 = vpop.f32.mrb[34].mxu0 }
 0x11e   :  { %v614_v7 = vmul.f32 0.2, %v398_v3  ;;  %v401_v8 = vadd.f32 %v2104_v6, %v2491_v47  ;;  %v392_v9 = vpop.f32.mrb[35].mxu0  ;;  %2169 = vmatprep.mubr.msk.bf16.mxu1 %vm759_vm6, %v730_v2  ;;  %vm550_vm4 = vcmp.ge.f32.partialorder %v398_v3, 0.0 }
 0x11f   :  { %v612_v10 = vmul.f32 0.2, %v390_v5  ;;  %v393_v11 = vadd.f32 %v2491_v47, %v392_v9  ;;  %2170 = vmatmul.mubr.msk.bf16.gmra.mrb[28].mxu1 %vm759_vm6, %v731_v63  ;;  %vm548_vm5 = vcmp.ge.f32.partialorder %v390_v5, 0.0 }
 0x120   :  { %vm551_vm7 = vcmp.ge.f32.partialorder %v401_v8, 0.0  ;;  %v615_v12 = vmul.f32 0.2, %v401_v8  ;;  %v678_v14 = vsel %vm550_vm4, %v398_v3, %v614_v7 }
 0x121   :  { %vm549_vm8 = vcmp.ge.f32.partialorder %v393_v11, 0.0  ;;  %v613_v13 = vmul.f32 0.2, %v393_v11  ;;  %v676_v16 = vsel %vm548_vm5, %v390_v5, %v612_v10 }
 0x122   :  { %v679_v15 = vsel %vm551_vm7, %v401_v8, %v615_v12 }
 0x123   :  { %v733_v17 = vpack.c.bf16 %v679_v15, %v678_v14  ;;  %v677_v18 = vsel %vm549_vm8, %v393_v11, %v613_v13  ;;  %v2107_v19 = vpop.f32.mrb[36].mxu0 }
 0x124   :  { %v732_v20 = vpack.c.bf16 %v677_v18, %v676_v16  ;;  %v414_v21 = vadd.f32 %v2107_v19, %v2491_v47  ;;  %v405_v22 = vpop.f32.mrb[37].mxu0 }
 0x125   :  { %v406_v23 = vadd.f32 %v2491_v47, %v405_v22  ;;  %v2108_v24 = vpop.f32.mrb[38].mxu0 }
 0x126   :  { %v618_v25 = vmul.f32 0.2, %v414_v21  ;;  %v417_v26 = vadd.f32 %v2108_v24, %v2491_v47  ;;  %v408_v27 = vpop.f32.mrb[39].mxu0  ;;  %2173 = vmatprep.mubr.msk.bf16.mxu1 %vm759_vm6, %v732_v20  ;;  %vm554_vm9 = vcmp.ge.f32.partialorder %v414_v21, 0.0 }
 0x127   :  { %v616_v28 = vmul.f32 0.2, %v406_v23  ;;  %v409_v29 = vadd.f32 %v2491_v47, %v408_v27  ;;  %2174 = vmatmul.mubr.msk.bf16.gmra.mrb[32].mxu1 %vm759_vm6, %v733_v17  ;;  %vm552_vm10 = vcmp.ge.f32.partialorder %v406_v23, 0.0 }
 0x128   :  { %vm555_vm11 = vcmp.ge.f32.partialorder %v417_v26, 0.0  ;;  %v619_v30 = vmul.f32 0.2, %v417_v26  ;;  %v682_v32 = vsel %vm554_vm9, %v414_v21, %v618_v25 }
 0x129   :  { %vm553_vm12 = vcmp.ge.f32.partialorder %v409_v29, 0.0  ;;  %v617_v31 = vmul.f32 0.2, %v409_v29  ;;  %v680_v34 = vsel %vm552_vm10, %v406_v23, %v616_v28 }
 0x12a   :  { %v683_v33 = vsel %vm555_vm11, %v417_v26, %v619_v30 }
 0x12b   :  { %v735_v35 = vpack.c.bf16 %v683_v33, %v682_v32  ;;  %v681_v36 = vsel %vm553_vm12, %v409_v29, %v617_v31  ;;  %v2111_v37 = vpop.f32.mrb[40].mxu0 }
 0x12c   :  { %v734_v38 = vpack.c.bf16 %v681_v36, %v680_v34  ;;  %v430_v39 = vadd.f32 %v2111_v37, %v2491_v47  ;;  %v421_v40 = vpop.f32.mrb[41].mxu0 }
 0x12d   :  { %v422_v41 = vadd.f32 %v2491_v47, %v421_v40  ;;  %v2112_v42 = vpop.f32.mrb[42].mxu0 }
 0x12e   :  { %v622_v43 = vmul.f32 0.2, %v430_v39  ;;  %v433_v44 = vadd.f32 %v2112_v42, %v2491_v47  ;;  %v424_v45 = vpop.f32.mrb[43].mxu0  ;;  %2177 = vmatprep.mubr.msk.bf16.mxu1 %vm759_vm6, %v734_v38  ;;  %vm558_vm13 = vcmp.ge.f32.partialorder %v430_v39, 0.0 }
 0x12f   :  { %v620_v46 = vmul.f32 0.2, %v422_v41  ;;  %v425_v48 = vadd.f32 %v2491_v47, %v424_v45  ;;  %2178 = vmatmul.mubr.msk.bf16.gmra.mrb[36].mxu1 %vm759_vm6, %v735_v35  ;;  %vm556_vm14 = vcmp.ge.f32.partialorder %v422_v41, 0.0 }
 0x130   :  { %vm559_vm15 = vcmp.ge.f32.partialorder %v433_v44, 0.0  ;;  %v623_v49 = vmul.f32 0.2, %v433_v44  ;;  %v686_v51 = vsel %vm558_vm13, %v430_v39, %v622_v43 }
 0x131   :  { %vm557_vm0 = vcmp.ge.f32.partialorder %v425_v48, 0.0  ;;  %v621_v50 = vmul.f32 0.2, %v425_v48  ;;  %v684_v53 = vsel %vm556_vm14, %v422_v41, %v620_v46 }
 0x132   :  { %v687_v52 = vsel %vm559_vm15, %v433_v44, %v623_v49 }
 0x133   :  { %v737_v54 = vpack.c.bf16 %v687_v52, %v686_v51  ;;  %v685_v55 = vsel %vm557_vm0, %v425_v48, %v621_v50  ;;  %v2115_v56 = vpop.f32.mrb[44].mxu0 }
 0x134   :  { %v736_v57 = vpack.c.bf16 %v685_v55, %v684_v53  ;;  %v446_v58 = vadd.f32 %v2115_v56, %v2491_v47  ;;  %v437_v59 = vpop.f32.mrb[45].mxu0 }
 0x135   :  { %v438_v60 = vadd.f32 %v2491_v47, %v437_v59  ;;  %v2116_v61 = vpop.f32.mrb[46].mxu0 }
 0x136   :  { %v626_v62 = vmul.f32 0.2, %v446_v58  ;;  %v449_v63 = vadd.f32 %v2116_v61, %v2491_v47  ;;  %v440_v0 = vpop.f32.mrb[47].mxu0  ;;  %2181 = vmatprep.mubr.msk.bf16.mxu1 %vm759_vm6, %v736_v57  ;;  %vm562_vm1 = vcmp.ge.f32.partialorder %v446_v58, 0.0 }
 0x137   :  { %v624_v1 = vmul.f32 0.2, %v438_v60  ;;  %v441_v2 = vadd.f32 %v2491_v47, %v440_v0  ;;  %2182 = vmatmul.mubr.msk.bf16.gmra.mrb[40].mxu1 %vm759_vm6, %v737_v54  ;;  %vm560_vm2 = vcmp.ge.f32.partialorder %v438_v60, 0.0 }
 0x138   :  { %vm563_vm3 = vcmp.ge.f32.partialorder %v449_v63, 0.0  ;;  %v627_v3 = vmul.f32 0.2, %v449_v63  ;;  %v690_v5 = vsel %vm562_vm1, %v446_v58, %v626_v62 }
 0x139   :  { %vm561_vm4 = vcmp.ge.f32.partialorder %v441_v2, 0.0  ;;  %v625_v4 = vmul.f32 0.2, %v441_v2  ;;  %v688_v7 = vsel %vm560_vm2, %v438_v60, %v624_v1 }
 0x13a   :  { %v691_v6 = vsel %vm563_vm3, %v449_v63, %v627_v3 }
 0x13b   :  { %v739_v8 = vpack.c.bf16 %v691_v6, %v690_v5  ;;  %v689_v9 = vsel %vm561_vm4, %v441_v2, %v625_v4  ;;  %v2119_v10 = vpop.f32.mrb[48].mxu0 }
 0x13c   :  { %v738_v11 = vpack.c.bf16 %v689_v9, %v688_v7  ;;  %v462_v12 = vadd.f32 %v2119_v10, %v2491_v47  ;;  %v453_v13 = vpop.f32.mrb[49].mxu0 }
 0x13d   :  { %v454_v14 = vadd.f32 %v2491_v47, %v453_v13  ;;  %v2120_v15 = vpop.f32.mrb[50].mxu0 }
 0x13e   :  { %v630_v16 = vmul.f32 0.2, %v462_v12  ;;  %v465_v17 = vadd.f32 %v2120_v15, %v2491_v47  ;;  %v456_v18 = vpop.f32.mrb[51].mxu0  ;;  %2185 = vmatprep.mubr.msk.bf16.mxu1 %vm759_vm6, %v738_v11  ;;  %vm566_vm5 = vcmp.ge.f32.partialorder %v462_v12, 0.0 }
 0x13f   :  { %v628_v19 = vmul.f32 0.2, %v454_v14  ;;  %v457_v20 = vadd.f32 %v2491_v47, %v456_v18  ;;  %2186 = vmatmul.mubr.msk.bf16.gmra.mrb[44].mxu1 %vm759_vm6, %v739_v8  ;;  %vm564_vm7 = vcmp.ge.f32.partialorder %v454_v14, 0.0 }
 0x140   :  { %vm567_vm8 = vcmp.ge.f32.partialorder %v465_v17, 0.0  ;;  %v631_v21 = vmul.f32 0.2, %v465_v17  ;;  %v694_v23 = vsel %vm566_vm5, %v462_v12, %v630_v16 }
 0x141   :  { %vm565_vm9 = vcmp.ge.f32.partialorder %v457_v20, 0.0  ;;  %v629_v22 = vmul.f32 0.2, %v457_v20  ;;  %v692_v25 = vsel %vm564_vm7, %v454_v14, %v628_v19 }
 0x142   :  { %v695_v24 = vsel %vm567_vm8, %v465_v17, %v631_v21 }
 0x143   :  { %v741_v26 = vpack.c.bf16 %v695_v24, %v694_v23  ;;  %v693_v27 = vsel %vm565_vm9, %v457_v20, %v629_v22  ;;  %v2123_v28 = vpop.f32.mrb[52].mxu0 }
 0x144   :  { %v740_v29 = vpack.c.bf16 %v693_v27, %v692_v25  ;;  %v478_v30 = vadd.f32 %v2123_v28, %v2491_v47  ;;  %v469_v31 = vpop.f32.mrb[53].mxu0 }
 0x145   :  { %v470_v32 = vadd.f32 %v2491_v47, %v469_v31  ;;  %v2124_v33 = vpop.f32.mrb[54].mxu0 }
 0x146   :  { %v634_v34 = vmul.f32 0.2, %v478_v30  ;;  %v481_v35 = vadd.f32 %v2124_v33, %v2491_v47  ;;  %v472_v36 = vpop.f32.mrb[55].mxu0  ;;  %2189 = vmatprep.mubr.msk.bf16.mxu1 %vm759_vm6, %v740_v29  ;;  %vm570_vm10 = vcmp.ge.f32.partialorder %v478_v30, 0.0 }
 0x147   :  { %v632_v37 = vmul.f32 0.2, %v470_v32  ;;  %v473_v38 = vadd.f32 %v2491_v47, %v472_v36  ;;  %2190 = vmatmul.mubr.msk.bf16.gmra.mrb[48].mxu1 %vm759_vm6, %v741_v26  ;;  %vm568_vm11 = vcmp.ge.f32.partialorder %v470_v32, 0.0 }
 0x148   :  { %vm571_vm12 = vcmp.ge.f32.partialorder %v481_v35, 0.0  ;;  %v635_v39 = vmul.f32 0.2, %v481_v35  ;;  %v698_v41 = vsel %vm570_vm10, %v478_v30, %v634_v34 }
 0x149   :  { %vm569_vm13 = vcmp.ge.f32.partialorder %v473_v38, 0.0  ;;  %v633_v40 = vmul.f32 0.2, %v473_v38  ;;  %v696_v43 = vsel %vm568_vm11, %v470_v32, %v632_v37  ;;  %vm1849_vm11 = vcmask 1041409  }
 0x14a   :  { %v699_v42 = vsel %vm571_vm12, %v481_v35, %v635_v39 }
 0x14b   :  { %v743_v44 = vpack.c.bf16 %v699_v42, %v698_v41  ;;  %v697_v45 = vsel %vm569_vm13, %v473_v38, %v633_v40  ;;  %v2127_v46 = vpop.f32.mrb[56].mxu0  ;;  %vm1851_vm13 = vcmask 1042434  }
 0x14c   :  { %v742_v48 = vpack.c.bf16 %v697_v45, %v696_v43  ;;  %v494_v49 = vadd.f32 %v2127_v46, %v2491_v47  ;;  %v485_v50 = vpop.f32.mrb[57].mxu0 }
 0x14d   :  { %v486_v51 = vadd.f32 %v2491_v47, %v485_v50  ;;  %v2128_v52 = vpop.f32.mrb[58].mxu0 }
 0x14e   :  { %v638_v53 = vmul.f32 0.2, %v494_v49  ;;  %v497_v54 = vadd.f32 %v2128_v52, %v2491_v47  ;;  %v488_v55 = vpop.f32.mrb[59].mxu0  ;;  %2193 = vmatprep.mubr.msk.bf16.mxu1 %vm759_vm6, %v742_v48  ;;  %vm574_vm14 = vcmp.ge.f32.partialorder %v494_v49, 0.0 }
 0x14f   :  { %v636_v56 = vmul.f32 0.2, %v486_v51  ;;  %v489_v57 = vadd.f32 %v2491_v47, %v488_v55  ;;  %2194 = vmatmul.mubr.msk.bf16.gmra.mrb[52].mxu1 %vm759_vm6, %v743_v44  ;;  %vm572_vm15 = vcmp.ge.f32.partialorder %v486_v51, 0.0 }
 0x150   :  { %vm575_vm0 = vcmp.ge.f32.partialorder %v497_v54, 0.0  ;;  %v639_v58 = vmul.f32 0.2, %v497_v54  ;;  %v702_v60 = vsel %vm574_vm14, %v494_v49, %v638_v53 }
 0x151   :  { %vm573_vm1 = vcmp.ge.f32.partialorder %v489_v57, 0.0  ;;  %v637_v59 = vmul.f32 0.2, %v489_v57  ;;  %v700_v62 = vsel %vm572_vm15, %v486_v51, %v636_v56  ;;  %vm1853_vm15 = vcmask 1043459  }
 0x152   :  { %v703_v61 = vsel %vm575_vm0, %v497_v54, %v639_v58 }
 0x153   :  { %v745_v63 = vpack.c.bf16 %v703_v61, %v702_v60  ;;  %v701_v0 = vsel %vm573_vm1, %v489_v57, %v637_v59  ;;  %v2131_v1 = vpop.f32.mrb[60].mxu0  ;;  %vm1855_vm1 = vcmask 1044484  }
 0x154   :  { %v744_v2 = vpack.c.bf16 %v701_v0, %v700_v62  ;;  %v510_v3 = vadd.f32 %v2131_v1, %v2491_v47  ;;  %v501_v4 = vpop.f32.mrb[61].mxu0 }
 0x155   :  { %v502_v5 = vadd.f32 %v2491_v47, %v501_v4  ;;  %v2132_v6 = vpop.f32.mrb[62].mxu0 }
 0x156   :  { %v642_v7 = vmul.f32 0.2, %v510_v3  ;;  %v513_v8 = vadd.f32 %v2132_v6, %v2491_v47  ;;  %v504_v9 = vpop.f32.mrb[63].mxu0  ;;  %2197 = vmatprep.mubr.msk.bf16.mxu1 %vm759_vm6, %v744_v2  ;;  %vm578_vm2 = vcmp.ge.f32.partialorder %v510_v3, 0.0 }
 0x157   :  { %v640_v10 = vmul.f32 0.2, %v502_v5  ;;  %v505_v11 = vadd.f32 %v2491_v47, %v504_v9  ;;  %2198 = vmatmul.mubr.msk.bf16.gmra.mrb[56].mxu1 %vm759_vm6, %v745_v63  ;;  %vm576_vm3 = vcmp.ge.f32.partialorder %v502_v5, 0.0  ;;  %v2592_v47 = vld [vmem:[%s2979_s4] ss:$0 sm:$0xff] }
 0x158   :  { %vm579_vm4 = vcmp.ge.f32.partialorder %v513_v8, 0.0  ;;  %v643_v12 = vmul.f32 0.2, %v513_v8  ;;  %v706_v14 = vsel %vm578_vm2, %v510_v3, %v642_v7 }
 0x159   :  { %vm577_vm5 = vcmp.ge.f32.partialorder %v505_v11, 0.0  ;;  %v641_v13 = vmul.f32 0.2, %v505_v11  ;;  %v704_v16 = vsel %vm576_vm3, %v502_v5, %v640_v10 }
 0x15a   :  { %v707_v15 = vsel %vm579_vm4, %v513_v8, %v643_v12  ;;  %vm1857_vm4 = vcmask 1045509  }
 0x15b   :  { %v747_v17 = vpack.c.bf16 %v707_v15, %v706_v14  ;;  %v705_v18 = vsel %vm577_vm5, %v505_v11, %v641_v13 }
 0x15c   :  { %v746_v19 = vpack.c.bf16 %v705_v18, %v704_v16 }
 0x15e   :  { %2201 = vmatprep.mubr.msk.bf16.mxu1 %vm759_vm6, %v746_v19 }
 0x15f   :  { %2202 = vmatmul.mubr.msk.bf16.gmra.mrb[60].mxu1 %vm759_vm6, %v747_v17 }
 0x1ba   :  { %v2143_v20 = vpop.f32.mrb[0].mxu1 }
 0x1bb   :  { %v899_v21 = vadd.f32 %v2143_v20, %v2592_v47  ;;  %v890_v22 = vpop.f32.mrb[1].mxu1 }
 0x1bc   :  { %v891_v23 = vadd.f32 %v2592_v47, %v890_v22  ;;  %v2144_v24 = vpop.f32.mrb[2].mxu1 }
 0x1bd   :  { %vm1147_vm7 = vcmp.ge.f32.partialorder %v899_v21, 0.0  ;;  %v1211_v25 = vmul.f32 0.2, %v899_v21  ;;  %v902_v26 = vadd.f32 %v2144_v24, %v2592_v47  ;;  %v893_v27 = vpop.f32.mrb[3].mxu1 }
 0x1be   :  { %vm1145_vm8 = vcmp.ge.f32.partialorder %v891_v23, 0.0  ;;  %v1209_v28 = vmul.f32 0.2, %v891_v23  ;;  %v894_v29 = vadd.f32 %v2592_v47, %v893_v27 }
 0x1bf   :  { %v1275_v30 = vsel %vm1147_vm7, %v899_v21, %v1211_v25  ;;  %vm1148_vm9 = vcmp.ge.f32.partialorder %v902_v26, 0.0  ;;  %v1212_v31 = vmul.f32 0.2, %v902_v26  ;;  %vm1859_vm7 = vcmask 1046534  }
 0x1c0   :  { %v1351_v32 = vsel %vm759_vm6, %v1275_v30, -inf  ;;  %v1273_v33 = vsel %vm1145_vm8, %v891_v23, %v1209_v28  ;;  %vm1146_vm10 = vcmp.ge.f32.partialorder %v894_v29, 0.0  ;;  %v1210_v34 = vmul.f32 0.2, %v894_v29 }
 0x1c1   :  { %v1352_v35 = vrot.slane %v1351_v32, 4  ;;  %v1337_v36 = vsel %vm759_vm6, %v1273_v33, -inf  ;;  %v1276_v37 = vsel %vm1148_vm9, %v902_v26, %v1212_v31  ;;  %vm1861_vm8 = vcmask 1047559  }
 0x1c2   :  { %v1338_v38 = vrot.slane %v1337_v36, 4  ;;  %v1358_v39 = vsel %vm759_vm6, %v1276_v37, -inf  ;;  %v1274_v40 = vsel %vm1146_vm10, %v894_v29, %v1210_v34  ;;  %v2147_v41 = vpop.f32.mrb[4].mxu1 }
 0x1c3   :  { %v1353_v42 = vmax.f32 %v1351_v32, %v1352_v35  ;;  %v1359_v43 = vrot.slane %v1358_v39, 4  ;;  %v1344_v44 = vsel %vm759_vm6, %v1274_v40, -inf  ;;  %v915_v45 = vadd.f32 %v2147_v41, %v2592_v47  ;;  %v906_v46 = vpop.f32.mrb[5].mxu1 }
 0x1c4   :  { %v1339_v48 = vmax.f32 %v1337_v36, %v1338_v38  ;;  %v1345_v49 = vrot.slane %v1344_v44, 4  ;;  %v907_v50 = vadd.f32 %v2592_v47, %v906_v46  ;;  %v2148_v51 = vpop.f32.mrb[6].mxu1 }
 0x1c5   :  { %v1354_v52 = vrot.slane %v1353_v42, 2  ;;  %v1360_v53 = vmax.f32 %v1358_v39, %v1359_v43  ;;  %vm1151_vm12 = vcmp.ge.f32.partialorder %v915_v45, 0.0  ;;  %v1215_v54 = vmul.f32 0.2, %v915_v45  ;;  %v909_v55 = vpop.f32.mrb[7].mxu1 }
 0x1c6   :  { %v1340_v56 = vrot.slane %v1339_v48, 2  ;;  %v1346_v57 = vmax.f32 %v1344_v44, %v1345_v49  ;;  %vm1149_vm14 = vcmp.ge.f32.partialorder %v907_v50, 0.0  ;;  %v1213_v58 = vmul.f32 0.2, %v907_v50 }
 0x1c7   :  { %v1355_v59 = vmax.f32 %v1353_v42, %v1354_v52  ;;  %v1361_v60 = vrot.slane %v1360_v53, 2  ;;  %v1279_v61 = vsel %vm1151_vm12, %v915_v45, %v1215_v54  ;;  %v918_v62 = vadd.f32 %v2148_v51, %v2592_v47 }
 0x1c8   :  { %v1341_v63 = vmax.f32 %v1339_v48, %v1340_v56  ;;  %v1347_v0 = vrot.slane %v1346_v57, 2  ;;  %v1379_v1 = vsel %vm759_vm6, %v1279_v61, -inf  ;;  %v1277_v2 = vsel %vm1149_vm14, %v907_v50, %v1213_v58 }
 0x1c9   :  { %v1356_v3 = vrot.slane %v1355_v59, 1  ;;  %v1362_v4 = vmax.f32 %v1360_v53, %v1361_v60  ;;  %v1380_v5 = vrot.slane %v1379_v1, 4  ;;  %v1365_v6 = vsel %vm759_vm6, %v1277_v2, -inf }
 0x1ca   :  { %v1342_v7 = vrot.slane %v1341_v63, 1  ;;  %v1348_v8 = vmax.f32 %v1346_v57, %v1347_v0  ;;  %v1366_v9 = vrot.slane %v1365_v6, 4  ;;  %vm1152_vm0 = vcmp.ge.f32.partialorder %v918_v62, 0.0  ;;  %v2151_v10 = vpop.f32.mrb[8].mxu1 }
 0x1cb   :  { %v1357_v11 = vmax.f32 %v1355_v59, %v1356_v3  ;;  %v1363_v12 = vrot.slane %v1362_v4, 1  ;;  %v1381_v13 = vmax.f32 %v1379_v1, %v1380_v5  ;;  %v1216_v14 = vmul.f32 0.2, %v918_v62  ;;  %v922_v15 = vpop.f32.mrb[9].mxu1 }
 0x1cc   :  { %v1343_v16 = vmax.f32 %v1341_v63, %v1342_v7  ;;  %v1349_v17 = vrot.slane %v1348_v8, 1  ;;  %v1367_v18 = vmax.f32 %v1365_v6, %v1366_v9  ;;  %v910_v19 = vadd.f32 %v2592_v47, %v909_v55  ;;  %v2152_v20 = vpop.f32.mrb[10].mxu1 }
 0x1cd   :  { %v1364_v21 = vmax.f32 %v1362_v4, %v1363_v12  ;;  %v1382_v22 = vrot.slane %v1381_v13, 2  ;;  %v1280_v23 = vsel %vm1152_vm0, %v918_v62, %v1216_v14  ;;  %v931_v24 = vadd.f32 %v2151_v10, %v2592_v47  ;;  %v925_v25 = vpop.f32.mrb[11].mxu1 }
 0x1ce   :  { %v1350_v26 = vmax.f32 %v1348_v8, %v1349_v17  ;;  %v1368_v27 = vrot.slane %v1367_v18, 2  ;;  %v1386_v28 = vsel %vm759_vm6, %v1280_v23, -inf  ;;  %vm1150_vm2 = vcmp.ge.f32.partialorder %v910_v19, 0.0 }
 0x1cf   :  { %v1383_v29 = vmax.f32 %v1381_v13, %v1382_v22  ;;  %v1387_v30 = vrot.slane %v1386_v28, 4  ;;  %v1214_v31 = vmul.f32 0.2, %v910_v19  ;;  %vm1155_vm3 = vcmp.ge.f32.partialorder %v931_v24, 0.0 }
 0x1d0   :  { %v1850_v32 = vsel %vm1849_vm11, %v1350_v26, %v1343_v16  ;;  %v1369_v33 = vmax.f32 %v1367_v18, %v1368_v27  ;;  %v1219_v34 = vmul.f32 0.2, %v931_v24  ;;  %v923_v35 = vadd.f32 %v2592_v47, %v922_v15 }
 0x1d1   :  { %v1852_v36 = vsel %vm1851_vm13, %v1357_v11, %v1850_v32  ;;  %v1384_v37 = vrot.slane %v1383_v29, 1  ;;  %v1388_v38 = vmax.f32 %v1386_v28, %v1387_v30  ;;  %v1278_v39 = vsel %vm1150_vm2, %v910_v19, %v1214_v31 }
 0x1d2   :  { %v1370_v40 = vrot.slane %v1369_v33, 1  ;;  %v1854_v41 = vsel %vm1853_vm15, %v1364_v21, %v1852_v36  ;;  %v1372_v42 = vsel %vm759_vm6, %v1278_v39, -inf  ;;  %v1283_v43 = vsel %vm1155_vm3, %v931_v24, %v1219_v34  ;;  %v2155_v44 = vpop.f32.mrb[12].mxu1 }
 0x1d3   :  { %v2615_v45 = vmax.f32 %v1383_v29, %v1384_v37  ;;  %v1389_v46 = vrot.slane %v1388_v38, 2  ;;  %v1373_v48 = vrot.slane %v1372_v42, 4  ;;  %v1407_v49 = vsel %vm759_vm6, %v1283_v43, -inf  ;;  %v938_v50 = vpop.f32.mrb[13].mxu1 }
 0x1d4   :  { %v1371_v51 = vmax.f32 %v1369_v33, %v1370_v40  ;;  %v1408_v52 = vrot.slane %v1407_v49, 4  ;;  %vm1153_vm5 = vcmp.ge.f32.partialorder %v923_v35, 0.0  ;;  %v1217_v53 = vmul.f32 0.2, %v923_v35  ;;  %v2156_v54 = vpop.f32.mrb[14].mxu1 }
 0x1d5   :  { %v1390_v55 = vmax.f32 %v1388_v38, %v1389_v46  ;;  %v1374_v56 = vmax.f32 %v1372_v42, %v1373_v48  ;;  %v934_v57 = vadd.f32 %v2152_v20, %v2592_v47  ;;  %v926_v58 = vadd.f32 %v2592_v47, %v925_v25  ;;  %v2620_v59 = vpop.f32.mrb[15].mxu1 }
 0x1d6   :  { %v1856_v60 = vsel %vm1855_vm1, %v1371_v51, %v1854_v41  ;;  %v1409_v61 = vmax.f32 %v1407_v49, %v1408_v52  ;;  %v1281_v62 = vsel %vm1153_vm5, %v923_v35, %v1217_v53  ;;  %v947_v63 = vadd.f32 %v2155_v44, %v2592_v47 }
 0x1d7   :  { %v1391_v0 = vrot.slane %v1390_v55, 1  ;;  %v1375_v1 = vrot.slane %v1374_v56, 2  ;;  %v1393_v2 = vsel %vm759_vm6, %v1281_v62, -inf  ;;  %vm1156_vm9 = vcmp.ge.f32.partialorder %v934_v57, 0.0 }
 0x1d8   :  { %v1410_v3 = vrot.slane %v1409_v61, 2  ;;  %v1394_v4 = vrot.slane %v1393_v2, 4  ;;  %v1220_v5 = vmul.f32 0.2, %v934_v57  ;;  %vm1154_vm10 = vcmp.ge.f32.partialorder %v926_v58, 0.0 }
 0x1d9   :  { %v1392_v6 = vmax.f32 %v1390_v55, %v1391_v0  ;;  %v1376_v7 = vmax.f32 %v1374_v56, %v1375_v1  ;;  %v1218_v8 = vmul.f32 0.2, %v926_v58  ;;  %vm1159_vm12 = vcmp.ge.f32.partialorder %v947_v63, 0.0 }
 0x1da   :  { %v1411_v9 = vmax.f32 %v1409_v61, %v1410_v3  ;;  %v1395_v10 = vmax.f32 %v1393_v2, %v1394_v4  ;;  %v1284_v11 = vsel %vm1156_vm9, %v934_v57, %v1220_v5  ;;  %v1223_v12 = vmul.f32 0.2, %v947_v63  ;;  %v2159_v13 = vpop.f32.mrb[16].mxu1 }
 0x1db   :  { %v1377_v14 = vrot.slane %v1376_v7, 1  ;;  %v1414_v15 = vsel %vm759_vm6, %v1284_v11, -inf  ;;  %v1282_v16 = vsel %vm1154_vm10, %v926_v58, %v1218_v8  ;;  %v939_v17 = vadd.f32 %v2592_v47, %v938_v50  ;;  %v954_v18 = vpop.f32.mrb[17].mxu1 }
 0x1dc   :  { %v1412_v19 = vrot.slane %v1411_v9, 1  ;;  %v1396_v20 = vrot.slane %v1395_v10, 2  ;;  %v1415_v21 = vrot.slane %v1414_v15, 4  ;;  %v1400_v22 = vsel %vm759_vm6, %v1282_v16, -inf  ;;  %v2628_v23 = vpop.f32.mrb[18].mxu1 }
 0x1dd   :  { %v1378_v24 = vmax.f32 %v1376_v7, %v1377_v14  ;;  %v1401_v25 = vrot.slane %v1400_v22, 4  ;;  %v1287_v26 = vsel %vm1159_vm12, %v947_v63, %v1223_v12  ;;  %vm1157_vm14 = vcmp.ge.f32.partialorder %v939_v17, 0.0  ;;  %v2631_v27 = vpop.f32.mrb[19].mxu1 }
 0x1de   :  { %v1413_v28 = vmax.f32 %v1411_v9, %v1412_v19  ;;  %v1397_v29 = vmax.f32 %v1395_v10, %v1396_v20  ;;  %v1416_v30 = vmax.f32 %v1414_v15, %v1415_v21  ;;  %v1435_v31 = vsel %vm759_vm6, %v1287_v26, -inf }
 0x1df   :  { %v1858_v32 = vsel %vm1857_vm4, %v1378_v24, %v1856_v60  ;;  %v1402_v33 = vmax.f32 %v1400_v22, %v1401_v25  ;;  %v1436_v34 = vrot.slane %v1435_v31, 4  ;;  %v1221_v35 = vmul.f32 0.2, %v939_v17 }
 0x1e0   :  { %v1860_v36 = vsel %vm1859_vm7, %v2615_v45, %v1858_v32  ;;  %v1398_v37 = vrot.slane %v1397_v29, 1  ;;  %v1417_v38 = vrot.slane %v1416_v30, 2  ;;  %v950_v39 = vadd.f32 %v2156_v54, %v2592_v47 }
 0x1e1   :  { %v1862_v40 = vsel %vm1861_vm8, %v1392_v6, %v1860_v36  ;;  %v1403_v41 = vrot.slane %v1402_v33, 2  ;;  %v1437_v42 = vmax.f32 %v1435_v31, %v1436_v34  ;;  %v1285_v43 = vsel %vm1157_vm14, %v939_v17, %v1221_v35 }
 0x1e2   :  { %1920 = vst.msk [vmem:[%s2980_s5] sm:$0xff] %vm759_vm6, %v1862_v40  ;;  %v1399_v44 = vmax.f32 %v1397_v29, %v1398_v37  ;;  %v1418_v46 = vmax.f32 %v1416_v30, %v1417_v38  ;;  %v1421_v48 = vsel %vm759_vm6, %v1285_v43, -inf  ;;  %vm1160_vm0 = vcmp.ge.f32.partialorder %v950_v39, 0.0  ;;  %v2645_v45 = vpop.f32.mrb[20].mxu1 }
 0x1e3   :  { %v1404_v49 = vmax.f32 %v1402_v33, %v1403_v41  ;;  %v1438_v50 = vrot.slane %v1437_v42, 2  ;;  %v1422_v51 = vrot.slane %v1421_v48, 4  ;;  %v1224_v52 = vmul.f32 0.2, %v950_v39  ;;  %v2647_v53 = vpop.f32.mrb[21].mxu1 }
 0x1e4   :  { %v1419_v54 = vrot.slane %v1418_v46, 1  ;;  %v942_v55 = vadd.f32 %v2592_v47, %v2620_v59  ;;  %v963_v56 = vadd.f32 %v2159_v13, %v2592_v47  ;;  %v955_v57 = vadd.f32 %v2592_v47, %v954_v18  ;;  %v2653_v58 = vpop.f32.mrb[22].mxu1 }
 0x1e5   :  { %v1405_v60 = vrot.slane %v1404_v49, 1  ;;  %v1439_v61 = vmax.f32 %v1437_v42, %v1438_v50  ;;  %v1423_v62 = vmax.f32 %v1421_v48, %v1422_v51  ;;  %v1288_v63 = vsel %vm1160_vm0, %v950_v39, %v1224_v52  ;;  %v2655_v0 = vpop.f32.mrb[23].mxu1 }
 0x1e6   :  { %v1420_v1 = vmax.f32 %v1418_v46, %v1419_v54  ;;  %v1442_v2 = vsel %vm759_vm6, %v1288_v63, -inf  ;;  %vm1158_vm2 = vcmp.ge.f32.partialorder %v942_v55, 0.0  ;;  %v1222_v3 = vmul.f32 0.2, %v942_v55 }
 0x1e7   :  { %v1406_v4 = vmax.f32 %v1404_v49, %v1405_v60  ;;  %v1440_v5 = vrot.slane %v1439_v61, 1  ;;  %v1424_v59 = vrot.slane %v1423_v62, 2  ;;  %v1443_v6 = vrot.slane %v1442_v2, 4 }
 0x1e8   :  { %v1286_v7 = vsel %vm1158_vm2, %v942_v55, %v1222_v3  ;;  %vm1163_vm3 = vcmp.ge.f32.partialorder %v963_v56, 0.0  ;;  %v1227_v8 = vmul.f32 0.2, %v963_v56  ;;  %vm1161_vm5 = vcmp.ge.f32.partialorder %v955_v57, 0.0 }
 0x1e9   :  { %v1863_v9 = vsel %vm1849_vm11, %v1406_v4, %v1399_v44  ;;  %v2659_v10 = vmax.f32 %v1439_v61, %v1440_v5  ;;  %v1425_v11 = vmax.f32 %v1423_v62, %v1424_v59  ;;  %v1444_v12 = vmax.f32 %v1442_v2, %v1443_v6 }
 0x1ea   :  { %v1864_v13 = vsel %vm1851_vm13, %v1413_v28, %v1863_v9  ;;  %v1428_v14 = vsel %vm759_vm6, %v1286_v7, -inf  ;;  %v1291_v15 = vsel %vm1163_vm3, %v963_v56, %v1227_v8  ;;  %v1225_v16 = vmul.f32 0.2, %v955_v57  ;;  %v2663_v17 = vpop.f32.mrb[24].mxu1 }
 0x1eb   :  { %v1426_v18 = vrot.slane %v1425_v11, 1  ;;  %v1865_v19 = vsel %vm1853_vm15, %v1420_v1, %v1864_v13  ;;  %v1445_v20 = vrot.slane %v1444_v12, 2  ;;  %v1429_v21 = vrot.slane %v1428_v14, 4  ;;  %v2666_v22 = vpop.f32.mrb[25].mxu1 }
 0x1ec   :  { %v1463_v24 = vsel %vm759_vm6, %v1291_v15, -inf  ;;  %v1289_v25 = vsel %vm1161_vm5, %v955_v57, %v1225_v16  ;;  %v966_v26 = vadd.f32 %v2628_v23, %v2592_v47  ;;  %v958_v28 = vadd.f32 %v2592_v47, %v2631_v27  ;;  %v2674_v29 = vpop.f32.mrb[26].mxu1 }
 0x1ed   :  { %v1427_v30 = vmax.f32 %v1425_v11, %v1426_v18  ;;  %v1446_v31 = vmax.f32 %v1444_v12, %v1445_v20  ;;  %v1430_v32 = vmax.f32 %v1428_v14, %v1429_v21  ;;  %v1464_v33 = vrot.slane %v1463_v24, 4  ;;  %v2676_v34 = vpop.f32.mrb[27].mxu1 }
 0x1ee   :  { %v1449_v35 = vsel %vm759_vm6, %v1289_v25, -inf  ;;  %vm1164_vm9 = vcmp.ge.f32.partialorder %v966_v26, 0.0  ;;  %v1228_v36 = vmul.f32 0.2, %v966_v26  ;;  %vm1162_vm10 = vcmp.ge.f32.partialorder %v958_v28, 0.0 }
 0x1ef   :  { %v1866_v37 = vsel %vm1855_vm1, %v1427_v30, %v1865_v19  ;;  %v1447_v38 = vrot.slane %v1446_v31, 1  ;;  %v1431_v23 = vrot.slane %v1430_v32, 2  ;;  %v1465_v39 = vmax.f32 %v1463_v24, %v1464_v33 }
 0x1f0   :  { %v1450_v40 = vrot.slane %v1449_v35, 4  ;;  %v1292_v27 = vsel %vm1164_vm9, %v966_v26, %v1228_v36  ;;  %v1226_v41 = vmul.f32 0.2, %v958_v28  ;;  %v979_v42 = vadd.f32 %v2645_v45, %v2592_v47 }
 0x1f1   :  { %v1448_v43 = vmax.f32 %v1446_v31, %v1447_v38  ;;  %v1432_v44 = vmax.f32 %v1430_v32, %v1431_v23  ;;  %v1466_v46 = vrot.slane %v1465_v39, 2  ;;  %v1470_v48 = vsel %vm759_vm6, %v1292_v27, -inf }
 0x1f2   :  { %v1451_v49 = vmax.f32 %v1449_v35, %v1450_v40  ;;  %v1471_v50 = vrot.slane %v1470_v48, 4  ;;  %v1290_v51 = vsel %vm1162_vm10, %v958_v28, %v1226_v41  ;;  %vm1167_vm12 = vcmp.ge.f32.partialorder %v979_v42, 0.0  ;;  %v2683_v52 = vpop.f32.mrb[28].mxu1 }
 0x1f3   :  { %v1433_v54 = vrot.slane %v1432_v44, 1  ;;  %v1467_v55 = vmax.f32 %v1465_v39, %v1466_v46  ;;  %v1456_v56 = vsel %vm759_vm6, %v1290_v51, -inf  ;;  %v1231_v57 = vmul.f32 0.2, %v979_v42  ;;  %v2686_v60 = vpop.f32.mrb[29].mxu1 }
 0x1f4   :  { %v1452_v61 = vrot.slane %v1451_v49, 2  ;;  %v1472_v45 = vmax.f32 %v1470_v48, %v1471_v50  ;;  %v1457_v62 = vrot.slane %v1456_v56, 4  ;;  %v971_v63 = vadd.f32 %v2592_v47, %v2647_v53  ;;  %v2690_v1 = vpop.f32.mrb[30].mxu1 }
 0x1f5   :  { %v1434_v2 = vmax.f32 %v1432_v44, %v1433_v54  ;;  %v1468_v3 = vrot.slane %v1467_v55, 1  ;;  %v1295_v4 = vsel %vm1167_vm12, %v979_v42, %v1231_v57  ;;  %v982_v5 = vadd.f32 %v2653_v58, %v2592_v47  ;;  %v2694_v59 = vpop.f32.mrb[31].mxu1 }
 0x1f6   :  { %v1453_v6 = vmax.f32 %v1451_v49, %v1452_v61  ;;  %v1473_v7 = vrot.slane %v1472_v45, 2  ;;  %v1458_v8 = vmax.f32 %v1456_v56, %v1457_v62  ;;  %v1491_v9 = vsel %vm759_vm6, %v1295_v4, -inf }
 0x1f7   :  { %v1867_v11 = vsel %vm1857_vm4, %v1434_v2, %v1866_v37  ;;  %v1469_v12 = vmax.f32 %v1467_v55, %v1468_v3  ;;  %v1492_v13 = vrot.slane %v1491_v9, 4  ;;  %vm1165_vm14 = vcmp.ge.f32.partialorder %v971_v63, 0.0 }
 0x1f8   :  { %v1868_v53 = vsel %vm1859_vm7, %v2659_v10, %v1867_v11  ;;  %v1454_v14 = vrot.slane %v1453_v6, 1  ;;  %v1474_v15 = vmax.f32 %v1472_v45, %v1473_v7  ;;  %v1459_v16 = vrot.slane %v1458_v8, 2 }
 0x1f9   :  { %v1869_v58 = vsel %vm1861_vm8, %v1448_v43, %v1868_v53  ;;  %v1493_v18 = vmax.f32 %v1491_v9, %v1492_v13  ;;  %v1229_v19 = vmul.f32 0.2, %v971_v63  ;;  %vm1168_vm0 = vcmp.ge.f32.partialorder %v982_v5, 0.0 }
 0x1fa   :  { %1921 = vst.msk [vmem:[%s2980_s5 + $0x8] sm:$0xff] %vm759_vm6, %v1869_v58  ;;  %v1455_v20 = vmax.f32 %v1453_v6, %v1454_v14  ;;  %v1475_v21 = vrot.slane %v1474_v15, 1  ;;  %v1460_v24 = vmax.f32 %v1458_v8, %v1459_v16  ;;  %v1232_v25 = vmul.f32 0.2, %v982_v5  ;;  %v2705_v26 = vpop.f32.mrb[32].mxu1 }
 0x1fb   :  { %v1494_v10 = vrot.slane %v1493_v18, 2  ;;  %v1293_v28 = vsel %vm1165_vm14, %v971_v63, %v1229_v19  ;;  %v974_v30 = vadd.f32 %v2592_v47, %v2655_v0  ;;  %v995_v31 = vadd.f32 %v2663_v17, %v2592_v47  ;;  %v2712_v32 = vpop.f32.mrb[33].mxu1 }
 0x1fc   :  { %v1476_v33 = vmax.f32 %v1474_v15, %v1475_v21  ;;  %v1461_v35 = vrot.slane %v1460_v24, 1  ;;  %v1477_v36 = vsel %vm759_vm6, %v1293_v28, -inf  ;;  %v1296_v37 = vsel %vm1168_vm0, %v982_v5, %v1232_v25  ;;  %v2715_v38 = vpop.f32.mrb[34].mxu1 }
 0x1fd   :  { %v1495_v23 = vmax.f32 %v1493_v18, %v1494_v10  ;;  %v1478_v39 = vrot.slane %v1477_v36, 4  ;;  %v1498_v40 = vsel %vm759_vm6, %v1296_v37, -inf  ;;  %vm1166_vm2 = vcmp.ge.f32.partialorder %v974_v30, 0.0  ;;  %v2718_v27 = vpop.f32.mrb[35].mxu1 }
 0x1fe   :  { %v1462_v0 = vmax.f32 %v1460_v24, %v1461_v35  ;;  %v1499_v41 = vrot.slane %v1498_v40, 4  ;;  %v1230_v42 = vmul.f32 0.2, %v974_v30  ;;  %vm1171_vm3 = vcmp.ge.f32.partialorder %v995_v31, 0.0 }
 0x1ff   :  { %v1496_v17 = vrot.slane %v1495_v23, 1  ;;  %v1479_v43 = vmax.f32 %v1477_v36, %v1478_v39  ;;  %v1235_v44 = vmul.f32 0.2, %v995_v31  ;;  %v987_v46 = vadd.f32 %v2592_v47, %v2666_v22 }
 0x200   :  { %v1870_v48 = vsel %vm1849_vm11, %v1462_v0, %v1455_v20  ;;  %v1500_v49 = vmax.f32 %v1498_v40, %v1499_v41  ;;  %v1294_v50 = vsel %vm1166_vm2, %v974_v30, %v1230_v42  ;;  %v998_v51 = vadd.f32 %v2674_v29, %v2592_v47 }
 0x201   :  { %v1871_v54 = vsel %vm1851_vm13, %v1469_v12, %v1870_v48  ;;  %v2726_v55 = vmax.f32 %v1495_v23, %v1496_v17  ;;  %v1480_v56 = vrot.slane %v1479_v43, 2  ;;  %v1484_v57 = vsel %vm759_vm6, %v1294_v50, -inf }
 0x202   :  { %v1872_v61 = vsel %vm1853_vm15, %v1476_v33, %v1871_v54  ;;  %v1501_v45 = vrot.slane %v1500_v49, 2  ;;  %v1485_v62 = vrot.slane %v1484_v57, 4  ;;  %v1299_v22 = vsel %vm1171_vm3, %v995_v31, %v1235_v44  ;;  %v2731_v63 = vpop.f32.mrb[36].mxu1 }
 0x203   :  { %v1481_v2 = vmax.f32 %v1479_v43, %v1480_v56  ;;  %v1519_v3 = vsel %vm759_vm6, %v1299_v22, -inf  ;;  %vm1169_vm5 = vcmp.ge.f32.partialorder %v987_v46, 0.0  ;;  %v1233_v29 = vmul.f32 0.2, %v987_v46  ;;  %v2734_v4 = vpop.f32.mrb[37].mxu1 }
 0x204   :  { %v1502_v5 = vmax.f32 %v1500_v49, %v1501_v45  ;;  %v1486_v6 = vmax.f32 %v1484_v57, %v1485_v62  ;;  %v1520_v7 = vrot.slane %v1519_v3, 4  ;;  %vm1172_vm9 = vcmp.ge.f32.partialorder %v998_v51, 0.0  ;;  %v2736_v8 = vpop.f32.mrb[38].mxu1 }
 0x205   :  { %v1482_v9 = vrot.slane %v1481_v2, 1  ;;  %v1297_v11 = vsel %vm1169_vm5, %v987_v46, %v1233_v29  ;;  %v1236_v12 = vmul.f32 0.2, %v998_v51  ;;  %v990_v13 = vadd.f32 %v2592_v47, %v2676_v34  ;;  %v2740_v53 = vpop.f32.mrb[39].mxu1 }
 0x206   :  { %v1503_v14 = vrot.slane %v1502_v5, 1  ;;  %v1487_v15 = vrot.slane %v1486_v6, 2  ;;  %v1521_v16 = vmax.f32 %v1519_v3, %v1520_v7  ;;  %v1505_v58 = vsel %vm759_vm6, %v1297_v11, -inf }
 0x207   :  { %v1483_v18 = vmax.f32 %v1481_v2, %v1482_v9  ;;  %v1506_v19 = vrot.slane %v1505_v58, 4  ;;  %v1300_v20 = vsel %vm1172_vm9, %v998_v51, %v1236_v12  ;;  %vm1170_vm10 = vcmp.ge.f32.partialorder %v990_v13, 0.0 }
 0x208   :  { %v1504_v21 = vmax.f32 %v1502_v5, %v1503_v14  ;;  %v1488_v24 = vmax.f32 %v1486_v6, %v1487_v15  ;;  %v1522_v25 = vrot.slane %v1521_v16, 2  ;;  %v1526_v10 = vsel %vm759_vm6, %v1300_v20, -inf }
 0x209   :  { %v1873_v28 = vsel %vm1855_vm1, %v1483_v18, %v1872_v61  ;;  %v1507_v30 = vmax.f32 %v1505_v58, %v1506_v19  ;;  %v1527_v34 = vrot.slane %v1526_v10, 4  ;;  %v1234_v31 = vmul.f32 0.2, %v990_v13 }
 0x20a   :  { %v1489_v33 = vrot.slane %v1488_v24, 1  ;;  %v1523_v35 = vmax.f32 %v1521_v16, %v1522_v25  ;;  %v1011_v36 = vadd.f32 %v2683_v52, %v2592_v47  ;;  %v1003_v37 = vadd.f32 %v2592_v47, %v2686_v60  ;;  %v2749_v23 = vpop.f32.mrb[40].mxu1 }
 0x20b   :  { %v1508_v39 = vrot.slane %v1507_v30, 2  ;;  %v1528_v40 = vmax.f32 %v1526_v10, %v1527_v34  ;;  %v1298_v0 = vsel %vm1170_vm10, %v990_v13, %v1234_v31  ;;  %v1014_v41 = vadd.f32 %v2690_v1, %v2592_v47  ;;  %v2754_v42 = vpop.f32.mrb[41].mxu1 }
 0x20c   :  { %v1490_v17 = vmax.f32 %v1488_v24, %v1489_v33  ;;  %v1524_v43 = vrot.slane %v1523_v35, 1  ;;  %v1512_v44 = vsel %vm759_vm6, %v1298_v0, -inf  ;;  %vm1175_vm12 = vcmp.ge.f32.partialorder %v1011_v36, 0.0  ;;  %v2757_v52 = vpop.f32.mrb[42].mxu1 }
 0x20d   :  { %v1509_v46 = vmax.f32 %v1507_v30, %v1508_v39  ;;  %v1529_v60 = vrot.slane %v1528_v40, 2  ;;  %v1513_v48 = vrot.slane %v1512_v44, 4  ;;  %v1239_v49 = vmul.f32 0.2, %v1011_v36  ;;  %v2759_v50 = vpop.f32.mrb[43].mxu1 }
 0x20e   :  { %v1874_v51 = vsel %vm1857_vm4, %v1490_v17, %v1873_v28  ;;  %v1525_v54 = vmax.f32 %v1523_v35, %v1524_v43  ;;  %vm1173_vm14 = vcmp.ge.f32.partialorder %v1003_v37, 0.0  ;;  %v1237_v1 = vmul.f32 0.2, %v1003_v37 }
 0x20f   :  { %v1875_v56 = vsel %vm1859_vm7, %v2726_v55, %v1874_v51  ;;  %v1510_v57 = vrot.slane %v1509_v46, 1  ;;  %v1530_v61 = vmax.f32 %v1528_v40, %v1529_v60  ;;  %v1514_v45 = vmax.f32 %v1512_v44, %v1513_v48 }
 0x210   :  { %v1876_v62 = vsel %vm1861_vm8, %v1504_v21, %v1875_v56  ;;  %v1303_v22 = vsel %vm1175_vm12, %v1011_v36, %v1239_v49  ;;  %v1301_v2 = vsel %vm1173_vm14, %v1003_v37, %v1237_v1  ;;  %vm1176_vm0 = vcmp.ge.f32.partialorder %v1014_v41, 0.0 }
 0x211   :  { %1922 = vst.msk [vmem:[%s2980_s5 + $0x10] sm:$0xff] %vm759_vm6, %v1876_v62  ;;  %v1511_v3 = vmax.f32 %v1509_v46, %v1510_v57  ;;  %v1531_v29 = vrot.slane %v1530_v61, 1  ;;  %v1515_v5 = vrot.slane %v1514_v45, 2  ;;  %v1547_v6 = vsel %vm759_vm6, %v1303_v22, -inf }
 0x212   :  { %v1548_v55 = vrot.slane %v1547_v6, 4  ;;  %v1533_v7 = vsel %vm759_vm6, %v1301_v2, -inf  ;;  %v1240_v9 = vmul.f32 0.2, %v1014_v41  ;;  %v1006_v11 = vadd.f32 %v2592_v47, %v2694_v59  ;;  %v2774_v12 = vpop.f32.mrb[44].mxu1 }
 0x213   :  { %v1532_v13 = vmax.f32 %v1530_v61, %v1531_v29  ;;  %v1516_v14 = vmax.f32 %v1514_v45, %v1515_v5  ;;  %v1534_v15 = vrot.slane %v1533_v7, 4  ;;  %v1027_v16 = vadd.f32 %v2705_v26, %v2592_v47  ;;  %v2778_v58 = vpop.f32.mrb[45].mxu1 }
 0x214   :  { %v1549_v18 = vmax.f32 %v1547_v6, %v1548_v55  ;;  %v1304_v19 = vsel %vm1176_vm0, %v1014_v41, %v1240_v9  ;;  %vm1174_vm2 = vcmp.ge.f32.partialorder %v1006_v11, 0.0  ;;  %v1238_v20 = vmul.f32 0.2, %v1006_v11  ;;  %v2781_v21 = vpop.f32.mrb[46].mxu1 }
 0x215   :  { %v1517_v24 = vrot.slane %v1516_v14, 1  ;;  %v1535_v25 = vmax.f32 %v1533_v7, %v1534_v15  ;;  %v1554_v59 = vsel %vm759_vm6, %v1304_v19, -inf  ;;  %vm1179_vm3 = vcmp.ge.f32.partialorder %v1027_v16, 0.0  ;;  %v2784_v10 = vpop.f32.mrb[47].mxu1 }
 0x216   :  { %v1550_v28 = vrot.slane %v1549_v18, 2  ;;  %v1555_v30 = vrot.slane %v1554_v59, 4  ;;  %v1302_v34 = vsel %vm1174_vm2, %v1006_v11, %v1238_v20  ;;  %v1243_v26 = vmul.f32 0.2, %v1027_v16 }
 0x217   :  { %v1518_v31 = vmax.f32 %v1516_v14, %v1517_v24  ;;  %v1536_v33 = vrot.slane %v1535_v25, 2  ;;  %v1540_v35 = vsel %vm759_vm6, %v1302_v34, -inf  ;;  %v1019_v36 = vadd.f32 %v2592_v47, %v2712_v32 }
 0x218   :  { %v1551_v37 = vmax.f32 %v1549_v18, %v1550_v28  ;;  %v1556_v39 = vmax.f32 %v1554_v59, %v1555_v30  ;;  %v1541_v40 = vrot.slane %v1540_v35, 4  ;;  %v1307_v0 = vsel %vm1179_vm3, %v1027_v16, %v1243_v26 }
 0x219   :  { %v1877_v41 = vsel %vm1849_vm11, %v1518_v31, %v1511_v3  ;;  %v1537_v17 = vmax.f32 %v1535_v25, %v1536_v33  ;;  %v1575_v43 = vsel %vm759_vm6, %v1307_v0, -inf  ;;  %vm1177_vm5 = vcmp.ge.f32.partialorder %v1019_v36, 0.0 }
 0x21a   :  { %v1878_v44 = vsel %vm1851_vm13, %v1525_v54, %v1877_v41  ;;  %v1552_v46 = vrot.slane %v1551_v37, 1  ;;  %v1557_v60 = vrot.slane %v1556_v39, 2  ;;  %v1542_v48 = vmax.f32 %v1540_v35, %v1541_v40  ;;  %v2792_v49 = vpop.f32.mrb[48].mxu1 }
 0x21b   :  { %v1538_v51 = vrot.slane %v1537_v17, 1  ;;  %v1879_v32 = vsel %vm1853_vm15, %v1532_v13, %v1878_v44  ;;  %v1576_v1 = vrot.slane %v1575_v43, 4  ;;  %v1241_v56 = vmul.f32 0.2, %v1019_v36  ;;  %v2795_v57 = vpop.f32.mrb[49].mxu1 }
 0x21c   :  { %v1553_v61 = vmax.f32 %v1551_v37, %v1552_v46  ;;  %v1558_v45 = vmax.f32 %v1556_v39, %v1557_v60  ;;  %v1543_v62 = vrot.slane %v1542_v48, 2  ;;  %v1030_v22 = vadd.f32 %v2715_v38, %v2592_v47  ;;  %v2799_v2 = vpop.f32.mrb[50].mxu1 }
 0x21d   :  { %v1539_v54 = vmax.f32 %v1537_v17, %v1538_v51  ;;  %v1577_v3 = vmax.f32 %v1575_v43, %v1576_v1  ;;  %v1305_v29 = vsel %vm1177_vm5, %v1019_v36, %v1241_v56  ;;  %v1022_v5 = vadd.f32 %v2592_v47, %v2718_v27  ;;  %v2804_v6 = vpop.f32.mrb[51].mxu1 }
 0x21e   :  { %v1559_v55 = vrot.slane %v1558_v45, 1  ;;  %v1544_v7 = vmax.f32 %v1542_v48, %v1543_v62  ;;  %v1561_v9 = vsel %vm759_vm6, %v1305_v29, -inf  ;;  %vm1180_vm9 = vcmp.ge.f32.partialorder %v1030_v22, 0.0 }
 0x21f   :  { %v1880_v11 = vsel %vm1855_vm1, %v1539_v54, %v1879_v32  ;;  %v1578_v13 = vrot.slane %v1577_v3, 2  ;;  %v1562_v38 = vrot.slane %v1561_v9, 4  ;;  %v1244_v14 = vmul.f32 0.2, %v1030_v22 }
 0x220   :  { %v1560_v15 = vmax.f32 %v1558_v45, %v1559_v55  ;;  %v1545_v16 = vrot.slane %v1544_v7, 1  ;;  %vm1178_vm10 = vcmp.ge.f32.partialorder %v1022_v5, 0.0  ;;  %v1242_v18 = vmul.f32 0.2, %v1022_v5 }
 0x221   :  { %v1579_v19 = vmax.f32 %v1577_v3, %v1578_v13  ;;  %v1563_v20 = vmax.f32 %v1561_v9, %v1562_v38  ;;  %v1308_v24 = vsel %vm1180_vm9, %v1030_v22, %v1244_v14  ;;  %v1043_v27 = vadd.f32 %v2731_v63, %v2592_v47 }
 0x222   :  { %v1546_v25 = vmax.f32 %v1544_v7, %v1545_v16  ;;  %v1582_v59 = vsel %vm759_vm6, %v1308_v24, -inf  ;;  %v1306_v28 = vsel %vm1178_vm10, %v1022_v5, %v1242_v18  ;;  %v1035_v30 = vadd.f32 %v2592_v47, %v2734_v4  ;;  %v2813_v34 = vpop.f32.mrb[52].mxu1 }
 0x223   :  { %v1580_v26 = vrot.slane %v1579_v19, 1  ;;  %v1564_v31 = vrot.slane %v1563_v20, 2  ;;  %v1583_v33 = vrot.slane %v1582_v59, 4  ;;  %v1568_v35 = vsel %vm759_vm6, %v1306_v28, -inf  ;;  %v2816_v36 = vpop.f32.mrb[53].mxu1 }
 0x224   :  { %v1881_v37 = vsel %vm1857_vm4, %v1546_v25, %v1880_v11  ;;  %v1569_v39 = vrot.slane %v1568_v35, 4  ;;  %vm1183_vm12 = vcmp.ge.f32.partialorder %v1043_v27, 0.0  ;;  %v1247_v63 = vmul.f32 0.2, %v1043_v27  ;;  %v2819_v40 = vpop.f32.mrb[54].mxu1 }
 0x225   :  { %v1882_v0 = vsel %vm1859_vm7, %v1553_v61, %v1881_v37  ;;  %v1565_v41 = vmax.f32 %v1563_v20, %v1564_v31  ;;  %v1584_v4 = vmax.f32 %v1582_v59, %v1583_v33  ;;  %v2822_v17 = vpop.f32.mrb[55].mxu1  ;;  %vm1181_vm14 = vcmp.ge.f32.partialorder %v1035_v30, 0.0 }
 0x226   :  { %v1883_v43 = vsel %vm1861_vm8, %v1560_v15, %v1882_v0  ;;  %v1570_v44 = vmax.f32 %v1568_v35, %v1569_v39  ;;  %v1311_v46 = vsel %vm1183_vm12, %v1043_v27, %v1247_v63  ;;  %v1581_v60 = vmax.f32 %v1579_v19, %v1580_v26 }
 0x227   :  { %1923 = vst.msk [vmem:[%s2980_s5 + $0x18] sm:$0xff] %vm759_vm6, %v1883_v43  ;;  %v1585_v48 = vrot.slane %v1584_v4, 2  ;;  %v1603_v51 = vsel %vm759_vm6, %v1311_v46, -inf  ;;  %v1245_v32 = vmul.f32 0.2, %v1035_v30  ;;  %v1046_v61 = vadd.f32 %v2736_v8, %v2592_v47 }
 0x228   :  { %v1571_v1 = vrot.slane %v1570_v44, 2  ;;  %v1604_v56 = vrot.slane %v1603_v51, 4  ;;  %v1038_v45 = vadd.f32 %v2592_v47, %v2740_v53  ;;  %v1566_v62 = vrot.slane %v1565_v41, 1  ;;  %v2854_v46 = vld [vmem:[%s2979_s4] ss:$0 sm:$0xff] }
 0x229   :  { %v1586_v22 = vmax.f32 %v1584_v4, %v1585_v48  ;;  %v1309_v54 = vsel %vm1181_vm14, %v1035_v30, %v1245_v32  ;;  %v1059_v3 = vadd.f32 %v2749_v23, %v2592_v47  ;;  %vm1184_vm0 = vcmp.ge.f32.partialorder %v1046_v61, 0.0 }
 0x22a   :  { %v1572_v29 = vmax.f32 %v1570_v44, %v1571_v1  ;;  %v1605_v5 = vmax.f32 %v1603_v51, %v1604_v56  ;;  %v1589_v55 = vsel %vm759_vm6, %v1309_v54, -inf  ;;  %v2837_v7 = vpop.f32.mrb[56].mxu1  ;;  %v1248_v13 = vmul.f32 0.2, %v1046_v61 }
 0x22b   :  { %v1587_v9 = vrot.slane %v1586_v22, 1  ;;  %v1590_v11 = vrot.slane %v1589_v55, 4  ;;  %vm1182_vm2 = vcmp.ge.f32.partialorder %v1038_v45, 0.0  ;;  %v2839_v8 = vpop.f32.mrb[57].mxu1  ;;  %v1246_v14 = vmul.f32 0.2, %v1038_v45 }
 0x22c   :  { %v1573_v53 = vrot.slane %v1572_v29, 1  ;;  %v1606_v38 = vrot.slane %v1605_v5, 2  ;;  %vm1187_vm3 = vcmp.ge.f32.partialorder %v1059_v3, 0.0  ;;  %v2841_v15 = vpop.f32.mrb[58].mxu1  ;;  %v1567_v47 = vmax.f32 %v1565_v41, %v1566_v62 }
 0x22d   :  { %v1591_v23 = vmax.f32 %v1589_v55, %v1590_v11  ;;  %v1312_v16 = vsel %vm1184_vm0, %v1046_v61, %v1248_v13  ;;  %v1251_v18 = vmul.f32 0.2, %v1059_v3  ;;  %v2843_v19 = vpop.f32.mrb[59].mxu1  ;;  %v1310_v25 = vsel %vm1182_vm2, %v1038_v45, %v1246_v14 }
 0x22e   :  { %v1574_v20 = vmax.f32 %v1572_v29, %v1573_v53  ;;  %v1607_v24 = vmax.f32 %v1605_v5, %v1606_v38  ;;  %v1610_v27 = vsel %vm759_vm6, %v1312_v16, -inf  ;;  %v1596_v30 = vsel %vm759_vm6, %v1310_v25, -inf }
 0x22f   :  { %v1592_v59 = vrot.slane %v1591_v23, 2  ;;  %v1611_v28 = vrot.slane %v1610_v27, 4  ;;  %v1315_v26 = vsel %vm1187_vm3, %v1059_v3, %v1251_v18  ;;  %v1588_v31 = vmax.f32 %v1586_v22, %v1587_v9 }
 0x230   :  { %v1884_v33 = vsel %vm1849_vm11, %v1574_v20, %v1567_v47  ;;  %v1597_v35 = vrot.slane %v1596_v30, 4  ;;  %v1631_v37 = vsel %vm759_vm6, %v1315_v26, -inf  ;;  %v1608_v4 = vrot.slane %v1607_v24, 1 }
 0x231   :  { %v1885_v39 = vsel %vm1851_vm13, %v1581_v60, %v1884_v33  ;;  %v1593_v63 = vmax.f32 %v1591_v23, %v1592_v59  ;;  %v1612_v0 = vmax.f32 %v1610_v27, %v1611_v28  ;;  %v1632_v41 = vrot.slane %v1631_v37, 4 }
 0x232   :  { %v1886_v43 = vsel %vm1853_vm15, %v1588_v31, %v1885_v39  ;;  %v1598_v44 = vmax.f32 %v1596_v30, %v1597_v35  ;;  %v1051_v48 = vadd.f32 %v2854_v46, %v2754_v42  ;;  %v2858_v51 = vpop.f32.mrb[60].mxu1  ;;  %v1062_v56 = vadd.f32 %v2854_v46, %v2757_v52 }
 0x233   :  { %v1594_v32 = vrot.slane %v1593_v63, 1  ;;  %v1613_v1 = vrot.slane %v1612_v0, 2  ;;  %v1633_v60 = vmax.f32 %v1631_v37, %v1632_v41  ;;  %v2862_v61 = vpop.f32.mrb[61].mxu1  ;;  %v1054_v22 = vadd.f32 %v2854_v46, %v2759_v50 }
 0x234   :  { %v1599_v45 = vrot.slane %v1598_v44, 2  ;;  %vm1185_vm5 = vcmp.ge.f32.partialorder %v1051_v48, 0.0  ;;  %v1249_v62 = vmul.f32 0.2, %v1051_v48  ;;  %v2866_v54 = vpop.f32.mrb[62].mxu1  ;;  %vm1188_vm9 = vcmp.ge.f32.partialorder %v1062_v56, 0.0 }
 0x235   :  { %v1595_v3 = vmax.f32 %v1593_v63, %v1594_v32  ;;  %v1614_v42 = vmax.f32 %v1612_v0, %v1613_v1  ;;  %v1634_v29 = vrot.slane %v1633_v60, 2  ;;  %v2868_v5 = vpop.f32.mrb[63].mxu1  ;;  %v1252_v11 = vmul.f32 0.2, %v1062_v56 }
 0x236   :  { %v1600_v55 = vmax.f32 %v1598_v44, %v1599_v45  ;;  %v1313_v9 = vsel %vm1185_vm5, %v1051_v48, %v1249_v62  ;;  %vm1186_vm10 = vcmp.ge.f32.partialorder %v1054_v22, 0.0  ;;  %v1250_v23 = vmul.f32 0.2, %v1054_v22 }
 0x237   :  { %v1887_v52 = vsel %vm1855_vm1, %v1595_v3, %v1886_v43  ;;  %v1615_v13 = vrot.slane %v1614_v42, 1  ;;  %v1635_v53 = vmax.f32 %v1633_v60, %v1634_v29  ;;  %v1617_v38 = vsel %vm759_vm6, %v1313_v9, -inf }
 0x238   :  { %v1601_v14 = vrot.slane %v1600_v55, 1  ;;  %v1618_v50 = vrot.slane %v1617_v38, 4  ;;  %v1316_v47 = vsel %vm1188_vm9, %v1062_v56, %v1252_v11  ;;  %v1609_v16 = vmax.f32 %v1607_v24, %v1608_v4 }
 0x239   :  { %v1616_v18 = vmax.f32 %v1614_v42, %v1615_v13  ;;  %v1638_v20 = vsel %vm759_vm6, %v1316_v47, -inf  ;;  %v1075_v27 = vadd.f32 %v2854_v46, %v2774_v12  ;;  %v1314_v30 = vsel %vm1186_vm10, %v1054_v22, %v1250_v23 }
 0x23a   :  { %v1602_v25 = vmax.f32 %v1600_v55, %v1601_v14  ;;  %v1619_v59 = vmax.f32 %v1617_v38, %v1618_v50  ;;  %v1639_v28 = vrot.slane %v1638_v20, 4  ;;  %v1636_v26 = vrot.slane %v1635_v53, 1 }
 0x23b   :  { %v1624_v31 = vsel %vm759_vm6, %v1314_v30, -inf  ;;  %vm1191_vm12 = vcmp.ge.f32.partialorder %v1075_v27, 0.0  ;;  %v1255_v33 = vmul.f32 0.2, %v1075_v27  ;;  %v1067_v12 = vadd.f32 %v2854_v46, %v2778_v58 }
 0x23c   :  { %v1888_v35 = vsel %vm1857_vm4, %v1602_v25, %v1887_v52  ;;  %v1620_v37 = vrot.slane %v1619_v59, 2  ;;  %v1640_v24 = vmax.f32 %v1638_v20, %v1639_v28  ;;  %v1625_v39 = vrot.slane %v1624_v31, 4 }
 0x23d   :  { %v1889_v63 = vsel %vm1859_vm7, %v1609_v16, %v1888_v35  ;;  %v1319_v0 = vsel %vm1191_vm12, %v1075_v27, %v1255_v33  ;;  %v1078_v41 = vadd.f32 %v2854_v46, %v2781_v21  ;;  %vm1189_vm14 = vcmp.ge.f32.partialorder %v1067_v12, 0.0 }
 0x23e   :  { %v1890_v4 = vsel %vm1861_vm8, %v1616_v18, %v1889_v63  ;;  %v1621_v43 = vmax.f32 %v1619_v59, %v1620_v37  ;;  %v1641_v44 = vrot.slane %v1640_v24, 2  ;;  %v1626_v48 = vmax.f32 %v1624_v31, %v1625_v39 }
 0x23f   :  { %1924 = vst.msk [vmem:[%s2980_s5 + $0x20] sm:$0xff] %vm759_vm6, %v1890_v4  ;;  %v1659_v32 = vsel %vm759_vm6, %v1319_v0, -inf  ;;  %v1253_v1 = vmul.f32 0.2, %v1067_v12  ;;  %vm1192_vm0 = vcmp.ge.f32.partialorder %v1078_v41, 0.0  ;;  %v1070_v22 = vadd.f32 %v2854_v46, %v2784_v10 }
 0x240   :  { %v1622_v60 = vrot.slane %v1621_v43, 1  ;;  %v1642_v58 = vmax.f32 %v1640_v24, %v1641_v44  ;;  %v1627_v56 = vrot.slane %v1626_v48, 2  ;;  %v1660_v45 = vrot.slane %v1659_v32, 4 }
 0x241   :  { %v1317_v21 = vsel %vm1189_vm14, %v1067_v12, %v1253_v1  ;;  %v1256_v62 = vmul.f32 0.2, %v1078_v41  ;;  %v1091_v3 = vadd.f32 %v2854_v46, %v2792_v49  ;;  %v1637_v42 = vmax.f32 %v1635_v53, %v1636_v26 }
 0x242   :  { %v1623_v29 = vmax.f32 %v1621_v43, %v1622_v60  ;;  %v1628_v55 = vmax.f32 %v1626_v48, %v1627_v56  ;;  %v1661_v9 = vmax.f32 %v1659_v32, %v1660_v45  ;;  %v1645_v11 = vsel %vm759_vm6, %v1317_v21, -inf }
 0x243   :  { %v1320_v52 = vsel %vm1192_vm0, %v1078_v41, %v1256_v62  ;;  %vm1190_vm2 = vcmp.ge.f32.partialorder %v1070_v22, 0.0  ;;  %v1254_v13 = vmul.f32 0.2, %v1070_v22  ;;  %v1643_v38 = vrot.slane %v1642_v58, 1 }
 0x244   :  { %v1629_v14 = vrot.slane %v1628_v55, 1  ;;  %v1662_v50 = vrot.slane %v1661_v9, 2  ;;  %v1646_v47 = vrot.slane %v1645_v11, 4  ;;  %v1666_v23 = vsel %vm759_vm6, %v1320_v52, -inf }
 0x245   :  { %v1318_v16 = vsel %vm1190_vm2, %v1070_v22, %v1254_v13  ;;  %vm1195_vm3 = vcmp.ge.f32.partialorder %v1091_v3, 0.0  ;;  %v1259_v10 = vmul.f32 0.2, %v1091_v3  ;;  %v1667_v20 = vrot.slane %v1666_v23, 4 }
 0x246   :  { %v1630_v18 = vmax.f32 %v1628_v55, %v1629_v14  ;;  %v1663_v49 = vmax.f32 %v1661_v9, %v1662_v50  ;;  %v1647_v53 = vmax.f32 %v1645_v11, %v1646_v47  ;;  %v1652_v27 = vsel %vm759_vm6, %v1318_v16, -inf }
 0x247   :  { %v1323_v25 = vsel %vm1195_vm3, %v1091_v3, %v1259_v10  ;;  %v1083_v59 = vadd.f32 %v2854_v46, %v2795_v57  ;;  %v1094_v28 = vadd.f32 %v2854_v46, %v2799_v2  ;;  %v1644_v30 = vmax.f32 %v1642_v58, %v1643_v38 }
 0x248   :  { %v1891_v26 = vsel %vm1849_vm11, %v1630_v18, %v1623_v29  ;;  %v1648_v31 = vrot.slane %v1647_v53, 2  ;;  %v1668_v33 = vmax.f32 %v1666_v23, %v1667_v20  ;;  %v1664_v37 = vrot.slane %v1663_v49, 1 }
 0x249   :  { %v1892_v35 = vsel %vm1851_vm13, %v1637_v42, %v1891_v26  ;;  %v1653_v24 = vrot.slane %v1652_v27, 4  ;;  %v1687_v39 = vsel %vm759_vm6, %v1323_v25, -inf  ;;  %vm1193_vm5 = vcmp.ge.f32.partialorder %v1083_v59, 0.0 }
 0x24a   :  { %v1649_v63 = vmax.f32 %v1647_v53, %v1648_v31  ;;  %v1893_v0 = vsel %vm1853_vm15, %v1644_v30, %v1892_v35  ;;  %v1669_v12 = vrot.slane %v1668_v33, 2  ;;  %v1688_v41 = vrot.slane %v1687_v39, 4 }
 0x24b   :  { %v1654_v57 = vmax.f32 %v1652_v27, %v1653_v24  ;;  %v1257_v4 = vmul.f32 0.2, %v1083_v59  ;;  %vm1196_vm9 = vcmp.ge.f32.partialorder %v1094_v28, 0.0  ;;  %v1260_v44 = vmul.f32 0.2, %v1094_v28 }
 0x24c   :  { %v1650_v2 = vrot.slane %v1649_v63, 1  ;;  %v1670_v43 = vmax.f32 %v1668_v33, %v1669_v12  ;;  %v1086_v48 = vadd.f32 %v2854_v46, %v2804_v6  ;;  %v1689_v1 = vmax.f32 %v1687_v39, %v1688_v41 }
 0x24d   :  { %v1655_v32 = vrot.slane %v1654_v57, 2  ;;  %v1321_v60 = vsel %vm1193_vm5, %v1083_v59, %v1257_v4  ;;  %v1107_v58 = vadd.f32 %v2854_v46, %v2813_v34  ;;  %v1324_v62 = vsel %vm1196_vm9, %v1094_v28, %v1260_v44 }
 0x24e   :  { %v1651_v56 = vmax.f32 %v1649_v63, %v1650_v2  ;;  %v1671_v45 = vrot.slane %v1670_v43, 1  ;;  %v1673_v21 = vsel %vm759_vm6, %v1321_v60, -inf  ;;  %v1690_v3 = vrot.slane %v1689_v1, 2 }
 0x24f   :  { %v1656_v22 = vmax.f32 %v1654_v57, %v1655_v32  ;;  %v1674_v42 = vrot.slane %v1673_v21, 4  ;;  %v1694_v29 = vsel %vm759_vm6, %v1324_v62, -inf  ;;  %v1665_v55 = vmax.f32 %v1663_v49, %v1664_v37 }
 0x250   :  { %v1894_v9 = vsel %vm1855_vm1, %v1651_v56, %v1893_v0  ;;  %v1695_v6 = vrot.slane %v1694_v29, 4  ;;  %vm1194_vm10 = vcmp.ge.f32.partialorder %v1086_v48, 0.0  ;;  %v1691_v52 = vmax.f32 %v1689_v1, %v1690_v3 }
 0x251   :  { %v1657_v11 = vrot.slane %v1656_v22, 1  ;;  %v1675_v13 = vmax.f32 %v1673_v21, %v1674_v42  ;;  %v1258_v38 = vmul.f32 0.2, %v1086_v48  ;;  %vm1199_vm12 = vcmp.ge.f32.partialorder %v1107_v58, 0.0 }
 0x252   :  { %v1696_v34 = vmax.f32 %v1694_v29, %v1695_v6  ;;  %v1263_v14 = vmul.f32 0.2, %v1107_v58  ;;  %v1099_v50 = vadd.f32 %v2854_v46, %v2816_v36  ;;  %v1672_v47 = vmax.f32 %v1670_v43, %v1671_v45 }
 0x253   :  { %v1658_v23 = vmax.f32 %v1656_v22, %v1657_v11  ;;  %v1676_v16 = vrot.slane %v1675_v13, 2  ;;  %v1322_v10 = vsel %vm1194_vm10, %v1086_v48, %v1258_v38  ;;  %v1692_v18 = vrot.slane %v1691_v52, 1 }
 0x254   :  { %v1697_v49 = vrot.slane %v1696_v34, 2  ;;  %v1680_v53 = vsel %vm759_vm6, %v1322_v10, -inf  ;;  %v1327_v20 = vsel %vm1199_vm12, %v1107_v58, %v1263_v14  ;;  %vm1197_vm14 = vcmp.ge.f32.partialorder %v1099_v50, 0.0 }
 0x255   :  { %v1895_v27 = vsel %vm1857_vm4, %v1658_v23, %v1894_v9  ;;  %v1677_v25 = vmax.f32 %v1675_v13, %v1676_v16  ;;  %v1681_v59 = vrot.slane %v1680_v53, 4  ;;  %v1715_v26 = vsel %vm759_vm6, %v1327_v20, -inf }
 0x256   :  { %v1896_v28 = vsel %vm1859_vm7, %v1665_v55, %v1895_v27  ;;  %v1698_v30 = vmax.f32 %v1696_v34, %v1697_v49  ;;  %v1261_v36 = vmul.f32 0.2, %v1099_v50  ;;  %v1716_v37 = vrot.slane %v1715_v26, 4 }
 0x257   :  { %v1897_v31 = vsel %vm1861_vm8, %v1672_v47, %v1896_v28  ;;  %v1678_v33 = vrot.slane %v1677_v25, 1  ;;  %v1682_v35 = vmax.f32 %v1680_v53, %v1681_v59  ;;  %v1110_v39 = vadd.f32 %v2854_v46, %v2819_v40 }
 0x258   :  { %1925 = vst.msk [vmem:[%s2980_s5 + $0x28] sm:$0xff] %vm759_vm6, %v1897_v31  ;;  %v1325_v24 = vsel %vm1197_vm14, %v1099_v50, %v1261_v36  ;;  %v1102_v63 = vadd.f32 %v2854_v46, %v2822_v17  ;;  %v1693_v0 = vmax.f32 %v1691_v52, %v1692_v18  ;;  %v1717_v57 = vmax.f32 %v1715_v26, %v1716_v37 }
 0x259   :  { %v1683_v12 = vrot.slane %v1682_v35, 2  ;;  %v1701_v41 = vsel %vm759_vm6, %v1325_v24, -inf  ;;  %v1699_v4 = vrot.slane %v1698_v30, 1  ;;  %vm1200_vm0 = vcmp.ge.f32.partialorder %v1110_v39, 0.0 }
 0x25a   :  { %v1702_v2 = vrot.slane %v1701_v41, 4  ;;  %v1264_v43 = vmul.f32 0.2, %v1110_v39  ;;  %v1679_v44 = vmax.f32 %v1677_v25, %v1678_v33  ;;  %vm1198_vm2 = vcmp.ge.f32.partialorder %v1102_v63, 0.0 }
 0x25b   :  { %v1684_v48 = vmax.f32 %v1682_v35, %v1683_v12  ;;  %v1262_v32 = vmul.f32 0.2, %v1102_v63  ;;  %v1123_v40 = vadd.f32 %v2854_v46, %v2837_v7  ;;  %v1115_v17 = vadd.f32 %v2854_v46, %v2839_v8 }
 0x25c   :  { %v1703_v1 = vmax.f32 %v1701_v41, %v1702_v2  ;;  %v1328_v60 = vsel %vm1200_vm0, %v1110_v39, %v1264_v43  ;;  %v1718_v56 = vrot.slane %v1717_v57, 2  ;;  %v1700_v42 = vmax.f32 %v1698_v30, %v1699_v4 }
 0x25d   :  { %v1685_v58 = vrot.slane %v1684_v48, 1  ;;  %v1722_v45 = vsel %vm759_vm6, %v1328_v60, -inf  ;;  %v1326_v21 = vsel %vm1198_vm2, %v1102_v63, %v1262_v32  ;;  %vm1203_vm3 = vcmp.ge.f32.partialorder %v1123_v40, 0.0 }
 0x25e   :  { %v1704_v62 = vrot.slane %v1703_v1, 2  ;;  %v1723_v22 = vrot.slane %v1722_v45, 4  ;;  %v1708_v3 = vsel %vm759_vm6, %v1326_v21, -inf  ;;  %v1267_v9 = vmul.f32 0.2, %v1123_v40 }
 0x25f   :  { %v1686_v29 = vmax.f32 %v1684_v48, %v1685_v58  ;;  %v1709_v55 = vrot.slane %v1708_v3, 4  ;;  %vm1201_vm5 = vcmp.ge.f32.partialorder %v1115_v17, 0.0  ;;  %v1265_v7 = vmul.f32 0.2, %v1115_v17 }
 0x260   :  { %v1705_v6 = vmax.f32 %v1703_v1, %v1704_v62  ;;  %v1724_v11 = vmax.f32 %v1722_v45, %v1723_v22  ;;  %v1719_v52 = vmax.f32 %v1717_v57, %v1718_v56  ;;  %v1331_v38 = vsel %vm1203_vm3, %v1123_v40, %v1267_v9 }
 0x261   :  { %v1898_v8 = vsel %vm1849_vm11, %v1686_v29, %v1679_v44  ;;  %v1710_v13 = vmax.f32 %v1708_v3, %v1709_v55  ;;  %v1743_v47 = vsel %vm759_vm6, %v1331_v38, -inf  ;;  %v1329_v18 = vsel %vm1201_vm5, %v1115_v17, %v1265_v7 }
 0x262   :  { %v1899_v34 = vsel %vm1851_vm13, %v1693_v0, %v1898_v8  ;;  %v1706_v14 = vrot.slane %v1705_v6, 1  ;;  %v1725_v50 = vrot.slane %v1724_v11, 2  ;;  %v1744_v10 = vrot.slane %v1743_v47, 4 }
 0x263   :  { %v1900_v23 = vsel %vm1853_vm15, %v1700_v42, %v1899_v34  ;;  %v1711_v16 = vrot.slane %v1710_v13, 2  ;;  %v1729_v20 = vsel %vm759_vm6, %v1329_v18, -inf  ;;  %v1126_v27 = vadd.f32 %v2854_v46, %v2841_v15 }
 0x264   :  { %v1707_v49 = vmax.f32 %v1705_v6, %v1706_v14  ;;  %v1726_v53 = vmax.f32 %v1724_v11, %v1725_v50  ;;  %v1720_v25 = vrot.slane %v1719_v52, 1  ;;  %v1730_v28 = vrot.slane %v1729_v20, 4 }
 0x265   :  { %v1712_v59 = vmax.f32 %v1710_v13, %v1711_v16  ;;  %v1118_v30 = vadd.f32 %v2854_v46, %v2843_v19  ;;  %v1745_v36 = vmax.f32 %v1743_v47, %v1744_v10  ;;  %vm1204_vm9 = vcmp.ge.f32.partialorder %v1126_v27, 0.0 }
 0x266   :  { %v1901_v26 = vsel %vm1855_vm1, %v1707_v49, %v1900_v23  ;;  %v1268_v31 = vmul.f32 0.2, %v1126_v27  ;;  %v1727_v33 = vrot.slane %v1726_v53, 1  ;;  %v1731_v37 = vmax.f32 %v1729_v20, %v1730_v28 }
 0x267   :  { %v1713_v35 = vrot.slane %v1712_v59, 1  ;;  %vm1202_vm10 = vcmp.ge.f32.partialorder %v1118_v30, 0.0  ;;  %v1266_v39 = vmul.f32 0.2, %v1118_v30  ;;  %v1139_v15 = vadd.f32 %v2854_v46, %v2858_v51 }
 0x268   :  { %v1332_v24 = vsel %vm1204_vm9, %v1126_v27, %v1268_v31  ;;  %v1721_v63 = vmax.f32 %v1719_v52, %v1720_v25  ;;  %v1732_v12 = vrot.slane %v1731_v37, 2  ;;  %v1728_v2 = vmax.f32 %v1726_v53, %v1727_v33 }
 0x269   :  { %v1714_v0 = vmax.f32 %v1712_v59, %v1713_v35  ;;  %v1750_v57 = vsel %vm759_vm6, %v1332_v24, -inf  ;;  %v1330_v41 = vsel %vm1202_vm10, %v1118_v30, %v1266_v39  ;;  %vm1207_vm12 = vcmp.ge.f32.partialorder %v1139_v15, 0.0 }
 0x26a   :  { %v1751_v19 = vrot.slane %v1750_v57, 4  ;;  %v1271_v4 = vmul.f32 0.2, %v1139_v15  ;;  %v1746_v44 = vrot.slane %v1745_v36, 2  ;;  %v1736_v48 = vsel %vm759_vm6, %v1330_v41, -inf }
 0x26b   :  { %v1902_v43 = vsel %vm1857_vm4, %v1714_v0, %v1901_v26  ;;  %v1737_v60 = vrot.slane %v1736_v48, 4  ;;  %v1733_v17 = vmax.f32 %v1731_v37, %v1732_v12  ;;  %v1131_v62 = vadd.f32 %v2854_v46, %v2862_v61 }
 0x26c   :  { %v1903_v32 = vsel %vm1859_vm7, %v1721_v63, %v1902_v43  ;;  %v1752_v1 = vmax.f32 %v1750_v57, %v1751_v19  ;;  %v1335_v51 = vsel %vm1207_vm12, %v1139_v15, %v1271_v4  ;;  %v1747_v22 = vmax.f32 %v1745_v36, %v1746_v44 }
 0x26d   :  { %v1904_v40 = vsel %vm1861_vm8, %v1728_v2, %v1903_v32  ;;  %v1771_v58 = vsel %vm759_vm6, %v1335_v51, -inf  ;;  %v1738_v45 = vmax.f32 %v1736_v48, %v1737_v60  ;;  %v1142_v3 = vadd.f32 %v2854_v46, %v2866_v54 }
 0x26e   :  { %1926 = vst.msk [vmem:[%s2980_s5 + $0x30] sm:$0xff] %vm759_vm6, %v1904_v40  ;;  %v1753_v56 = vrot.slane %v1752_v1, 2  ;;  %v1772_v21 = vrot.slane %v1771_v58, 4  ;;  %v1134_v42 = vadd.f32 %v2854_v46, %v2868_v5  ;;  %vm1205_vm14 = vcmp.ge.f32.partialorder %v1131_v62, 0.0 }
 0x26f   :  { %v1739_v55 = vrot.slane %v1738_v45, 2  ;;  %v1734_v9 = vrot.slane %v1733_v17, 1  ;;  %v1269_v6 = vmul.f32 0.2, %v1131_v62  ;;  %vm1208_vm0 = vcmp.ge.f32.partialorder %v1142_v3, 0.0 }
 0x270   :  { %v1754_v29 = vmax.f32 %v1752_v1, %v1753_v56  ;;  %v1272_v11 = vmul.f32 0.2, %v1142_v3  ;;  %v1773_v8 = vmax.f32 %v1771_v58, %v1772_v21  ;;  %vm1206_vm2 = vcmp.ge.f32.partialorder %v1134_v42, 0.0 }
 0x271   :  { %v1740_v7 = vmax.f32 %v1738_v45, %v1739_v55  ;;  %v1270_v52 = vmul.f32 0.2, %v1134_v42  ;;  %v1748_v13 = vrot.slane %v1747_v22, 1  ;;  %v1333_v61 = vsel %vm1205_vm14, %v1131_v62, %v1269_v6 }
 0x272   :  { %v1336_v38 = vsel %vm1208_vm0, %v1142_v3, %v1272_v11  ;;  %v1755_v34 = vrot.slane %v1754_v29, 1  ;;  %v1757_v54 = vsel %vm759_vm6, %v1333_v61, -inf  ;;  %v1735_v50 = vmax.f32 %v1733_v17, %v1734_v9 }
 0x273   :  { %v1741_v14 = vrot.slane %v1740_v7, 1  ;;  %v1758_v46 = vrot.slane %v1757_v54, 4  ;;  %v1778_v5 = vsel %vm759_vm6, %v1336_v38, -inf  ;;  %v1334_v47 = vsel %vm1206_vm2, %v1134_v42, %v1270_v52 }
 0x274   :  { %v1774_v16 = vrot.slane %v1773_v8, 2  ;;  %v1779_v10 = vrot.slane %v1778_v5, 4  ;;  %v1764_v18 = vsel %vm759_vm6, %v1334_v47, -inf  ;;  %v1749_v49 = vmax.f32 %v1747_v22, %v1748_v13 }
 0x275   :  { %v1742_v23 = vmax.f32 %v1740_v7, %v1741_v14  ;;  %v1759_v53 = vmax.f32 %v1757_v54, %v1758_v46  ;;  %v1765_v20 = vrot.slane %v1764_v18, 4  ;;  %v1756_v27 = vmax.f32 %v1754_v29, %v1755_v34 }
 0x276   :  { %v1780_v59 = vmax.f32 %v1778_v5, %v1779_v10  ;;  %v1775_v36 = vmax.f32 %v1773_v8, %v1774_v16 }
 0x277   :  { %v1905_v25 = vsel %vm1849_vm11, %v1742_v23, %v1735_v50  ;;  %v1760_v30 = vrot.slane %v1759_v53, 2  ;;  %v1766_v26 = vmax.f32 %v1764_v18, %v1765_v20 }
 0x278   :  { %v1906_v28 = vsel %vm1851_vm13, %v1749_v49, %v1905_v25  ;;  %v1781_v33 = vrot.slane %v1780_v59, 2  ;;  %v1776_v63 = vrot.slane %v1775_v36, 1 }
 0x279   :  { %v1907_v31 = vsel %vm1853_vm15, %v1756_v27, %v1906_v28  ;;  %v1761_v35 = vmax.f32 %v1759_v53, %v1760_v30  ;;  %v1767_v37 = vrot.slane %v1766_v26, 2 }
 0x27a   :  { %v1782_v24 = vmax.f32 %v1780_v59, %v1781_v33  ;;  %v1777_v4 = vmax.f32 %v1775_v36, %v1776_v63 }
 0x27b   :  { %v1762_v39 = vrot.slane %v1761_v35, 1  ;;  %v1768_v15 = vmax.f32 %v1766_v26, %v1767_v37 }
 0x27c   :  { %v1783_v12 = vrot.slane %v1782_v24, 1 }
 0x27d   :  { %v1763_v0 = vmax.f32 %v1761_v35, %v1762_v39  ;;  %v1769_v57 = vrot.slane %v1768_v15, 1 }
 0x27e   :  { %v1784_v2 = vmax.f32 %v1782_v24, %v1783_v12 }
 0x27f   :  { %v1908_v19 = vsel %vm1855_vm1, %v1763_v0, %v1907_v31  ;;  %v1770_v41 = vmax.f32 %v1768_v15, %v1769_v57 }
 0x281   :  { %v1909_v43 = vsel %vm1857_vm4, %v1770_v41, %v1908_v19 }
 0x282   :  { %v1910_v44 = vsel %vm1859_vm7, %v1777_v4, %v1909_v43 }
 0x283   :  { %v1911_v48 = vsel %vm1861_vm8, %v1784_v2, %v1910_v44 }
 0x284   :  { %1927 = vst.msk [vmem:[%s2980_s5 + $0x38] sm:$0xff] %vm759_vm6, %v1911_v48 }

// kernel: network_whole_forward.6
= control target key start
LH: loop header
LB: loop body
LE: loop exit
PB: predicated region body
PF: predicated region fallthrough
CT: control target
= control target key end

     0   :  { %s4532_s0 = inlined_call_operand.vmem [shape: f32[512,128], index: 0, kind: input, shape index: {}]   ;;  %s4533_s1 = inlined_call_operand.vmem [shape: f32[64,64], index: 1, kind: input, shape index: {}]   ;;  %s4534_s2 = inlined_call_operand.vmem [shape: f32[128,64], index: 2, kind: input, shape index: {}]   ;;  %s4535_s3 = inlined_call_operand.vmem [shape: f32[1,64], index: 3, kind: input, shape index: {}]   ;;  %s4536_s4 = inlined_call_operand.vmem [shape: f32[64,64], index: 4, kind: input, shape index: {}]   ;;  %s4537_s5 = inlined_call_operand.vmem [shape: f32[1,64], index: 5, kind: input, shape index: {}]   ;;  %s4538_s6 = inlined_call_operand.vmem [shape: f32[128,64], index: 6, kind: input, shape index: {}]   ;;  %s4539_s7 = inlined_call_operand.vmem [shape: f32[1,64], index: 7, kind: input, shape index: {}]   ;;  %s4540_s8 = inlined_call_operand.vmem [shape: f32[64,16], index: 8, kind: input, shape index: {}]   ;;  %s4541_s9 = inlined_call_operand.vmem [shape: f32[1,16], index: 9, kind: input, shape index: {}]   ;;  %s4542_s10 = inlined_call_operand.vmem [shape: f32[64,16], index: 10, kind: input, shape index: {}]   ;;  %s4543_s11 = inlined_call_operand.vmem [shape: f32[1,16], index: 11, kind: input, shape index: {}]   ;;  %s4544_s12 = inlined_call_operand.vmem [shape: f32[2,16], index: 12, kind: input, shape index: {}]   ;;  %s4545_s13 = inlined_call_operand.vmem [shape: f32[8,64], index: 13, kind: input, shape index: {}]   ;;  %s4546_s14 = inlined_call_operand.vmem [shape: f32[16,256], index: 14, kind: input, shape index: {}]   ;;  %s4547_s15 = inlined_call_operand.vmem [shape: f32[64,256], index: 15, kind: input, shape index: {}]   ;;  %s4548_s16 = inlined_call_operand.vmem [shape: f32[256,128], index: 16, kind: input, shape index: {}]   ;;  %s4549_s17 = inlined_call_operand.vmem [shape: f32[64,128], index: 17, kind: output, shape index: {0}]   ;;  %s4550_s18 = inlined_call_operand.vmem [shape: f32[16,128], index: 18, kind: output, shape index: {1}]   ;;  %s4551_s19 = inlined_call_operand.hbm [shape: f32[2,16], index: 19, kind: output, shape index: {2}]   ;;  %s4552_s20 = inlined_call_operand.hbm [shape: f32[2,16], index: 20, kind: output, shape index: {3}]   ;;  %s4553_s21 = inlined_call_operand.hbm [shape: f32[2,16], index: 21, kind: output, shape index: {4}]  }
   0x1   :  { %4559 = sst [smem:[#allocation9_spill]] %s4532_s0 }
   0x2   :  { %4560 = sst [smem:[#allocation10_spill]] %s4533_s1 }
   0x3   :  { %4561 = sst [smem:[#allocation11_spill]] %s4534_s2 }
   0x4   :  { %4562 = sst [smem:[#allocation12_spill]] %s4535_s3 }
   0x5   :  { %4563 = sst [smem:[#allocation13_spill]] %s4536_s4 }
   0x6   :  { %4564 = sst [smem:[#allocation14_spill]] %s4537_s5 }
   0x7   :  { %27 = vsyncpa [#allocation3], 0  ;;  %s4565_s26 = sld [smem:[#allocation11_spill]]  ;;  %s4566_s2 = sld [smem:[#allocation9_spill]] }
   0xd   :  { %v128_v0 = vld [vmem:[%s4565_s26] sm:$0xff]  ;;  %v129_v1 = vld [vmem:[%s4565_s26 + $0x8] sm:$0xff]  ;;  %v130_v2 = vld [vmem:[%s4565_s26 + $0x10] sm:$0xff] }
   0xe   :  { %v176_v3 = vpack.c.bf16 %v129_v1, %v128_v0  ;;  %v131_v4 = vld [vmem:[%s4565_s26 + $0x18] sm:$0xff]  ;;  %v132_v6 = vld [vmem:[%s4565_s26 + $0x20] sm:$0xff]  ;;  %v133_v7 = vld [vmem:[%s4565_s26 + $0x28] sm:$0xff] }
   0xf   :  { %v177_v5 = vpack.c.bf16 %v131_v4, %v130_v2  ;;  %v178_v8 = vpack.c.bf16 %v133_v7, %v132_v6  ;;  %v64_v9 = vld [vmem:[%s4566_s2] sm:$0xff]  ;;  %v65_v10 = vld [vmem:[%s4566_s2 + $0x8] sm:$0xff]  ;;  %v134_v11 = vld [vmem:[%s4565_s26 + $0x30] sm:$0xff] }
  0x10   :  { %2789 = vmatprep.subr.bf16.mxu0 %v176_v3  ;;  %v135_v12 = vld [vmem:[%s4565_s26 + $0x38] sm:$0xff]  ;;  %v144_v13 = vpack.c.bf16 %v65_v10, %v64_v9  ;;  %v136_v15 = vld [vmem:[%s4565_s26 + $0x40] sm:$0xff]  ;;  %v137_v16 = vld [vmem:[%s4565_s26 + $0x48] sm:$0xff] }
  0x11   :  { %2790 = vmatpush3.bf16.msra.mxu0 %v176_v3  ;;  %v179_v14 = vpack.c.bf16 %v135_v12, %v134_v11  ;;  %v180_v17 = vpack.c.bf16 %v137_v16, %v136_v15  ;;  %v138_v18 = vld [vmem:[%s4565_s26 + $0x50] sm:$0xff]  ;;  %v139_v19 = vld [vmem:[%s4565_s26 + $0x58] sm:$0xff]  ;;  %v140_v21 = vld [vmem:[%s4565_s26 + $0x60] sm:$0xff] }
  0x12   :  { %2791 = vmatprep.subr.bf16.mxu0 %v177_v5  ;;  %2805 = vmatprep.mubr.bf16.mxu0 %v144_v13  ;;  %v181_v20 = vpack.c.bf16 %v139_v19, %v138_v18  ;;  %v141_v22 = vld [vmem:[%s4565_s26 + $0x68] sm:$0xff]  ;;  %v142_v24 = vld [vmem:[%s4565_s26 + $0x70] sm:$0xff]  ;;  %v143_v25 = vld [vmem:[%s4565_s26 + $0x78] sm:$0xff] }
  0x13   :  { %v182_v23 = vpack.c.bf16 %v141_v22, %v140_v21  ;;  %v183_v26 = vpack.c.bf16 %v143_v25, %v142_v24 }
  0x15   :  { %2792 = vmatpush3.bf16.msra.mxu0 %v177_v5 }
  0x16   :  { %2793 = vmatprep.subr.bf16.mxu0 %v178_v8 }
  0x19   :  { %2794 = vmatpush3.bf16.msra.mxu0 %v178_v8 }
  0x1a   :  { %2795 = vmatprep.subr.bf16.mxu0 %v179_v14 }
  0x1d   :  { %2796 = vmatpush3.bf16.msra.mxu0 %v179_v14 }
  0x1e   :  { %2797 = vmatprep.subr.bf16.mxu0 %v180_v17 }
  0x21   :  { %2798 = vmatpush3.bf16.msra.mxu0 %v180_v17 }
  0x22   :  { %2799 = vmatprep.subr.bf16.mxu0 %v181_v20 }
  0x25   :  { %2800 = vmatpush3.bf16.msra.mxu0 %v181_v20 }
  0x26   :  { %2801 = vmatprep.subr.bf16.mxu0 %v182_v23 }
  0x27   :  { %28 = vsyncpa [#allocation5], 0  ;;  %s4567_s1 = sld [smem:[#allocation13_spill]]  ;;  %v66_v29 = vld [vmem:[%s4566_s2 + $0x10] sm:$0xff]  ;;  %v67_v30 = vld [vmem:[%s4566_s2 + $0x18] sm:$0xff]  ;;  %s4568_s4 = sld [smem:[#allocation12_spill]] }
  0x28   :  { %v68_v32 = vld [vmem:[%s4566_s2 + $0x20] sm:$0xff]  ;;  %v69_v33 = vld [vmem:[%s4566_s2 + $0x28] sm:$0xff]  ;;  %v145_v34 = vpack.c.bf16 %v67_v30, %v66_v29  ;;  %v70_v36 = vld [vmem:[%s4566_s2 + $0x30] sm:$0xff]  ;;  %vm723_vm4 = vcmask 523264   ;;  %s4569_s5 = sld [smem:[#allocation14_spill]]  ;;  %s3113_s22 = smov 64  }
  0x29   :  { %2802 = vmatpush3.bf16.msra.mxu0 %v182_v23  ;;  %v146_v35 = vpack.c.bf16 %v69_v33, %v68_v32  ;;  %v71_v37 = vld [vmem:[%s4566_s2 + $0x38] sm:$0xff]  ;;  %v72_v38 = vld [vmem:[%s4566_s2 + $0x40] sm:$0xff]  ;;  %v73_v39 = vld [vmem:[%s4566_s2 + $0x48] sm:$0xff]  ;;  %s4570_s30 = sld [smem:[#allocation10_spill]] }
  0x2a   :  { %2803 = vmatprep.subr.bf16.mxu0 %v183_v26  ;;  %v147_v40 = vpack.c.bf16 %v71_v37, %v70_v36  ;;  %v148_v41 = vpack.c.bf16 %v73_v39, %v72_v38  ;;  %v74_v42 = vld [vmem:[%s4566_s2 + $0x50] sm:$0xff]  ;;  %v75_v43 = vld [vmem:[%s4566_s2 + $0x58] sm:$0xff]  ;;  %v76_v44 = vld [vmem:[%s4566_s2 + $0x60] sm:$0xff] }
  0x2b   :  { %v77_v45 = vld [vmem:[%s4566_s2 + $0x68] sm:$0xff]  ;;  %v149_v46 = vpack.c.bf16 %v75_v43, %v74_v42  ;;  %v78_v48 = vld [vmem:[%s4566_s2 + $0x70] sm:$0xff]  ;;  %v79_v49 = vld [vmem:[%s4566_s2 + $0x78] sm:$0xff] }
  0x2c   :  { %v150_v47 = vpack.c.bf16 %v77_v45, %v76_v44  ;;  %v80_v50 = vld [vmem:[%s4566_s2 + $0x80] sm:$0xff]  ;;  %v81_v51 = vld [vmem:[%s4566_s2 + $0x88] sm:$0xff]  ;;  %v151_v52 = vpack.c.bf16 %v79_v49, %v78_v48  ;;  %v82_v54 = vld [vmem:[%s4566_s2 + $0x90] sm:$0xff] }
  0x2d   :  { %v672_v27 = vld [vmem:[%s4567_s1] sm:$0xff]  ;;  %v673_v28 = vld [vmem:[%s4567_s1 + $0x8] sm:$0xff]  ;;  %2804 = vmatpush3.bf16.msra.mxu0 %v183_v26  ;;  %v152_v53 = vpack.c.bf16 %v81_v51, %v80_v50  ;;  %v83_v55 = vld [vmem:[%s4566_s2 + $0x98] sm:$0xff] }
  0x2e   :  { %v712_v31 = vpack.c.bf16 %v673_v28, %v672_v27  ;;  %v84_v56 = vld [vmem:[%s4566_s2 + $0xa0] sm:$0xff]  ;;  %v85_v57 = vld [vmem:[%s4566_s2 + $0xa8] sm:$0xff]  ;;  %v153_v58 = vpack.c.bf16 %v83_v55, %v82_v54  ;;  %v86_v60 = vld [vmem:[%s4566_s2 + $0xb0] sm:$0xff] }
  0x2f   :  { %v154_v59 = vpack.c.bf16 %v85_v57, %v84_v56  ;;  %v87_v61 = vld [vmem:[%s4566_s2 + $0xb8] sm:$0xff]  ;;  %v88_v62 = vld [vmem:[%s4566_s2 + $0xc0] sm:$0xff]  ;;  %v89_v63 = vld [vmem:[%s4566_s2 + $0xc8] sm:$0xff] }
  0x30   :  { %2869 = vmatprep.subr.bf16.mxu1 %v712_v31  ;;  %2806 = vmatmul.mubr.bf16.vlgmr.msra.gmra.mrb[0].mxu0 %v145_v34  ;;  %v155_v0 = vpack.c.bf16 %v87_v61, %v86_v60  ;;  %v156_v1 = vpack.c.bf16 %v89_v63, %v88_v62  ;;  %v90_v2 = vld [vmem:[%s4566_s2 + $0xd0] sm:$0xff]  ;;  %v91_v3 = vld [vmem:[%s4566_s2 + $0xd8] sm:$0xff]  ;;  %v92_v4 = vld [vmem:[%s4566_s2 + $0xe0] sm:$0xff] }
  0x31   :  { %2870 = vmatpush3.bf16.msra.mxu1 %v712_v31  ;;  %2809 = vmatprep.mubr.bf16.mxu0 %v146_v35  ;;  %v93_v5 = vld [vmem:[%s4566_s2 + $0xe8] sm:$0xff]  ;;  %v157_v6 = vpack.c.bf16 %v91_v3, %v90_v2  ;;  %v94_v8 = vld [vmem:[%s4566_s2 + $0xf0] sm:$0xff]  ;;  %v95_v9 = vld [vmem:[%s4566_s2 + $0xf8] sm:$0xff] }
  0x32   :  { %v158_v7 = vpack.c.bf16 %v93_v5, %v92_v4  ;;  %v96_v10 = vld [vmem:[%s4566_s2 + $0x100] sm:$0xff]  ;;  %v97_v11 = vld [vmem:[%s4566_s2 + $0x108] sm:$0xff]  ;;  %v159_v12 = vpack.c.bf16 %v95_v9, %v94_v8  ;;  %v98_v14 = vld [vmem:[%s4566_s2 + $0x110] sm:$0xff] }
  0x33   :  { %v160_v13 = vpack.c.bf16 %v97_v11, %v96_v10  ;;  %v99_v15 = vld [vmem:[%s4566_s2 + $0x118] sm:$0xff]  ;;  %v100_v16 = vld [vmem:[%s4566_s2 + $0x120] sm:$0xff]  ;;  %v101_v17 = vld [vmem:[%s4566_s2 + $0x128] sm:$0xff] }
  0x34   :  { %v161_v18 = vpack.c.bf16 %v99_v15, %v98_v14  ;;  %v162_v19 = vpack.c.bf16 %v101_v17, %v100_v16  ;;  %v102_v20 = vld [vmem:[%s4566_s2 + $0x130] sm:$0xff]  ;;  %v103_v21 = vld [vmem:[%s4566_s2 + $0x138] sm:$0xff]  ;;  %v104_v22 = vld [vmem:[%s4566_s2 + $0x140] sm:$0xff] }
  0x35   :  { %v105_v23 = vld [vmem:[%s4566_s2 + $0x148] sm:$0xff]  ;;  %v163_v24 = vpack.c.bf16 %v103_v21, %v102_v20  ;;  %v106_v26 = vld [vmem:[%s4566_s2 + $0x150] sm:$0xff]  ;;  %v107_v27 = vld [vmem:[%s4566_s2 + $0x158] sm:$0xff] }
  0x36   :  { %v164_v25 = vpack.c.bf16 %v105_v23, %v104_v22  ;;  %v108_v28 = vld [vmem:[%s4566_s2 + $0x160] sm:$0xff]  ;;  %v109_v29 = vld [vmem:[%s4566_s2 + $0x168] sm:$0xff]  ;;  %v165_v30 = vpack.c.bf16 %v107_v27, %v106_v26  ;;  %v674_v32 = vld [vmem:[%s4567_s1 + $0x10] sm:$0xff] }
  0x37   :  { %v166_v31 = vpack.c.bf16 %v109_v29, %v108_v28  ;;  %v675_v33 = vld [vmem:[%s4567_s1 + $0x18] sm:$0xff]  ;;  %v110_v34 = vld [vmem:[%s4566_s2 + $0x170] sm:$0xff]  ;;  %v112_v37 = vld [vmem:[%s4566_s2 + $0x180] sm:$0xff] }
  0x38   :  { %2810 = vmatmul.mubr.bf16.gmra.mrb[4].mxu0 %v147_v40  ;;  %v111_v35 = vld [vmem:[%s4566_s2 + $0x178] sm:$0xff]  ;;  %v713_v36 = vpack.c.bf16 %v675_v33, %v674_v32  ;;  %v113_v38 = vld [vmem:[%s4566_s2 + $0x188] sm:$0xff]  ;;  %v676_v40 = vld [vmem:[%s4567_s1 + $0x20] sm:$0xff] }
  0x39   :  { %2813 = vmatprep.mubr.bf16.mxu0 %v148_v41  ;;  %v167_v39 = vpack.c.bf16 %v111_v35, %v110_v34  ;;  %v677_v41 = vld [vmem:[%s4567_s1 + $0x28] sm:$0xff]  ;;  %v168_v42 = vpack.c.bf16 %v113_v38, %v112_v37  ;;  %v678_v44 = vld [vmem:[%s4567_s1 + $0x30] sm:$0xff]  ;;  %v679_v45 = vld [vmem:[%s4567_s1 + $0x38] sm:$0xff] }
  0x3a   :  { %2871 = vmatprep.subr.bf16.mxu1 %v713_v36  ;;  %v714_v43 = vpack.c.bf16 %v677_v41, %v676_v40  ;;  %v715_v48 = vpack.c.bf16 %v679_v45, %v678_v44  ;;  %v116_v49 = vld [vmem:[%s4566_s2 + $0x1a0] sm:$0xff]  ;;  %v117_v50 = vld [vmem:[%s4566_s2 + $0x1a8] sm:$0xff]  ;;  %v119_v54 = vld [vmem:[%s4566_s2 + $0x1b8] sm:$0xff] }
  0x3b   :  { %2872 = vmatpush3.bf16.msra.mxu1 %v713_v36  ;;  %v120_v55 = vld [vmem:[%s4566_s2 + $0x1c0] sm:$0xff]  ;;  %v121_v56 = vld [vmem:[%s4566_s2 + $0x1c8] sm:$0xff]  ;;  %v123_v60 = vld [vmem:[%s4566_s2 + $0x1d8] sm:$0xff] }
  0x3c   :  { %2873 = vmatprep.subr.bf16.mxu1 %v714_v43  ;;  %v124_v61 = vld [vmem:[%s4566_s2 + $0x1e0] sm:$0xff]  ;;  %v125_v62 = vld [vmem:[%s4566_s2 + $0x1e8] sm:$0xff]  ;;  %v127_v2 = vld [vmem:[%s4566_s2 + $0x1f8] sm:$0xff] }
  0x3d   :  { %v3499_v4 = vld [vmem:[%s4568_s4] ss:$0 sm:$0xff] }
  0x3f   :  { %2874 = vmatpush3.bf16.msra.mxu1 %v714_v43 }
  0x40   :  { %2814 = vmatmul.mubr.bf16.gmra.mrb[8].mxu0 %v149_v46  ;;  %v114_v46 = vld [vmem:[%s4566_s2 + $0x190] sm:$0xff]  ;;  %2875 = vmatprep.subr.bf16.mxu1 %v715_v48 }
  0x41   :  { %2817 = vmatprep.mubr.bf16.mxu0 %v150_v47  ;;  %v115_v47 = vld [vmem:[%s4566_s2 + $0x198] sm:$0xff] }
  0x42   :  { %v169_v51 = vpack.c.bf16 %v115_v47, %v114_v46 }
  0x43   :  { %2876 = vmatpush3.bf16.msra.mxu1 %v715_v48 }
  0x48   :  { %2818 = vmatmul.mubr.bf16.gmra.mrb[12].mxu0 %v151_v52  ;;  %v170_v52 = vpack.c.bf16 %v117_v50, %v116_v49 }
  0x49   :  { %2821 = vmatprep.mubr.bf16.mxu0 %v152_v53  ;;  %v118_v53 = vld [vmem:[%s4566_s2 + $0x1b0] sm:$0xff] }
  0x4a   :  { %v171_v57 = vpack.c.bf16 %v119_v54, %v118_v53 }
  0x50   :  { %2822 = vmatmul.mubr.bf16.gmra.mrb[16].mxu0 %v153_v58  ;;  %v172_v58 = vpack.c.bf16 %v121_v56, %v120_v55 }
  0x51   :  { %2825 = vmatprep.mubr.bf16.mxu0 %v154_v59  ;;  %v122_v59 = vld [vmem:[%s4566_s2 + $0x1d0] sm:$0xff] }
  0x52   :  { %v173_v63 = vpack.c.bf16 %v123_v60, %v122_v59 }
  0x58   :  { %2826 = vmatmul.mubr.bf16.gmra.mrb[20].mxu0 %v155_v0  ;;  %v174_v0 = vpack.c.bf16 %v125_v62, %v124_v61 }
  0x59   :  { %2829 = vmatprep.mubr.bf16.mxu0 %v156_v1  ;;  %v126_v1 = vld [vmem:[%s4566_s2 + $0x1f0] sm:$0xff] }
  0x5a   :  { %v175_v3 = vpack.c.bf16 %v127_v2, %v126_v1 }
  0x60   :  { %2830 = vmatmul.mubr.bf16.gmra.mrb[24].mxu0 %v157_v6 }
  0x61   :  { %2833 = vmatprep.mubr.bf16.mxu0 %v158_v7 }
  0x68   :  { %2834 = vmatmul.mubr.bf16.gmra.mrb[28].mxu0 %v159_v12 }
  0x69   :  { %2837 = vmatprep.mubr.bf16.mxu0 %v160_v13 }
  0x70   :  { %2838 = vmatmul.mubr.bf16.gmra.mrb[32].mxu0 %v161_v18 }
  0x71   :  { %2841 = vmatprep.mubr.bf16.mxu0 %v162_v19 }
  0x78   :  { %2842 = vmatmul.mubr.bf16.gmra.mrb[36].mxu0 %v163_v24 }
  0x79   :  { %2845 = vmatprep.mubr.bf16.mxu0 %v164_v25 }
  0x80   :  { %2846 = vmatmul.mubr.bf16.gmra.mrb[40].mxu0 %v165_v30 }
  0x81   :  { %2849 = vmatprep.mubr.bf16.mxu0 %v166_v31 }
  0x88   :  { %2850 = vmatmul.mubr.bf16.gmra.mrb[44].mxu0 %v167_v39 }
  0x89   :  { %2853 = vmatprep.mubr.bf16.mxu0 %v168_v42 }
  0x90   :  { %2854 = vmatmul.mubr.bf16.gmra.mrb[48].mxu0 %v169_v51 }
  0x91   :  { %2857 = vmatprep.mubr.bf16.mxu0 %v170_v52 }
  0x98   :  { %2858 = vmatmul.mubr.bf16.gmra.mrb[52].mxu0 %v171_v57 }
  0x99   :  { %2861 = vmatprep.mubr.bf16.mxu0 %v172_v58 }
  0xa0   :  { %2862 = vmatmul.mubr.bf16.gmra.mrb[56].mxu0 %v173_v63 }
  0xa1   :  { %2865 = vmatprep.mubr.bf16.mxu0 %v174_v0 }
  0xa8   :  { %2866 = vmatmul.mubr.bf16.gmra.mrb[60].mxu0 %v175_v3 }
 0x103   :  { %v2807_v5 = vpop.f32.mrb[0].mxu0 }
 0x104   :  { %v234_v6 = vadd.f32 %v2807_v5, %v3499_v4  ;;  %v225_v7 = vpop.f32.mrb[1].mxu0 }
 0x105   :  { %v226_v8 = vadd.f32 %v3499_v4, %v225_v7  ;;  %v2808_v9 = vpop.f32.mrb[2].mxu0 }
 0x106   :  { %v546_v10 = vmul.f32 0.2, %v234_v6  ;;  %v237_v11 = vadd.f32 %v2808_v9, %v3499_v4  ;;  %v228_v12 = vpop.f32.mrb[3].mxu0  ;;  %vm482_vm0 = vcmp.ge.f32.partialorder %v234_v6, 0.0 }
 0x107   :  { %v544_v13 = vmul.f32 0.2, %v226_v8  ;;  %v229_v14 = vadd.f32 %v3499_v4, %v228_v12  ;;  %vm480_vm2 = vcmp.ge.f32.partialorder %v226_v8, 0.0 }
 0x108   :  { %vm483_vm1 = vcmp.ge.f32.partialorder %v237_v11, 0.0  ;;  %v547_v15 = vmul.f32 0.2, %v237_v11  ;;  %v610_v17 = vsel %vm482_vm0, %v234_v6, %v546_v10 }
 0x109   :  { %v545_v16 = vmul.f32 0.2, %v229_v14  ;;  %vm481_vm3 = vcmp.ge.f32.partialorder %v229_v14, 0.0  ;;  %v608_v21 = vsel %vm480_vm2, %v226_v8, %v544_v13 }
 0x10a   :  { %v611_v18 = vsel %vm483_vm1, %v237_v11, %v547_v15 }
 0x10b   :  { %v681_v19 = vpack.c.bf16 %v611_v18, %v610_v17  ;;  %v2811_v20 = vpop.f32.mrb[4].mxu0  ;;  %v609_v22 = vsel %vm481_vm3, %v229_v14, %v545_v16 }
 0x10c   :  { %v250_v23 = vadd.f32 %v2811_v20, %v3499_v4  ;;  %v241_v24 = vpop.f32.mrb[5].mxu0  ;;  %v680_v25 = vpack.c.bf16 %v609_v22, %v608_v21 }
 0x10d   :  { %v242_v26 = vadd.f32 %v3499_v4, %v241_v24  ;;  %v2812_v27 = vpop.f32.mrb[6].mxu0 }
 0x10e   :  { %v550_v28 = vmul.f32 0.2, %v250_v23  ;;  %v253_v29 = vadd.f32 %v2812_v27, %v3499_v4  ;;  %v244_v30 = vpop.f32.mrb[7].mxu0  ;;  %2877 = vmatprep.mubr.msk.bf16.mxu1 %vm723_vm4, %v680_v25  ;;  %vm486_vm5 = vcmp.ge.f32.partialorder %v250_v23, 0.0 }
 0x10f   :  { %v548_v31 = vmul.f32 0.2, %v242_v26  ;;  %v245_v32 = vadd.f32 %v3499_v4, %v244_v30  ;;  %2878 = vmatmul.mubr.msk.bf16.vlgmr.msra.gmra.mrb[0].mxu1 %vm723_vm4, %v681_v19  ;;  %vm484_vm6 = vcmp.ge.f32.partialorder %v242_v26, 0.0 }
 0x110   :  { %vm487_vm7 = vcmp.ge.f32.partialorder %v253_v29, 0.0  ;;  %v551_v33 = vmul.f32 0.2, %v253_v29  ;;  %v614_v35 = vsel %vm486_vm5, %v250_v23, %v550_v28 }
 0x111   :  { %vm485_vm8 = vcmp.ge.f32.partialorder %v245_v32, 0.0  ;;  %v549_v34 = vmul.f32 0.2, %v245_v32  ;;  %v612_v37 = vsel %vm484_vm6, %v242_v26, %v548_v31 }
 0x112   :  { %v615_v36 = vsel %vm487_vm7, %v253_v29, %v551_v33 }
 0x113   :  { %v683_v38 = vpack.c.bf16 %v615_v36, %v614_v35  ;;  %v613_v39 = vsel %vm485_vm8, %v245_v32, %v549_v34  ;;  %v2815_v40 = vpop.f32.mrb[8].mxu0 }
 0x114   :  { %v682_v41 = vpack.c.bf16 %v613_v39, %v612_v37  ;;  %v266_v42 = vadd.f32 %v2815_v40, %v3499_v4  ;;  %v257_v43 = vpop.f32.mrb[9].mxu0 }
 0x115   :  { %v258_v44 = vadd.f32 %v3499_v4, %v257_v43  ;;  %v2816_v45 = vpop.f32.mrb[10].mxu0 }
 0x116   :  { %v554_v46 = vmul.f32 0.2, %v266_v42  ;;  %v269_v47 = vadd.f32 %v2816_v45, %v3499_v4  ;;  %v260_v48 = vpop.f32.mrb[11].mxu0  ;;  %2881 = vmatprep.mubr.msk.bf16.mxu1 %vm723_vm4, %v682_v41  ;;  %vm490_vm9 = vcmp.ge.f32.partialorder %v266_v42, 0.0 }
 0x117   :  { %v552_v49 = vmul.f32 0.2, %v258_v44  ;;  %v261_v50 = vadd.f32 %v3499_v4, %v260_v48  ;;  %2882 = vmatmul.mubr.msk.bf16.gmra.mrb[4].mxu1 %vm723_vm4, %v683_v38  ;;  %vm488_vm10 = vcmp.ge.f32.partialorder %v258_v44, 0.0 }
 0x118   :  { %vm491_vm11 = vcmp.ge.f32.partialorder %v269_v47, 0.0  ;;  %v555_v51 = vmul.f32 0.2, %v269_v47  ;;  %v618_v53 = vsel %vm490_vm9, %v266_v42, %v554_v46 }
 0x119   :  { %vm489_vm12 = vcmp.ge.f32.partialorder %v261_v50, 0.0  ;;  %v553_v52 = vmul.f32 0.2, %v261_v50  ;;  %v616_v55 = vsel %vm488_vm10, %v258_v44, %v552_v49 }
 0x11a   :  { %v619_v54 = vsel %vm491_vm11, %v269_v47, %v555_v51 }
 0x11b   :  { %v685_v56 = vpack.c.bf16 %v619_v54, %v618_v53  ;;  %v617_v57 = vsel %vm489_vm12, %v261_v50, %v553_v52  ;;  %v2819_v58 = vpop.f32.mrb[12].mxu0 }
 0x11c   :  { %v684_v59 = vpack.c.bf16 %v617_v57, %v616_v55  ;;  %v282_v60 = vadd.f32 %v2819_v58, %v3499_v4  ;;  %v273_v61 = vpop.f32.mrb[13].mxu0 }
 0x11d   :  { %v274_v62 = vadd.f32 %v3499_v4, %v273_v61  ;;  %v2820_v63 = vpop.f32.mrb[14].mxu0 }
 0x11e   :  { %v558_v0 = vmul.f32 0.2, %v282_v60  ;;  %v285_v1 = vadd.f32 %v2820_v63, %v3499_v4  ;;  %v276_v2 = vpop.f32.mrb[15].mxu0  ;;  %2885 = vmatprep.mubr.msk.bf16.mxu1 %vm723_vm4, %v684_v59  ;;  %vm494_vm13 = vcmp.ge.f32.partialorder %v282_v60, 0.0 }
 0x11f   :  { %v556_v3 = vmul.f32 0.2, %v274_v62  ;;  %v277_v5 = vadd.f32 %v3499_v4, %v276_v2  ;;  %2886 = vmatmul.mubr.msk.bf16.gmra.mrb[8].mxu1 %vm723_vm4, %v685_v56  ;;  %vm492_vm14 = vcmp.ge.f32.partialorder %v274_v62, 0.0 }
 0x120   :  { %vm495_vm15 = vcmp.ge.f32.partialorder %v285_v1, 0.0  ;;  %v559_v6 = vmul.f32 0.2, %v285_v1  ;;  %v622_v8 = vsel %vm494_vm13, %v282_v60, %v558_v0 }
 0x121   :  { %vm493_vm0 = vcmp.ge.f32.partialorder %v277_v5, 0.0  ;;  %v557_v7 = vmul.f32 0.2, %v277_v5  ;;  %v620_v10 = vsel %vm492_vm14, %v274_v62, %v556_v3 }
 0x122   :  { %v623_v9 = vsel %vm495_vm15, %v285_v1, %v559_v6 }
 0x123   :  { %v687_v11 = vpack.c.bf16 %v623_v9, %v622_v8  ;;  %v621_v12 = vsel %vm493_vm0, %v277_v5, %v557_v7  ;;  %v2823_v13 = vpop.f32.mrb[16].mxu0 }
 0x124   :  { %v686_v14 = vpack.c.bf16 %v621_v12, %v620_v10  ;;  %v298_v15 = vadd.f32 %v2823_v13, %v3499_v4  ;;  %v289_v16 = vpop.f32.mrb[17].mxu0 }
 0x125   :  { %v290_v17 = vadd.f32 %v3499_v4, %v289_v16  ;;  %v2824_v18 = vpop.f32.mrb[18].mxu0 }
 0x126   :  { %v562_v19 = vmul.f32 0.2, %v298_v15  ;;  %v301_v20 = vadd.f32 %v2824_v18, %v3499_v4  ;;  %v292_v21 = vpop.f32.mrb[19].mxu0  ;;  %2889 = vmatprep.mubr.msk.bf16.mxu1 %vm723_vm4, %v686_v14  ;;  %vm498_vm1 = vcmp.ge.f32.partialorder %v298_v15, 0.0 }
 0x127   :  { %v560_v22 = vmul.f32 0.2, %v290_v17  ;;  %v293_v23 = vadd.f32 %v3499_v4, %v292_v21  ;;  %2890 = vmatmul.mubr.msk.bf16.gmra.mrb[12].mxu1 %vm723_vm4, %v687_v11  ;;  %vm496_vm2 = vcmp.ge.f32.partialorder %v290_v17, 0.0 }
 0x128   :  { %vm499_vm3 = vcmp.ge.f32.partialorder %v301_v20, 0.0  ;;  %v563_v24 = vmul.f32 0.2, %v301_v20  ;;  %v626_v26 = vsel %vm498_vm1, %v298_v15, %v562_v19 }
 0x129   :  { %vm497_vm5 = vcmp.ge.f32.partialorder %v293_v23, 0.0  ;;  %v561_v25 = vmul.f32 0.2, %v293_v23  ;;  %v624_v28 = vsel %vm496_vm2, %v290_v17, %v560_v22 }
 0x12a   :  { %v627_v27 = vsel %vm499_vm3, %v301_v20, %v563_v24 }
 0x12b   :  { %v689_v29 = vpack.c.bf16 %v627_v27, %v626_v26  ;;  %v625_v30 = vsel %vm497_vm5, %v293_v23, %v561_v25  ;;  %v2827_v31 = vpop.f32.mrb[20].mxu0 }
 0x12c   :  { %v688_v32 = vpack.c.bf16 %v625_v30, %v624_v28  ;;  %v314_v33 = vadd.f32 %v2827_v31, %v3499_v4  ;;  %v305_v34 = vpop.f32.mrb[21].mxu0 }
 0x12d   :  { %v306_v35 = vadd.f32 %v3499_v4, %v305_v34  ;;  %v2828_v36 = vpop.f32.mrb[22].mxu0 }
 0x12e   :  { %v566_v37 = vmul.f32 0.2, %v314_v33  ;;  %v317_v38 = vadd.f32 %v2828_v36, %v3499_v4  ;;  %v308_v39 = vpop.f32.mrb[23].mxu0  ;;  %2893 = vmatprep.mubr.msk.bf16.mxu1 %vm723_vm4, %v688_v32  ;;  %vm502_vm6 = vcmp.ge.f32.partialorder %v314_v33, 0.0 }
 0x12f   :  { %v564_v40 = vmul.f32 0.2, %v306_v35  ;;  %v309_v41 = vadd.f32 %v3499_v4, %v308_v39  ;;  %2894 = vmatmul.mubr.msk.bf16.gmra.mrb[16].mxu1 %vm723_vm4, %v689_v29  ;;  %vm500_vm7 = vcmp.ge.f32.partialorder %v306_v35, 0.0 }
 0x130   :  { %vm503_vm8 = vcmp.ge.f32.partialorder %v317_v38, 0.0  ;;  %v567_v42 = vmul.f32 0.2, %v317_v38  ;;  %v630_v44 = vsel %vm502_vm6, %v314_v33, %v566_v37 }
 0x131   :  { %vm501_vm9 = vcmp.ge.f32.partialorder %v309_v41, 0.0  ;;  %v565_v43 = vmul.f32 0.2, %v309_v41  ;;  %v628_v46 = vsel %vm500_vm7, %v306_v35, %v564_v40 }
 0x132   :  { %v631_v45 = vsel %vm503_vm8, %v317_v38, %v567_v42 }
 0x133   :  { %v691_v47 = vpack.c.bf16 %v631_v45, %v630_v44  ;;  %v629_v48 = vsel %vm501_vm9, %v309_v41, %v565_v43  ;;  %v2831_v49 = vpop.f32.mrb[24].mxu0 }
 0x134   :  { %v690_v50 = vpack.c.bf16 %v629_v48, %v628_v46  ;;  %v330_v51 = vadd.f32 %v2831_v49, %v3499_v4  ;;  %v321_v52 = vpop.f32.mrb[25].mxu0 }
 0x135   :  { %v322_v53 = vadd.f32 %v3499_v4, %v321_v52  ;;  %v2832_v54 = vpop.f32.mrb[26].mxu0 }
 0x136   :  { %v570_v55 = vmul.f32 0.2, %v330_v51  ;;  %v333_v56 = vadd.f32 %v2832_v54, %v3499_v4  ;;  %v324_v57 = vpop.f32.mrb[27].mxu0  ;;  %2897 = vmatprep.mubr.msk.bf16.mxu1 %vm723_vm4, %v690_v50  ;;  %vm506_vm10 = vcmp.ge.f32.partialorder %v330_v51, 0.0 }
 0x137   :  { %v568_v58 = vmul.f32 0.2, %v322_v53  ;;  %v325_v59 = vadd.f32 %v3499_v4, %v324_v57  ;;  %2898 = vmatmul.mubr.msk.bf16.gmra.mrb[20].mxu1 %vm723_vm4, %v691_v47  ;;  %vm504_vm11 = vcmp.ge.f32.partialorder %v322_v53, 0.0 }
 0x138   :  { %vm507_vm12 = vcmp.ge.f32.partialorder %v333_v56, 0.0  ;;  %v571_v60 = vmul.f32 0.2, %v333_v56  ;;  %v634_v62 = vsel %vm506_vm10, %v330_v51, %v570_v55 }
 0x139   :  { %vm505_vm13 = vcmp.ge.f32.partialorder %v325_v59, 0.0  ;;  %v569_v61 = vmul.f32 0.2, %v325_v59  ;;  %v632_v0 = vsel %vm504_vm11, %v322_v53, %v568_v58 }
 0x13a   :  { %v635_v63 = vsel %vm507_vm12, %v333_v56, %v571_v60 }
 0x13b   :  { %v693_v1 = vpack.c.bf16 %v635_v63, %v634_v62  ;;  %v633_v2 = vsel %vm505_vm13, %v325_v59, %v569_v61  ;;  %v2835_v3 = vpop.f32.mrb[28].mxu0 }
 0x13c   :  { %v692_v5 = vpack.c.bf16 %v633_v2, %v632_v0  ;;  %v346_v6 = vadd.f32 %v2835_v3, %v3499_v4  ;;  %v337_v7 = vpop.f32.mrb[29].mxu0 }
 0x13d   :  { %v338_v8 = vadd.f32 %v3499_v4, %v337_v7  ;;  %v2836_v9 = vpop.f32.mrb[30].mxu0 }
 0x13e   :  { %v574_v10 = vmul.f32 0.2, %v346_v6  ;;  %v349_v11 = vadd.f32 %v2836_v9, %v3499_v4  ;;  %v340_v12 = vpop.f32.mrb[31].mxu0  ;;  %2901 = vmatprep.mubr.msk.bf16.mxu1 %vm723_vm4, %v692_v5  ;;  %vm510_vm14 = vcmp.ge.f32.partialorder %v346_v6, 0.0 }
 0x13f   :  { %v572_v13 = vmul.f32 0.2, %v338_v8  ;;  %v341_v14 = vadd.f32 %v3499_v4, %v340_v12  ;;  %2902 = vmatmul.mubr.msk.bf16.gmra.mrb[24].mxu1 %vm723_vm4, %v693_v1  ;;  %vm508_vm15 = vcmp.ge.f32.partialorder %v338_v8, 0.0 }
 0x140   :  { %vm511_vm0 = vcmp.ge.f32.partialorder %v349_v11, 0.0  ;;  %v575_v15 = vmul.f32 0.2, %v349_v11  ;;  %v638_v17 = vsel %vm510_vm14, %v346_v6, %v574_v10 }
 0x141   :  { %vm509_vm1 = vcmp.ge.f32.partialorder %v341_v14, 0.0  ;;  %v573_v16 = vmul.f32 0.2, %v341_v14  ;;  %v636_v19 = vsel %vm508_vm15, %v338_v8, %v572_v13 }
 0x142   :  { %v639_v18 = vsel %vm511_vm0, %v349_v11, %v575_v15 }
 0x143   :  { %v695_v20 = vpack.c.bf16 %v639_v18, %v638_v17  ;;  %v637_v21 = vsel %vm509_vm1, %v341_v14, %v573_v16  ;;  %v2839_v22 = vpop.f32.mrb[32].mxu0 }
 0x144   :  { %v694_v23 = vpack.c.bf16 %v637_v21, %v636_v19  ;;  %v362_v24 = vadd.f32 %v2839_v22, %v3499_v4  ;;  %v353_v25 = vpop.f32.mrb[33].mxu0 }
 0x145   :  { %v354_v26 = vadd.f32 %v3499_v4, %v353_v25  ;;  %v2840_v27 = vpop.f32.mrb[34].mxu0 }
 0x146   :  { %v578_v28 = vmul.f32 0.2, %v362_v24  ;;  %v365_v29 = vadd.f32 %v2840_v27, %v3499_v4  ;;  %v356_v30 = vpop.f32.mrb[35].mxu0  ;;  %2905 = vmatprep.mubr.msk.bf16.mxu1 %vm723_vm4, %v694_v23  ;;  %vm514_vm2 = vcmp.ge.f32.partialorder %v362_v24, 0.0 }
 0x147   :  { %v576_v31 = vmul.f32 0.2, %v354_v26  ;;  %v357_v32 = vadd.f32 %v3499_v4, %v356_v30  ;;  %2906 = vmatmul.mubr.msk.bf16.gmra.mrb[28].mxu1 %vm723_vm4, %v695_v20  ;;  %vm512_vm3 = vcmp.ge.f32.partialorder %v354_v26, 0.0 }
 0x148   :  { %vm515_vm5 = vcmp.ge.f32.partialorder %v365_v29, 0.0  ;;  %v579_v33 = vmul.f32 0.2, %v365_v29  ;;  %v642_v35 = vsel %vm514_vm2, %v362_v24, %v578_v28 }
 0x149   :  { %vm513_vm6 = vcmp.ge.f32.partialorder %v357_v32, 0.0  ;;  %v577_v34 = vmul.f32 0.2, %v357_v32  ;;  %v640_v37 = vsel %vm512_vm3, %v354_v26, %v576_v31 }
 0x14a   :  { %v643_v36 = vsel %vm515_vm5, %v365_v29, %v579_v33 }
 0x14b   :  { %v697_v38 = vpack.c.bf16 %v643_v36, %v642_v35  ;;  %v641_v39 = vsel %vm513_vm6, %v357_v32, %v577_v34  ;;  %v2843_v40 = vpop.f32.mrb[36].mxu0 }
 0x14c   :  { %v696_v41 = vpack.c.bf16 %v641_v39, %v640_v37  ;;  %v378_v42 = vadd.f32 %v2843_v40, %v3499_v4  ;;  %v369_v43 = vpop.f32.mrb[37].mxu0 }
 0x14d   :  { %v370_v44 = vadd.f32 %v3499_v4, %v369_v43  ;;  %v2844_v45 = vpop.f32.mrb[38].mxu0 }
 0x14e   :  { %v582_v46 = vmul.f32 0.2, %v378_v42  ;;  %v381_v47 = vadd.f32 %v2844_v45, %v3499_v4  ;;  %v372_v48 = vpop.f32.mrb[39].mxu0  ;;  %2909 = vmatprep.mubr.msk.bf16.mxu1 %vm723_vm4, %v696_v41  ;;  %vm518_vm7 = vcmp.ge.f32.partialorder %v378_v42, 0.0 }
 0x14f   :  { %v580_v49 = vmul.f32 0.2, %v370_v44  ;;  %v373_v50 = vadd.f32 %v3499_v4, %v372_v48  ;;  %2910 = vmatmul.mubr.msk.bf16.gmra.mrb[32].mxu1 %vm723_vm4, %v697_v38  ;;  %vm516_vm8 = vcmp.ge.f32.partialorder %v370_v44, 0.0 }
 0x150   :  { %vm519_vm9 = vcmp.ge.f32.partialorder %v381_v47, 0.0  ;;  %v583_v51 = vmul.f32 0.2, %v381_v47  ;;  %v646_v53 = vsel %vm518_vm7, %v378_v42, %v582_v46 }
 0x151   :  { %vm517_vm10 = vcmp.ge.f32.partialorder %v373_v50, 0.0  ;;  %v581_v52 = vmul.f32 0.2, %v373_v50  ;;  %v644_v55 = vsel %vm516_vm8, %v370_v44, %v580_v49 }
 0x152   :  { %v647_v54 = vsel %vm519_vm9, %v381_v47, %v583_v51 }
 0x153   :  { %v699_v56 = vpack.c.bf16 %v647_v54, %v646_v53  ;;  %v645_v57 = vsel %vm517_vm10, %v373_v50, %v581_v52  ;;  %v2847_v58 = vpop.f32.mrb[40].mxu0 }
 0x154   :  { %v698_v59 = vpack.c.bf16 %v645_v57, %v644_v55  ;;  %v394_v60 = vadd.f32 %v2847_v58, %v3499_v4  ;;  %v385_v61 = vpop.f32.mrb[41].mxu0 }
 0x155   :  { %v386_v62 = vadd.f32 %v3499_v4, %v385_v61  ;;  %v2848_v63 = vpop.f32.mrb[42].mxu0 }
 0x156   :  { %v586_v0 = vmul.f32 0.2, %v394_v60  ;;  %v397_v1 = vadd.f32 %v2848_v63, %v3499_v4  ;;  %v388_v2 = vpop.f32.mrb[43].mxu0  ;;  %2913 = vmatprep.mubr.msk.bf16.mxu1 %vm723_vm4, %v698_v59  ;;  %vm522_vm11 = vcmp.ge.f32.partialorder %v394_v60, 0.0 }
 0x157   :  { %v584_v3 = vmul.f32 0.2, %v386_v62  ;;  %v389_v5 = vadd.f32 %v3499_v4, %v388_v2  ;;  %2914 = vmatmul.mubr.msk.bf16.gmra.mrb[36].mxu1 %vm723_vm4, %v699_v56  ;;  %vm520_vm12 = vcmp.ge.f32.partialorder %v386_v62, 0.0 }
 0x158   :  { %vm523_vm13 = vcmp.ge.f32.partialorder %v397_v1, 0.0  ;;  %v587_v6 = vmul.f32 0.2, %v397_v1  ;;  %v650_v8 = vsel %vm522_vm11, %v394_v60, %v586_v0 }
 0x159   :  { %vm521_vm14 = vcmp.ge.f32.partialorder %v389_v5, 0.0  ;;  %v585_v7 = vmul.f32 0.2, %v389_v5  ;;  %v648_v10 = vsel %vm520_vm12, %v386_v62, %v584_v3 }
 0x15a   :  { %v651_v9 = vsel %vm523_vm13, %v397_v1, %v587_v6 }
 0x15b   :  { %v701_v11 = vpack.c.bf16 %v651_v9, %v650_v8  ;;  %v649_v12 = vsel %vm521_vm14, %v389_v5, %v585_v7  ;;  %v2851_v13 = vpop.f32.mrb[44].mxu0 }
 0x15c   :  { %v700_v14 = vpack.c.bf16 %v649_v12, %v648_v10  ;;  %v410_v15 = vadd.f32 %v2851_v13, %v3499_v4  ;;  %v401_v16 = vpop.f32.mrb[45].mxu0 }
 0x15d   :  { %v402_v17 = vadd.f32 %v3499_v4, %v401_v16  ;;  %v2852_v18 = vpop.f32.mrb[46].mxu0 }
 0x15e   :  { %v590_v19 = vmul.f32 0.2, %v410_v15  ;;  %v413_v20 = vadd.f32 %v2852_v18, %v3499_v4  ;;  %v404_v21 = vpop.f32.mrb[47].mxu0  ;;  %2917 = vmatprep.mubr.msk.bf16.mxu1 %vm723_vm4, %v700_v14  ;;  %vm526_vm15 = vcmp.ge.f32.partialorder %v410_v15, 0.0 }
 0x15f   :  { %v588_v22 = vmul.f32 0.2, %v402_v17  ;;  %v405_v23 = vadd.f32 %v3499_v4, %v404_v21  ;;  %2918 = vmatmul.mubr.msk.bf16.gmra.mrb[40].mxu1 %vm723_vm4, %v701_v11  ;;  %vm524_vm0 = vcmp.ge.f32.partialorder %v402_v17, 0.0 }
 0x160   :  { %vm527_vm1 = vcmp.ge.f32.partialorder %v413_v20, 0.0  ;;  %v591_v24 = vmul.f32 0.2, %v413_v20  ;;  %v654_v26 = vsel %vm526_vm15, %v410_v15, %v590_v19 }
 0x161   :  { %vm525_vm2 = vcmp.ge.f32.partialorder %v405_v23, 0.0  ;;  %v589_v25 = vmul.f32 0.2, %v405_v23  ;;  %v652_v28 = vsel %vm524_vm0, %v402_v17, %v588_v22 }
 0x162   :  { %v655_v27 = vsel %vm527_vm1, %v413_v20, %v591_v24 }
 0x163   :  { %v703_v29 = vpack.c.bf16 %v655_v27, %v654_v26  ;;  %v653_v30 = vsel %vm525_vm2, %v405_v23, %v589_v25  ;;  %v2855_v31 = vpop.f32.mrb[48].mxu0 }
 0x164   :  { %v702_v32 = vpack.c.bf16 %v653_v30, %v652_v28  ;;  %v426_v33 = vadd.f32 %v2855_v31, %v3499_v4  ;;  %v417_v34 = vpop.f32.mrb[49].mxu0 }
 0x165   :  { %v418_v35 = vadd.f32 %v3499_v4, %v417_v34  ;;  %v2856_v36 = vpop.f32.mrb[50].mxu0 }
 0x166   :  { %v594_v37 = vmul.f32 0.2, %v426_v33  ;;  %v429_v38 = vadd.f32 %v2856_v36, %v3499_v4  ;;  %v420_v39 = vpop.f32.mrb[51].mxu0  ;;  %2921 = vmatprep.mubr.msk.bf16.mxu1 %vm723_vm4, %v702_v32  ;;  %vm530_vm3 = vcmp.ge.f32.partialorder %v426_v33, 0.0 }
 0x167   :  { %v592_v40 = vmul.f32 0.2, %v418_v35  ;;  %v421_v41 = vadd.f32 %v3499_v4, %v420_v39  ;;  %2922 = vmatmul.mubr.msk.bf16.gmra.mrb[44].mxu1 %vm723_vm4, %v703_v29  ;;  %vm528_vm5 = vcmp.ge.f32.partialorder %v418_v35, 0.0 }
 0x168   :  { %vm531_vm6 = vcmp.ge.f32.partialorder %v429_v38, 0.0  ;;  %v595_v42 = vmul.f32 0.2, %v429_v38  ;;  %v658_v44 = vsel %vm530_vm3, %v426_v33, %v594_v37 }
 0x169   :  { %vm529_vm7 = vcmp.ge.f32.partialorder %v421_v41, 0.0  ;;  %v593_v43 = vmul.f32 0.2, %v421_v41  ;;  %v656_v46 = vsel %vm528_vm5, %v418_v35, %v592_v40 }
 0x16a   :  { %v659_v45 = vsel %vm531_vm6, %v429_v38, %v595_v42 }
 0x16b   :  { %v705_v47 = vpack.c.bf16 %v659_v45, %v658_v44  ;;  %v657_v48 = vsel %vm529_vm7, %v421_v41, %v593_v43  ;;  %v2859_v49 = vpop.f32.mrb[52].mxu0 }
 0x16c   :  { %v704_v50 = vpack.c.bf16 %v657_v48, %v656_v46  ;;  %v442_v51 = vadd.f32 %v2859_v49, %v3499_v4  ;;  %v433_v52 = vpop.f32.mrb[53].mxu0 }
 0x16d   :  { %v434_v53 = vadd.f32 %v3499_v4, %v433_v52  ;;  %v2860_v54 = vpop.f32.mrb[54].mxu0 }
 0x16e   :  { %v598_v55 = vmul.f32 0.2, %v442_v51  ;;  %v445_v56 = vadd.f32 %v2860_v54, %v3499_v4  ;;  %v436_v57 = vpop.f32.mrb[55].mxu0  ;;  %2925 = vmatprep.mubr.msk.bf16.mxu1 %vm723_vm4, %v704_v50  ;;  %vm534_vm8 = vcmp.ge.f32.partialorder %v442_v51, 0.0 }
 0x16f   :  { %v596_v58 = vmul.f32 0.2, %v434_v53  ;;  %v437_v59 = vadd.f32 %v3499_v4, %v436_v57  ;;  %2926 = vmatmul.mubr.msk.bf16.gmra.mrb[48].mxu1 %vm723_vm4, %v705_v47  ;;  %vm532_vm9 = vcmp.ge.f32.partialorder %v434_v53, 0.0 }
 0x170   :  { %vm535_vm10 = vcmp.ge.f32.partialorder %v445_v56, 0.0  ;;  %v599_v60 = vmul.f32 0.2, %v445_v56  ;;  %v662_v62 = vsel %vm534_vm8, %v442_v51, %v598_v55 }
 0x171   :  { %vm533_vm11 = vcmp.ge.f32.partialorder %v437_v59, 0.0  ;;  %v597_v61 = vmul.f32 0.2, %v437_v59  ;;  %v660_v0 = vsel %vm532_vm9, %v434_v53, %v596_v58 }
 0x172   :  { %v663_v63 = vsel %vm535_vm10, %v445_v56, %v599_v60 }
 0x173   :  { %v707_v1 = vpack.c.bf16 %v663_v63, %v662_v62  ;;  %v661_v2 = vsel %vm533_vm11, %v437_v59, %v597_v61  ;;  %v2863_v3 = vpop.f32.mrb[56].mxu0 }
 0x174   :  { %v706_v5 = vpack.c.bf16 %v661_v2, %v660_v0  ;;  %v458_v6 = vadd.f32 %v2863_v3, %v3499_v4  ;;  %v449_v7 = vpop.f32.mrb[57].mxu0 }
 0x175   :  { %v450_v8 = vadd.f32 %v3499_v4, %v449_v7  ;;  %v2864_v9 = vpop.f32.mrb[58].mxu0 }
 0x176   :  { %v602_v10 = vmul.f32 0.2, %v458_v6  ;;  %v461_v11 = vadd.f32 %v2864_v9, %v3499_v4  ;;  %v452_v12 = vpop.f32.mrb[59].mxu0  ;;  %2929 = vmatprep.mubr.msk.bf16.mxu1 %vm723_vm4, %v706_v5  ;;  %vm538_vm12 = vcmp.ge.f32.partialorder %v458_v6, 0.0 }
 0x177   :  { %v600_v13 = vmul.f32 0.2, %v450_v8  ;;  %v453_v14 = vadd.f32 %v3499_v4, %v452_v12  ;;  %2930 = vmatmul.mubr.msk.bf16.gmra.mrb[52].mxu1 %vm723_vm4, %v707_v1  ;;  %vm536_vm13 = vcmp.ge.f32.partialorder %v450_v8, 0.0 }
 0x178   :  { %vm539_vm14 = vcmp.ge.f32.partialorder %v461_v11, 0.0  ;;  %v603_v15 = vmul.f32 0.2, %v461_v11  ;;  %v666_v17 = vsel %vm538_vm12, %v458_v6, %v602_v10 }
 0x179   :  { %vm537_vm15 = vcmp.ge.f32.partialorder %v453_v14, 0.0  ;;  %v601_v16 = vmul.f32 0.2, %v453_v14  ;;  %v664_v19 = vsel %vm536_vm13, %v450_v8, %v600_v13 }
 0x17a   :  { %v667_v18 = vsel %vm539_vm14, %v461_v11, %v603_v15 }
 0x17b   :  { %v709_v20 = vpack.c.bf16 %v667_v18, %v666_v17  ;;  %v665_v21 = vsel %vm537_vm15, %v453_v14, %v601_v16  ;;  %v2867_v22 = vpop.f32.mrb[60].mxu0 }
 0x17c   :  { %v708_v23 = vpack.c.bf16 %v665_v21, %v664_v19  ;;  %v474_v24 = vadd.f32 %v2867_v22, %v3499_v4  ;;  %v465_v25 = vpop.f32.mrb[61].mxu0 }
 0x17d   :  { %v466_v26 = vadd.f32 %v3499_v4, %v465_v25  ;;  %v2868_v27 = vpop.f32.mrb[62].mxu0 }
 0x17e   :  { %v606_v28 = vmul.f32 0.2, %v474_v24  ;;  %v477_v29 = vadd.f32 %v2868_v27, %v3499_v4  ;;  %v468_v30 = vpop.f32.mrb[63].mxu0  ;;  %2933 = vmatprep.mubr.msk.bf16.mxu1 %vm723_vm4, %v708_v23  ;;  %vm542_vm0 = vcmp.ge.f32.partialorder %v474_v24, 0.0 }
 0x17f   :  { %v604_v31 = vmul.f32 0.2, %v466_v26  ;;  %v469_v32 = vadd.f32 %v3499_v4, %v468_v30  ;;  %2934 = vmatmul.mubr.msk.bf16.gmra.mrb[56].mxu1 %vm723_vm4, %v709_v20  ;;  %vm540_vm1 = vcmp.ge.f32.partialorder %v466_v26, 0.0  ;;  %v3600_v4 = vld [vmem:[%s4569_s5] ss:$0 sm:$0xff] }
 0x180   :  { %vm543_vm2 = vcmp.ge.f32.partialorder %v477_v29, 0.0  ;;  %v607_v33 = vmul.f32 0.2, %v477_v29  ;;  %v670_v35 = vsel %vm542_vm0, %v474_v24, %v606_v28 }
 0x181   :  { %vm541_vm3 = vcmp.ge.f32.partialorder %v469_v32, 0.0  ;;  %v605_v34 = vmul.f32 0.2, %v469_v32  ;;  %v668_v37 = vsel %vm540_vm1, %v466_v26, %v604_v31 }
 0x182   :  { %v671_v36 = vsel %vm543_vm2, %v477_v29, %v607_v33 }
 0x183   :  { %v711_v38 = vpack.c.bf16 %v671_v36, %v670_v35  ;;  %v669_v39 = vsel %vm541_vm3, %v469_v32, %v605_v34  ;;  %vm1821_vm3 = vcmask 1041409  }
 0x184   :  { %v710_v40 = vpack.c.bf16 %v669_v39, %v668_v37 }
 0x186   :  { %2937 = vmatprep.mubr.msk.bf16.mxu1 %vm723_vm4, %v710_v40 }
 0x187   :  { %2938 = vmatmul.mubr.msk.bf16.gmra.mrb[60].mxu1 %vm723_vm4, %v711_v38 }
 0x1e2   :  { %v2879_v41 = vpop.f32.mrb[0].mxu1 }
 0x1e3   :  { %v863_v42 = vadd.f32 %v2879_v41, %v3600_v4  ;;  %v854_v43 = vpop.f32.mrb[1].mxu1 }
 0x1e4   :  { %v855_v44 = vadd.f32 %v3600_v4, %v854_v43  ;;  %v2880_v45 = vpop.f32.mrb[2].mxu1 }
 0x1e5   :  { %vm1111_vm5 = vcmp.ge.f32.partialorder %v863_v42, 0.0  ;;  %v1175_v46 = vmul.f32 0.2, %v863_v42  ;;  %v866_v47 = vadd.f32 %v2880_v45, %v3600_v4  ;;  %v857_v48 = vpop.f32.mrb[3].mxu1 }
 0x1e6   :  { %vm1109_vm6 = vcmp.ge.f32.partialorder %v855_v44, 0.0  ;;  %v1173_v49 = vmul.f32 0.2, %v855_v44  ;;  %v858_v50 = vadd.f32 %v3600_v4, %v857_v48 }
 0x1e7   :  { %v1239_v51 = vsel %vm1111_vm5, %v863_v42, %v1175_v46  ;;  %vm1112_vm7 = vcmp.ge.f32.partialorder %v866_v47, 0.0  ;;  %v1176_v52 = vmul.f32 0.2, %v866_v47  ;;  %vm1823_vm5 = vcmask 1042434  }
 0x1e8   :  { %v1315_v53 = vsel %vm723_vm4, %v1239_v51, -inf  ;;  %v1237_v54 = vsel %vm1109_vm6, %v855_v44, %v1173_v49  ;;  %vm1110_vm8 = vcmp.ge.f32.partialorder %v858_v50, 0.0  ;;  %v1174_v55 = vmul.f32 0.2, %v858_v50 }
 0x1e9   :  { %v1316_v56 = vrot.slane %v1315_v53, 4  ;;  %v1301_v57 = vsel %vm723_vm4, %v1237_v54, -inf  ;;  %v1240_v58 = vsel %vm1112_vm7, %v866_v47, %v1176_v52  ;;  %vm1825_vm7 = vcmask 1043459  }
 0x1ea   :  { %v1302_v59 = vrot.slane %v1301_v57, 4  ;;  %v1322_v60 = vsel %vm723_vm4, %v1240_v58, -inf  ;;  %v1238_v61 = vsel %vm1110_vm8, %v858_v50, %v1174_v55  ;;  %v2883_v62 = vpop.f32.mrb[4].mxu1 }
 0x1eb   :  { %v1317_v63 = vmax.f32 %v1315_v53, %v1316_v56  ;;  %v1323_v0 = vrot.slane %v1322_v60, 4  ;;  %v1308_v1 = vsel %vm723_vm4, %v1238_v61, -inf  ;;  %v879_v2 = vadd.f32 %v2883_v62, %v3600_v4  ;;  %v870_v3 = vpop.f32.mrb[5].mxu1 }
 0x1ec   :  { %v1303_v5 = vmax.f32 %v1301_v57, %v1302_v59  ;;  %v1309_v6 = vrot.slane %v1308_v1, 4  ;;  %v871_v7 = vadd.f32 %v3600_v4, %v870_v3  ;;  %v2884_v8 = vpop.f32.mrb[6].mxu1 }
 0x1ed   :  { %v1318_v9 = vrot.slane %v1317_v63, 2  ;;  %v1324_v10 = vmax.f32 %v1322_v60, %v1323_v0  ;;  %vm1115_vm9 = vcmp.ge.f32.partialorder %v879_v2, 0.0  ;;  %v1179_v11 = vmul.f32 0.2, %v879_v2  ;;  %v873_v12 = vpop.f32.mrb[7].mxu1 }
 0x1ee   :  { %v1304_v13 = vrot.slane %v1303_v5, 2  ;;  %v1310_v14 = vmax.f32 %v1308_v1, %v1309_v6  ;;  %vm1113_vm10 = vcmp.ge.f32.partialorder %v871_v7, 0.0  ;;  %v1177_v15 = vmul.f32 0.2, %v871_v7 }
 0x1ef   :  { %v1319_v16 = vmax.f32 %v1317_v63, %v1318_v9  ;;  %v1325_v17 = vrot.slane %v1324_v10, 2  ;;  %v1243_v18 = vsel %vm1115_vm9, %v879_v2, %v1179_v11  ;;  %v882_v19 = vadd.f32 %v2884_v8, %v3600_v4 }
 0x1f0   :  { %v1305_v20 = vmax.f32 %v1303_v5, %v1304_v13  ;;  %v1311_v21 = vrot.slane %v1310_v14, 2  ;;  %v1343_v22 = vsel %vm723_vm4, %v1243_v18, -inf  ;;  %v1241_v23 = vsel %vm1113_vm10, %v871_v7, %v1177_v15 }
 0x1f1   :  { %v1320_v24 = vrot.slane %v1319_v16, 1  ;;  %v1326_v25 = vmax.f32 %v1324_v10, %v1325_v17  ;;  %v1344_v26 = vrot.slane %v1343_v22, 4  ;;  %v1329_v27 = vsel %vm723_vm4, %v1241_v23, -inf }
 0x1f2   :  { %v1306_v28 = vrot.slane %v1305_v20, 1  ;;  %v1312_v29 = vmax.f32 %v1310_v14, %v1311_v21  ;;  %v1330_v30 = vrot.slane %v1329_v27, 4  ;;  %vm1116_vm11 = vcmp.ge.f32.partialorder %v882_v19, 0.0  ;;  %v2887_v31 = vpop.f32.mrb[8].mxu1 }
 0x1f3   :  { %v1327_v32 = vrot.slane %v1326_v25, 1  ;;  %v1345_v33 = vmax.f32 %v1343_v22, %v1344_v26  ;;  %v1180_v34 = vmul.f32 0.2, %v882_v19  ;;  %v886_v35 = vpop.f32.mrb[9].mxu1  ;;  %v3615_v36 = vmax.f32 %v1319_v16, %v1320_v24 }
 0x1f4   :  { %v1331_v37 = vmax.f32 %v1329_v27, %v1330_v30  ;;  %v874_v38 = vadd.f32 %v3600_v4, %v873_v12  ;;  %v2888_v39 = vpop.f32.mrb[10].mxu1  ;;  %v1313_v40 = vrot.slane %v1312_v29, 1  ;;  %v895_v43 = vadd.f32 %v2887_v31, %v3600_v4 }
 0x1f5   :  { %v1346_v41 = vrot.slane %v1345_v33, 2  ;;  %v1244_v42 = vsel %vm1116_vm11, %v882_v19, %v1180_v34  ;;  %v889_v44 = vpop.f32.mrb[11].mxu1  ;;  %v3619_v45 = vmax.f32 %v1305_v20, %v1306_v28  ;;  %v3622_v48 = vmax.f32 %v1326_v25, %v1327_v32 }
 0x1f6   :  { %v1332_v46 = vrot.slane %v1331_v37, 2  ;;  %v1350_v47 = vsel %vm723_vm4, %v1244_v42, -inf  ;;  %vm1114_vm12 = vcmp.ge.f32.partialorder %v874_v38, 0.0  ;;  %v1178_v50 = vmul.f32 0.2, %v874_v38 }
 0x1f7   :  { %v1351_v49 = vrot.slane %v1350_v47, 4  ;;  %vm1119_vm13 = vcmp.ge.f32.partialorder %v895_v43, 0.0  ;;  %v3624_v51 = vmax.f32 %v1345_v33, %v1346_v41  ;;  %v1183_v52 = vmul.f32 0.2, %v895_v43 }
 0x1f8   :  { %v887_v53 = vadd.f32 %v3600_v4, %v886_v35  ;;  %v898_v54 = vadd.f32 %v2888_v39, %v3600_v4  ;;  %v3628_v55 = vmax.f32 %v1312_v29, %v1313_v40  ;;  %v1333_v56 = vmax.f32 %v1331_v37, %v1332_v46 }
 0x1f9   :  { %v1242_v57 = vsel %vm1114_vm12, %v874_v38, %v1178_v50  ;;  %v890_v58 = vadd.f32 %v3600_v4, %v889_v44  ;;  %v3631_v59 = vmax.f32 %v1350_v47, %v1351_v49  ;;  %v1247_v61 = vsel %vm1119_vm13, %v895_v43, %v1183_v52 }
 0x1fa   :  { %v1336_v60 = vsel %vm723_vm4, %v1242_v57, -inf  ;;  %vm1117_vm14 = vcmp.ge.f32.partialorder %v887_v53, 0.0  ;;  %v2891_v62 = vpop.f32.mrb[12].mxu1  ;;  %v1371_v0 = vsel %vm723_vm4, %v1247_v61, -inf  ;;  %v1181_v1 = vmul.f32 0.2, %v887_v53 }
 0x1fb   :  { %v1337_v63 = vrot.slane %v1336_v60, 4  ;;  %vm1120_vm15 = vcmp.ge.f32.partialorder %v898_v54, 0.0  ;;  %v902_v2 = vpop.f32.mrb[13].mxu1  ;;  %v1372_v3 = vrot.slane %v1371_v0, 4  ;;  %v1184_v5 = vmul.f32 0.2, %v898_v54 }
 0x1fc   :  { %vm1118_vm0 = vcmp.ge.f32.partialorder %v890_v58, 0.0  ;;  %v2892_v6 = vpop.f32.mrb[14].mxu1  ;;  %v1348_v7 = vrot.slane %v3624_v51, 1  ;;  %v1245_v9 = vsel %vm1117_vm14, %v887_v53, %v1181_v1  ;;  %v1182_v10 = vmul.f32 0.2, %v890_v58 }
 0x1fd   :  { %v1338_v8 = vmax.f32 %v1336_v60, %v1337_v63  ;;  %v911_v11 = vadd.f32 %v2891_v62, %v3600_v4  ;;  %v905_v12 = vpop.f32.mrb[15].mxu1  ;;  %v1373_v13 = vmax.f32 %v1371_v0, %v1372_v3  ;;  %v1357_v14 = vsel %vm723_vm4, %v1245_v9, -inf }
 0x1fe   :  { %v1248_v15 = vsel %vm1120_vm15, %v898_v54, %v1184_v5  ;;  %v903_v16 = vadd.f32 %v3600_v4, %v902_v2  ;;  %v1358_v18 = vrot.slane %v1357_v14, 4  ;;  %v1246_v20 = vsel %vm1118_vm0, %v890_v58, %v1182_v10 }
 0x1ff   :  { %v1339_v17 = vrot.slane %v1338_v8, 2  ;;  %v1378_v19 = vsel %vm723_vm4, %v1248_v15, -inf  ;;  %v1374_v21 = vrot.slane %v1373_v13, 2  ;;  %v1364_v23 = vsel %vm723_vm4, %v1246_v20, -inf }
 0x200   :  { %v1379_v22 = vrot.slane %v1378_v19, 4  ;;  %vm1123_vm1 = vcmp.ge.f32.partialorder %v911_v11, 0.0  ;;  %v1334_v24 = vrot.slane %v1333_v56, 1  ;;  %v1359_v25 = vmax.f32 %v1357_v14, %v1358_v18 }
 0x201   :  { %v1365_v26 = vrot.slane %v1364_v23, 4  ;;  %v1187_v27 = vmul.f32 0.2, %v911_v11  ;;  %v1375_v28 = vmax.f32 %v1373_v13, %v1374_v21  ;;  %vm1121_vm2 = vcmp.ge.f32.partialorder %v903_v16, 0.0 }
 0x202   :  { %v1380_v29 = vmax.f32 %v1378_v19, %v1379_v22  ;;  %v1185_v30 = vmul.f32 0.2, %v903_v16  ;;  %v2895_v31 = vpop.f32.mrb[16].mxu1  ;;  %v1340_v32 = vmax.f32 %v1338_v8, %v1339_v17  ;;  %v1360_v33 = vrot.slane %v1359_v25, 2 }
 0x203   :  { %v1366_v34 = vmax.f32 %v1364_v23, %v1365_v26  ;;  %v1251_v35 = vsel %vm1123_vm1, %v911_v11, %v1187_v27  ;;  %v918_v37 = vpop.f32.mrb[17].mxu1  ;;  %v1376_v38 = vrot.slane %v1375_v28, 1  ;;  %v3647_v50 = vmax.f32 %v1333_v56, %v1334_v24 }
 0x204   :  { %v1381_v39 = vrot.slane %v1380_v29, 2  ;;  %v1399_v40 = vsel %vm723_vm4, %v1251_v35, -inf  ;;  %v1249_v41 = vsel %vm1121_vm2, %v903_v16, %v1185_v30  ;;  %v3642_v42 = vpop.f32.mrb[18].mxu1  ;;  %v1361_v43 = vmax.f32 %v1359_v25, %v1360_v33 }
 0x205   :  { %v1367_v44 = vrot.slane %v1366_v34, 2  ;;  %v1400_v46 = vrot.slane %v1399_v40, 4  ;;  %v1385_v47 = vsel %vm723_vm4, %v1249_v41, -inf  ;;  %v3645_v49 = vpop.f32.mrb[19].mxu1  ;;  %v914_v54 = vadd.f32 %v2892_v6, %v3600_v4 }
 0x206   :  { %v1382_v52 = vmax.f32 %v1380_v29, %v1381_v39  ;;  %v1386_v53 = vrot.slane %v1385_v47, 4  ;;  %v1362_v57 = vrot.slane %v1361_v43, 1  ;;  %v906_v61 = vadd.f32 %v3600_v4, %v905_v12 }
 0x207   :  { %v1368_v58 = vmax.f32 %v1366_v34, %v1367_v44  ;;  %v1401_v60 = vmax.f32 %v1399_v40, %v1400_v46  ;;  %vm1124_vm6 = vcmp.ge.f32.partialorder %v914_v54, 0.0  ;;  %v1188_v0 = vmul.f32 0.2, %v914_v54 }
 0x208   :  { %v1383_v62 = vrot.slane %v1382_v52, 1  ;;  %v1387_v63 = vmax.f32 %v1385_v47, %v1386_v53  ;;  %v1341_v1 = vrot.slane %v1340_v32, 1  ;;  %v3651_v2 = vmax.f32 %v1375_v28, %v1376_v38 }
 0x209   :  { %v1369_v56 = vrot.slane %v1368_v58, 1  ;;  %vm1122_vm8 = vcmp.ge.f32.partialorder %v906_v61, 0.0  ;;  %vm1827_vm9 = vcmask 1044484   ;;  %v1402_v3 = vrot.slane %v1401_v60, 2 }
 0x20a   :  { %v1388_v5 = vrot.slane %v1387_v63, 2  ;;  %v1252_v6 = vsel %vm1124_vm6, %v914_v54, %v1188_v0  ;;  %v1186_v8 = vmul.f32 0.2, %v906_v61  ;;  %vm1829_vm10 = vcmask 1045509   ;;  %v3653_v9 = vpop.f32.mrb[20].mxu1 }
 0x20b   :  { %v3655_v10 = vmax.f32 %v1361_v43, %v1362_v57  ;;  %v3657_v11 = vmax.f32 %v1382_v52, %v1383_v62  ;;  %v1406_v12 = vsel %vm723_vm4, %v1252_v6, -inf  ;;  %v927_v13 = vadd.f32 %v2895_v31, %v3600_v4  ;;  %v3661_v14 = vpop.f32.mrb[21].mxu1 }
 0x20c   :  { %vm1831_vm11 = vcmask 1046534   ;;  %v1389_v15 = vmax.f32 %v1387_v63, %v1388_v5  ;;  %v1407_v16 = vrot.slane %v1406_v12, 4  ;;  %v1250_v17 = vsel %vm1122_vm8, %v906_v61, %v1186_v8  ;;  %v2900_v19 = vpop.f32.mrb[22].mxu1 }
 0x20d   :  { %v919_v18 = vadd.f32 %v3600_v4, %v918_v37  ;;  %vm1833_vm12 = vcmask 1047559   ;;  %v3665_v20 = vmax.f32 %v1368_v58, %v1369_v56  ;;  %v1392_v21 = vsel %vm723_vm4, %v1250_v17, -inf  ;;  %v3668_v23 = vpop.f32.mrb[23].mxu1 }
 0x20e   :  { %vm1127_vm13 = vcmp.ge.f32.partialorder %v927_v13, 0.0  ;;  %v1191_v22 = vmul.f32 0.2, %v927_v13  ;;  %v3670_v24 = vmax.f32 %v1401_v60, %v1402_v3  ;;  %v1393_v25 = vrot.slane %v1392_v21, 4 }
 0x20f   :  { %vm1125_vm14 = vcmp.ge.f32.partialorder %v919_v18, 0.0  ;;  %v1342_v26 = vmax.f32 %v1340_v32, %v1341_v1  ;;  %v1390_v27 = vrot.slane %v1389_v15, 1  ;;  %v1189_v29 = vmul.f32 0.2, %v919_v18 }
 0x210   :  { %v1255_v28 = vsel %vm1127_vm13, %v927_v13, %v1191_v22  ;;  %v1353_v30 = vrot.slane %v3631_v59, 2  ;;  %v3673_v31 = vmax.f32 %v1406_v12, %v1407_v16  ;;  %v1394_v33 = vmax.f32 %v1392_v21, %v1393_v25 }
 0x211   :  { %v1427_v34 = vsel %vm723_vm4, %v1255_v28, -inf  ;;  %v1349_v35 = vmax.f32 %v3624_v51, %v1348_v7  ;;  %v1253_v38 = vsel %vm1125_vm14, %v919_v18, %v1189_v29  ;;  %v1822_v32 = vsel %vm1821_vm3, %v3628_v55, %v3619_v45 }
 0x212   :  { %v1428_v37 = vrot.slane %v1427_v34, 4  ;;  %v1354_v39 = vmax.f32 %v3631_v59, %v1353_v30  ;;  %v1395_v40 = vrot.slane %v1394_v33, 2  ;;  %v1413_v41 = vsel %vm723_vm4, %v1253_v38, -inf  ;;  %v2903_v46 = vpop.f32.mrb[24].mxu1 }
 0x213   :  { %v1824_v43 = vsel %vm1823_vm5, %v3615_v36, %v1822_v32  ;;  %v930_v44 = vadd.f32 %v3642_v42, %v3600_v4  ;;  %v1414_v51 = vrot.slane %v1413_v41, 4  ;;  %v3690_v52 = vpop.f32.mrb[25].mxu1  ;;  %v3692_v53 = vmax.f32 %v1389_v15, %v1390_v27 }
 0x214   :  { %v1429_v47 = vmax.f32 %v1427_v34, %v1428_v37  ;;  %v1355_v7 = vrot.slane %v1354_v39, 1  ;;  %v1826_v59 = vsel %vm1825_vm7, %v3622_v48, %v1824_v43  ;;  %v3696_v36 = vpop.f32.mrb[26].mxu1  ;;  %v3701_v61 = vmax.f32 %v1394_v33, %v1395_v40 }
 0x215   :  { %v1828_v45 = vsel %vm1827_vm9, %v3647_v50, %v1826_v59  ;;  %vm1128_vm15 = vcmp.ge.f32.partialorder %v930_v44, 0.0  ;;  %v1192_v55 = vmul.f32 0.2, %v930_v44  ;;  %v1415_v42 = vmax.f32 %v1413_v41, %v1414_v51  ;;  %v3699_v60 = vpop.f32.mrb[27].mxu1 }
 0x216   :  { %v1430_v54 = vrot.slane %v1429_v47, 2  ;;  %v1356_v57 = vmax.f32 %v1354_v39, %v1355_v7  ;;  %v1830_v58 = vsel %vm1829_vm10, %v1342_v26, %v1828_v45  ;;  %v922_v63 = vadd.f32 %v3600_v4, %v3645_v49 }
 0x217   :  { %v1832_v48 = vsel %vm1831_vm11, %v1349_v35, %v1830_v58  ;;  %v1256_v62 = vsel %vm1128_vm15, %v930_v44, %v1192_v55  ;;  %v1416_v0 = vrot.slane %v1415_v42, 2  ;;  %v943_v6 = vadd.f32 %v3653_v9, %v3600_v4 }
 0x218   :  { %v1431_v50 = vmax.f32 %v1429_v47, %v1430_v54  ;;  %v1834_v1 = vsel %vm1833_vm12, %v1356_v57, %v1832_v48  ;;  %v1434_v56 = vsel %vm723_vm4, %v1256_v62, -inf  ;;  %vm1126_vm0 = vcmp.ge.f32.partialorder %v922_v63, 0.0 }
 0x219   :  { %1884 = vrot.lane.b32.xlu0 %v1834_v1, %s3113_s22  ;;  %v1435_v3 = vrot.slane %v1434_v56, 4  ;;  %v1190_v5 = vmul.f32 0.2, %v922_v63  ;;  %v1409_v8 = vrot.slane %v3673_v31, 2  ;;  %v935_v49 = vadd.f32 %v3600_v4, %v3661_v14 }
 0x21a   :  { %v1432_v12 = vrot.slane %v1431_v50, 1  ;;  %v946_v13 = vadd.f32 %v2900_v19, %v3600_v4  ;;  %vm1131_vm1 = vcmp.ge.f32.partialorder %v943_v6, 0.0  ;;  %v1195_v17 = vmul.f32 0.2, %v943_v6  ;;  %v3715_v18 = vpop.f32.mrb[28].mxu1 }
 0x21b   :  { %v1436_v15 = vmax.f32 %v1434_v56, %v1435_v3  ;;  %v1254_v16 = vsel %vm1126_vm0, %v922_v63, %v1190_v5  ;;  %v1397_v21 = vrot.slane %v3701_v61, 1  ;;  %v1417_v22 = vmax.f32 %v1415_v42, %v1416_v0  ;;  %v3719_v9 = vpop.f32.mrb[29].mxu1 }
 0x21c   :  { %v1420_v25 = vsel %vm723_vm4, %v1254_v16, -inf  ;;  %vm1129_vm2 = vcmp.ge.f32.partialorder %v935_v49, 0.0  ;;  %v1259_v28 = vsel %vm1131_vm1, %v943_v6, %v1195_v17  ;;  %v1193_v14 = vmul.f32 0.2, %v935_v49  ;;  %v3721_v29 = vpop.f32.mrb[30].mxu1 }
 0x21d   :  { %v1437_v26 = vrot.slane %v1436_v15, 2  ;;  %v1421_v27 = vrot.slane %v1420_v25, 4  ;;  %v3723_v19 = vmax.f32 %v1431_v50, %v1432_v12  ;;  %v1455_v30 = vsel %vm723_vm4, %v1259_v28, -inf  ;;  %v3726_v34 = vpop.f32.mrb[31].mxu1 }
 0x21e   :  { %vm1132_vm6 = vcmp.ge.f32.partialorder %v946_v13, 0.0  ;;  %v1196_v33 = vmul.f32 0.2, %v946_v13  ;;  %v1456_v38 = vrot.slane %v1455_v30, 4  ;;  %v1257_v39 = vsel %vm1129_vm2, %v935_v49, %v1193_v14 }
 0x21f   :  { %v1438_v35 = vmax.f32 %v1436_v15, %v1437_v26  ;;  %v1422_v37 = vmax.f32 %v1420_v25, %v1421_v27  ;;  %v1441_v32 = vsel %vm723_vm4, %v1257_v39, -inf  ;;  %v938_v41 = vadd.f32 %v3600_v4, %v3668_v23 }
 0x220   :  { %v1260_v40 = vsel %vm1132_vm6, %v946_v13, %v1196_v33  ;;  %v959_v43 = vadd.f32 %v2903_v46, %v3600_v4  ;;  %v1418_v44 = vrot.slane %v1417_v22, 1  ;;  %v1457_v51 = vmax.f32 %v1455_v30, %v1456_v38 }
 0x221   :  { %v1423_v47 = vrot.slane %v1422_v37, 2  ;;  %v1442_v7 = vrot.slane %v1441_v32, 4  ;;  %v1439_v59 = vrot.slane %v1438_v35, 1  ;;  %v1462_v45 = vsel %vm723_vm4, %v1260_v40, -inf }
 0x222   :  { %vm1130_vm8 = vcmp.ge.f32.partialorder %v938_v41, 0.0  ;;  %v1194_v55 = vmul.f32 0.2, %v938_v41  ;;  %v1458_v42 = vrot.slane %v1457_v51, 2  ;;  %vm1135_vm13 = vcmp.ge.f32.partialorder %v959_v43, 0.0  ;;  %v3733_v58 = vpop.f32.mrb[32].mxu1 }
 0x223   :  { %v1424_v54 = vmax.f32 %v1422_v37, %v1423_v47  ;;  %v1443_v57 = vmax.f32 %v1441_v32, %v1442_v7  ;;  %v1463_v48 = vrot.slane %v1462_v45, 4  ;;  %v1199_v23 = vmul.f32 0.2, %v959_v43  ;;  %v3737_v63 = vpop.f32.mrb[33].mxu1 }
 0x224   :  { %v1258_v62 = vsel %vm1130_vm8, %v938_v41, %v1194_v55  ;;  %v951_v46 = vadd.f32 %v3600_v4, %v3690_v52  ;;  %v3739_v50 = vmax.f32 %v1417_v22, %v1418_v44  ;;  %v3742_v3 = vpop.f32.mrb[34].mxu1  ;;  %v3744_v5 = vmax.f32 %v1438_v35, %v1439_v59 }
 0x225   :  { %v1425_v0 = vrot.slane %v1424_v54, 1  ;;  %v1444_v1 = vrot.slane %v1443_v57, 2  ;;  %v1448_v56 = vsel %vm723_vm4, %v1258_v62, -inf  ;;  %v1263_v12 = vsel %vm1135_vm13, %v959_v43, %v1199_v23  ;;  %v3746_v49 = vpop.f32.mrb[35].mxu1 }
 0x226   :  { %v1449_v6 = vrot.slane %v1448_v56, 4  ;;  %vm1133_vm14 = vcmp.ge.f32.partialorder %v951_v46, 0.0  ;;  %v3748_v13 = vmax.f32 %v1457_v51, %v1458_v42  ;;  %v1483_v15 = vsel %vm723_vm4, %v1263_v12, -inf }
 0x227   :  { %v1445_v52 = vmax.f32 %v1443_v57, %v1444_v1  ;;  %v1197_v16 = vmul.f32 0.2, %v951_v46  ;;  %v3751_v17 = vmax.f32 %v1462_v45, %v1463_v48  ;;  %v1484_v25 = vrot.slane %v1483_v15, 4 }
 0x228   :  { %v1450_v22 = vmax.f32 %v1448_v56, %v1449_v6  ;;  %v1404_v26 = vrot.slane %v3670_v24, 1  ;;  %v3754_v27 = vmax.f32 %v1424_v54, %v1425_v0  ;;  %v1410_v14 = vmax.f32 %v3673_v31, %v1409_v8 }
 0x229   :  { %v1261_v28 = vsel %vm1133_vm14, %v951_v46, %v1197_v16  ;;  %v1835_v30 = vsel %vm1821_vm3, %v3665_v20, %v3655_v10  ;;  %v1485_v35 = vmax.f32 %v1483_v15, %v1484_v25  ;;  %v1398_v38 = vmax.f32 %v3701_v61, %v1397_v21 }
 0x22a   :  { %v1451_v33 = vrot.slane %v1450_v22, 2  ;;  %v1469_v37 = vsel %vm723_vm4, %v1261_v28, -inf  ;;  %v1446_v39 = vrot.slane %v1445_v52, 1  ;;  %v1411_v40 = vrot.slane %v1410_v14, 1  ;;  %v3768_v43 = vpop.f32.mrb[36].mxu1 }
 0x22b   :  { %v1470_v32 = vrot.slane %v1469_v37, 4  ;;  %v1836_v41 = vsel %vm1823_vm5, %v3651_v2, %v1835_v30  ;;  %v1486_v31 = vrot.slane %v1485_v35, 2  ;;  %v1405_v8 = vmax.f32 %v3670_v24, %v1404_v26  ;;  %v3775_v44 = vpop.f32.mrb[37].mxu1 }
 0x22c   :  { %v1837_v10 = vsel %vm1825_vm7, %v3657_v11, %v1836_v41  ;;  %v962_v20 = vadd.f32 %v3696_v36, %v3600_v4  ;;  %v3777_v61 = vmax.f32 %v1450_v22, %v1451_v33  ;;  %v954_v2 = vadd.f32 %v3600_v4, %v3699_v60  ;;  %v3783_v51 = vpop.f32.mrb[38].mxu1 }
 0x22d   :  { %v1471_v21 = vmax.f32 %v1469_v37, %v1470_v32  ;;  %v1838_v47 = vsel %vm1827_vm9, %v3692_v53, %v1837_v10  ;;  %v3785_v24 = vmax.f32 %v1485_v35, %v1486_v31  ;;  %v1412_v7 = vmax.f32 %v1410_v14, %v1411_v40  ;;  %v3788_v36 = vpop.f32.mrb[39].mxu1 }
 0x22e   :  { %v1839_v11 = vsel %vm1829_vm10, %v1398_v38, %v1838_v47  ;;  %vm1136_vm15 = vcmp.ge.f32.partialorder %v962_v20, 0.0  ;;  %v1200_v55 = vmul.f32 0.2, %v962_v20  ;;  %vm1134_vm0 = vcmp.ge.f32.partialorder %v954_v2, 0.0 }
 0x22f   :  { %v1472_v59 = vrot.slane %v1471_v21, 2  ;;  %v1840_v45 = vsel %vm1831_vm11, %v1405_v8, %v1839_v11  ;;  %v3791_v54 = vmax.f32 %v1445_v52, %v1446_v39  ;;  %v1198_v60 = vmul.f32 0.2, %v954_v2 }
 0x230   :  { %v1841_v53 = vsel %vm1833_vm12, %v1412_v7, %v1840_v45  ;;  %v975_v42 = vadd.f32 %v3715_v18, %v3600_v4  ;;  %v1264_v48 = vsel %vm1136_vm15, %v962_v20, %v1200_v55  ;;  %v967_v62 = vadd.f32 %v3600_v4, %v3719_v9 }
 0x231   :  { %v1473_v57 = vmax.f32 %v1471_v21, %v1472_v59  ;;  %1886 = vrot.lane.b32.xlu0 %v1841_v53, %s3113_s22  ;;  %v978_v23 = vadd.f32 %v3721_v29, %v3600_v4  ;;  %v1453_v46 = vrot.slane %v3777_v61, 1  ;;  %v1490_v0 = vsel %vm723_vm4, %v1264_v48, -inf }
 0x232   :  { %v1262_v1 = vsel %vm1134_vm0, %v954_v2, %v1198_v60  ;;  %vm1139_vm1 = vcmp.ge.f32.partialorder %v975_v42, 0.0  ;;  %v1488_v56 = vrot.slane %v3785_v24, 1  ;;  %v1491_v6 = vrot.slane %v1490_v0, 4  ;;  %v3805_v52 = vpop.f32.mrb[40].mxu1 }
 0x233   :  { %v1476_v18 = vsel %vm723_vm4, %v1262_v1, -inf  ;;  %v1203_v12 = vmul.f32 0.2, %v975_v42  ;;  %vm1137_vm2 = vcmp.ge.f32.partialorder %v967_v62, 0.0  ;;  %v1201_v9 = vmul.f32 0.2, %v967_v62 }
 0x234   :  { %v1477_v15 = vrot.slane %v1476_v18, 4  ;;  %vm1140_vm6 = vcmp.ge.f32.partialorder %v978_v23, 0.0  ;;  %v3807_v16 = vpop.f32.mrb[41].mxu1  ;;  %v1474_v29 = vrot.slane %v1473_v57, 1  ;;  %v1492_v22 = vmax.f32 %v1490_v0, %v1491_v6 }
 0x235   :  { %v1267_v25 = vsel %vm1139_vm1, %v975_v42, %v1203_v12  ;;  %v1204_v26 = vmul.f32 0.2, %v978_v23  ;;  %v3809_v28 = vpop.f32.mrb[42].mxu1  ;;  %v1265_v33 = vsel %vm1137_vm2, %v967_v62, %v1201_v9  ;;  %v970_v35 = vadd.f32 %v3600_v4, %v3726_v34 }
 0x236   :  { %v1478_v14 = vmax.f32 %v1476_v18, %v1477_v15  ;;  %v1511_v30 = vsel %vm723_vm4, %v1267_v25, -inf  ;;  %v3814_v37 = vpop.f32.mrb[43].mxu1  ;;  %v1493_v38 = vrot.slane %v1492_v22, 2  ;;  %v1497_v32 = vsel %vm723_vm4, %v1265_v33, -inf }
 0x237   :  { %v1512_v39 = vrot.slane %v1511_v30, 4  ;;  %v1268_v40 = vsel %vm1140_vm6, %v978_v23, %v1204_v26  ;;  %v1498_v31 = vrot.slane %v1497_v32, 4  ;;  %vm1138_vm8 = vcmp.ge.f32.partialorder %v970_v35, 0.0 }
 0x238   :  { %v1479_v41 = vrot.slane %v1478_v14, 2  ;;  %v1518_v8 = vsel %vm723_vm4, %v1268_v40, -inf  ;;  %v1494_v10 = vmax.f32 %v1492_v22, %v1493_v38  ;;  %v1202_v47 = vmul.f32 0.2, %v970_v35 }
 0x239   :  { %v1513_v20 = vmax.f32 %v1511_v30, %v1512_v39  ;;  %v1519_v21 = vrot.slane %v1518_v8, 4  ;;  %v1499_v7 = vmax.f32 %v1497_v32, %v1498_v31  ;;  %v991_v34 = vadd.f32 %v3733_v58, %v3600_v4 }
 0x23a   :  { %v1480_v2 = vmax.f32 %v1478_v14, %v1479_v41  ;;  %v983_v11 = vadd.f32 %v3600_v4, %v3737_v63  ;;  %v1495_v59 = vrot.slane %v1494_v10, 1  ;;  %v1266_v53 = vsel %vm1138_vm8, %v970_v35, %v1202_v47  ;;  %v3824_v60 = vpop.f32.mrb[44].mxu1 }
 0x23b   :  { %v1514_v45 = vrot.slane %v1513_v20, 2  ;;  %v3822_v55 = vmax.f32 %v1518_v8, %v1519_v21  ;;  %v3827_v42 = vmax.f32 %v3785_v24, %v1488_v56  ;;  %v1500_v62 = vrot.slane %v1499_v7, 2  ;;  %v3830_v0 = vpop.f32.mrb[45].mxu1 }
 0x23c   :  { %v1481_v48 = vrot.slane %v1480_v2, 1  ;;  %v1504_v23 = vsel %vm723_vm4, %v1266_v53, -inf  ;;  %v3832_v58 = vmax.f32 %v1473_v57, %v1474_v29  ;;  %v3834_v1 = vmax.f32 %v1494_v10, %v1495_v59  ;;  %v3836_v6 = vpop.f32.mrb[46].mxu1 }
 0x23d   :  { %v1505_v63 = vrot.slane %v1504_v23, 4  ;;  %vm1143_vm13 = vcmp.ge.f32.partialorder %v991_v34, 0.0  ;;  %v3838_v18 = vmax.f32 %v1513_v20, %v1514_v45  ;;  %v1501_v12 = vmax.f32 %v1499_v7, %v1500_v62  ;;  %v3840_v24 = vpop.f32.mrb[47].mxu1 }
 0x23e   :  { %v1207_v15 = vmul.f32 0.2, %v991_v34  ;;  %vm1141_vm14 = vcmp.ge.f32.partialorder %v983_v11, 0.0  ;;  %v1521_v56 = vrot.slane %v3822_v55, 2  ;;  %v1205_v22 = vmul.f32 0.2, %v983_v11 }
 0x23f   :  { %v1506_v9 = vmax.f32 %v1504_v23, %v1505_v63  ;;  %v1460_v57 = vrot.slane %v3748_v13, 1  ;;  %v3844_v29 = vmax.f32 %v1480_v2, %v1481_v48  ;;  %v1465_v26 = vrot.slane %v3751_v17, 2 }
 0x240   :  { %v1271_v25 = vsel %vm1143_vm13, %v991_v34, %v1207_v15  ;;  %v1842_v14 = vsel %vm1821_vm3, %v3754_v27, %v3739_v50  ;;  %v1269_v35 = vsel %vm1141_vm14, %v983_v11, %v1205_v22  ;;  %v1454_v38 = vmax.f32 %v3777_v61, %v1453_v46 }
 0x241   :  { %v1507_v30 = vrot.slane %v1506_v9, 2  ;;  %v1539_v33 = vsel %vm723_vm4, %v1271_v25, -inf  ;;  %v1502_v39 = vrot.slane %v1501_v12, 1  ;;  %v1525_v40 = vsel %vm723_vm4, %v1269_v35, -inf }
 0x242   :  { %v1540_v32 = vrot.slane %v1539_v33, 4  ;;  %v1466_v41 = vmax.f32 %v3751_v17, %v1465_v26  ;;  %v1526_v31 = vrot.slane %v1525_v40, 4  ;;  %v1461_v8 = vmax.f32 %v3748_v13, %v1460_v57  ;;  %v3861_v10 = vpop.f32.mrb[48].mxu1 }
 0x243   :  { %v1843_v50 = vsel %vm1823_vm5, %v3723_v19, %v1842_v14  ;;  %v994_v27 = vadd.f32 %v3742_v3, %v3600_v4  ;;  %v986_v46 = vadd.f32 %v3600_v4, %v3746_v49  ;;  %v3867_v17 = vpop.f32.mrb[49].mxu1  ;;  %v3869_v47 = vmax.f32 %v1506_v9, %v1507_v30 }
 0x244   :  { %v1541_v20 = vmax.f32 %v1539_v33, %v1540_v32  ;;  %v1467_v21 = vrot.slane %v1466_v41, 1  ;;  %v1844_v61 = vsel %vm1825_vm7, %v3744_v5, %v1843_v50  ;;  %v1527_v13 = vmax.f32 %v1525_v40, %v1526_v31  ;;  %v3873_v3 = vpop.f32.mrb[50].mxu1 }
 0x245   :  { %v1845_v19 = vsel %vm1827_vm9, %v3791_v54, %v1844_v61  ;;  %vm1144_vm15 = vcmp.ge.f32.partialorder %v994_v27, 0.0  ;;  %v1208_v11 = vmul.f32 0.2, %v994_v27  ;;  %v3876_v5 = vpop.f32.mrb[51].mxu1  ;;  %vm1142_vm0 = vcmp.ge.f32.partialorder %v986_v46, 0.0 }
 0x246   :  { %v1542_v2 = vrot.slane %v1541_v20, 2  ;;  %v1468_v7 = vmax.f32 %v1466_v41, %v1467_v21  ;;  %v1846_v34 = vsel %vm1829_vm10, %v1454_v38, %v1845_v19  ;;  %v1528_v59 = vrot.slane %v1527_v13, 2 }
 0x247   :  { %v1847_v49 = vsel %vm1831_vm11, %v1461_v8, %v1846_v34  ;;  %v1206_v45 = vmul.f32 0.2, %v986_v46  ;;  %v1272_v62 = vsel %vm1144_vm15, %v994_v27, %v1208_v11  ;;  %v1007_v54 = vadd.f32 %v3768_v43, %v3600_v4 }
 0x248   :  { %v1543_v53 = vmax.f32 %v1541_v20, %v1542_v2  ;;  %v1848_v48 = vsel %vm1833_vm12, %v1468_v7, %v1847_v49  ;;  %v1529_v23 = vmax.f32 %v1527_v13, %v1528_v59  ;;  %v1546_v63 = vsel %vm723_vm4, %v1272_v62, -inf }
 0x249   :  { %1888 = vrot.lane.b32.xlu1 %v1848_v48, %s3113_s22  ;;  %v1270_v15 = vsel %vm1142_vm0, %v986_v46, %v1206_v45  ;;  %v999_v9 = vadd.f32 %v3600_v4, %v3775_v44  ;;  %v3886_v22 = vmax.f32 %v1501_v12, %v1502_v39  ;;  %v1547_v57 = vrot.slane %v1546_v63, 4 }
 0x24a   :  { %v1532_v25 = vsel %vm723_vm4, %v1270_v15, -inf  ;;  %vm1147_vm1 = vcmp.ge.f32.partialorder %v1007_v54, 0.0  ;;  %v1509_v26 = vrot.slane %v3869_v47, 1  ;;  %v1211_v30 = vmul.f32 0.2, %v1007_v54  ;;  %v3890_v43 = vpop.f32.mrb[52].mxu1 }
 0x24b   :  { %v1533_v14 = vrot.slane %v1532_v25, 4  ;;  %vm1145_vm2 = vcmp.ge.f32.partialorder %v999_v9, 0.0  ;;  %v1544_v33 = vrot.slane %v1543_v53, 1  ;;  %v1548_v35 = vmax.f32 %v1546_v63, %v1547_v57  ;;  %v3894_v44 = vpop.f32.mrb[53].mxu1 }
 0x24c   :  { %v1209_v38 = vmul.f32 0.2, %v999_v9  ;;  %v1010_v32 = vadd.f32 %v3783_v51, %v3600_v4  ;;  %v1530_v12 = vrot.slane %v1529_v23, 1  ;;  %v1275_v40 = vsel %vm1147_vm1, %v1007_v54, %v1211_v30  ;;  %v3898_v31 = vpop.f32.mrb[54].mxu1 }
 0x24d   :  { %v1534_v39 = vmax.f32 %v1532_v25, %v1533_v14  ;;  %v1002_v41 = vadd.f32 %v3600_v4, %v3788_v36  ;;  %v1549_v8 = vrot.slane %v1548_v35, 2  ;;  %v1567_v50 = vsel %vm723_vm4, %v1275_v40, -inf  ;;  %v3901_v20 = vpop.f32.mrb[55].mxu1 }
 0x24e   :  { %v1273_v27 = vsel %vm1145_vm2, %v999_v9, %v1209_v38  ;;  %vm1148_vm6 = vcmp.ge.f32.partialorder %v1010_v32, 0.0  ;;  %v1568_v61 = vrot.slane %v1567_v50, 4  ;;  %v1212_v46 = vmul.f32 0.2, %v1010_v32 }
 0x24f   :  { %v1535_v21 = vrot.slane %v1534_v39, 2  ;;  %v1553_v51 = vsel %vm723_vm4, %v1273_v27, -inf  ;;  %v1550_v13 = vmax.f32 %v1548_v35, %v1549_v8  ;;  %vm1146_vm8 = vcmp.ge.f32.partialorder %v1002_v41, 0.0 }
 0x250   :  { %v1554_v19 = vrot.slane %v1553_v51, 4  ;;  %v1210_v2 = vmul.f32 0.2, %v1002_v41  ;;  %v1569_v36 = vmax.f32 %v1567_v50, %v1568_v61  ;;  %v1276_v34 = vsel %vm1148_vm6, %v1010_v32, %v1212_v46 }
 0x251   :  { %v1536_v7 = vmax.f32 %v1534_v39, %v1535_v21  ;;  %v1023_v11 = vadd.f32 %v3805_v52, %v3600_v4  ;;  %v1551_v59 = vrot.slane %v1550_v13, 1  ;;  %v1574_v45 = vsel %vm723_vm4, %v1276_v34, -inf }
 0x252   :  { %v1555_v49 = vmax.f32 %v1553_v51, %v1554_v19  ;;  %v1274_v48 = vsel %vm1146_vm8, %v1002_v41, %v1210_v2  ;;  %v1570_v54 = vrot.slane %v1569_v36, 2  ;;  %v1575_v63 = vrot.slane %v1574_v45, 4  ;;  %v3908_v9 = vpop.f32.mrb[56].mxu1 }
 0x253   :  { %v1537_v62 = vrot.slane %v1536_v7, 1  ;;  %v1560_v15 = vsel %vm723_vm4, %v1274_v48, -inf  ;;  %v3910_v57 = vmax.f32 %v1543_v53, %v1544_v33  ;;  %vm1151_vm13 = vcmp.ge.f32.partialorder %v1023_v11, 0.0  ;;  %v3912_v30 = vpop.f32.mrb[57].mxu1  ;;  %v3927_v53 = vld [vmem:[%s4569_s5] ss:$0 sm:$0xff] }
 0x254   :  { %v1556_v25 = vrot.slane %v1555_v49, 2  ;;  %v1561_v14 = vrot.slane %v1560_v15, 4  ;;  %v3914_v4 = vmax.f32 %v1529_v23, %v1530_v12  ;;  %v3916_v52 = vmax.f32 %v1550_v13, %v1551_v59  ;;  %v3920_v32 = vpop.f32.mrb[58].mxu1 }
 0x255   :  { %v3918_v35 = vmax.f32 %v1574_v45, %v1575_v63  ;;  %v1215_v38 = vmul.f32 0.2, %v1023_v11  ;;  %v3922_v39 = vmax.f32 %v1536_v7, %v1537_v62  ;;  %v1015_v23 = vadd.f32 %v3927_v53, %v3807_v16  ;;  %v3931_v33 = vpop.f32.mrb[59].mxu1 }
 0x256   :  { %v1557_v40 = vmax.f32 %v1555_v49, %v1556_v25  ;;  %v1562_v41 = vmax.f32 %v1560_v15, %v1561_v14  ;;  %v3933_v12 = vmax.f32 %v1569_v36, %v1570_v54  ;;  %v1516_v50 = vrot.slane %v3838_v18, 1 }
 0x257   :  { %v1279_v8 = vsel %vm1151_vm13, %v1023_v11, %v1215_v38  ;;  %v1522_v27 = vmax.f32 %v3822_v55, %v1521_v56  ;;  %vm1149_vm14 = vcmp.ge.f32.partialorder %v1015_v23, 0.0  ;;  %v1510_v51 = vmax.f32 %v3869_v47, %v1509_v26 }
 0x258   :  { %v1558_v21 = vrot.slane %v1557_v40, 1  ;;  %v1595_v61 = vsel %vm723_vm4, %v1279_v8, -inf  ;;  %v1577_v16 = vrot.slane %v3918_v35, 2  ;;  %v1213_v13 = vmul.f32 0.2, %v1015_v23 }
 0x259   :  { %v1596_v46 = vrot.slane %v1595_v61, 4  ;;  %v1523_v19 = vrot.slane %v1522_v27, 1  ;;  %v1563_v2 = vrot.slane %v1562_v41, 2  ;;  %v1517_v7 = vmax.f32 %v3838_v18, %v1516_v50 }
 0x25a   :  { %v1849_v55 = vsel %vm1821_vm3, %v3844_v29, %v3832_v58  ;;  %v1026_v56 = vadd.f32 %v3927_v53, %v3809_v28  ;;  %v3950_v36 = vmax.f32 %v1557_v40, %v1558_v21  ;;  %v1277_v11 = vsel %vm1149_vm14, %v1015_v23, %v1213_v13  ;;  %v3954_v26 = vpop.f32.mrb[60].mxu1 }
 0x25b   :  { %v1597_v34 = vmax.f32 %v1595_v61, %v1596_v46  ;;  %v1850_v47 = vsel %vm1823_vm5, %v3827_v42, %v1849_v55  ;;  %v1581_v59 = vsel %vm723_vm4, %v1277_v11, -inf  ;;  %v1524_v49 = vmax.f32 %v1522_v27, %v1523_v19  ;;  %v3959_v58 = vpop.f32.mrb[61].mxu1 }
 0x25c   :  { %v1851_v18 = vsel %vm1825_vm7, %v3834_v1, %v1850_v47  ;;  %vm1152_vm15 = vcmp.ge.f32.partialorder %v1026_v56, 0.0  ;;  %v1582_v28 = vrot.slane %v1581_v59, 4  ;;  %v1216_v48 = vmul.f32 0.2, %v1026_v56  ;;  %v3963_v62 = vpop.f32.mrb[62].mxu1 }
 0x25d   :  { %v1598_v29 = vrot.slane %v1597_v34, 2  ;;  %v1852_v45 = vsel %vm1827_vm9, %v3886_v22, %v1851_v18  ;;  %v1018_v54 = vadd.f32 %v3927_v53, %v3814_v37  ;;  %v1039_v63 = vadd.f32 %v3927_v53, %v3824_v60  ;;  %v3972_v15 = vpop.f32.mrb[63].mxu1 }
 0x25e   :  { %v1853_v42 = vsel %vm1829_vm10, %v1510_v51, %v1852_v45  ;;  %v1031_v1 = vadd.f32 %v3927_v53, %v3830_v0  ;;  %v3974_v25 = vmax.f32 %v1562_v41, %v1563_v2  ;;  %v1583_v14 = vmax.f32 %v1581_v59, %v1582_v28 }
 0x25f   :  { %v1854_v22 = vsel %vm1831_vm11, %v1517_v7, %v1853_v42  ;;  %v1280_v38 = vsel %vm1152_vm15, %v1026_v56, %v1216_v48  ;;  %vm1150_vm0 = vcmp.ge.f32.partialorder %v1018_v54, 0.0  ;;  %v1214_v37 = vmul.f32 0.2, %v1018_v54 }
 0x260   :  { %v1855_v40 = vsel %vm1833_vm12, %v1524_v49, %v1854_v22  ;;  %v1602_v23 = vsel %vm723_vm4, %v1280_v38, -inf  ;;  %v1599_v8 = vmax.f32 %v1597_v34, %v1598_v29  ;;  %v1584_v50 = vrot.slane %v1583_v14, 2 }
 0x261   :  { %1890 = vrot.lane.b32.xlu1 %v1855_v40, %s3113_s22  ;;  %v1603_v60 = vrot.slane %v1602_v23, 4  ;;  %vm1155_vm1 = vcmp.ge.f32.partialorder %v1039_v63, 0.0  ;;  %v1278_v0 = vsel %vm1150_vm0, %v1018_v54, %v1214_v37  ;;  %v1219_v27 = vmul.f32 0.2, %v1039_v63 }
 0x262   :  { %vm1153_vm2 = vcmp.ge.f32.partialorder %v1031_v1, 0.0  ;;  %v1217_v41 = vmul.f32 0.2, %v1031_v1  ;;  %v1565_v21 = vrot.slane %v3974_v25, 1  ;;  %v1585_v61 = vmax.f32 %v1583_v14, %v1584_v50 }
 0x263   :  { %v1604_v51 = vmax.f32 %v1602_v23, %v1603_v60  ;;  %v1588_v46 = vsel %vm723_vm4, %v1278_v0, -inf  ;;  %v1283_v19 = vsel %vm1155_vm1, %v1039_v63, %v1219_v27  ;;  %v1042_v7 = vadd.f32 %v3927_v53, %v3836_v6 }
 0x264   :  { %v1589_v13 = vrot.slane %v1588_v46, 4  ;;  %v1281_v2 = vsel %vm1153_vm2, %v1031_v1, %v1217_v41  ;;  %v1600_v55 = vrot.slane %v1599_v8, 1  ;;  %v1623_v34 = vsel %vm723_vm4, %v1283_v19, -inf }
 0x265   :  { %v1605_v56 = vrot.slane %v1604_v51, 2  ;;  %v1609_v11 = vsel %vm723_vm4, %v1281_v2, -inf  ;;  %v1624_v59 = vrot.slane %v1623_v34, 4  ;;  %vm1156_vm6 = vcmp.ge.f32.partialorder %v1042_v7, 0.0 }
 0x266   :  { %v1590_v47 = vmax.f32 %v1588_v46, %v1589_v13  ;;  %v1610_v49 = vrot.slane %v1609_v11, 4  ;;  %v1586_v18 = vrot.slane %v1585_v61, 1  ;;  %v1220_v28 = vmul.f32 0.2, %v1042_v7 }
 0x267   :  { %v1606_v29 = vmax.f32 %v1604_v51, %v1605_v56  ;;  %v1034_v45 = vadd.f32 %v3927_v53, %v3840_v24  ;;  %v1625_v42 = vmax.f32 %v1623_v34, %v1624_v59  ;;  %v1055_v6 = vadd.f32 %v3927_v53, %v3861_v10 }
 0x268   :  { %v1591_v48 = vrot.slane %v1590_v47, 2  ;;  %v1611_v54 = vmax.f32 %v1609_v11, %v1610_v49  ;;  %v1284_v1 = vsel %vm1156_vm6, %v1042_v7, %v1220_v28  ;;  %v3991_v37 = vmax.f32 %v1599_v8, %v1600_v55 }
 0x269   :  { %v1607_v63 = vrot.slane %v1606_v29, 1  ;;  %vm1154_vm8 = vcmp.ge.f32.partialorder %v1034_v45, 0.0  ;;  %v1218_v14 = vmul.f32 0.2, %v1034_v45  ;;  %v1626_v38 = vrot.slane %v1625_v42, 2 }
 0x26a   :  { %v1592_v22 = vmax.f32 %v1590_v47, %v1591_v48  ;;  %v1612_v40 = vrot.slane %v1611_v54, 2  ;;  %v1630_v23 = vsel %vm723_vm4, %v1284_v1, -inf  ;;  %v3993_v50 = vmax.f32 %v1585_v61, %v1586_v18 }
 0x26b   :  { %v1631_v24 = vrot.slane %v1630_v23, 4  ;;  %v1282_v60 = vsel %vm1154_vm8, %v1034_v45, %v1218_v14  ;;  %vm1159_vm13 = vcmp.ge.f32.partialorder %v1055_v6, 0.0  ;;  %v1223_v46 = vmul.f32 0.2, %v1055_v6 }
 0x26c   :  { %v1593_v0 = vrot.slane %v1592_v22, 1  ;;  %v1613_v27 = vmax.f32 %v1611_v54, %v1612_v40  ;;  %v1616_v41 = vsel %vm723_vm4, %v1282_v60, -inf  ;;  %v1047_v13 = vadd.f32 %v3927_v53, %v3867_v17 }
 0x26d   :  { %v3996_v10 = vmax.f32 %v1630_v23, %v1631_v24  ;;  %v1617_v51 = vrot.slane %v1616_v41, 4  ;;  %v4000_v19 = vmax.f32 %v1606_v29, %v1607_v63  ;;  %v4004_v61 = vmax.f32 %v1625_v42, %v1626_v38 }
 0x26e   :  { %v4002_v8 = vmax.f32 %v1592_v22, %v1593_v0  ;;  %v1614_v2 = vrot.slane %v1613_v27, 1  ;;  %v1287_v55 = vsel %vm1159_vm13, %v1055_v6, %v1223_v46  ;;  %vm1157_vm14 = vcmp.ge.f32.partialorder %v1047_v13, 0.0 }
 0x26f   :  { %v1618_v7 = vmax.f32 %v1616_v41, %v1617_v51  ;;  %v1572_v56 = vrot.slane %v3933_v12, 1  ;;  %v1633_v34 = vrot.slane %v3996_v10, 2  ;;  %v1651_v11 = vsel %vm723_vm4, %v1287_v55, -inf }
 0x270   :  { %v1221_v47 = vmul.f32 0.2, %v1047_v13  ;;  %v1566_v59 = vmax.f32 %v3974_v25, %v1565_v21  ;;  %v1652_v49 = vrot.slane %v1651_v11, 4  ;;  %v1578_v18 = vmax.f32 %v3918_v35, %v1577_v16 }
 0x271   :  { %v1619_v17 = vrot.slane %v1618_v7, 2  ;;  %v1856_v29 = vsel %vm1821_vm3, %v3922_v39, %v3914_v4  ;;  %v1058_v48 = vadd.f32 %v3927_v53, %v3873_v3  ;;  %v1050_v25 = vadd.f32 %v3927_v53, %v3876_v5 }
 0x272   :  { %v1285_v28 = vsel %vm1157_vm14, %v1047_v13, %v1221_v47  ;;  %v1857_v45 = vsel %vm1823_vm5, %v3910_v57, %v1856_v29  ;;  %v1653_v21 = vmax.f32 %v1651_v11, %v1652_v49  ;;  %v1573_v54 = vmax.f32 %v3933_v12, %v1572_v56 }
 0x273   :  { %v1637_v42 = vsel %vm723_vm4, %v1285_v28, -inf  ;;  %v1579_v35 = vrot.slane %v1578_v18, 1  ;;  %v1858_v4 = vsel %vm1825_vm7, %v3916_v52, %v1857_v45  ;;  %vm1160_vm15 = vcmp.ge.f32.partialorder %v1058_v48, 0.0 }
 0x274   :  { %v1638_v16 = vrot.slane %v1637_v42, 4  ;;  %v1224_v39 = vmul.f32 0.2, %v1058_v48  ;;  %v4026_v6 = vmax.f32 %v1618_v7, %v1619_v17  ;;  %v1654_v57 = vrot.slane %v1653_v21, 2 }
 0x275   :  { %v1580_v63 = vmax.f32 %v1578_v18, %v1579_v35  ;;  %v1859_v3 = vsel %vm1827_vm9, %v3950_v36, %v1858_v4  ;;  %vm1158_vm0 = vcmp.ge.f32.partialorder %v1050_v25, 0.0  ;;  %v1222_v52 = vmul.f32 0.2, %v1050_v25 }
 0x276   :  { %v1639_v5 = vmax.f32 %v1637_v42, %v1638_v16  ;;  %v1860_v1 = vsel %vm1829_vm10, %v1566_v59, %v1859_v3  ;;  %v1288_v14 = vsel %vm1160_vm15, %v1058_v48, %v1224_v39  ;;  %v1655_v12 = vmax.f32 %v1653_v21, %v1654_v57 }
 0x277   :  { %v1861_v22 = vsel %vm1831_vm11, %v1573_v54, %v1860_v1  ;;  %v1658_v38 = vsel %vm723_vm4, %v1288_v14, -inf  ;;  %v1071_v60 = vadd.f32 %v3927_v53, %v3890_v43  ;;  %v4036_v0 = vmax.f32 %v1613_v27, %v1614_v2 }
 0x278   :  { %v1640_v40 = vrot.slane %v1639_v5, 2  ;;  %v1862_v23 = vsel %vm1833_vm12, %v1580_v63, %v1861_v22  ;;  %v1659_v24 = vrot.slane %v1658_v38, 4  ;;  %v1286_v36 = vsel %vm1158_vm0, %v1050_v25, %v1222_v52 }
 0x279   :  { %1892 = vrot.lane.b32.xlu0 %v1862_v23, %s3113_s22  ;;  %v1063_v41 = vadd.f32 %v3927_v53, %v3894_v44  ;;  %v1074_v51 = vadd.f32 %v3927_v53, %v3898_v31  ;;  %v1644_v7 = vsel %vm723_vm4, %v1286_v36, -inf  ;;  %vm1163_vm1 = vcmp.ge.f32.partialorder %v1071_v60, 0.0 }
 0x27a   :  { %v1641_v46 = vmax.f32 %v1639_v5, %v1640_v40  ;;  %v1660_v13 = vmax.f32 %v1658_v38, %v1659_v24  ;;  %v1621_v55 = vrot.slane %v4026_v6, 1  ;;  %v1645_v56 = vrot.slane %v1644_v7, 4 }
 0x27b   :  { %v1227_v43 = vmul.f32 0.2, %v1071_v60  ;;  %vm1161_vm2 = vcmp.ge.f32.partialorder %v1063_v41, 0.0  ;;  %v1656_v27 = vrot.slane %v1655_v12, 1  ;;  %v1225_v11 = vmul.f32 0.2, %v1063_v41 }
 0x27c   :  { %v1661_v2 = vrot.slane %v1660_v13, 2  ;;  %vm1164_vm6 = vcmp.ge.f32.partialorder %v1074_v51, 0.0  ;;  %v1646_v47 = vmax.f32 %v1644_v7, %v1645_v56  ;;  %v1228_v44 = vmul.f32 0.2, %v1074_v51 }
 0x27d   :  { %v1291_v59 = vsel %vm1163_vm1, %v1071_v60, %v1227_v43  ;;  %v1066_v31 = vadd.f32 %v3927_v53, %v3901_v20  ;;  %v1642_v17 = vrot.slane %v1641_v46, 1  ;;  %v1289_v29 = vsel %vm1161_vm2, %v1063_v41, %v1225_v11 }
 0x27e   :  { %v1662_v49 = vmax.f32 %v1660_v13, %v1661_v2  ;;  %v1679_v18 = vsel %vm723_vm4, %v1291_v59, -inf  ;;  %v1647_v28 = vrot.slane %v1646_v47, 2  ;;  %v1665_v48 = vsel %vm723_vm4, %v1289_v29, -inf }
 0x27f   :  { %v1680_v45 = vrot.slane %v1679_v18, 4  ;;  %v1292_v25 = vsel %vm1164_vm6, %v1074_v51, %v1228_v44  ;;  %v1666_v42 = vrot.slane %v1665_v48, 4  ;;  %vm1162_vm8 = vcmp.ge.f32.partialorder %v1066_v31, 0.0 }
 0x280   :  { %v1663_v21 = vrot.slane %v1662_v49, 1  ;;  %v1686_v54 = vsel %vm723_vm4, %v1292_v25, -inf  ;;  %v1648_v35 = vmax.f32 %v1646_v47, %v1647_v28  ;;  %v1226_v39 = vmul.f32 0.2, %v1066_v31 }
 0x281   :  { %v1681_v16 = vmax.f32 %v1679_v18, %v1680_v45  ;;  %v1687_v4 = vrot.slane %v1686_v54, 4  ;;  %v4050_v20 = vmax.f32 %v1655_v12, %v1656_v27  ;;  %v1667_v57 = vmax.f32 %v1665_v48, %v1666_v42 }
 0x282   :  { %v1087_v63 = vadd.f32 %v3927_v53, %v3908_v9  ;;  %v1079_v3 = vadd.f32 %v3927_v53, %v3912_v30  ;;  %v1649_v5 = vrot.slane %v1648_v35, 1  ;;  %v1290_v22 = vsel %vm1162_vm8, %v1066_v31, %v1226_v39 }
 0x283   :  { %v1682_v1 = vrot.slane %v1681_v16, 2  ;;  %v4056_v14 = vmax.f32 %v1686_v54, %v1687_v4  ;;  %v1668_v38 = vrot.slane %v1667_v57, 2  ;;  %v1672_v52 = vsel %vm723_vm4, %v1290_v22, -inf }
 0x284   :  { %vm1167_vm13 = vcmp.ge.f32.partialorder %v1087_v63, 0.0  ;;  %v1231_v40 = vmul.f32 0.2, %v1087_v63  ;;  %v4059_v23 = vmax.f32 %v1641_v46, %v1642_v17  ;;  %v4061_v12 = vmax.f32 %v1662_v49, %v1663_v21 }
 0x285   :  { %v4063_v24 = vmax.f32 %v1648_v35, %v1649_v5  ;;  %v1673_v9 = vrot.slane %v1672_v52, 4  ;;  %v1669_v60 = vmax.f32 %v1667_v57, %v1668_v38  ;;  %vm1165_vm14 = vcmp.ge.f32.partialorder %v1079_v3, 0.0 }
 0x286   :  { %v1295_v36 = vsel %vm1167_vm13, %v1087_v63, %v1231_v40  ;;  %v1229_v30 = vmul.f32 0.2, %v1079_v3  ;;  %v4065_v41 = vmax.f32 %v1681_v16, %v1682_v1  ;;  %v1628_v7 = vrot.slane %v4004_v61, 1  ;;  %v1925_v40 = vld [vmem:[%s4538_s6 + $0x8] sm:$0xff] }
 0x287   :  { %v1674_v51 = vmax.f32 %v1672_v52, %v1673_v9  ;;  %v1707_v13 = vsel %vm723_vm4, %v1295_v36, -inf  ;;  %v1689_v56 = vrot.slane %v4056_v14, 2  ;;  %v1634_v27 = vmax.f32 %v3996_v10, %v1633_v34  ;;  %v1924_v52 = vld [vmem:[%s4538_s6] sm:$0xff] }
 0x288   :  { %v1708_v46 = vrot.slane %v1707_v13, 4  ;;  %v1293_v43 = vsel %vm1165_vm14, %v1079_v3, %v1229_v30  ;;  %v1622_v47 = vmax.f32 %v4026_v6, %v1621_v55  ;;  %v1863_v59 = vsel %vm1821_vm3, %v4002_v8, %v3993_v50 }
 0x289   :  { %v1675_v2 = vrot.slane %v1674_v51, 2  ;;  %v1693_v11 = vsel %vm723_vm4, %v1293_v43, -inf  ;;  %v1670_v44 = vrot.slane %v1669_v60, 1  ;;  %v1635_v49 = vrot.slane %v1634_v27, 1 }
 0x28a   :  { %v1709_v31 = vmax.f32 %v1707_v13, %v1708_v46  ;;  %v1694_v17 = vrot.slane %v1693_v11, 4  ;;  %v1629_v18 = vmax.f32 %v4004_v61, %v1628_v7  ;;  %v1864_v29 = vsel %vm1823_vm5, %v3991_v37, %v1863_v59 }
 0x28b   :  { %v1090_v10 = vadd.f32 %v3927_v53, %v3920_v32  ;;  %v1082_v34 = vadd.f32 %v3927_v53, %v3931_v33  ;;  %v4085_v6 = vmax.f32 %v1674_v51, %v1675_v2  ;;  %v1865_v50 = vsel %vm1825_vm7, %v4000_v19, %v1864_v29 }
 0x28c   :  { %v1710_v55 = vrot.slane %v1709_v31, 2  ;;  %v1695_v28 = vmax.f32 %v1693_v11, %v1694_v17  ;;  %v1636_v8 = vmax.f32 %v1634_v27, %v1635_v49  ;;  %v1866_v61 = vsel %vm1827_vm9, %v4036_v0, %v1865_v50 }
 0x28d   :  { %vm1168_vm15 = vcmp.ge.f32.partialorder %v1090_v10, 0.0  ;;  %v1232_v45 = vmul.f32 0.2, %v1090_v10  ;;  %v1867_v32 = vsel %vm1829_vm10, %v1622_v47, %v1866_v61  ;;  %vm1166_vm0 = vcmp.ge.f32.partialorder %v1082_v34, 0.0 }
 0x28e   :  { %v1711_v37 = vmax.f32 %v1709_v31, %v1710_v55  ;;  %v1696_v48 = vrot.slane %v1695_v28, 2  ;;  %v1868_v33 = vsel %vm1831_vm11, %v1629_v18, %v1867_v32  ;;  %v1230_v21 = vmul.f32 0.2, %v1082_v34  ;;  %v1927_v55 = vld [vmem:[%s4538_s6 + $0x18] sm:$0xff] }
 0x28f   :  { %v1296_v25 = vsel %vm1168_vm15, %v1090_v10, %v1232_v45  ;;  %v1103_v42 = vadd.f32 %v3927_v53, %v3954_v26  ;;  %v4095_v54 = vmax.f32 %v1669_v60, %v1670_v44  ;;  %v1869_v35 = vsel %vm1833_vm12, %v1636_v8, %v1868_v33 }
 0x290   :  { %v1697_v19 = vmax.f32 %v1695_v28, %v1696_v48  ;;  %v1714_v0 = vsel %vm723_vm4, %v1296_v25, -inf  ;;  %1894 = vrot.lane.b32.xlu1 %v1869_v35, %s3113_s22  ;;  %v1294_v4 = vsel %vm1166_vm0, %v1082_v34, %v1230_v21  ;;  %v1677_v57 = vrot.slane %v4085_v6, 1  ;;  %v1926_v34 = vld [vmem:[%s4538_s6 + $0x10] sm:$0xff] }
 0x291   :  { %v1715_v16 = vrot.slane %v1714_v0, 4  ;;  %vm1171_vm1 = vcmp.ge.f32.partialorder %v1103_v42, 0.0  ;;  %v1235_v39 = vmul.f32 0.2, %v1103_v42  ;;  %v1712_v63 = vrot.slane %v1711_v37, 1 }
 0x292   :  { %v1700_v3 = vsel %vm723_vm4, %v1294_v4, -inf  ;;  %v1095_v26 = vadd.f32 %v3927_v53, %v3959_v58  ;;  %v1106_v38 = vadd.f32 %v3927_v53, %v3963_v62  ;;  %v1698_v9 = vrot.slane %v1697_v19, 1 }
 0x293   :  { %v1716_v5 = vmax.f32 %v1714_v0, %v1715_v16  ;;  %v1701_v1 = vrot.slane %v1700_v3, 4  ;;  %v1299_v22 = vsel %vm1171_vm1, %v1103_v42, %v1235_v39  ;;  %v1098_v62 = vadd.f32 %v3927_v53, %v3972_v15 }
 0x294   :  { %v1735_v60 = vsel %vm723_vm4, %v1299_v22, -inf  ;;  %vm1169_vm2 = vcmp.ge.f32.partialorder %v1095_v26, 0.0  ;;  %v1233_v36 = vmul.f32 0.2, %v1095_v26  ;;  %vm1172_vm6 = vcmp.ge.f32.partialorder %v1106_v38, 0.0 }
 0x295   :  { %v1717_v58 = vrot.slane %v1716_v5, 2  ;;  %v1702_v30 = vmax.f32 %v1700_v3, %v1701_v1  ;;  %v1736_v51 = vrot.slane %v1735_v60, 4  ;;  %v1236_v7 = vmul.f32 0.2, %v1106_v38 }
 0x296   :  { %v1297_v13 = vsel %vm1169_vm2, %v1095_v26, %v1233_v36  ;;  %v1944_v46 = vpack.c.bf16 %v1925_v40, %v1924_v52  ;;  %vm1170_vm8 = vcmp.ge.f32.partialorder %v1098_v62, 0.0  ;;  %v1234_v44 = vmul.f32 0.2, %v1098_v62  ;;  %v1885_v26 = vpop.permute.xlu0 %1884  ;;  %v1930_v36 = vld [vmem:[%s4538_s6 + $0x30] sm:$0xff] }
 0x297   :  { %v1718_v43 = vmax.f32 %v1716_v5, %v1717_v58  ;;  %v1703_v27 = vrot.slane %v1702_v30, 2  ;;  %v1737_v2 = vmax.f32 %v1735_v60, %v1736_v51  ;;  %v1721_v11 = vsel %vm723_vm4, %v1297_v13, -inf  ;;  %v1750_v60 = vld [vmem:[%s4570_s30 + $0x8] sm:$0xff] }
 0x298   :  { %v1722_v47 = vrot.slane %v1721_v11, 4  ;;  %v1300_v59 = vsel %vm1172_vm6, %v1106_v38, %v1236_v7  ;;  %2941 = vmatprep.subr.bf16.mxu1 %v1944_v46  ;;  %v1713_v31 = vmax.f32 %v1711_v37, %v1712_v63  ;;  %v1699_v29 = vmax.f32 %v1697_v19, %v1698_v9 }
 0x299   :  { %v1704_v17 = vmax.f32 %v1702_v30, %v1703_v27  ;;  %v1738_v49 = vrot.slane %v1737_v2, 2  ;;  %v1742_v18 = vsel %vm723_vm4, %v1300_v59, -inf  ;;  %2942 = vmatpush3.bf16.msra.mxu1 %v1944_v46  ;;  %v1298_v15 = vsel %vm1170_vm8, %v1098_v62, %v1234_v44  ;;  %v1932_v27 = vld [vmem:[%s4538_s6 + $0x40] sm:$0xff] }
 0x29a   :  { %v1723_v10 = vmax.f32 %v1721_v11, %v1722_v47  ;;  %v1743_v53 = vrot.slane %v1742_v18, 4  ;;  %v1719_v28 = vrot.slane %v1718_v43, 1  ;;  %v1728_v61 = vsel %vm723_vm4, %v1298_v15, -inf }
 0x29b   :  { %v1705_v50 = vrot.slane %v1704_v17, 1  ;;  %v1739_v8 = vmax.f32 %v1737_v2, %v1738_v49  ;;  %v1729_v48 = vrot.slane %v1728_v61, 4  ;;  %v1684_v32 = vrot.slane %v4065_v41, 1  ;;  %v1933_v2 = vld [vmem:[%s4538_s6 + $0x48] sm:$0xff] }
 0x29c   :  { %v1724_v45 = vrot.slane %v1723_v10, 2  ;;  %v1744_v37 = vmax.f32 %v1742_v18, %v1743_v53  ;;  %v1690_v25 = vmax.f32 %v4056_v14, %v1689_v56  ;;  %v1870_v21 = vsel %vm1821_vm3, %v4063_v24, %v4059_v23 }
 0x29d   :  { %v1706_v33 = vmax.f32 %v1704_v17, %v1705_v50  ;;  %v1945_v42 = vpack.c.bf16 %v1927_v55, %v1926_v34  ;;  %v1730_v0 = vmax.f32 %v1728_v61, %v1729_v48  ;;  %v1678_v16 = vmax.f32 %v4085_v6, %v1677_v57  ;;  %v1749_v6 = vld [vmem:[%s4570_s30] sm:$0xff]  ;;  %v1939_v61 = vld [vmem:[%s4538_s6 + $0x78] sm:$0xff] }
 0x29e   :  { %v1725_v19 = vmax.f32 %v1723_v10, %v1724_v45  ;;  %v1745_v35 = vrot.slane %v1744_v37, 2  ;;  %v1720_v4 = vmax.f32 %v1718_v43, %v1719_v28  ;;  %v1691_v39 = vrot.slane %v1690_v25, 1  ;;  %v1928_v57 = vld [vmem:[%s4538_s6 + $0x20] sm:$0xff]  ;;  %v1935_v10 = vld [vmem:[%s4538_s6 + $0x58] sm:$0xff]  ;;  %v1937_v28 = vld [vmem:[%s4538_s6 + $0x68] sm:$0xff] }
 0x29f   :  { %v1871_v63 = vsel %vm1823_vm5, %v4050_v20, %v1870_v21  ;;  %2943 = vmatprep.subr.bf16.mxu1 %v1945_v42  ;;  %v1877_v3 = vsel %vm1821_vm3, %v1706_v33, %v1699_v29  ;;  %v1731_v56 = vrot.slane %v1730_v0, 2  ;;  %v1929_v20 = vld [vmem:[%s4538_s6 + $0x28] sm:$0xff]  ;;  %v1685_v5 = vmax.f32 %v4065_v41, %v1684_v32  ;;  %v1931_v41 = vld [vmem:[%s4538_s6 + $0x38] sm:$0xff]  ;;  %v1934_v29 = vld [vmem:[%s4538_s6 + $0x50] sm:$0xff] }
 0x2a0   :  { %v1726_v14 = vrot.slane %v1725_v19, 1  ;;  %v1872_v23 = vsel %vm1825_vm7, %v4061_v12, %v1871_v63  ;;  %2944 = vmatpush3.bf16.msra.mxu1 %v1945_v42  ;;  %v1746_v24 = vmax.f32 %v1744_v37, %v1745_v35  ;;  %v1740_v12 = vrot.slane %v1739_v8, 1  ;;  %v1936_v55 = vld [vmem:[%s4538_s6 + $0x60] sm:$0xff]  ;;  %v1751_v37 = vld [vmem:[%s4570_s30 + $0x10] sm:$0xff]  ;;  %v1752_v33 = vld [vmem:[%s4570_s30 + $0x18] sm:$0xff] }
 0x2a1   :  { %v1873_v1 = vsel %vm1827_vm9, %v4095_v54, %v1872_v23  ;;  %v1878_v22 = vsel %vm1823_vm5, %v1713_v31, %v1877_v3  ;;  %v1732_v52 = vmax.f32 %v1730_v0, %v1731_v56  ;;  %v1692_v40 = vmax.f32 %v1690_v25, %v1691_v39  ;;  %v1755_v3 = vld [vmem:[%s4570_s30 + $0x30] sm:$0xff]  ;;  %v1756_v56 = vld [vmem:[%s4570_s30 + $0x38] sm:$0xff] }
 0x2a2   :  { %v1727_v38 = vmax.f32 %v1725_v19, %v1726_v14  ;;  %v1874_v9 = vsel %vm1829_vm10, %v1678_v16, %v1873_v1  ;;  %v1879_v58 = vsel %vm1825_vm7, %v1720_v4, %v1878_v22  ;;  %v1908_v30 = vsel %vm723_vm4, %v1749_v6, %v1885_v26  ;;  %v1753_v19 = vld [vmem:[%s4570_s30 + $0x20] sm:$0xff]  ;;  %v1754_v16 = vld [vmem:[%s4570_s30 + $0x28] sm:$0xff]  ;;  %v2077_v22 = vld [vmem:[%s4540_s8 + $0x18] sm:$0xff] }
 0x2a3   :  { %v1875_v54 = vsel %vm1831_vm11, %v1685_v5, %v1874_v9  ;;  %v1946_v51 = vpack.c.bf16 %v1929_v20, %v1928_v57  ;;  %v1887_v13 = vpop.permute.xlu0 %1886  ;;  %v1733_v7 = vrot.slane %v1732_v52, 1  ;;  %v1747_v46 = vrot.slane %v1746_v24, 1  ;;  %1916 = vst [vmem:[%s4549_s17] sm:$0xff] %v1908_v30  ;;  %v2074_v57 = vld [vmem:[%s4540_s8] sm:$0xff]  ;;  %v2075_v20 = vld [vmem:[%s4540_s8 + $0x8] sm:$0xff]  ;;  %v2076_v5 = vld [vmem:[%s4540_s8 + $0x10] sm:$0xff] }
 0x2a4   :  { %v1876_v62 = vsel %vm1833_vm12, %v1692_v40, %v1875_v54  ;;  %v1880_v43 = vsel %vm1827_vm9, %v1727_v38, %v1879_v58  ;;  %v1909_v11 = vsel %vm723_vm4, %v1750_v60, %v1887_v13  ;;  %v1947_v47 = vpack.c.bf16 %v1931_v41, %v1930_v36  ;;  %v2078_v40 = vld [vmem:[%s4540_s8 + $0x20] sm:$0xff]  ;;  %v2079_v9 = vld [vmem:[%s4540_s8 + $0x28] sm:$0xff]  ;;  %v2080_v36 = vld [vmem:[%s4540_s8 + $0x30] sm:$0xff] }
 0x2a5   :  { %1896 = vrot.lane.b32.xlu0 %v1876_v62, %s3113_s22  ;;  %2945 = vmatprep.subr.bf16.mxu1 %v1946_v51  ;;  %v1734_v59 = vmax.f32 %v1732_v52, %v1733_v7  ;;  %1917 = vst [vmem:[%s4549_s17 + $0x8] sm:$0xff] %v1909_v11  ;;  %v1940_v44 = vpack.c.bf16 %v1909_v11, %v1908_v30  ;;  %v3114_v1 = vmov 0.0|0.0   ;;  %vm3115_vm5 = vmmov 0   ;;  %v2081_v41 = vld [vmem:[%s4540_s8 + $0x38] sm:$0xff]  ;;  %v2264_v58 = vld [vmem:[%s4546_s14 + $0x8] sm:$0xff] }
 0x2a6   :  { %2946 = vmatpush3.bf16.msra.mxu1 %v1946_v51  ;;  %v1741_v31 = vmax.f32 %v1739_v8, %v1740_v12  ;;  %v1948_v17 = vpack.c.bf16 %v1933_v2, %v1932_v27  ;;  %v1748_v49 = vmax.f32 %v1746_v24, %v1747_v46  ;;  %v1949_v34 = vpack.c.bf16 %v1935_v10, %v1934_v29  ;;  %v1938_v8 = vld [vmem:[%s4538_s6 + $0x70] sm:$0xff]  ;;  %v2266_v30 = vld [vmem:[%s4546_s14 + $0x18] sm:$0xff]  ;;  %v2263_v51 = vld [vmem:[%s4546_s14] sm:$0xff] }
 0x2a7   :  { %2947 = vmatprep.subr.bf16.mxu1 %v1947_v47  ;;  %v1881_v18 = vsel %vm1829_vm10, %v1734_v59, %v1880_v43  ;;  %2957 = vmatprep.mubr.bf16.mxu1 %v1940_v44  ;;  %v1950_v50 = vpack.c.bf16 %v1937_v28, %v1936_v55  ;;  %v1951_v45 = vpack.c.bf16 %v1939_v61, %v1938_v8  ;;  %v3116_v38 = vmov 0.0   ;;  %v2265_v7 = vld [vmem:[%s4546_s14 + $0x10] sm:$0xff]  ;;  %v2654_v46 = vld [vmem:[%s4539_s7] ss:$0 sm:$0xff] }
 0x2a8   :  { %v1882_v53 = vsel %vm1831_vm11, %v1741_v31, %v1881_v18  ;;  %v3004_v12 = vpack.c.bf16 %v2075_v20, %v2074_v57  ;;  %2335 = vmatprep.mubr.f32.mxu0 %v3116_v38  ;;  %v3007_v52 = vpack.c.bf16 %v2077_v22, %v2076_v5  ;;  %v3010_v60 = vpack.c.bf16 %v2079_v9, %v2078_v40 }
 0x2a9   :  { %v1883_v15 = vsel %vm1833_vm12, %v1748_v49, %v1882_v53  ;;  %v3013_v54 = vpack.c.bf16 %v2081_v41, %v2080_v36  ;;  %v3027_v13 = vpack.c.bf16 %v2266_v30, %v2264_v58  ;;  %v3029_v62 = vpack.c.bf16 %v2265_v7, %v2263_v51  ;;  %v2164_v58 = vld [vmem:[%s4542_s10] sm:$0xff]  ;;  %v2165_v30 = vld [vmem:[%s4542_s10 + $0x8] sm:$0xff] }
 0x2aa   :  { %2948 = vmatpush3.bf16.msra.mxu1 %v1947_v47  ;;  %1898 = vrot.lane.b32.xlu1 %v1883_v15, %s3113_s22  ;;  %vm2255_vm0 = vcmask 123904  }
 0x2ab   :  { %2949 = vmatprep.subr.bf16.mxu1 %v1948_v17  ;;  %3028 = vmatprep.subr.bf16.mxu0 %v3027_v13 }
 0x2ac   :  { %3030 = vmatpush1.bf16.msra.mxu0 %v3029_v62  ;;  %v3016_v62 = vpack.c.bf16 %v2165_v30, %v2164_v58 }
 0x2ae   :  { %2950 = vmatpush3.bf16.msra.mxu1 %v1948_v17 }
 0x2af   :  { %2951 = vmatprep.subr.bf16.mxu1 %v1949_v34 }
 0x2b2   :  { %2952 = vmatpush3.bf16.msra.mxu1 %v1949_v34 }
 0x2b3   :  { %2953 = vmatprep.subr.bf16.mxu1 %v1950_v50 }
 0x2b6   :  { %2954 = vmatpush3.bf16.msra.mxu1 %v1950_v50 }
 0x2b7   :  { %2955 = vmatprep.subr.bf16.mxu1 %v1951_v45 }
 0x2ba   :  { %2956 = vmatpush3.bf16.msra.mxu1 %v1951_v45 }
 0x2bb   :  { %v1889_v48 = vpop.permute.xlu1 %1888  ;;  %3003 = vmatprep.subr.bf16.mxu1 %v3114_v1 }
 0x2bc   :  { %v1910_v32 = vsel %vm723_vm4, %v1751_v37, %v1889_v48 }
 0x2bd   :  { %1918 = vst [vmem:[%s4549_s17 + $0x10] sm:$0xff] %v1910_v32 }
 0x2d3   :  { %v1891_v25 = vpop.permute.xlu1 %1890 }
 0x2d4   :  { %v1911_v21 = vsel %vm723_vm4, %v1752_v33, %v1891_v25 }
 0x2d5   :  { %1919 = vst [vmem:[%s4549_s17 + $0x18] sm:$0xff] %v1911_v21  ;;  %v1941_v42 = vpack.c.bf16 %v1911_v21, %v1910_v32 }
 0x2d7   :  { %2958 = vmatmul.mubr.bf16.vlgmr.msra.gmra.mrb[64].mxu1 %v1941_v42 }
 0x2d8   :  { %3005 = vmatpush3.bf16.msra.mxu1 %v3004_v12 }
 0x2d9   :  { %3006 = vmatprep.subr.bf16.mxu1 %v3114_v1 }
 0x2dc   :  { %3008 = vmatpush3.bf16.msra.mxu1 %v3007_v52 }
 0x2dd   :  { %3009 = vmatprep.subr.bf16.mxu1 %v3114_v1 }
 0x2e0   :  { %3011 = vmatpush3.bf16.msra.mxu1 %v3010_v60 }
 0x2e1   :  { %3012 = vmatprep.subr.bf16.mxu1 %v3114_v1 }
 0x2e4   :  { %3014 = vmatpush3.bf16.msra.mxu1 %v3013_v54 }
 0x2e5   :  { %3015 = vmatprep.subr.bf16.mxu1 %v3114_v1 }
 0x2eb   :  { %v1893_v35 = vpop.permute.xlu0 %1892 }
 0x2ec   :  { %v1912_v0 = vsel %vm723_vm4, %v1753_v19, %v1893_v35 }
 0x2ed   :  { %1920 = vst [vmem:[%s4549_s17 + $0x20] sm:$0xff] %v1912_v0 }
 0x302   :  { %v1895_v4 = vpop.permute.xlu1 %1894 }
 0x303   :  { %v1913_v39 = vsel %vm723_vm4, %v1754_v16, %v1895_v4 }
 0x304   :  { %1921 = vst [vmem:[%s4549_s17 + $0x28] sm:$0xff] %v1913_v39  ;;  %v1942_v63 = vpack.c.bf16 %v1913_v39, %v1912_v0 }
 0x306   :  { %2961 = vmatprep.mubr.bf16.mxu1 %v1942_v63 }
 0x317   :  { %v1897_v26 = vpop.permute.xlu0 %1896 }
 0x318   :  { %v1914_v14 = vsel %vm723_vm4, %v1755_v3, %v1897_v26 }
 0x319   :  { %1922 = vst [vmem:[%s4549_s17 + $0x30] sm:$0xff] %v1914_v14 }
 0x31c   :  { %v1899_v23 = vpop.permute.xlu1 %1898 }
 0x31d   :  { %v1915_v24 = vsel %vm723_vm4, %v1756_v56, %v1899_v23 }
 0x31e   :  { %1923 = vst [vmem:[%s4549_s17 + $0x38] sm:$0xff] %v1915_v24  ;;  %v1943_v6 = vpack.c.bf16 %v1915_v24, %v1914_v14 }
 0x320   :  { %2962 = vmatmul.mubr.bf16.gmra.mrb[68].mxu1 %v1943_v6 }
 0x321   :  { %2981 = vmatprep.mubr.msk.f32.mxu1 %vm3115_vm5, %v3116_v38 }
 0x3aa   :  { %v2959_v43 = vpop.f32.mrb[64].mxu1 }
 0x3ab   :  { %v2002_v27 = vadd.f32 %v2959_v43, %v2654_v46  ;;  %v1993_v2 = vpop.f32.mrb[65].mxu1  ;;  %v2167_v43 = vld [vmem:[%s4542_s10 + $0x18] sm:$0xff] }
 0x3ac   :  { %v1994_v11 = vadd.f32 %v2654_v46, %v1993_v2  ;;  %v2960_v47 = vpop.f32.mrb[66].mxu1 }
 0x3ad   :  { %vm2026_vm7 = vcmp.ge.f32.partialorder %v2002_v27, 0.0  ;;  %v2034_v59 = vmul.f32 0.2, %v2002_v27  ;;  %v2005_v44 = vadd.f32 %v2960_v47, %v2654_v46  ;;  %v1996_v31 = vpop.f32.mrb[67].mxu1  ;;  %v2169_v47 = vld [vmem:[%s4542_s10 + $0x28] sm:$0xff] }
 0x3ae   :  { %vm2024_vm9 = vcmp.ge.f32.partialorder %v1994_v11, 0.0  ;;  %v2032_v17 = vmul.f32 0.2, %v1994_v11  ;;  %v1997_v49 = vadd.f32 %v2654_v46, %v1996_v31 }
 0x3af   :  { %v2042_v18 = vsel %vm2026_vm7, %v2002_v27, %v2034_v59  ;;  %vm2027_vm10 = vcmp.ge.f32.partialorder %v2005_v44, 0.0  ;;  %v2035_v29 = vmul.f32 0.2, %v2005_v44 }
 0x3b0   :  { %v2050_v10 = vsel %vm723_vm4, %v2042_v18, -inf  ;;  %v2040_v53 = vsel %vm2024_vm9, %v1994_v11, %v2032_v17  ;;  %vm2025_vm11 = vcmp.ge.f32.partialorder %v1997_v49, 0.0  ;;  %v2033_v15 = vmul.f32 0.2, %v1997_v49  ;;  %v2168_v11 = vld [vmem:[%s4542_s10 + $0x20] sm:$0xff]  ;;  %v2343_v17 = vld [vmem:[%s4547_s15 + $0x8] sm:$0xff] }
 0x3b1   :  { %v2048_v34 = vsel %vm723_vm4, %v2040_v53, -inf  ;;  %v2043_v55 = vsel %vm2027_vm10, %v2005_v44, %v2035_v29  ;;  %v3022_v59 = vpack.c.bf16 %v2169_v47, %v2168_v11  ;;  %v2170_v44 = vld [vmem:[%s4542_s10 + $0x30] sm:$0xff]  ;;  %v2342_v18 = vld [vmem:[%s4547_s15] sm:$0xff]  ;;  %v2349_v53 = vld [vmem:[%s4547_s15 + $0x38] sm:$0xff] }
 0x3b2   :  { %v2051_v28 = vmax.f32 %v2048_v34, %v2050_v10  ;;  %v2052_v50 = vsel %vm723_vm4, %v2043_v55, -inf  ;;  %v2041_v8 = vsel %vm2025_vm11, %v1997_v49, %v2033_v15  ;;  %v2345_v49 = vld [vmem:[%s4547_s15 + $0x18] sm:$0xff]  ;;  %v2347_v10 = vld [vmem:[%s4547_s15 + $0x28] sm:$0xff]  ;;  %v2346_v55 = vld [vmem:[%s4547_s15 + $0x20] sm:$0xff] }
 0x3b3   :  { %v2049_v61 = vsel %vm723_vm4, %v2041_v8, -inf  ;;  %v2360_v29 = vpack.c.bf16 %v2345_v49, %v2343_v17  ;;  %v2362_v34 = vpack.c.bf16 %v2349_v53, %v2347_v10  ;;  %v2353_v8 = vld [vmem:[%s4547_s15 + $0x58] sm:$0xff]  ;;  %v2476_v11 = vld [vmem:[%s4548_s16 + $0x20] sm:$0xff]  ;;  %v2477_v47 = vld [vmem:[%s4548_s16 + $0x28] sm:$0xff] }
 0x3b4   :  { %v2053_v45 = vmax.f32 %v2049_v61, %v2052_v50  ;;  %v2351_v50 = vld [vmem:[%s4547_s15 + $0x48] sm:$0xff]  ;;  %v3117_v61 = vmov 0   ;;  %v2478_v17 = vld [vmem:[%s4548_s16 + $0x30] sm:$0xff]  ;;  %v2479_v49 = vld [vmem:[%s4548_s16 + $0x38] sm:$0xff] }
 0x3b5   :  { %v2480_v10 = vld [vmem:[%s4548_s16 + $0x40] sm:$0xff]  ;;  %v2481_v53 = vld [vmem:[%s4548_s16 + $0x48] sm:$0xff] }
 0x3b6   :  { %v2054_v37 = vmax.f32 %v2051_v28, %v2053_v45  ;;  %v2348_v28 = vld [vmem:[%s4547_s15 + $0x30] sm:$0xff] }
 0x3b7   :  { %v2361_v45 = vpack.c.bf16 %v2348_v28, %v2346_v55  ;;  %v2498_v28 = vld [vmem:[%s4548_s16 + $0xd0] sm:$0xff] }
 0x3b8   :  { %v2055_v0 = vrot.slane %v2054_v37, 4 }
 0x3ba   :  { %v2056_v24 = vmax.f32 %v2054_v37, %v2055_v0  ;;  %v2350_v37 = vld [vmem:[%s4547_s15 + $0x40] sm:$0xff] }
 0x3bc   :  { %v2057_v22 = vrot.slane %v2056_v24, 2 }
 0x3be   :  { %v2058_v9 = vmax.f32 %v2056_v24, %v2057_v22 }
 0x3c0   :  { %v2059_v54 = vrot.slane %v2058_v9, 1 }
 0x3c2   :  { %v2060_v13 = vmax.f32 %v2058_v9, %v2059_v54  ;;  %v2472_v9 = vld [vmem:[%s4548_s16] sm:$0xff]  ;;  %v2491_v54 = vld [vmem:[%s4548_s16 + $0x98] sm:$0xff] }
 0x3f3   :  { %v2963_v48 = vpop.f32.mrb[68].mxu1 }
 0x3f4   :  { %v2018_v32 = vadd.f32 %v2963_v48, %v2654_v46  ;;  %v2009_v33 = vpop.f32.mrb[69].mxu1  ;;  %v2364_v48 = vpack.c.bf16 %v2353_v8, %v2351_v50  ;;  %v2499_v50 = vld [vmem:[%s4548_s16 + $0xd8] sm:$0xff]  ;;  %v2482_v8 = vld [vmem:[%s4548_s16 + $0x50] sm:$0xff] }
 0x3f5   :  { %v2010_v25 = vadd.f32 %v2654_v46, %v2009_v33  ;;  %v2964_v21 = vpop.f32.mrb[70].mxu1  ;;  %v2259_v33 = vld [vmem:[%s4545_s13] sm:$0xff] }
 0x3f6   :  { %vm2030_vm12 = vcmp.ge.f32.partialorder %v2018_v32, 0.0  ;;  %v2038_v42 = vmul.f32 0.2, %v2018_v32  ;;  %v2021_v19 = vadd.f32 %v2964_v21, %v2654_v46  ;;  %v2012_v35 = vpop.f32.mrb[71].mxu1  ;;  %v2355_v21 = vld [vmem:[%s4547_s15 + $0x68] sm:$0xff] }
 0x3f7   :  { %vm2028_vm13 = vcmp.ge.f32.partialorder %v2010_v25, 0.0  ;;  %v2036_v16 = vmul.f32 0.2, %v2010_v25  ;;  %v2013_v4 = vadd.f32 %v2654_v46, %v2012_v35  ;;  %v2166_v46 = vld [vmem:[%s4542_s10 + $0x10] sm:$0xff] }
 0x3f8   :  { %v2046_v39 = vsel %vm2030_vm12, %v2018_v32, %v2038_v42  ;;  %vm2031_vm14 = vcmp.ge.f32.partialorder %v2021_v19, 0.0  ;;  %v2039_v63 = vmul.f32 0.2, %v2021_v19  ;;  %v3019_v2 = vpack.c.bf16 %v2167_v43, %v2166_v46  ;;  %v2352_v32 = vld [vmem:[%s4547_s15 + $0x50] sm:$0xff]  ;;  %v2357_v42 = vld [vmem:[%s4547_s15 + $0x78] sm:$0xff]  ;;  %v2492_v46 = vld [vmem:[%s4548_s16 + $0xa0] sm:$0xff] }
 0x3f9   :  { %v2063_v3 = vsel %vm723_vm4, %v2046_v39, -inf  ;;  %v2044_v26 = vsel %vm2028_vm13, %v2010_v25, %v2036_v16  ;;  %vm2029_vm15 = vcmp.ge.f32.partialorder %v2013_v4, 0.0  ;;  %v2037_v14 = vmul.f32 0.2, %v2013_v4  ;;  %v2488_v25 = vld [vmem:[%s4548_s16 + $0x80] sm:$0xff]  ;;  %v2493_v43 = vld [vmem:[%s4548_s16 + $0xa8] sm:$0xff] }
 0x3fa   :  { %v2061_v56 = vsel %vm723_vm4, %v2044_v26, -inf  ;;  %v2047_v23 = vsel %vm2031_vm14, %v2021_v19, %v2039_v63  ;;  %v2489_v19 = vld [vmem:[%s4548_s16 + $0x88] sm:$0xff]  ;;  %v2363_v0 = vpack.c.bf16 %v2352_v32, %v2350_v37  ;;  %v2261_v16 = vmul.f32 0.2, %v2259_v33  ;;  %v2354_v39 = vld [vmem:[%s4547_s15 + $0x60] sm:$0xff]  ;;  %v2356_v63 = vld [vmem:[%s4547_s15 + $0x70] sm:$0xff] }
 0x3fb   :  { %v2064_v6 = vmax.f32 %v2061_v56, %v2063_v3  ;;  %v2065_v57 = vsel %vm723_vm4, %v2047_v23, -inf  ;;  %v2045_v20 = vsel %vm2029_vm15, %v2013_v4, %v2037_v14  ;;  %v2514_v35 = vpack.c.bf16 %v2489_v19, %v2488_v25  ;;  %v2655_v56 = vld [vmem:[%s4541_s9] ss:$0 sm:$0xff]  ;;  %v2483_v37 = vld [vmem:[%s4548_s16 + $0x58] sm:$0xff]  ;;  %v2501_v32 = vld [vmem:[%s4548_s16 + $0xe8] sm:$0xff] }
 0x3fc   :  { %v2062_v5 = vsel %vm723_vm4, %v2045_v20, -inf  ;;  %v2366_v4 = vpack.c.bf16 %v2357_v42, %v2355_v21  ;;  %v2365_v3 = vpack.c.bf16 %v2356_v63, %v2354_v39  ;;  %v2511_v25 = vpack.c.bf16 %v2483_v37, %v2482_v8  ;;  %v2484_v42 = vld [vmem:[%s4548_s16 + $0x60] sm:$0xff]  ;;  %v2485_v19 = vld [vmem:[%s4548_s16 + $0x68] sm:$0xff]  ;;  %v2486_v63 = vld [vmem:[%s4548_s16 + $0x70] sm:$0xff] }
 0x3fd   :  { %v2066_v12 = vmax.f32 %v2062_v5, %v2065_v57  ;;  %2767 = vmatprep.subr.bf16.mxu0 %v2514_v35  ;;  %v2657_v57 = vld [vmem:[%s4543_s11] ss:$0 sm:$0xff]  ;;  %v2502_v35 = vld [vmem:[%s4548_s16 + $0xf0] sm:$0xff] }
 0x3ff   :  { %v2067_v52 = vmax.f32 %v2064_v6, %v2066_v12 }
 0x401   :  { %v2068_v40 = vrot.slane %v2067_v52, 4 }
 0x403   :  { %v2069_v60 = vmax.f32 %v2067_v52, %v2068_v40  ;;  %v2249_v40 = vld [vmem:[%s4544_s12] sm:$0x3] }
 0x405   :  { %v2070_v36 = vrot.slane %v2069_v60, 2 }
 0x407   :  { %v2071_v41 = vmax.f32 %v2069_v60, %v2070_v36  ;;  %v2473_v60 = vld [vmem:[%s4548_s16 + $0x8] sm:$0xff] }
 0x408   :  { %v2506_v30 = vpack.c.bf16 %v2473_v60, %v2472_v9 }
 0x409   :  { %v2072_v51 = vrot.slane %v2071_v41, 1 }
 0x40b   :  { %v2073_v7 = vmax.f32 %v2071_v41, %v2072_v51  ;;  %v2490_v41 = vld [vmem:[%s4548_s16 + $0x90] sm:$0xff] }
 0x40d   :  { %v2091_v27 = vsel %vm1821_vm3, %v2073_v7, %v2060_v13  ;;  %vm2260_vm3 = vcmp.ge.f32.partialorder %v2259_v33, 0.0  ;;  %v2515_v13 = vpack.c.bf16 %v2491_v54, %v2490_v41  ;;  %v2474_v7 = vld [vmem:[%s4548_s16 + $0x10] sm:$0xff] }
 0x40e   :  { %2982 = vmatmul.mubr.msk.f32.vlgmr.msra.gmra.mrb[72].mxu1 %vm723_vm4, %v2091_v27  ;;  %v2262_v26 = vsel %vm2260_vm3, %v2259_v33, %v2261_v16  ;;  %v2503_v16 = vld [vmem:[%s4548_s16 + $0xf8] sm:$0xff] }
 0x40f   :  { %3017 = vmatpush3.bf16.msra.mxu1 %v3016_v62  ;;  %3000 = vmatprep.mubr.msk.f32.mxu1 %vm3115_vm5, %v3116_v38  ;;  %v2171_v38 = vld [vmem:[%s4542_s10 + $0x38] sm:$0xff]  ;;  %v2358_v14 = vpack.c.bf16 %v2262_v26, %v2262_v26  ;;  %v2521_v39 = vpack.c.bf16 %v2503_v16, %v2502_v35  ;;  %s3120_s10 = smov [#allocation2]  }
 0x410   :  { %3018 = vmatprep.subr.bf16.mxu1 %v3114_v1  ;;  %v3025_v31 = vpack.c.bf16 %v2171_v38, %v2170_v44  ;;  %v2475_v62 = vld [vmem:[%s4548_s16 + $0x18] sm:$0xff]  ;;  %v2494_v44 = vld [vmem:[%s4548_s16 + $0xb0] sm:$0xff]  ;;  %s2581_s22 = sshll.u32 %s3120_s10, 4  ;;  %s2582_s22 = int_to_ptr.vmem [resolvable:$true] %s2581_s22 }
 0x411   :  { %v2495_v38 = vld [vmem:[%s4548_s16 + $0xb8] sm:$0xff] }
 0x413   :  { %3020 = vmatpush3.bf16.msra.mxu1 %v3019_v2  ;;  %v2516_v2 = vpack.c.bf16 %v2493_v43, %v2492_v46 }
 0x414   :  { %3021 = vmatprep.subr.bf16.mxu1 %v3114_v1 }
 0x417   :  { %3023 = vmatpush3.bf16.msra.mxu1 %v3022_v59  ;;  %v2508_v59 = vpack.c.bf16 %v2477_v47, %v2476_v11 }
 0x418   :  { %3024 = vmatprep.subr.bf16.mxu1 %v3114_v1  ;;  %v2344_v1 = vld [vmem:[%s4547_s15 + $0x10] sm:$0xff] }
 0x419   :  { %v2359_v15 = vpack.c.bf16 %v2344_v1, %v2342_v18  ;;  %v2496_v18 = vld [vmem:[%s4548_s16 + $0xc0] sm:$0xff]  ;;  %v2497_v1 = vld [vmem:[%s4548_s16 + $0xc8] sm:$0xff] }
 0x41b   :  { %3026 = vmatpush3.bf16.msra.mxu1 %v3025_v31  ;;  %v2517_v31 = vpack.c.bf16 %v2495_v38, %v2494_v44 }
 0x41c   :  { %2370 = vmatprep.subr.bf16.mxu1 %v2360_v29  ;;  %v2509_v29 = vpack.c.bf16 %v2479_v49, %v2478_v17 }
 0x41e   :  { %3001 = vmatmul.mubr.msk.f32.vlgmr.msra.gmra.mrb[74].mxu1 %vm723_vm4, %v2091_v27  ;;  %v2507_v27 = vpack.c.bf16 %v2475_v62, %v2474_v7 }
 0x41f   :  { %2402 = vmatprep.mubr.bf16.mxu1 %v3117_v61  ;;  %2371 = vmatpush1.bf16.msra.mxu1 %v2359_v15  ;;  %v2518_v15 = vpack.c.bf16 %v2497_v1, %v2496_v18 }
 0x420   :  { %2372 = vmatprep.subr.bf16.mxu1 %v2362_v34  ;;  %v2510_v34 = vpack.c.bf16 %v2481_v53, %v2480_v10 }
 0x423   :  { %2373 = vmatpush1.bf16.msra.mxu1 %v2361_v45  ;;  %v2519_v45 = vpack.c.bf16 %v2499_v50, %v2498_v28 }
 0x424   :  { %2374 = vmatprep.subr.bf16.mxu1 %v2364_v48  ;;  %v2500_v48 = vld [vmem:[%s4548_s16 + $0xe0] sm:$0xff] }
 0x425   :  { %v2520_v21 = vpack.c.bf16 %v2501_v32, %v2500_v48 }
 0x427   :  { %2375 = vmatpush1.bf16.msra.mxu1 %v2363_v0 }
 0x428   :  { %2376 = vmatprep.subr.bf16.mxu1 %v2366_v4  ;;  %v2512_v4 = vpack.c.bf16 %v2485_v19, %v2484_v42 }
 0x42b   :  { %2377 = vmatpush1.bf16.msra.mxu1 %v2365_v3  ;;  %v2487_v3 = vld [vmem:[%s4548_s16 + $0x78] sm:$0xff]  ;;  %s3119_s16 = smov [#allocation4]  }
 0x42c   :  { %v2513_v26 = vpack.c.bf16 %v2487_v3, %v2486_v63  ;;  %s2591_s12 = sshll.u32 %s3119_s16, 4  ;;  %s2592_s12 = int_to_ptr.vmem [resolvable:$true] %s2591_s12 }
 0x42d   :  { %s3043_s25 = scalar_lea.vmem %s2592_s12, 32  ;;  %p3048_p1 = scmp.lt.s32.totalorder %s2592_s12, %s2592_s12 }
 0x42e   :  { %2660 = vmatmul.mubr.msk.bf16.vlgmr.msra.gmra.mrb[76].mxu1 %vm723_vm4, %v2358_v14  ;;  %vm2267_vm4 = vcmask 130048   ;;  %v3118_v14 = vmov 1966171168   ;;  %p3044_p0 = scmp.ne.s32.totalorder %s2592_s12, %s3043_s25  ;;  %p3049_p2 = scmp.lt.s32.totalorder %s3043_s25, %s3043_s25 }
 0x430   :  { %p3050_p3 = por %p3049_p2, %p3048_p1 }
 0x432   :  { %p3051_p4 = pnand %p3050_p3, %p3044_p0 }
 0x4e1   :  { %v2160_v23 = vpop.f32.mrb[72].mxu1 }
 0x4e2   :  { %v2161_v24 = vadd.f32 %v2655_v56, %v2160_v23  ;;  %v2983_v6 = vpop.f32.mrb[73].mxu1  ;;  %v2415_v56 = vunpack.c.l.s4 %v3118_v14  ;;  %v2417_v23 = vlaneseq }
 0x4e4   :  { %2256 = vst.msk [vmem:[#allocation2] sm:$0x3] %vm2255_vm0, %v2161_v24  ;;  %v2418_v6 = vshrl.u32 %v2417_v23, 7 }
 0x4f1   :  { %v2245_v20 = vpop.f32.mrb[74].mxu1 }
 0x4f2   :  { %v2246_v5 = vadd.f32 %v2657_v57, %v2245_v20  ;;  %v3002_v12 = vpop.f32.mrb[75].mxu1 }
 0x4f4   :  { %v2250_v22 = vmul.f32 0.5, %v2246_v5  ;;  %2257 = vst.msk [vmem:[#allocation4] sm:$0x3] %vm2255_vm0, %v2246_v5 }
 0x4f6   :  { %v2251_v52 = vmul.f32 1.442695, %v2250_v22 }
 0x4f8   :  { %3040 = vpow2.f32 %v2251_v52  ;;  %v2438_v52 = vsub.s32 0, %v2418_v6 }
 0x501   :  { %v2404_v55 = vpop.f32.mrb[76].mxu1 }
 0x502   :  { %v3041_v36 = vpop.eup %3040  ;;  %v2406_v61 = vpop.f32.mrb[77].mxu1 }
 0x503   :  { %v2253_v58 = vmul.f32 %v3041_v36, %v2249_v40  ;;  %v2408_v33 = vpop.f32.mrb[78].mxu1  ;;  %v2442_v40 = vsub.s32 1, %v2418_v6 }
 0x504   :  { %v2409_v0 = vpop.f32.mrb[79].mxu1 }
 0x505   :  { %v2254_v51 = vadd.f32 %v2253_v58, %v2161_v24  ;;  %v2416_v24 = vunpack.c.0.s8 %v2415_v56 }
 0x507   :  { %2659 = vmatmul.mubr.msk.f32.vlgmr.msra.gmra.mrb[64].mxu0 %vm2267_vm4, %v2254_v51  ;;  %2258 = vst.msk [vmem:[#allocation6] sm:$0x3] %vm2255_vm0, %v2254_v51  ;;  %v2419_v20 = vsub.s32 %v2416_v24, %v2418_v6 }
 0x508   :  { %2768 = vmatpush3.bf16.msra.mxu0 %v2506_v30 }
 0x509   :  { %2769 = vmatprep.subr.bf16.mxu0 %v2515_v13 }
 0x50c   :  { %2770 = vmatpush3.bf16.msra.mxu0 %v2507_v27 }
 0x50d   :  { %2771 = vmatprep.subr.bf16.mxu0 %v2516_v2 }
 0x510   :  { %2772 = vmatpush3.bf16.msra.mxu0 %v2508_v59 }
 0x511   :  { %2773 = vmatprep.subr.bf16.mxu0 %v2517_v31 }
 0x514   :  { %2774 = vmatpush3.bf16.msra.mxu0 %v2509_v29 }
 0x515   :  { %2775 = vmatprep.subr.bf16.mxu0 %v2518_v15 }
 0x518   :  { %2776 = vmatpush3.bf16.msra.mxu0 %v2510_v34 }
 0x519   :  { %2777 = vmatprep.subr.bf16.mxu0 %v2519_v45 }
 0x51c   :  { %2778 = vmatpush3.bf16.msra.mxu0 %v2511_v25 }
 0x51d   :  { %2779 = vmatprep.subr.bf16.mxu0 %v2520_v21 }
 0x520   :  { %2780 = vmatpush3.bf16.msra.mxu0 %v2512_v4 }
 0x521   :  { %2781 = vmatprep.subr.bf16.mxu0 %v2521_v39 }
 0x524   :  { %2782 = vmatpush3.bf16.msra.mxu0 %v2513_v26 }
 0x5da   :  { %v2337_v57 = vpop.f32.mrb[64].mxu0 }
 0x5db   :  { %v2339_v5 = vpop.f32.mrb[65].mxu0 }
 0x5dc   :  { %v2413_v12 = vcombine.low %v2337_v57, %v2339_v5 }
 0x5de   :  { %v2420_v22 = vrot.slane %v2413_v12, %v2419_v20 }
 0x5e0   :  { %v2421_v9 = vcombine.high %v2420_v22, %v2420_v22  ;;  %v2428_v60 = vrot.slane %v2420_v22, %v2419_v20 }
 0x5e2   :  { %v2435_v36 = vrot.slane %v2421_v9, %v2419_v20  ;;  %v2439_v41 = vrot.slane %v2428_v60, %v2438_v52  ;;  %v2443_v54 = vrot.slane %v2428_v60, %v2442_v40 }
 0x5e4   :  { %v2447_v58 = vrot.slane %v2435_v36, %v2438_v52  ;;  %v2456_v30 = vadd.f32 %v2439_v41, %v2404_v55  ;;  %v2451_v51 = vrot.slane %v2435_v36, %v2442_v40  ;;  %v2457_v13 = vadd.f32 %v2443_v54, %v2406_v61 }
 0x5e6   :  { %v2458_v7 = vadd.f32 %v2447_v58, %v2404_v55  ;;  %v2464_v62 = vmul.f32 0.2, %v2456_v30  ;;  %v2459_v46 = vadd.f32 %v2451_v51, %v2406_v61  ;;  %vm2460_vm1 = vcmp.ge.f32.partialorder %v2456_v30, 0.0 }
 0x5e7   :  { %v2465_v43 = vmul.f32 0.2, %v2457_v13  ;;  %vm2461_vm6 = vcmp.ge.f32.partialorder %v2457_v13, 0.0 }
 0x5e8   :  { %vm2462_vm2 = vcmp.ge.f32.partialorder %v2458_v7, 0.0  ;;  %v2466_v27 = vmul.f32 0.2, %v2458_v7  ;;  %vm2463_vm8 = vcmp.ge.f32.partialorder %v2459_v46, 0.0  ;;  %v2467_v2 = vmul.f32 0.2, %v2459_v46 }
 0x5e9   :  { %v2468_v11 = vsel %vm2460_vm1, %v2456_v30, %v2464_v62  ;;  %v2469_v44 = vsel %vm2461_vm6, %v2457_v13, %v2465_v43 }
 0x5ea   :  { %v2470_v47 = vsel %vm2462_vm2, %v2458_v7, %v2466_v27  ;;  %v2471_v38 = vsel %vm2463_vm8, %v2459_v46, %v2467_v2 }
 0x5eb   :  { %v2504_v59 = vpack.c.bf16 %v2470_v47, %v2468_v11  ;;  %v2505_v31 = vpack.c.bf16 %v2471_v38, %v2469_v44 }
 0x5ed   :  { %2554 = vmatprep.mubr.bf16.mxu0 %v2505_v31 }
 0x5ee   :  { %2555 = vmatmul.mubr.bf16.vlgmr.msra.gmra.mrb[68].mxu0 %v2504_v59 }
 0x5ef   :  { %3054 = shalt.err (!%p3051_p4)
}
 0x5f0   :  { %s3055_s28 = scalar_lea.hbm %s4552_s20, 32 }
 0x5f1   :  { %p3056_p5 = scmp.ne.s32.totalorder %s4552_s20, %s3055_s28  ;;  %p3059_p6 = scmp.lt.u32.totalorder %s3055_s28, %s4552_s20 }
 0x5f3   :  { %p3061_p7 = pnand %p3059_p6, %p3056_p5 }
 0x5f5   :  { %3064 = shalt.err (!%p3061_p7)
}
 0x5f6   :  { %2594 = dma.vmem_to_hbm [thread:$0]  %s2592_s12, 32, %s4552_s20, [#allocation5]  }
 0x5f7   :  { %s3065_s2 = scalar_lea.vmem %s2582_s22, 32  ;;  %p3070_p9 = scmp.lt.s32.totalorder %s2582_s22, %s2582_s22 }
 0x5f8   :  { %p3066_p8 = scmp.ne.s32.totalorder %s2582_s22, %s3065_s2  ;;  %p3071_p10 = scmp.lt.s32.totalorder %s3065_s2, %s3065_s2 }
 0x5fa   :  { %p3072_p11 = por %p3071_p10, %p3070_p9 }
 0x5fc   :  { %p3073_p12 = pnand %p3072_p11, %p3066_p8 }
 0x5fe   :  { %3076 = shalt.err (!%p3073_p12)
}
 0x5ff   :  { %s3077_s23 = scalar_lea.hbm %s4551_s19, 32 }
 0x600   :  { %p3078_p13 = scmp.ne.s32.totalorder %s4551_s19, %s3077_s23  ;;  %p3081_p0 = scmp.lt.u32.totalorder %s3077_s23, %s4551_s19 }
 0x602   :  { %p3083_p1 = pnand %p3081_p0, %p3078_p13 }
 0x604   :  { %3086 = shalt.err (!%p3083_p1)
}
 0x605   :  { %2584 = dma.vmem_to_hbm [thread:$0]  %s2582_s22, 32, %s4551_s19, [#allocation3]  }
 0x606   :  { %s3121_s11 = smov [#allocation6]  }
 0x607   :  { %s2601_s17 = sshll.u32 %s3121_s11, 4  ;;  %s2602_s17 = int_to_ptr.vmem [resolvable:$true] %s2601_s17 }
 0x608   :  { %s3087_s7 = scalar_lea.vmem %s2602_s17, 32  ;;  %p3092_p3 = scmp.lt.s32.totalorder %s2602_s17, %s2602_s17 }
 0x609   :  { %p3088_p2 = scmp.ne.s32.totalorder %s2602_s17, %s3087_s7  ;;  %p3093_p4 = scmp.lt.s32.totalorder %s3087_s7, %s3087_s7 }
 0x60b   :  { %p3094_p5 = por %p3093_p4, %p3092_p3 }
 0x60d   :  { %p3095_p6 = pnand %p3094_p5, %p3088_p2 }
 0x60f   :  { %3098 = shalt.err (!%p3095_p6)
}
 0x610   :  { %s3099_s12 = scalar_lea.hbm %s4553_s21, 32 }
 0x611   :  { %p3100_p7 = scmp.ne.s32.totalorder %s4553_s21, %s3099_s12  ;;  %p3103_p8 = scmp.lt.u32.totalorder %s3099_s12, %s4553_s21 }
 0x613   :  { %p3105_p9 = pnand %p3103_p8, %p3100_p7 }
 0x615   :  { %3108 = shalt.err (!%p3105_p9)
}
 0x616   :  { %2604 = dma.vmem_to_hbm [thread:$0]  %s2602_s17, 32, %s4553_s21, [#allocation5]  }
 0x6c1   :  { %v2783_v17 = vpop.f32.mrb[68].mxu0 }
 0x6c2   :  { %v2784_v49 = vpop.f32.mrb[69].mxu0 }
 0x6c3   :  { %v2785_v18 = vadd.f32 %v2784_v49, %v2783_v17  ;;  %v2786_v29 = vpop.f32.mrb[70].mxu0 }
 0x6c4   :  { %v2787_v1 = vpop.f32.mrb[71].mxu0 }
 0x6c5   :  { %vm2563_vm5 = vcmp.ge.f32.partialorder %v2785_v18, 0.0  ;;  %v2565_v10 = vmul.f32 0.2, %v2785_v18  ;;  %v2788_v53 = vadd.f32 %v2787_v1, %v2786_v29 }
 0x6c7   :  { %v2567_v15 = vsel %vm2563_vm5, %v2785_v18, %v2565_v10  ;;  %vm2564_vm7 = vcmp.ge.f32.partialorder %v2788_v53, 0.0  ;;  %v2566_v34 = vmul.f32 0.2, %v2788_v53 }
 0x6c8   :  { %2569 = vst [vmem:[%s4550_s18] sm:$0xff] %v2567_v15 }
 0x6c9   :  { %v2568_v55 = vsel %vm2564_vm7, %v2788_v53, %v2566_v34 }
 0x6ca   :  { %2570 = vst [vmem:[%s4550_s18 + $0x8] sm:$0xff] %v2568_v55 }
 0x6cb   :  { %3109 = dma.done.wait [#allocation3], 32  }
 0x6cc   :  { %3110 = vsyncadd [#allocation3], 4294967264 }
 0x6cd   :  { %3111 = dma.done.wait [#allocation5], 64  }
 0x6ce   :  { %3112 = vsyncadd [#allocation5], 4294967232 }
 0x6cf   :  { %2618 = vsyncpa [#allocation3], 1 }
 0x6d0   :  { %2619 = vsyncpa [#allocation5], 1 }

// kernel: network_whole_forward.7
= control target key start
LH: loop header
LB: loop body
LE: loop exit
PB: predicated region body
PF: predicated region fallthrough
CT: control target
= control target key end

     0   :  { %v1592_v0 = vmov 0.0   ;;  %vm1593_vm0 = vmmov 0   ;;  %vm417_vm2 = vcmask 261120   ;;  %vm146_vm4 = vcmask 23552   ;;  %s2271_s7 = inlined_call_operand.vmem [shape: f32[128,4], index: 7, kind: input, shape index: {}]   ;;  %s2272_s5 = inlined_call_operand.vmem [shape: f32[128,3], index: 5, kind: input, shape index: {}]   ;;  %s2273_s1 = inlined_call_operand.vmem [shape: f32[16,128], index: 1, kind: input, shape index: {}]   ;;  %s2274_s11 = inlined_call_operand.vmem [shape: f32[128,32], index: 11, kind: input, shape index: {}]   ;;  %s2275_s9 = inlined_call_operand.vmem [shape: f32[128,3], index: 9, kind: input, shape index: {}]   ;;  %s2276_s13 = inlined_call_operand.vmem [shape: f32[32,1], index: 13, kind: input, shape index: {}]   ;;  %s2277_s3 = inlined_call_operand.vmem [shape: f32[128,32], index: 3, kind: input, shape index: {}]   ;;  %s2278_s0 = inlined_call_operand.vmem [shape: f32[64,128], index: 0, kind: input, shape index: {}]   ;;  %s2279_s14 = inlined_call_operand.<no memory space> [shape: f32[1,1], index: 14, kind: input, shape index: {}]   ;;  %s2280_s12 = inlined_call_operand.vmem [shape: f32[1,32], index: 12, kind: input, shape index: {}]   ;;  %s2281_s4 = inlined_call_operand.vmem [shape: f32[128,32], index: 4, kind: input, shape index: {}]   ;;  %s2282_s6 = inlined_call_operand.vmem [shape: f32[1,3], index: 6, kind: input, shape index: {}]   ;;  %s2283_s10 = inlined_call_operand.vmem [shape: f32[1,3], index: 10, kind: input, shape index: {}]   ;;  %s2284_s15 = inlined_call_operand.vmem [shape: f32[16,3], index: 15, kind: output, shape index: {0}]   ;;  %s2285_s17 = inlined_call_operand.vmem [shape: f32[16,3], index: 17, kind: output, shape index: {2}]   ;;  %s2286_s18 = inlined_call_operand.vmem [shape: f32[16,1], index: 18, kind: output, shape index: {3}]   ;;  %s2287_s2 = inlined_call_operand.vmem [shape: f32[2,32,4], index: 2, kind: input, shape index: {}]   ;;  %s2288_s19 = inlined_call_operand.vmem [shape: f32[2,32,8], index: 19, kind: output, shape index: {4}]   ;;  %s2289_s8 = inlined_call_operand.vmem [shape: f32[1,4], index: 8, kind: input, shape index: {}]   ;;  %s2290_s16 = inlined_call_operand.vmem [shape: f32[16,4], index: 16, kind: output, shape index: {1}]   ;;  %s2291_s20 = inlined_call_operand.vmem [shape: f32[2,8,3], index: 20, kind: output, shape index: {5}]  }
   0x1   :  { %2297 = sst [smem:[#allocation3_spill]] %s2271_s7  ;;  %1357 = vmatprep.subr.bf16.mxu1 %v1592_v0  ;;  %1373 = vmatprep.mubr.msk.bf16.mxu1 %vm1593_vm0, %v1592_v0  ;;  %vm499_vm5 = vcmask 7168   ;;  %vm876_vm6 = vcmask 64512   ;;  %vm223_vm7 = vcmask 31744  }
   0x2   :  { %2298 = sst [smem:[#allocation4_spill]] %s2272_s5  ;;  %s2302_s23 = sld [smem:[#allocation3_spill]]  ;;  %1337 = vmatprep.subr.bf16.mxu0 %v1592_v0  ;;  %1353 = vmatprep.mubr.msk.bf16.mxu0 %vm1593_vm0, %v1592_v0 }
   0x3   :  { %2299 = sst [smem:[#allocation5_spill]] %s2273_s1  ;;  %s2303_s26 = sld [smem:[#allocation4_spill]] }
   0x4   :  { %2300 = sst [smem:[#allocation6_spill]] %s2274_s11  ;;  %s2304_s22 = sld [smem:[#allocation5_spill]] }
   0x5   :  { %2301 = sst [smem:[#allocation7_spill]] %s2275_s9  ;;  %s2305_s29 = sld [smem:[#allocation6_spill]] }
   0x6   :  { %s2306_s1 = sld [smem:[#allocation7_spill]] }
   0x8   :  { %v149_v1 = vld [vmem:[%s2302_s23] sm:$0xff]  ;;  %v150_v2 = vld [vmem:[%s2302_s23 + $0x8] sm:$0xff]  ;;  %v151_v3 = vld [vmem:[%s2302_s23 + $0x10] sm:$0xff] }
   0x9   :  { %v165_v4 = vpack.c.bf16 %v150_v2, %v149_v1  ;;  %v152_v5 = vld [vmem:[%s2302_s23 + $0x18] sm:$0xff]  ;;  %v153_v7 = vld [vmem:[%s2302_s23 + $0x20] sm:$0xff]  ;;  %v154_v8 = vld [vmem:[%s2302_s23 + $0x28] sm:$0xff] }
   0xa   :  { %v166_v6 = vpack.c.bf16 %v152_v5, %v151_v3  ;;  %v167_v9 = vpack.c.bf16 %v154_v8, %v153_v7  ;;  %v155_v10 = vld [vmem:[%s2302_s23 + $0x30] sm:$0xff]  ;;  %v156_v11 = vld [vmem:[%s2302_s23 + $0x38] sm:$0xff]  ;;  %v157_v13 = vld [vmem:[%s2302_s23 + $0x40] sm:$0xff] }
   0xb   :  { %1358 = vmatpush3.bf16.msra.mxu1 %v165_v4  ;;  %v168_v12 = vpack.c.bf16 %v156_v11, %v155_v10  ;;  %v61_v14 = vld [vmem:[%s2303_s26] sm:$0xff]  ;;  %v62_v15 = vld [vmem:[%s2303_s26 + $0x8] sm:$0xff]  ;;  %v63_v18 = vld [vmem:[%s2303_s26 + $0x10] sm:$0xff] }
   0xc   :  { %1359 = vmatprep.subr.bf16.mxu1 %v1592_v0  ;;  %v158_v16 = vld [vmem:[%s2302_s23 + $0x48] sm:$0xff]  ;;  %v78_v17 = vpack.c.bf16 %v62_v15, %v61_v14  ;;  %v64_v19 = vld [vmem:[%s2303_s26 + $0x18] sm:$0xff]  ;;  %v65_v22 = vld [vmem:[%s2303_s26 + $0x20] sm:$0xff] }
   0xd   :  { %v79_v20 = vpack.c.bf16 %v64_v19, %v63_v18  ;;  %v169_v21 = vpack.c.bf16 %v158_v16, %v157_v13  ;;  %v66_v23 = vld [vmem:[%s2303_s26 + $0x28] sm:$0xff]  ;;  %v159_v24 = vld [vmem:[%s2302_s23 + $0x50] sm:$0xff]  ;;  %v160_v25 = vld [vmem:[%s2302_s23 + $0x58] sm:$0xff] }
   0xe   :  { %1338 = vmatpush3.bf16.msra.mxu0 %v78_v17  ;;  %v80_v26 = vpack.c.bf16 %v66_v23, %v65_v22  ;;  %v170_v27 = vpack.c.bf16 %v160_v25, %v159_v24  ;;  %v67_v28 = vld [vmem:[%s2303_s26 + $0x30] sm:$0xff]  ;;  %v68_v29 = vld [vmem:[%s2303_s26 + $0x38] sm:$0xff]  ;;  %v161_v30 = vld [vmem:[%s2302_s23 + $0x60] sm:$0xff] }
   0xf   :  { %1360 = vmatpush3.bf16.msra.mxu1 %v166_v6  ;;  %1339 = vmatprep.subr.bf16.mxu0 %v1592_v0  ;;  %v162_v31 = vld [vmem:[%s2302_s23 + $0x68] sm:$0xff]  ;;  %v81_v32 = vpack.c.bf16 %v68_v29, %v67_v28  ;;  %v69_v34 = vld [vmem:[%s2303_s26 + $0x40] sm:$0xff]  ;;  %v163_v36 = vld [vmem:[%s2302_s23 + $0x70] sm:$0xff] }
  0x10   :  { %1361 = vmatprep.subr.bf16.mxu1 %v1592_v0  ;;  %v171_v33 = vpack.c.bf16 %v162_v31, %v161_v30  ;;  %v70_v35 = vld [vmem:[%s2303_s26 + $0x48] sm:$0xff]  ;;  %v164_v37 = vld [vmem:[%s2302_s23 + $0x78] sm:$0xff]  ;;  %v59_v38 = vld [vmem:[%s2304_s22] sm:$0xff] }
  0x11   :  { %v82_v39 = vpack.c.bf16 %v70_v35, %v69_v34  ;;  %v172_v40 = vpack.c.bf16 %v164_v37, %v163_v36  ;;  %v60_v41 = vld [vmem:[%s2304_s22 + $0x8] sm:$0xff]  ;;  %v71_v42 = vld [vmem:[%s2303_s26 + $0x50] sm:$0xff]  ;;  %v72_v43 = vld [vmem:[%s2303_s26 + $0x58] sm:$0xff] }
  0x12   :  { %1340 = vmatpush3.bf16.msra.mxu0 %v79_v20  ;;  %v328_v44 = vld [vmem:[%s2305_s29] sm:$0xff]  ;;  %v329_v45 = vld [vmem:[%s2305_s29 + $0x8] sm:$0xff]  ;;  %v1814_v46 = vpack.c.bf16 %v60_v41, %v59_v38  ;;  %v83_v47 = vpack.c.bf16 %v72_v43, %v71_v42  ;;  %v330_v51 = vld [vmem:[%s2305_s29 + $0x10] sm:$0xff] }
  0x13   :  { %1362 = vmatpush3.bf16.msra.mxu1 %v167_v9  ;;  %1341 = vmatprep.subr.bf16.mxu0 %v1592_v0  ;;  %v344_v48 = vpack.c.bf16 %v329_v45, %v328_v44  ;;  %v73_v49 = vld [vmem:[%s2303_s26 + $0x60] sm:$0xff]  ;;  %v74_v50 = vld [vmem:[%s2303_s26 + $0x68] sm:$0xff]  ;;  %v331_v52 = vld [vmem:[%s2305_s29 + $0x18] sm:$0xff] }
  0x14   :  { %1363 = vmatprep.subr.bf16.mxu1 %v1592_v0  ;;  %v84_v53 = vpack.c.bf16 %v74_v50, %v73_v49  ;;  %v345_v54 = vpack.c.bf16 %v331_v52, %v330_v51  ;;  %v75_v55 = vld [vmem:[%s2303_s26 + $0x70] sm:$0xff]  ;;  %v76_v56 = vld [vmem:[%s2303_s26 + $0x78] sm:$0xff]  ;;  %v332_v57 = vld [vmem:[%s2305_s29 + $0x20] sm:$0xff] }
  0x15   :  { %v333_v58 = vld [vmem:[%s2305_s29 + $0x28] sm:$0xff]  ;;  %v85_v59 = vpack.c.bf16 %v76_v56, %v75_v55  ;;  %v252_v61 = vld [vmem:[%s2306_s1] sm:$0xff]  ;;  %v334_v63 = vld [vmem:[%s2305_s29 + $0x30] sm:$0xff] }
  0x16   :  { %1342 = vmatpush3.bf16.msra.mxu0 %v80_v26  ;;  %v346_v60 = vpack.c.bf16 %v333_v58, %v332_v57  ;;  %v253_v62 = vld [vmem:[%s2306_s1 + $0x8] sm:$0xff]  ;;  %v335_v1 = vld [vmem:[%s2305_s29 + $0x38] sm:$0xff]  ;;  %v336_v4 = vld [vmem:[%s2305_s29 + $0x40] sm:$0xff] }
  0x17   :  { %1364 = vmatpush3.bf16.msra.mxu1 %v168_v12  ;;  %1343 = vmatprep.subr.bf16.mxu0 %v1592_v0  ;;  %v268_v2 = vpack.c.bf16 %v253_v62, %v252_v61  ;;  %v347_v3 = vpack.c.bf16 %v335_v1, %v334_v63  ;;  %v337_v5 = vld [vmem:[%s2305_s29 + $0x48] sm:$0xff]  ;;  %v338_v7 = vld [vmem:[%s2305_s29 + $0x50] sm:$0xff]  ;;  %v339_v8 = vld [vmem:[%s2305_s29 + $0x58] sm:$0xff] }
  0x18   :  { %1365 = vmatprep.subr.bf16.mxu1 %v1592_v0  ;;  %v348_v6 = vpack.c.bf16 %v337_v5, %v336_v4  ;;  %v349_v9 = vpack.c.bf16 %v339_v8, %v338_v7  ;;  %v340_v10 = vld [vmem:[%s2305_s29 + $0x60] sm:$0xff]  ;;  %v341_v11 = vld [vmem:[%s2305_s29 + $0x68] sm:$0xff]  ;;  %v342_v13 = vld [vmem:[%s2305_s29 + $0x70] sm:$0xff] }
  0x19   :  { %v350_v12 = vpack.c.bf16 %v341_v11, %v340_v10  ;;  %v343_v14 = vld [vmem:[%s2305_s29 + $0x78] sm:$0xff]  ;;  %v254_v16 = vld [vmem:[%s2306_s1 + $0x10] sm:$0xff]  ;;  %v256_v19 = vld [vmem:[%s2306_s1 + $0x20] sm:$0xff] }
  0x1a   :  { %1344 = vmatpush3.bf16.msra.mxu0 %v81_v32  ;;  %v351_v15 = vpack.c.bf16 %v343_v14, %v342_v13  ;;  %v255_v17 = vld [vmem:[%s2306_s1 + $0x18] sm:$0xff]  ;;  %v257_v20 = vld [vmem:[%s2306_s1 + $0x28] sm:$0xff]  ;;  %v260_v25 = vld [vmem:[%s2306_s1 + $0x40] sm:$0xff] }
  0x1b   :  { %1366 = vmatpush3.bf16.msra.mxu1 %v169_v21  ;;  %1345 = vmatprep.subr.bf16.mxu0 %v1592_v0  ;;  %v269_v18 = vpack.c.bf16 %v255_v17, %v254_v16  ;;  %v258_v21 = vld [vmem:[%s2306_s1 + $0x30] sm:$0xff]  ;;  %v270_v22 = vpack.c.bf16 %v257_v20, %v256_v19  ;;  %v259_v23 = vld [vmem:[%s2306_s1 + $0x38] sm:$0xff]  ;;  %v261_v26 = vld [vmem:[%s2306_s1 + $0x48] sm:$0xff]  ;;  %v26_v17 = vstv %s2279_s14 }
  0x1c   :  { %1367 = vmatprep.subr.bf16.mxu1 %v1592_v0  ;;  %v271_v24 = vpack.c.bf16 %v259_v23, %v258_v21  ;;  %v262_v28 = vld [vmem:[%s2306_s1 + $0x50] sm:$0xff]  ;;  %v263_v29 = vld [vmem:[%s2306_s1 + $0x58] sm:$0xff]  ;;  %v264_v31 = vld [vmem:[%s2306_s1 + $0x60] sm:$0xff]  ;;  %27 = vst [vmem:[#allocation2] sm:$0x1] %v26_v17 }
  0x1d   :  { %v273_v30 = vpack.c.bf16 %v263_v29, %v262_v28  ;;  %v265_v32 = vld [vmem:[%s2306_s1 + $0x68] sm:$0xff]  ;;  %v266_v34 = vld [vmem:[%s2306_s1 + $0x70] sm:$0xff]  ;;  %v267_v35 = vld [vmem:[%s2306_s1 + $0x78] sm:$0xff] }
  0x1e   :  { %1346 = vmatpush3.bf16.msra.mxu0 %v82_v39  ;;  %v406_v36 = vld [vmem:[%s2276_s13] sm:$0xff]  ;;  %v407_v37 = vld [vmem:[%s2276_s13 + $0x8] sm:$0xff]  ;;  %v275_v38 = vpack.c.bf16 %v267_v35, %v266_v34  ;;  %v408_v43 = vld [vmem:[%s2276_s13 + $0x10] sm:$0xff] }
  0x1f   :  { %1368 = vmatpush3.bf16.msra.mxu1 %v170_v27  ;;  %1347 = vmatprep.subr.bf16.mxu0 %v1592_v0  ;;  %v272_v27 = vpack.c.bf16 %v261_v26, %v260_v25  ;;  %v1510_v39 = vpack.c.bf16 %v407_v37, %v406_v36  ;;  %v511_v41 = vld [vmem:[%s2277_s3 + $0x8] sm:$0xff]  ;;  %v409_v44 = vld [vmem:[%s2276_s13 + $0x18] sm:$0xff]  ;;  %v512_v45 = vld [vmem:[%s2277_s3 + $0x10] sm:$0xff] }
  0x20   :  { %1369 = vmatprep.subr.bf16.mxu1 %v1592_v0  ;;  %v514_v50 = vld [vmem:[%s2277_s3 + $0x20] sm:$0xff]  ;;  %v515_v51 = vld [vmem:[%s2277_s3 + $0x28] sm:$0xff]  ;;  %v504_v8 = vld [vmem:[%s2278_s0 + $0x10] sm:$0xff] }
  0x21   :  { %v532_v52 = vpack.c.bf16 %v515_v51, %v514_v50  ;;  %v518_v56 = vld [vmem:[%s2277_s3 + $0x40] sm:$0xff]  ;;  %v519_v57 = vld [vmem:[%s2277_s3 + $0x48] sm:$0xff]  ;;  %v508_v14 = vld [vmem:[%s2278_s0 + $0x30] sm:$0xff] }
  0x22   :  { %1348 = vmatpush3.bf16.msra.mxu0 %v83_v47  ;;  %v1514_v47 = vpack.c.bf16 %v409_v44, %v408_v43  ;;  %v534_v58 = vpack.c.bf16 %v519_v57, %v518_v56  ;;  %v522_v62 = vld [vmem:[%s2277_s3 + $0x60] sm:$0xff]  ;;  %v523_v63 = vld [vmem:[%s2277_s3 + $0x68] sm:$0xff] }
  0x23   :  { %1370 = vmatpush3.bf16.msra.mxu1 %v171_v33  ;;  %1349 = vmatprep.subr.bf16.mxu0 %v1592_v0  ;;  %v274_v33 = vpack.c.bf16 %v265_v32, %v264_v31  ;;  %v536_v1 = vpack.c.bf16 %v523_v63, %v522_v62  ;;  %v502_v5 = vld [vmem:[%s2278_s0] sm:$0xff]  ;;  %v612_v32 = vld [vmem:[%s2281_s4 + $0x8] sm:$0xff] }
  0x24   :  { %1371 = vmatprep.subr.bf16.mxu1 %v1592_v0  ;;  %v506_v11 = vld [vmem:[%s2278_s0 + $0x20] sm:$0xff]  ;;  %v616_v44 = vld [vmem:[%s2281_s4 + $0x28] sm:$0xff] }
  0x25   :  { %v1238_v26 = vld [vmem:[%s2280_s12] ss:$0 sm:$0xff]  ;;  %v620_v51 = vld [vmem:[%s2281_s4 + $0x48] sm:$0xff] }
  0x26   :  { %1350 = vmatpush3.bf16.msra.mxu0 %v84_v53  ;;  %v516_v53 = vld [vmem:[%s2277_s3 + $0x30] sm:$0xff]  ;;  %v611_v31 = vld [vmem:[%s2281_s4] sm:$0xff]  ;;  %v624_v57 = vld [vmem:[%s2281_s4 + $0x68] sm:$0xff] }
  0x27   :  { %1372 = vmatpush3.bf16.msra.mxu1 %v172_v40  ;;  %1351 = vmatprep.subr.bf16.mxu0 %v1592_v0  ;;  %v510_v40 = vld [vmem:[%s2277_s3] sm:$0xff] }
  0x28   :  { %1397 = vmatprep.subr.bf16.mxu1 %v1592_v0  ;;  %v530_v42 = vpack.c.bf16 %v511_v41, %v510_v40  ;;  %v614_v40 = vld [vmem:[%s2281_s4 + $0x18] sm:$0xff]  ;;  %v615_v43 = vld [vmem:[%s2281_s4 + $0x20] sm:$0xff] }
  0x29   :  { %v619_v50 = vld [vmem:[%s2281_s4 + $0x40] sm:$0xff] }
  0x2a   :  { %1374 = vmatmul.mubr.bf16.vlgmr.msra.gmra.mrb[0].mxu1 %v1814_v46  ;;  %1352 = vmatpush3.bf16.msra.mxu0 %v85_v59  ;;  %v520_v59 = vld [vmem:[%s2277_s3 + $0x50] sm:$0xff]  ;;  %v623_v56 = vld [vmem:[%s2281_s4 + $0x60] sm:$0xff] }
  0x2b   :  { %1398 = vmatpush3.bf16.msra.mxu1 %v344_v48  ;;  %1413 = vmatprep.mubr.msk.bf16.mxu1 %vm1593_vm0, %v1592_v0  ;;  %v513_v48 = vld [vmem:[%s2277_s3 + $0x18] sm:$0xff]  ;;  %v1233_v62 = vld [vmem:[%s2282_s6] ss:$0 sm:$0xff] }
  0x2c   :  { %1399 = vmatprep.subr.bf16.mxu1 %v1592_v0  ;;  %1377 = vmatprep.subr.bf16.mxu0 %v1592_v0  ;;  %v531_v49 = vpack.c.bf16 %v513_v48, %v512_v45  ;;  %v629_v45 = vpack.c.bf16 %v616_v44, %v615_v43  ;;  %v618_v48 = vld [vmem:[%s2281_s4 + $0x38] sm:$0xff] }
  0x2d   :  { %1354 = vmatmul.mubr.bf16.vlgmr.msra.gmra.mrb[0].mxu0 %v1814_v46 }
  0x2e   :  { %1378 = vmatpush3.bf16.msra.mxu0 %v268_v2  ;;  %1393 = vmatprep.mubr.msk.bf16.mxu0 %vm1593_vm0, %v1592_v0  ;;  %v524_v2 = vld [vmem:[%s2277_s3 + $0x70] sm:$0xff] }
  0x2f   :  { %1400 = vmatpush3.bf16.msra.mxu1 %v345_v54  ;;  %1379 = vmatprep.subr.bf16.mxu0 %v1592_v0  ;;  %v517_v54 = vld [vmem:[%s2277_s3 + $0x38] sm:$0xff] }
  0x30   :  { %1401 = vmatprep.subr.bf16.mxu1 %v1592_v0  ;;  %v533_v55 = vpack.c.bf16 %v517_v54, %v516_v53  ;;  %v621_v53 = vld [vmem:[%s2281_s4 + $0x50] sm:$0xff]  ;;  %v622_v54 = vld [vmem:[%s2281_s4 + $0x58] sm:$0xff] }
  0x32   :  { %1380 = vmatpush3.bf16.msra.mxu0 %v269_v18 }
  0x33   :  { %1402 = vmatpush3.bf16.msra.mxu1 %v346_v60  ;;  %1381 = vmatprep.subr.bf16.mxu0 %v1592_v0  ;;  %v521_v60 = vld [vmem:[%s2277_s3 + $0x58] sm:$0xff] }
  0x34   :  { %1403 = vmatprep.subr.bf16.mxu1 %v1592_v0  ;;  %v535_v61 = vpack.c.bf16 %v521_v60, %v520_v59  ;;  %v625_v59 = vld [vmem:[%s2281_s4 + $0x70] sm:$0xff]  ;;  %v626_v60 = vld [vmem:[%s2281_s4 + $0x78] sm:$0xff] }
  0x36   :  { %1382 = vmatpush3.bf16.msra.mxu0 %v270_v22 }
  0x37   :  { %1404 = vmatpush3.bf16.msra.mxu1 %v347_v3  ;;  %1383 = vmatprep.subr.bf16.mxu0 %v1592_v0  ;;  %v525_v3 = vld [vmem:[%s2277_s3 + $0x78] sm:$0xff] }
  0x38   :  { %1405 = vmatprep.subr.bf16.mxu1 %v1592_v0  ;;  %v537_v4 = vpack.c.bf16 %v525_v3, %v524_v2 }
  0x3a   :  { %1384 = vmatpush3.bf16.msra.mxu0 %v271_v24 }
  0x3b   :  { %1406 = vmatpush3.bf16.msra.mxu1 %v348_v6  ;;  %1385 = vmatprep.subr.bf16.mxu0 %v1592_v0  ;;  %v503_v6 = vld [vmem:[%s2278_s0 + $0x8] sm:$0xff] }
  0x3c   :  { %1407 = vmatprep.subr.bf16.mxu1 %v1592_v0  ;;  %v526_v7 = vpack.c.bf16 %v503_v6, %v502_v5 }
  0x3e   :  { %1386 = vmatpush3.bf16.msra.mxu0 %v272_v27 }
  0x3f   :  { %1408 = vmatpush3.bf16.msra.mxu1 %v349_v9  ;;  %1387 = vmatprep.subr.bf16.mxu0 %v1592_v0  ;;  %v505_v9 = vld [vmem:[%s2278_s0 + $0x18] sm:$0xff] }
  0x40   :  { %1409 = vmatprep.subr.bf16.mxu1 %v1592_v0  ;;  %v527_v10 = vpack.c.bf16 %v505_v9, %v504_v8 }
  0x42   :  { %1388 = vmatpush3.bf16.msra.mxu0 %v273_v30 }
  0x43   :  { %1410 = vmatpush3.bf16.msra.mxu1 %v350_v12  ;;  %1389 = vmatprep.subr.bf16.mxu0 %v1592_v0  ;;  %v507_v12 = vld [vmem:[%s2278_s0 + $0x28] sm:$0xff] }
  0x44   :  { %1411 = vmatprep.subr.bf16.mxu1 %v1592_v0  ;;  %v528_v13 = vpack.c.bf16 %v507_v12, %v506_v11 }
  0x46   :  { %1390 = vmatpush3.bf16.msra.mxu0 %v274_v33 }
  0x47   :  { %1412 = vmatpush3.bf16.msra.mxu1 %v351_v15  ;;  %1391 = vmatprep.subr.bf16.mxu0 %v1592_v0  ;;  %v509_v15 = vld [vmem:[%s2278_s0 + $0x38] sm:$0xff] }
  0x48   :  { %1428 = vmatprep.subr.bf16.mxu1 %v530_v42  ;;  %v529_v16 = vpack.c.bf16 %v509_v15, %v508_v14 }
  0x4a   :  { %1414 = vmatmul.mubr.bf16.vlgmr.msra.gmra.mrb[4].mxu1 %v1814_v46  ;;  %1392 = vmatpush3.bf16.msra.mxu0 %v275_v38  ;;  %v627_v38 = vpack.c.bf16 %v612_v32, %v611_v31 }
  0x4b   :  { %1511 = vmatprep.subr.bf16.mxu0 %v1510_v39  ;;  %1429 = vmatpush3.bf16.msra.mxu1 %v530_v42 }
  0x4c   :  { %1430 = vmatprep.subr.bf16.mxu1 %v531_v49  ;;  %1444 = vmatprep.mubr.bf16.mxu1 %v526_v7 }
  0x4d   :  { %1394 = vmatmul.mubr.bf16.vlgmr.msra.gmra.mrb[4].mxu0 %v1814_v46 }
  0x4e   :  { %1513 = vmatpush3.bf16.msra.mxu0 %v1510_v39  ;;  %v613_v39 = vld [vmem:[%s2281_s4 + $0x10] sm:$0xff] }
  0x4f   :  { %1515 = vmatprep.subr.bf16.mxu0 %v1514_v47  ;;  %1431 = vmatpush3.bf16.msra.mxu1 %v531_v49  ;;  %v628_v42 = vpack.c.bf16 %v614_v40, %v613_v39 }
  0x50   :  { %1432 = vmatprep.subr.bf16.mxu1 %v532_v52 }
  0x52   :  { %1517 = vmatpush3.bf16.msra.mxu0 %v1514_v47  ;;  %v617_v47 = vld [vmem:[%s2281_s4 + $0x30] sm:$0xff] }
  0x53   :  { %1452 = vmatprep.subr.bf16.mxu0 %v1592_v0  ;;  %1433 = vmatpush3.bf16.msra.mxu1 %v532_v52  ;;  %v630_v49 = vpack.c.bf16 %v618_v48, %v617_v47  ;;  %v631_v52 = vpack.c.bf16 %v620_v51, %v619_v50 }
  0x54   :  { %1434 = vmatprep.subr.bf16.mxu1 %v533_v55 }
  0x57   :  { %1435 = vmatpush3.bf16.msra.mxu1 %v533_v55  ;;  %v632_v55 = vpack.c.bf16 %v622_v54, %v621_v53 }
  0x58   :  { %1436 = vmatprep.subr.bf16.mxu1 %v534_v58 }
  0x5b   :  { %1437 = vmatpush3.bf16.msra.mxu1 %v534_v58  ;;  %v633_v58 = vpack.c.bf16 %v624_v57, %v623_v56 }
  0x5c   :  { %1438 = vmatprep.subr.bf16.mxu1 %v535_v61 }
  0x5f   :  { %1439 = vmatpush3.bf16.msra.mxu1 %v535_v61  ;;  %v634_v61 = vpack.c.bf16 %v626_v60, %v625_v59 }
  0x60   :  { %1440 = vmatprep.subr.bf16.mxu1 %v536_v1 }
  0x63   :  { %1441 = vmatpush3.bf16.msra.mxu1 %v536_v1 }
  0x64   :  { %1442 = vmatprep.subr.bf16.mxu1 %v537_v4 }
  0x67   :  { %1443 = vmatpush3.bf16.msra.mxu1 %v537_v4 }
  0x6a   :  { %1445 = vmatmul.mubr.bf16.vlgmr.msra.gmra.mrb[8].mxu1 %v527_v10 }
  0x6b   :  { %1448 = vmatprep.mubr.bf16.mxu1 %v528_v13 }
  0x72   :  { %1449 = vmatmul.mubr.bf16.gmra.mrb[12].mxu1 %v529_v16 }
  0xfd   :  { %v2033_v18 = vpop.f32.mrb[0].mxu1 }
  0xfe   :  { %v1375_v19 = vpop.f32.mrb[1].mxu1 }
  0xff   :  { %v2035_v20 = vpop.f32.mrb[2].mxu1 }
 0x100   :  { %v1376_v21 = vpop.f32.mrb[3].mxu1  ;;  %v2037_v22 = vpop.f32.mrb[0].mxu0 }
 0x101   :  { %v1355_v23 = vpop.f32.mrb[1].mxu0  ;;  %v128_v63 = vadd.f32 %v1233_v62, %v2037_v22 }
 0x102   :  { %v2039_v24 = vpop.f32.mrb[2].mxu0 }
 0x103   :  { %v1356_v25 = vpop.f32.mrb[3].mxu0  ;;  %v131_v1 = vadd.f32 %v1233_v62, %v2039_v24  ;;  %v1234_v2 = vmul.f32 -1.442695, %v128_v63 }
 0x105   :  { %v1235_v3 = vmul.f32 -1.442695, %v131_v1  ;;  %1536 = vpow2.f32 %v1234_v2 }
 0x107   :  { %1538 = vpow2.f32 %v1235_v3 }
 0x10f   :  { %v1537_v4 = vpop.eup %1536 }
 0x110   :  { %v140_v6 = vadd.f32 1.0, %v1537_v4 }
 0x111   :  { %v1539_v5 = vpop.eup %1538 }
 0x112   :  { %v141_v7 = vadd.f32 1.0, %v1539_v5  ;;  %1540 = vrcp.f32 %v140_v6 }
 0x114   :  { %1542 = vrcp.f32 %v141_v7 }
 0x11c   :  { %v1541_v8 = vpop.eup %1540 }
 0x11d   :  { %v393_v27 = vpop.f32.mrb[4].mxu1  ;;  %147 = vst.msk [vmem:[%s2284_s15] sm:$0xff] %vm146_vm4, %v1541_v8 }
 0x11e   :  { %v394_v28 = vadd.f32 %v1238_v26, %v393_v27  ;;  %v1415_v29 = vpop.f32.mrb[5].mxu1  ;;  %v1543_v9 = vpop.eup %1542 }
 0x11f   :  { %v396_v30 = vpop.f32.mrb[6].mxu1  ;;  %148 = vst.msk [vmem:[%s2284_s15 + $0x8] sm:$0xff] %vm146_vm4, %v1543_v9 }
 0x120   :  { %vm400_vm1 = vcmp.ge.f32.partialorder %v394_v28, 0.0  ;;  %v402_v33 = vmul.f32 0.2, %v394_v28  ;;  %v397_v34 = vadd.f32 %v1238_v26, %v396_v30  ;;  %v1416_v35 = vpop.f32.mrb[7].mxu1  ;;  %v317_v10 = vpop.f32.mrb[4].mxu0 }
 0x121   :  { %v1395_v12 = vpop.f32.mrb[5].mxu0  ;;  %v1239_v30 = vld [vmem:[#allocation2] ss:$0 sm:$0xff] }
 0x122   :  { %vm401_vm3 = vcmp.ge.f32.partialorder %v397_v34, 0.0  ;;  %v403_v36 = vmul.f32 0.2, %v397_v34  ;;  %v404_v37 = vsel %vm400_vm1, %v394_v28, %v402_v33  ;;  %v320_v13 = vpop.f32.mrb[6].mxu0 }
 0x123   :  { %1425 = vmatprep.mubr.msk.f32.mxu0 %vm417_vm2, %v404_v37  ;;  %v1396_v15 = vpop.f32.mrb[7].mxu0 }
 0x124   :  { %v405_v41 = vsel %vm401_vm3, %v397_v34, %v403_v36 }
 0x125   :  { %1426 = vmatmul.mubr.msk.f32.vlgmr.msra.gmra.mrb[8].mxu0 %vm417_vm2, %v405_v41 }
 0x126   :  { %1453 = vmatpush3.bf16.msra.mxu0 %v627_v38  ;;  %1468 = vmatprep.mubr.msk.bf16.mxu0 %vm1593_vm0, %v1592_v0 }
 0x127   :  { %1454 = vmatprep.subr.bf16.mxu0 %v1592_v0 }
 0x12a   :  { %1455 = vmatpush3.bf16.msra.mxu0 %v628_v42 }
 0x12b   :  { %1456 = vmatprep.subr.bf16.mxu0 %v1592_v0 }
 0x12e   :  { %1457 = vmatpush3.bf16.msra.mxu0 %v629_v45 }
 0x12f   :  { %1458 = vmatprep.subr.bf16.mxu0 %v1592_v0 }
 0x132   :  { %1459 = vmatpush3.bf16.msra.mxu0 %v630_v49 }
 0x133   :  { %1460 = vmatprep.subr.bf16.mxu0 %v1592_v0 }
 0x136   :  { %1461 = vmatpush3.bf16.msra.mxu0 %v631_v52 }
 0x137   :  { %1462 = vmatprep.subr.bf16.mxu0 %v1592_v0 }
 0x13a   :  { %1463 = vmatpush3.bf16.msra.mxu0 %v632_v55 }
 0x13b   :  { %1464 = vmatprep.subr.bf16.mxu0 %v1592_v0 }
 0x13d   :  { %v1446_v19 = vpop.f32.mrb[8].mxu1 }
 0x13e   :  { %1465 = vmatpush3.bf16.msra.mxu0 %v633_v58  ;;  %v572_v21 = vpop.f32.mrb[9].mxu1  ;;  %v605_v41 = vmul.f32 0.17677669, %v1446_v19 }
 0x13f   :  { %1466 = vmatprep.subr.bf16.mxu0 %v1592_v0  ;;  %v603_v22 = vmul.f32 0.17677669, %v572_v21  ;;  %v1447_v23 = vpop.f32.mrb[10].mxu1 }
 0x140   :  { %v575_v24 = vpop.f32.mrb[11].mxu1  ;;  %v606_v43 = vmul.f32 0.17677669, %v1447_v23 }
 0x141   :  { %v604_v38 = vmul.f32 0.17677669, %v575_v24 }
 0x142   :  { %1467 = vmatpush3.bf16.msra.mxu0 %v634_v61 }
 0x145   :  { %1469 = vmatmul.mubr.bf16.vlgmr.msra.gmra.mrb[12].mxu0 %v1814_v46  ;;  %v1237_v46 = vld [vmem:[%s2283_s10] ss:$0 sm:$0xff]  ;;  %v1450_v25 = vpop.f32.mrb[12].mxu1 }
 0x146   :  { %v318_v11 = vadd.f32 %v1237_v46, %v317_v10  ;;  %v321_v14 = vadd.f32 %v1237_v46, %v320_v13  ;;  %1474 = vmatprep.mubr.msk.f32.mxu0 %vm417_vm2, %v603_v22  ;;  %v588_v26 = vpop.f32.mrb[13].mxu1  ;;  %v609_v42 = vmul.f32 0.17677669, %v1450_v25 }
 0x147   :  { %v607_v27 = vmul.f32 0.17677669, %v588_v26  ;;  %v1451_v28 = vpop.f32.mrb[14].mxu1 }
 0x148   :  { %1544 = vtanh.f32 %v318_v11  ;;  %v591_v29 = vpop.f32.mrb[15].mxu1  ;;  %v610_v44 = vmul.f32 0.17677669, %v1451_v28 }
 0x149   :  { %1546 = vtanh.f32 %v321_v14  ;;  %1482 = vmatprep.mubr.msk.f32.mxu1 %vm417_vm2, %v607_v27  ;;  %v608_v40 = vmul.f32 0.17677669, %v591_v29 }
 0x152   :  { %v1545_v16 = vpop.eup %1544 }
 0x153   :  { %v1547_v17 = vpop.eup %1546  ;;  %326 = vst.msk [vmem:[%s2285_s17] sm:$0xff] %vm146_vm4, %v1545_v16 }
 0x154   :  { %327 = vst.msk [vmem:[%s2285_s17 + $0x8] sm:$0xff] %vm146_vm4, %v1547_v17 }
 0x1f8   :  { %v1427_v31 = vpop.f32.mrb[8].mxu0 }
 0x1f9   :  { %v496_v32 = vadd.f32 %v1427_v31, %v1239_v30  ;;  %v490_v33 = vpop.f32.mrb[9].mxu0 }
 0x1fa   :  { %v491_v34 = vadd.f32 %v1239_v30, %v490_v33 }
 0x1fb   :  { %501 = vst.msk [vmem:[%s2286_s18 + $0x8] sm:$0xff] %vm499_vm5, %v496_v32 }
 0x1fc   :  { %500 = vst.msk [vmem:[%s2286_s18] sm:$0xff] %vm499_vm5, %v491_v34 }
 0x218   :  { %v669_v35 = vpop.f32.mrb[12].mxu0 }
 0x219   :  { %v1470_v36 = vpop.f32.mrb[13].mxu0  ;;  %1472 = vmatprep.subr.msk.mxu0 %vm417_vm2, %v669_v35 }
 0x21a   :  { %v672_v37 = vpop.f32.mrb[14].mxu0  ;;  %1473 = vmatpush3.xpose.msk.msra.mxu0 %vm417_vm2, %v669_v35 }
 0x21b   :  { %v1471_v39 = vpop.f32.mrb[15].mxu0  ;;  %1480 = vmatprep.subr.msk.mxu1 %vm417_vm2, %v672_v37 }
 0x21c   :  { %1481 = vmatpush3.xpose.msk.msra.mxu1 %vm417_vm2, %v672_v37  ;;  %v1594_v39 = vmov 0.0|0.0  }
 0x21d   :  { %1475 = vmatmul.mubr.msk.f32.vlgmr.msra.gmra.mrb[10].mxu0 %vm417_vm2, %v604_v38  ;;  %1518 = vmatprep.subr.bf16.mxu0 %v1594_v39 }
 0x21e   :  { %1477 = vmatprep.mubr.msk.f32.mxu0 %vm417_vm2, %v605_v41  ;;  %v974_v41 = vld [vmem:[%s2287_s2 + $0x8] sm:$0xff]  ;;  %1524 = vmatprep.subr.bf16.mxu1 %v1594_v39 }
 0x21f   :  { %1483 = vmatmul.mubr.msk.f32.vlgmr.msra.gmra.mrb[16].mxu1 %vm417_vm2, %v608_v40  ;;  %v973_v40 = vld [vmem:[%s2287_s2] sm:$0xff] }
 0x220   :  { %1485 = vmatprep.mubr.msk.f32.mxu1 %vm417_vm2, %v609_v42  ;;  %v975_v42 = vld [vmem:[%s2287_s2 + $0x10] sm:$0xff] }
 0x221   :  { %1478 = vmatmul.mubr.msk.f32.gmra.mrb[16].mxu0 %vm417_vm2, %v606_v43  ;;  %v1519_v43 = vpack.c.bf16 %v974_v41, %v973_v40 }
 0x222   :  { %1496 = vmatprep.mubr.msk.f32.mxu0 %vm1593_vm0, %v1592_v0 }
 0x223   :  { %1486 = vmatmul.mubr.msk.f32.gmra.mrb[18].mxu1 %vm417_vm2, %v610_v44  ;;  %v976_v44 = vld [vmem:[%s2287_s2 + $0x18] sm:$0xff]  ;;  %1520 = vmatpush3.bf16.msra.mxu0 %v1519_v43 }
 0x224   :  { %1507 = vmatprep.mubr.msk.f32.mxu1 %vm1593_vm0, %v1592_v0  ;;  %1521 = vmatprep.subr.bf16.mxu0 %v1594_v39 }
 0x2f0   :  { %v1476_v45 = vpop.f32.mrb[10].mxu0 }
 0x2f1   :  { %v757_v47 = vpop.f32.mrb[11].mxu0  ;;  %v880_v48 = vsel %vm876_vm6, %v1476_v45, -inf }
 0x2f2   :  { %881 = vmax.xlane.f32.xlu1 %v880_v48  ;;  %v877_v49 = vsel %vm876_vm6, %v757_v47, -inf  ;;  %v1484_v50 = vpop.f32.mrb[16].mxu1 }
 0x2f3   :  { %878 = vmax.xlane.f32.xlu0 %v877_v49  ;;  %v857_v51 = vpop.f32.mrb[17].mxu1  ;;  %v892_v54 = vsel %vm876_vm6, %v1484_v50, -inf  ;;  %v1522_v49 = vpack.c.bf16 %v976_v44, %v975_v42 }
 0x2f4   :  { %v1479_v52 = vpop.f32.mrb[16].mxu0  ;;  %v889_v55 = vsel %vm876_vm6, %v857_v51, -inf }
 0x2f5   :  { %v767_v53 = vpop.f32.mrb[17].mxu0  ;;  %v886_v60 = vsel %vm876_vm6, %v1479_v52, -inf  ;;  %1523 = vmatpush3.bf16.msra.mxu0 %v1522_v49 }
 0x2f6   :  { %893 = vmax.xlane.f32.xlu1 %v892_v54  ;;  %v1487_v56 = vpop.f32.mrb[18].mxu1  ;;  %v883_v58 = vsel %vm876_vm6, %v767_v53, -inf }
 0x2f7   :  { %890 = vmax.xlane.f32.xlu0 %v889_v55  ;;  %v867_v0 = vpop.f32.mrb[19].mxu1  ;;  %v898_v59 = vsel %vm876_vm6, %v1487_v56, -inf }
 0x2f8   :  { %v895_v57 = vsel %vm876_vm6, %v867_v0, -inf }
 0x2fa   :  { %896 = vmax.xlane.f32.xlu1 %v895_v57 }
 0x2fb   :  { %884 = vmax.xlane.f32.xlu0 %v883_v58 }
 0x2fe   :  { %899 = vmax.xlane.f32.xlu1 %v898_v59 }
 0x2ff   :  { %887 = vmax.xlane.f32.xlu0 %v886_v60 }
 0x37f   :  { %v882_v61 = vpop.xlane.xlu1 %881 }
 0x380   :  { %v902_v62 = vsub.f32 %v1476_v45, %v882_v61  ;;  %v879_v63 = vpop.xlane.xlu0 %878  ;;  %v977_v45 = vld [vmem:[%s2287_s2 + $0x20] sm:$0xff] }
 0x381   :  { %v901_v1 = vsub.f32 %v757_v47, %v879_v63  ;;  %v978_v47 = vld [vmem:[%s2287_s2 + $0x28] sm:$0xff]  ;;  %v979_v63 = vld [vmem:[%s2287_s2 + $0x30] sm:$0xff] }
 0x382   :  { %v911_v2 = vmul.f32 1.442695, %v902_v62  ;;  %v1525_v48 = vpack.c.bf16 %v978_v47, %v977_v45 }
 0x383   :  { %v909_v3 = vmul.f32 1.442695, %v901_v1  ;;  %v894_v4 = vpop.xlane.xlu1 %893  ;;  %v980_v1 = vld [vmem:[%s2287_s2 + $0x38] sm:$0xff] }
 0x384   :  { %1548 = vpow2.f32 %v911_v2  ;;  %v906_v5 = vsub.f32 %v1484_v50, %v894_v4  ;;  %v891_v6 = vpop.xlane.xlu0 %890  ;;  %1526 = vmatpush3.bf16.msra.mxu1 %v1525_v48 }
 0x385   :  { %v905_v7 = vsub.f32 %v857_v51, %v891_v6  ;;  %1550 = vpow2.f32 %v909_v3  ;;  %1527 = vmatprep.subr.bf16.mxu1 %v1594_v39  ;;  %v1528_v3 = vpack.c.bf16 %v980_v1, %v979_v63 }
 0x386   :  { %v919_v8 = vmul.f32 1.442695, %v906_v5 }
 0x387   :  { %v917_v46 = vmul.f32 1.442695, %v905_v7  ;;  %v897_v9 = vpop.xlane.xlu1 %896 }
 0x388   :  { %1552 = vpow2.f32 %v919_v8  ;;  %v907_v10 = vsub.f32 %v867_v0, %v897_v9  ;;  %v885_v11 = vpop.xlane.xlu0 %884  ;;  %1529 = vmatpush3.bf16.msra.mxu1 %v1528_v3 }
 0x389   :  { %v903_v12 = vsub.f32 %v767_v53, %v885_v11  ;;  %1554 = vpow2.f32 %v917_v46 }
 0x38a   :  { %v921_v13 = vmul.f32 1.442695, %v907_v10 }
 0x38b   :  { %v913_v14 = vmul.f32 1.442695, %v903_v12  ;;  %v900_v15 = vpop.xlane.xlu1 %899  ;;  %v1236_v12 = vld [vmem:[%s2289_s8] ss:$0 sm:$0xff] }
 0x38c   :  { %v908_v16 = vsub.f32 %v1487_v56, %v900_v15  ;;  %v888_v17 = vpop.xlane.xlu0 %887 }
 0x38d   :  { %1556 = vpow2.f32 %v913_v14  ;;  %v904_v19 = vsub.f32 %v1479_v52, %v888_v17  ;;  %v215_v14 = vadd.f32 %v1236_v12, %v2033_v18 }
 0x38e   :  { %v1549_v21 = vpop.eup %1548  ;;  %1558 = vpow2.f32 %v921_v13  ;;  %v923_v22 = vmul.f32 1.442695, %v908_v16  ;;  %v218_v13 = vadd.f32 %v1236_v12, %v2035_v20 }
 0x38f   :  { %v915_v23 = vmul.f32 1.442695, %v904_v19  ;;  %v928_v24 = vsel %vm876_vm6, %v1549_v21, 0.0  ;;  %v2159_v25 = vpop.eup %1550  ;;  %v221_v16 = vmul.f32 %v215_v14, %v215_v14 }
 0x390   :  { %929 = vadd.xlane.f32.xlu0 %v928_v24  ;;  %v925_v27 = vsel %vm876_vm6, %v2159_v25, 0.0  ;;  %v222_v15 = vmul.f32 %v218_v13, %v218_v13 }
 0x391   :  { %1560 = vpow2.f32 %v915_v23  ;;  %v224_v19 = vsel %vm223_vm7, %v221_v16, 0.0 }
 0x392   :  { %v1553_v26 = vpop.eup %1552  ;;  %1562 = vpow2.f32 %v923_v22  ;;  %v227_v17 = vsel %vm223_vm7, %v222_v15, 0.0 }
 0x393   :  { %v940_v28 = vsel %vm876_vm6, %v1553_v26, 0.0  ;;  %v2164_v29 = vpop.eup %1554 }
 0x394   :  { %926 = vadd.xlane.f32.xlu0 %v925_v27  ;;  %941 = vadd.xlane.f32.xlu1 %v940_v28  ;;  %v937_v31 = vsel %vm876_vm6, %v2164_v29, 0.0 }
 0x397   :  { %v2166_v30 = vpop.eup %1556 }
 0x398   :  { %v2170_v32 = vpop.eup %1558  ;;  %938 = vadd.xlane.f32.xlu1 %v937_v31  ;;  %v931_v33 = vsel %vm876_vm6, %v2166_v30, 0.0 }
 0x399   :  { %932 = vadd.xlane.f32.xlu0 %v931_v33  ;;  %v943_v35 = vsel %vm876_vm6, %v2170_v32, 0.0 }
 0x39b   :  { %v2174_v34 = vpop.eup %1560 }
 0x39c   :  { %v2178_v36 = vpop.eup %1562  ;;  %944 = vadd.xlane.f32.xlu1 %v943_v35  ;;  %v934_v37 = vsel %vm876_vm6, %v2174_v34, 0.0  ;;  %v1595_v35 = vmov 3  }
 0x39d   :  { %935 = vadd.xlane.f32.xlu0 %v934_v37  ;;  %v946_v38 = vsel %vm876_vm6, %v2178_v36, 0.0 }
 0x3a0   :  { %947 = vadd.xlane.f32.xlu1 %v946_v38 }
 0x41d   :  { %v930_v50 = vpop.xlane.xlu0 %929 }
 0x41e   :  { %1564 = vrcp.f32 %v930_v50 }
 0x421   :  { %v927_v51 = vpop.xlane.xlu0 %926  ;;  %v942_v52 = vpop.xlane.xlu1 %941 }
 0x422   :  { %1566 = vrcp.f32 %v927_v51 }
 0x423   :  { %1568 = vrcp.f32 %v942_v52 }
 0x425   :  { %v939_v53 = vpop.xlane.xlu1 %938 }
 0x426   :  { %1570 = vrcp.f32 %v939_v53  ;;  %v933_v54 = vpop.xlane.xlu0 %932 }
 0x427   :  { %1572 = vrcp.f32 %v933_v54 }
 0x428   :  { %v1565_v55 = vpop.eup %1564 }
 0x429   :  { %v945_v56 = vpop.xlane.xlu1 %944  ;;  %v952_v0 = vmul.f32 %v1565_v55, %v1549_v21 }
 0x42a   :  { %1574 = vrcp.f32 %v945_v56  ;;  %v936_v57 = vpop.xlane.xlu0 %935 }
 0x42b   :  { %1576 = vrcp.f32 %v936_v57  ;;  %966 = vst.msk [vmem:[%s2288_s19 + $0x8] sm:$0xff] %vm876_vm6, %v952_v0 }
 0x42c   :  { %v1567_v58 = vpop.eup %1566 }
 0x42d   :  { %v1569_v59 = vpop.eup %1568  ;;  %v948_v60 = vpop.xlane.xlu1 %947  ;;  %v950_v61 = vmul.f32 %v1567_v58, %v2159_v25 }
 0x42e   :  { %1578 = vrcp.f32 %v948_v60  ;;  %v960_v62 = vmul.f32 %v1569_v59, %v1553_v26 }
 0x42f   :  { %981 = vxpose.xlu0.b32.start [1/4] (short) (narrow) %v950_v61, 8  ;;  %965 = vst.msk [vmem:[%s2288_s19] sm:$0xff] %vm876_vm6, %v950_v61 }
 0x430   :  { %v1571_v2 = vpop.eup %1570  ;;  %970 = vst.msk [vmem:[%s2288_s19 + $0x28] sm:$0xff] %vm876_vm6, %v960_v62 }
 0x431   :  { %v1573_v4 = vpop.eup %1572  ;;  %v958_v5 = vmul.f32 %v1571_v2, %v2164_v29 }
 0x432   :  { %v954_v6 = vmul.f32 %v1573_v4, %v2166_v30 }
 0x433   :  { %982 = vxpose.xlu0.b32.cont [2/4] (short) (narrow) %v952_v0, 8  ;;  %1086 = vxpose.xlu1.b32.start [1/4] (short) (narrow) %v958_v5, 8  ;;  %969 = vst.msk [vmem:[%s2288_s19 + $0x20] sm:$0xff] %vm876_vm6, %v958_v5 }
 0x434   :  { %v1575_v7 = vpop.eup %1574  ;;  %967 = vst.msk [vmem:[%s2288_s19 + $0x10] sm:$0xff] %vm876_vm6, %v954_v6 }
 0x435   :  { %v1577_v8 = vpop.eup %1576  ;;  %v962_v46 = vmul.f32 %v1575_v7, %v2170_v32 }
 0x436   :  { %v956_v9 = vmul.f32 %v1577_v8, %v2174_v34 }
 0x437   :  { %983 = vxpose.xlu0.b32.cont [3/4] (short) (narrow) %v954_v6, 8  ;;  %1087 = vxpose.xlu1.b32.cont [2/4] (short) (narrow) %v960_v62, 8  ;;  %971 = vst.msk [vmem:[%s2288_s19 + $0x30] sm:$0xff] %vm876_vm6, %v962_v46 }
 0x438   :  { %v1579_v10 = vpop.eup %1578  ;;  %968 = vst.msk [vmem:[%s2288_s19 + $0x18] sm:$0xff] %vm876_vm6, %v956_v9 }
 0x439   :  { %v964_v11 = vmul.f32 %v1579_v10, %v2178_v36 }
 0x43b   :  { %984 = vxpose.xlu0.b32.end [4/4] (short) (narrow) %v956_v9, 8  ;;  %1088 = vxpose.xlu1.b32.cont [3/4] (short) (narrow) %v962_v46, 8  ;;  %972 = vst.msk [vmem:[%s2288_s19 + $0x38] sm:$0xff] %vm876_vm6, %v964_v11 }
 0x43f   :  { %1089 = vxpose.xlu1.b32.end [4/4] (short) (narrow) %v964_v11, 8 }
 0x45d   :  { %1535 = vset.pattern.permute.xlu1 %v1595_v35 }
 0x464   :  { %1534 = vset.pattern.permute.xlu0 %v1595_v35 }
 0x466   :  { %228 = vadd.xlane.f32.xlu1 %v227_v17 }
 0x468   :  { %225 = vadd.xlane.f32.xlu0 %v224_v19 }
 0x4af   :  { %v997_v21 = vpop.trf.xlu0 }
 0x4b0   :  { %1497 = vmatmul.mubr.msk.f32.vlgmr.msra.gmra.mrb[18].mxu0 %vm417_vm2, %v997_v21 }
 0x4b3   :  { %v1102_v22 = vpop.trf.xlu1 }
 0x4b4   :  { %1508 = vmatmul.mubr.msk.f32.vlgmr.msra.gmra.mrb[20].mxu1 %vm417_vm2, %v1102_v22 }
 0x4f3   :  { %v229_v23 = vpop.xlane.xlu1 %228 }
 0x4f4   :  { %1580 = vrsqrt.f32 %v229_v23  ;;  %vm239_vm8 = vcmp.eq.f32.partialorder %v229_v23, inf  ;;  %v242_v26 = vand.u32 2147483648, %v229_v23  ;;  %vm241_vm9 = vcmp.eq.f32.partialorder %v229_v23, 0.0 }
 0x4f5   :  { %v226_v20 = vpop.xlane.xlu0 %225 }
 0x4f6   :  { %1582 = vrsqrt.f32 %v226_v20  ;;  %vm232_vm10 = vcmp.eq.f32.partialorder %v226_v20, inf  ;;  %v235_v30 = vand.u32 2147483648, %v226_v20  ;;  %vm234_vm11 = vcmp.eq.f32.partialorder %v226_v20, 0.0 }
 0x4fe   :  { %v1581_v18 = vpop.eup %1580 }
 0x4ff   :  { %v238_v24 = vmul.f32 %v1581_v18, %v229_v23 }
 0x500   :  { %v1583_v25 = vpop.eup %1582 }
 0x501   :  { %v240_v27 = vsel %vm239_vm8, %v229_v23, %v238_v24  ;;  %v231_v28 = vmul.f32 %v1583_v25, %v226_v20 }
 0x502   :  { %v243_v29 = vsel %vm241_vm9, %v242_v26, %v240_v27 }
 0x503   :  { %v245_v31 = vmax.f32 %v243_v29, 1e-12  ;;  %v233_v32 = vsel %vm232_vm10, %v226_v20, %v231_v28 }
 0x504   :  { %v236_v33 = vsel %vm234_vm11, %v235_v30, %v233_v32 }
 0x505   :  { %1584 = vrcp.f32 %v245_v31  ;;  %v244_v34 = vmax.f32 %v236_v33, 1e-12 }
 0x507   :  { %1586 = vrcp.f32 %v244_v34 }
 0x50f   :  { %v1585_v36 = vpop.eup %1584 }
 0x510   :  { %v249_v37 = vmul.f32 %v1585_v36, %v218_v13 }
 0x511   :  { %v1587_v38 = vpop.eup %1586 }
 0x512   :  { %251 = vst.msk [vmem:[%s2290_s16 + $0x8] sm:$0xff] %vm223_vm7, %v249_v37  ;;  %v247_v39 = vmul.f32 %v1587_v38, %v215_v14 }
 0x514   :  { %250 = vst.msk [vmem:[%s2290_s16] sm:$0xff] %vm223_vm7, %v247_v39 }
 0x583   :  { %v1082_v40 = vpop.f32.mrb[18].mxu0 }
 0x584   :  { %v1191_v41 = vadd.f32 1.0, %v1082_v40  ;;  %v1498_v42 = vpop.f32.mrb[19].mxu0 }
 0x586   :  { %1195 = vperm.xlu0 %1534, %v1191_v41  }
 0x587   :  { %v1187_v43 = vpop.f32.mrb[20].mxu1 }
 0x588   :  { %v1192_v44 = vadd.f32 1.0, %v1187_v43  ;;  %v1509_v45 = vpop.f32.mrb[21].mxu1 }
 0x58a   :  { %1200 = vperm.xlu1 %1535, %v1192_v44  }
 0x605   :  { %v1196_v47 = vpop.permute.xlu0 %1195 }
 0x606   :  { %1588 = vrcp.f32 %v1196_v47 }
 0x609   :  { %v1201_v48 = vpop.permute.xlu1 %1200 }
 0x60a   :  { %1590 = vrcp.f32 %v1201_v48 }
 0x610   :  { %v1589_v49 = vpop.eup %1588 }
 0x611   :  { %v1204_v50 = vmul.f32 %v1589_v49, %v1082_v40 }
 0x613   :  { %1207 = vst.msk [vmem:[%s2291_s20] sm:$0xff] %vm146_vm4, %v1204_v50 }
 0x614   :  { %v1591_v51 = vpop.eup %1590 }
 0x615   :  { %v1206_v52 = vmul.f32 %v1591_v51, %v1187_v43 }
 0x617   :  { %1208 = vst.msk [vmem:[%s2291_s20 + $0x8] sm:$0xff] %vm146_vm4, %v1206_v52 }

</bundles_post_ra>
